<compile_context>
chip_gen: v7x
topology: tpu7x:2x2x1
jax: 0.10.0
libtpu: 0.0.40
codegen_flags: <defaults>
</compile_context>

<pallas_src>
import functools

import jax
import jax.numpy as jnp
import numpy as np
from jax.experimental import pallas as pl
from jax.experimental.pallas import tpu as pltpu

LANE = 128     # channel padding target (vreg lane width)
SLOPE = 0.2    # LeakyReLU negative slope (nl_layer)


# ----------------------------- Pallas kernels ------------------------------ #

def _conv_lrelu_kernel(xs_ref, w_ref, b_ref, o_ref, *, th, ow, slope):
    """One row-tile of a Conv(k4,s2,p1): expressed as a k2/s1 conv over the
    space-to-depth input; 4 taps gathered in-kernel, fused bias + LeakyReLU.
    Output block is lane-dense (th*ow, 128) bf16."""
    r0 = pl.program_id(1) * th
    acc = None
    for di in range(2):
        for dj in range(2):
            xs = xs_ref[0, pl.ds(r0 + di, th), pl.ds(dj, ow), :]    # (th, ow, C4) bf16
            part = jnp.dot(xs.reshape(th * ow, xs.shape[-1]), w_ref[2 * di + dj],
                           preferred_element_type=jnp.float32)
            acc = part if acc is None else acc + part
    acc = acc + b_ref[...]
    acc = jnp.maximum(acc, slope * acc)                              # LeakyReLU (1 VPU op)
    o_ref[...] = acc.astype(o_ref.dtype)


def _conv_pool_fc_kernel(xs_ref, w_ref, b_ref, fcw_ref, fcb_ref, o_ref,
                         *, oh, ow, slope):
    """Last conv layer fused with AvgPool2d(full 8x8 map) + Linear head(s).
    FC is applied per row then averaged (linear, so identical to pool-then-FC);
    avoids an M=1 matmul. Result broadcast to an (8,128)-dense output block."""
    acc = None
    for di in range(2):
        for dj in range(2):
            xs = xs_ref[0, pl.ds(di, oh), pl.ds(dj, ow), :]          # (oh, ow, C4) bf16
            part = jnp.dot(xs.reshape(oh * ow, xs.shape[-1]), w_ref[2 * di + dj],
                           preferred_element_type=jnp.float32)
            acc = part if acc is None else acc + part
    acc = acc + b_ref[...]
    acc = jnp.maximum(acc, slope * acc)                              # (oh*ow, Cp)
    head = jnp.dot(acc, fcw_ref[...], preferred_element_type=jnp.float32)
    out = jnp.sum(head, axis=0, keepdims=True) * (1.0 / (oh * ow)) + fcb_ref[...]
    o_ref[0] = jnp.broadcast_to(out, (8, out.shape[-1])).astype(o_ref.dtype)


# --------------------------- glue / param packing --------------------------- #

def _space_to_depth2(x):
    """(N,H,W,C) with even H,W -> (N,H/2,W/2,4C); channel order (pi, pj, c)."""
    n, h, w, c = x.shape
    x = x.reshape(n, h // 2, 2, w // 2, 2, c)
    x = jnp.transpose(x, (0, 1, 3, 2, 4, 5))
    return x.reshape(n, h // 2, w // 2, 4 * c)


def _prep_activation(x_nhwc):
    """Zero-pad spatially by 1 and fold the stride-2 factor into channels (bf16)."""
    xp = jnp.pad(x_nhwc, ((0, 0), (1, 1), (1, 1), (0, 0)))
    return _space_to_depth2(xp).astype(jnp.bfloat16)


def _prep_conv_params(w, b, cin_pad, cout_pad):
    """(4,4,cin,cout) conv weight -> 4 taps (4*cin_pad, cout_pad) bf16 whose row
    order (pi, pj, ci) matches the space-to-depth channel order; zero channel
    padding keeps padded outputs exactly zero through bias + LeakyReLU."""
    kh, kw, cin, cout = w.shape
    wp = jnp.zeros((kh, kw, cin_pad, cout_pad), jnp.float32)
    wp = wp.at[:, :, :cin, :cout].set(w.astype(jnp.float32))
    wp = wp.reshape(2, 2, 2, 2, cin_pad, cout_pad)        # (di, pi, dj, pj, ci, co)
    wp = jnp.transpose(wp, (0, 2, 1, 3, 4, 5))            # (di, dj, pi, pj, ci, co)
    w_taps = wp.reshape(4, 4 * cin_pad, cout_pad).astype(jnp.bfloat16)
    bp = jnp.zeros((1, cout_pad), jnp.float32).at[0, :cout].set(b.astype(jnp.float32))
    return w_taps, bp


def _prep_fc_params(heads, cin_real, cin_pad, out_pad):
    """Concatenate FC head(s) (vaeLike == two heads sharing pooled features) and
    zero-pad to a lane-dense (cin_pad, out_pad) matmul."""
    w_cat = jnp.concatenate([w for (w, _) in heads], axis=1).astype(jnp.float32)
    b_cat = jnp.concatenate([b for (_, b) in heads], axis=0).astype(jnp.float32)
    n_out = w_cat.shape[1]
    fcw = jnp.zeros((cin_pad, out_pad), jnp.float32).at[:cin_real, :n_out].set(w_cat)
    fcb = jnp.zeros((1, out_pad), jnp.float32).at[0, :n_out].set(b_cat)
    return fcw, fcb


def prepare_params(convs, fc_heads, *, lane_pad=LANE):
    """One-time packing of module params into kernel-ready padded / bf16 form."""
    prepped = []
    for li, (w, b) in enumerate(convs):
        cin_pad = w.shape[2] if li == 0 else lane_pad     # later inputs are lane-padded
        prepped.append(_prep_conv_params(w, b, cin_pad, lane_pad))
    c_last = convs[-1][0].shape[3]
    fcw, fcb = _prep_fc_params(fc_heads, c_last, lane_pad, lane_pad)
    return tuple(prepped), fcw, fcb


# ------------------------------ layer wrappers ------------------------------ #

def _pick_row_tile(oh, ow, coutp, vmem_budget=2 * 1024 * 1024):
    """Row-tile height bounded by a VMEM budget (f32 acc + double-buffered bf16
    output tile), preferring >=2 row blocks so both TCs get work on v7x."""
    bytes_per_row = ow * coutp * (4 + 2 * 2)
    max_rows = max(1, vmem_budget // bytes_per_row)
    th = 1
    for cand in range(min(oh, max_rows), 0, -1):
        if oh % cand == 0:
            th = cand
            break
    if th == oh and oh >= 16 and oh % 2 == 0:
        th = oh // 2
    return th


def conv_lrelu_layer(xs2d, w_taps, bp, *, slope=SLOPE):
    """Conv(k4,s2,p1)+LeakyReLU. xs2d: (N, OH+1, OW+1, 4*Cin_pad) bf16 (padded,
    space-to-depth). Returns (N, OH, OW, LANE) bf16 (lane-padded channels)."""
    n, hh, wh, c4 = xs2d.shape
    oh, ow = hh - 1, wh - 1
    coutp = w_taps.shape[-1]
    th = _pick_row_tile(oh, ow, coutp)
    n_rb = oh // th

    out = pl.pallas_call(
        functools.partial(_conv_lrelu_kernel, th=th, ow=ow, slope=slope),
        out_shape=jax.ShapeDtypeStruct((n * oh * ow, coutp), jnp.bfloat16),
        grid=(n, n_rb),
        in_specs=[
            pl.BlockSpec((1, hh, wh, c4), lambda i, j: (i, 0, 0, 0)),
            pl.BlockSpec((4, c4, coutp), lambda i, j: (0, 0, 0)),
            pl.BlockSpec((1, coutp), lambda i, j: (0, 0)),
        ],
        out_specs=pl.BlockSpec((th * ow, coutp), lambda i, j: (i * n_rb + j, 0)),
        compiler_params=pltpu.CompilerParams(
            dimension_semantics=("parallel", "parallel")),
    )(xs2d, w_taps, bp)
    return out.reshape(n, oh, ow, coutp)


def conv_pool_fc_layer(xs2d, w_taps, bp, fcw, fcb, *, slope=SLOPE):
    """Last Conv+LReLU fused with AvgPool2d(8) + Linear. Returns (N, LANE) f32;
    real head outputs live in the leading columns."""
    n, hh, wh, c4 = xs2d.shape
    oh, ow = hh - 1, wh - 1
    coutp = w_taps.shape[-1]
    outp = fcw.shape[-1]

    out = pl.pallas_call(
        functools.partial(_conv_pool_fc_kernel, oh=oh, ow=ow, slope=slope),
        out_shape=jax.ShapeDtypeStruct((n, 8, outp), jnp.float32),
        grid=(n,),
        in_specs=[
            pl.BlockSpec((1, hh, wh, c4), lambda i: (i, 0, 0, 0)),
            pl.BlockSpec((4, c4, coutp), lambda i: (0, 0, 0)),
            pl.BlockSpec((1, coutp), lambda i: (0, 0)),
            pl.BlockSpec((coutp, outp), lambda i: (0, 0)),
            pl.BlockSpec((1, outp), lambda i: (0, 0)),
        ],
        out_specs=pl.BlockSpec((1, 8, outp), lambda i: (i, 0, 0)),
        compiler_params=pltpu.CompilerParams(dimension_semantics=("parallel",)),
    )(xs2d, w_taps, bp, fcw, fcb)
    return out[:, 0, :]


# ----------------------------- model definition ----------------------------- #

def init_e_nlayers_params(key, input_nc, output_nc=1, ndf=8, n_layers=3,
                          vae_like=False):
    """Deterministic synthetic params matching the PyTorch module's shapes."""
    dims = [input_nc, ndf]
    nf_mult = 1
    for n in range(1, n_layers):
        nf_mult = min(2 ** n, 4)
        dims.append(ndf * nf_mult)
    keys = jax.random.split(key, 2 * n_layers + 4)
    convs = []
    for li, (cin, cout) in enumerate(zip(dims[:-1], dims[1:])):
        w = 0.05 * jax.random.normal(keys[2 * li], (4, 4, cin, cout), jnp.float32)
        b = 0.05 * jax.random.normal(keys[2 * li + 1], (cout,), jnp.float32)
        convs.append((w, b))
    heads = [(0.05 * jax.random.normal(keys[-4], (dims[-1], output_nc), jnp.float32),
              0.05 * jax.random.normal(keys[-3], (output_nc,), jnp.float32))]
    if vae_like:
        heads.append((0.05 * jax.random.normal(keys[-2], (dims[-1], output_nc), jnp.float32),
                      0.05 * jax.random.normal(keys[-1], (output_nc,), jnp.float32)))
    return convs, heads


def e_nlayers_forward(x_nchw, conv_params, fcw, fcb):
    """E_NLayers.forward (Pallas path). Returns the lane-padded (N, LANE) head
    output; slice the leading output_nc (or 2*output_nc if vaeLike) columns."""
    x = jnp.transpose(x_nchw, (0, 2, 3, 1)).astype(jnp.float32)   # NCHW -> NHWC
    n, h, w, _ = x.shape
    n_layers = len(conv_params)
    assert h == w == (8 << n_layers), \
        "E_NLayers' AvgPool2d(8)+Linear require a 64x64 input (8x8 pre-pool map)."
    xs = _prep_activation(x)                                      # (N, h/2+1, w/2+1, 4*Cin)
    for (w_taps, bp) in conv_params[:-1]:
        feat = conv_lrelu_layer(xs, w_taps, bp)                   # (N, OH, OW, LANE) bf16
        xs = _prep_activation(feat)
    w_taps, bp = conv_params[-1]
    return conv_pool_fc_layer(xs, w_taps, bp, fcw, fcb)           # (N, LANE) f32


# Pure-JAX f32 reference for the correctness check (not the Pallas path).
def _ref_forward(x_nchw, convs, fc_heads):
    x = jnp.transpose(x_nchw, (0, 2, 3, 1)).astype(jnp.float32)
    for (w, b) in convs:
        x = jax.lax.conv_general_dilated(
            x, w, window_strides=(2, 2), padding=((1, 1), (1, 1)),
            dimension_numbers=("NHWC", "HWIO", "NHWC")) + b
        x = jnp.where(x > 0, x, SLOPE * x)
    pooled = jnp.mean(x, axis=(1, 2))
    return jnp.concatenate([pooled @ w + b for (w, b) in fc_heads], axis=1)


# ---------------------------------- main ------------------------------------ #

if __name__ == "__main__":
    key = jax.random.PRNGKey(0)
    k_params, k_x = jax.random.split(key)

    batch, input_nc, ndf, output_nc = 2, 3, 8, 1
    H = W = 64  # required by AvgPool2d(8) + Linear(ndf*4, output_nc)

    convs, fc_heads = init_e_nlayers_params(k_params, input_nc, output_nc=output_nc,
                                            ndf=ndf, n_layers=3, vae_like=False)
    x = jax.random.normal(k_x, (batch, input_nc, H, W), jnp.float32)

    conv_p, fcw_p, fcb_p = prepare_params(convs, fc_heads)
    fwd = jax.jit(e_nlayers_forward)
    out_pad = jax.block_until_ready(fwd(x, conv_p, fcw_p, fcb_p))

    n_out = sum(wb[0].shape[1] for wb in fc_heads)
    out = np.asarray(out_pad)[:, :n_out]
    ref = np.asarray(jax.block_until_ready(_ref_forward(x, convs, fc_heads)))

    assert out.shape == (batch, output_nc)
    # bf16 MXU operands + bf16 inter-layer activations vs. an f32 reference.
    np.testing.assert_allclose(out, ref, rtol=5e-2, atol=1e-2)
    # Zero-padded head columns must stay exactly zero.
    np.testing.assert_array_equal(np.asarray(out_pad)[:, n_out:], 0.0)

    print("KERNEL_OK")
</pallas_src>

<mosaic_0001>
module attributes {stable_mosaic.version = 11 : i64} {
  func.func @_conv_lrelu_kernel(%arg0: i32, %arg1: i32, %arg2: memref<1x33x33x12xbf16, #tpu.memory_space<vmem>>, %arg3: memref<4x12x128xbf16, #tpu.memory_space<vmem>>, %arg4: memref<1x128xf32, #tpu.memory_space<vmem>>, %arg5: memref<512x128xbf16, #tpu.memory_space<vmem>>) attributes {dimension_semantics = [#tpu.dimension_semantics<parallel>, #tpu.dimension_semantics<parallel>], iteration_bounds = array<i64: 2, 2>, scalar_prefetch = 0 : i64, scratch_operands = 0 : i64, tpu.core_type = #tpu.core_type<tc>, window_params = [{transform_indices = @transform_0, window_bounds = array<i64: 1, 33, 33, 12>}, {pipeline_mode = #tpu.pipeline_mode<synchronous>, transform_indices = @transform_1, window_bounds = array<i64: 4, 12, 128>}, {pipeline_mode = #tpu.pipeline_mode<synchronous>, transform_indices = @transform_2, window_bounds = array<i64: 1, 128>}, {transform_indices = @transform_3, window_bounds = array<i64: 512, 128>}]} {
    %c16_i32 = arith.constant 16 : i32
    %0 = arith.muli %arg1, %c16_i32 : i32
    %c0_i32 = arith.constant 0 : i32
    %1 = arith.addi %0, %c0_i32 : i32
    %c0 = arith.constant 0 : index
    %2 = arith.index_cast %1 : i32 to index
    %c0_0 = arith.constant 0 : index
    %c0_1 = arith.constant 0 : index
    %3 = vector.load %arg2[%c0, %2, %c0_0, %c0_1] : memref<1x33x33x12xbf16, #tpu.memory_space<vmem>>, vector<1x16x32x12xbf16>
    %4 = vector.shape_cast %3 : vector<1x16x32x12xbf16> to vector<16x32x12xbf16>
    %5 = vector.shape_cast %4 : vector<16x32x12xbf16> to vector<512x12xbf16>
    %c0_2 = arith.constant 0 : index
    %c0_3 = arith.constant 0 : index
    %c0_4 = arith.constant 0 : index
    %6 = vector.load %arg3[%c0_2, %c0_3, %c0_4] : memref<4x12x128xbf16, #tpu.memory_space<vmem>>, vector<1x12x128xbf16>
    %7 = vector.shape_cast %6 : vector<1x12x128xbf16> to vector<12x128xbf16>
    %cst = arith.constant dense<0.000000e+00> : vector<512x128xf32>
    %8 = tpu.matmul %5, %7, %cst {dimension_numbers = #tpu.dot_dimension_numbers<[1], [0], [0], [1], [0, 0, 1, 1], [], []>} : vector<512x12xbf16>, vector<12x128xbf16>, vector<512x128xf32> -> vector<512x128xf32>
    %c0_i32_5 = arith.constant 0 : i32
    %9 = arith.addi %0, %c0_i32_5 : i32
    %c0_6 = arith.constant 0 : index
    %10 = arith.index_cast %9 : i32 to index
    %c1 = arith.constant 1 : index
    %c0_7 = arith.constant 0 : index
    %11 = vector.load %arg2[%c0_6, %10, %c1, %c0_7] : memref<1x33x33x12xbf16, #tpu.memory_space<vmem>>, vector<1x16x32x12xbf16>
    %12 = vector.shape_cast %11 : vector<1x16x32x12xbf16> to vector<16x32x12xbf16>
    %13 = vector.shape_cast %12 : vector<16x32x12xbf16> to vector<512x12xbf16>
    %c1_8 = arith.constant 1 : index
    %c0_9 = arith.constant 0 : index
    %c0_10 = arith.constant 0 : index
    %14 = vector.load %arg3[%c1_8, %c0_9, %c0_10] : memref<4x12x128xbf16, #tpu.memory_space<vmem>>, vector<1x12x128xbf16>
    %15 = vector.shape_cast %14 : vector<1x12x128xbf16> to vector<12x128xbf16>
    %cst_11 = arith.constant dense<0.000000e+00> : vector<512x128xf32>
    %16 = tpu.matmul %13, %15, %cst_11 {dimension_numbers = #tpu.dot_dimension_numbers<[1], [0], [0], [1], [0, 0, 1, 1], [], []>} : vector<512x12xbf16>, vector<12x128xbf16>, vector<512x128xf32> -> vector<512x128xf32>
    %17 = arith.addf %8, %16 : vector<512x128xf32>
    %c1_i32 = arith.constant 1 : i32
    %18 = arith.addi %0, %c1_i32 : i32
    %c0_12 = arith.constant 0 : index
    %19 = arith.index_cast %18 : i32 to index
    %c0_13 = arith.constant 0 : index
    %c0_14 = arith.constant 0 : index
    %20 = vector.load %arg2[%c0_12, %19, %c0_13, %c0_14] : memref<1x33x33x12xbf16, #tpu.memory_space<vmem>>, vector<1x16x32x12xbf16>
    %21 = vector.shape_cast %20 : vector<1x16x32x12xbf16> to vector<16x32x12xbf16>
    %22 = vector.shape_cast %21 : vector<16x32x12xbf16> to vector<512x12xbf16>
    %c2 = arith.constant 2 : index
    %c0_15 = arith.constant 0 : index
    %c0_16 = arith.constant 0 : index
    %23 = vector.load %arg3[%c2, %c0_15, %c0_16] : memref<4x12x128xbf16, #tpu.memory_space<vmem>>, vector<1x12x128xbf16>
    %24 = vector.shape_cast %23 : vector<1x12x128xbf16> to vector<12x128xbf16>
    %cst_17 = arith.constant dense<0.000000e+00> : vector<512x128xf32>
    %25 = tpu.matmul %22, %24, %cst_17 {dimension_numbers = #tpu.dot_dimension_numbers<[1], [0], [0], [1], [0, 0, 1, 1], [], []>} : vector<512x12xbf16>, vector<12x128xbf16>, vector<512x128xf32> -> vector<512x128xf32>
    %26 = arith.addf %17, %25 : vector<512x128xf32>
    %c1_i32_18 = arith.constant 1 : i32
    %27 = arith.addi %0, %c1_i32_18 : i32
    %c0_19 = arith.constant 0 : index
    %28 = arith.index_cast %27 : i32 to index
    %c1_20 = arith.constant 1 : index
    %c0_21 = arith.constant 0 : index
    %29 = vector.load %arg2[%c0_19, %28, %c1_20, %c0_21] : memref<1x33x33x12xbf16, #tpu.memory_space<vmem>>, vector<1x16x32x12xbf16>
    %30 = vector.shape_cast %29 : vector<1x16x32x12xbf16> to vector<16x32x12xbf16>
    %31 = vector.shape_cast %30 : vector<16x32x12xbf16> to vector<512x12xbf16>
    %c3 = arith.constant 3 : index
    %c0_22 = arith.constant 0 : index
    %c0_23 = arith.constant 0 : index
    %32 = vector.load %arg3[%c3, %c0_22, %c0_23] : memref<4x12x128xbf16, #tpu.memory_space<vmem>>, vector<1x12x128xbf16>
    %33 = vector.shape_cast %32 : vector<1x12x128xbf16> to vector<12x128xbf16>
    %cst_24 = arith.constant dense<0.000000e+00> : vector<512x128xf32>
    %34 = tpu.matmul %31, %33, %cst_24 {dimension_numbers = #tpu.dot_dimension_numbers<[1], [0], [0], [1], [0, 0, 1, 1], [], []>} : vector<512x12xbf16>, vector<12x128xbf16>, vector<512x128xf32> -> vector<512x128xf32>
    %35 = arith.addf %26, %34 : vector<512x128xf32>
    %c0_25 = arith.constant 0 : index
    %c0_26 = arith.constant 0 : index
    %36 = vector.load %arg4[%c0_25, %c0_26] : memref<1x128xf32, #tpu.memory_space<vmem>>, vector<1x128xf32>
    %37 = vector.broadcast %36 : vector<1x128xf32> to vector<512x128xf32>
    %38 = arith.addf %35, %37 : vector<512x128xf32>
    %cst_27 = arith.constant 2.000000e-01 : f32
    %39 = vector.broadcast %cst_27 : f32 to vector<512x128xf32>
    %40 = arith.mulf %39, %38 : vector<512x128xf32>
    %41 = arith.maximumf %38, %40 : vector<512x128xf32>
    %42 = arith.truncf %41 : vector<512x128xf32> to vector<512x128xbf16>
    %c0_28 = arith.constant 0 : index
    %c0_29 = arith.constant 0 : index
    %43 = vector.load %arg5[%c0_28, %c0_29] : memref<512x128xbf16, #tpu.memory_space<vmem>>, vector<512x128xbf16>
    tpu.vector_store %arg5[%c0_28, %c0_29], %42 {strides = array<i32>} : memref<512x128xbf16, #tpu.memory_space<vmem>>, vector<512x128xbf16>,
    return
  }
  func.func @transform_0(%arg0: i32, %arg1: i32) -> (i32, i32, i32, i32) {
    %c0_i32 = arith.constant 0 : i32
    %c0_i32_0 = arith.constant 0 : i32
    %c0_i32_1 = arith.constant 0 : i32
    %c0_i32_2 = arith.constant 0 : i32
    return %arg0, %c0_i32, %c0_i32_0, %c0_i32_1 : i32, i32, i32, i32
  }
  func.func @transform_1(%arg0: i32, %arg1: i32) -> (i32, i32, i32) {
    %c0_i32 = arith.constant 0 : i32
    %c0_i32_0 = arith.constant 0 : i32
    %c0_i32_1 = arith.constant 0 : i32
    %c0_i32_2 = arith.constant 0 : i32
    return %c0_i32, %c0_i32_0, %c0_i32_1 : i32, i32, i32
  }
  func.func @transform_2(%arg0: i32, %arg1: i32) -> (i32, i32) {
    %c0_i32 = arith.constant 0 : i32
    %c0_i32_0 = arith.constant 0 : i32
    %c0_i32_1 = arith.constant 0 : i32
    return %c0_i32, %c0_i32_0 : i32, i32
  }
  func.func @transform_3(%arg0: i32, %arg1: i32) -> (i32, i32) {
    %c2_i32 = arith.constant 2 : i32
    %0 = arith.muli %arg0, %c2_i32 : i32
    %1 = arith.addi %0, %arg1 : i32
    %c0_i32 = arith.constant 0 : i32
    %c0_i32_0 = arith.constant 0 : i32
    return %1, %c0_i32 : i32, i32
  }
}

module attributes {stable_mosaic.version = 11 : i64} {
  func.func @_conv_lrelu_kernel(%arg0: i32, %arg1: i32, %arg2: memref<1x17x17x512xbf16, #tpu.memory_space<vmem>>, %arg3: memref<4x512x128xbf16, #tpu.memory_space<vmem>>, %arg4: memref<1x128xf32, #tpu.memory_space<vmem>>, %arg5: memref<128x128xbf16, #tpu.memory_space<vmem>>) attributes {dimension_semantics = [#tpu.dimension_semantics<parallel>, #tpu.dimension_semantics<parallel>], iteration_bounds = array<i64: 2, 2>, scalar_prefetch = 0 : i64, scratch_operands = 0 : i64, tpu.core_type = #tpu.core_type<tc>, window_params = [{transform_indices = @transform_0, window_bounds = array<i64: 1, 17, 17, 512>}, {pipeline_mode = #tpu.pipeline_mode<synchronous>, transform_indices = @transform_1, window_bounds = array<i64: 4, 512, 128>}, {pipeline_mode = #tpu.pipeline_mode<synchronous>, transform_indices = @transform_2, window_bounds = array<i64: 1, 128>}, {transform_indices = @transform_3, window_bounds = array<i64: 128, 128>}]} {
    %c8_i32 = arith.constant 8 : i32
    %0 = arith.muli %arg1, %c8_i32 : i32
    %c0_i32 = arith.constant 0 : i32
    %1 = arith.addi %0, %c0_i32 : i32
    %c0 = arith.constant 0 : index
    %2 = arith.index_cast %1 : i32 to index
    %c0_0 = arith.constant 0 : index
    %c0_1 = arith.constant 0 : index
    %3 = vector.load %arg2[%c0, %2, %c0_0, %c0_1] : memref<1x17x17x512xbf16, #tpu.memory_space<vmem>>, vector<1x8x16x512xbf16>
    %4 = vector.shape_cast %3 : vector<1x8x16x512xbf16> to vector<8x16x512xbf16>
    %5 = vector.shape_cast %4 : vector<8x16x512xbf16> to vector<128x512xbf16>
    %c0_2 = arith.constant 0 : index
    %c0_3 = arith.constant 0 : index
    %c0_4 = arith.constant 0 : index
    %6 = vector.load %arg3[%c0_2, %c0_3, %c0_4] : memref<4x512x128xbf16, #tpu.memory_space<vmem>>, vector<1x512x128xbf16>
    %7 = vector.shape_cast %6 : vector<1x512x128xbf16> to vector<512x128xbf16>
    %cst = arith.constant dense<0.000000e+00> : vector<128x128xf32>
    %8 = tpu.matmul %5, %7, %cst {dimension_numbers = #tpu.dot_dimension_numbers<[1], [0], [0], [1], [0, 0, 1, 1], [], []>} : vector<128x512xbf16>, vector<512x128xbf16>, vector<128x128xf32> -> vector<128x128xf32>
    %c0_i32_5 = arith.constant 0 : i32
    %9 = arith.addi %0, %c0_i32_5 : i32
    %c0_6 = arith.constant 0 : index
    %10 = arith.index_cast %9 : i32 to index
    %c1 = arith.constant 1 : index
    %c0_7 = arith.constant 0 : index
    %11 = vector.load %arg2[%c0_6, %10, %c1, %c0_7] : memref<1x17x17x512xbf16, #tpu.memory_space<vmem>>, vector<1x8x16x512xbf16>
    %12 = vector.shape_cast %11 : vector<1x8x16x512xbf16> to vector<8x16x512xbf16>
    %13 = vector.shape_cast %12 : vector<8x16x512xbf16> to vector<128x512xbf16>
    %c1_8 = arith.constant 1 : index
    %c0_9 = arith.constant 0 : index
    %c0_10 = arith.constant 0 : index
    %14 = vector.load %arg3[%c1_8, %c0_9, %c0_10] : memref<4x512x128xbf16, #tpu.memory_space<vmem>>, vector<1x512x128xbf16>
    %15 = vector.shape_cast %14 : vector<1x512x128xbf16> to vector<512x128xbf16>
    %cst_11 = arith.constant dense<0.000000e+00> : vector<128x128xf32>
    %16 = tpu.matmul %13, %15, %cst_11 {dimension_numbers = #tpu.dot_dimension_numbers<[1], [0], [0], [1], [0, 0, 1, 1], [], []>} : vector<128x512xbf16>, vector<512x128xbf16>, vector<128x128xf32> -> vector<128x128xf32>
    %17 = arith.addf %8, %16 : vector<128x128xf32>
    %c1_i32 = arith.constant 1 : i32
    %18 = arith.addi %0, %c1_i32 : i32
    %c0_12 = arith.constant 0 : index
    %19 = arith.index_cast %18 : i32 to index
    %c0_13 = arith.constant 0 : index
    %c0_14 = arith.constant 0 : index
    %20 = vector.load %arg2[%c0_12, %19, %c0_13, %c0_14] : memref<1x17x17x512xbf16, #tpu.memory_space<vmem>>, vector<1x8x16x512xbf16>
    %21 = vector.shape_cast %20 : vector<1x8x16x512xbf16> to vector<8x16x512xbf16>
    %22 = vector.shape_cast %21 : vector<8x16x512xbf16> to vector<128x512xbf16>
    %c2 = arith.constant 2 : index
    %c0_15 = arith.constant 0 : index
    %c0_16 = arith.constant 0 : index
    %23 = vector.load %arg3[%c2, %c0_15, %c0_16] : memref<4x512x128xbf16, #tpu.memory_space<vmem>>, vector<1x512x128xbf16>
    %24 = vector.shape_cast %23 : vector<1x512x128xbf16> to vector<512x128xbf16>
    %cst_17 = arith.constant dense<0.000000e+00> : vector<128x128xf32>
    %25 = tpu.matmul %22, %24, %cst_17 {dimension_numbers = #tpu.dot_dimension_numbers<[1], [0], [0], [1], [0, 0, 1, 1], [], []>} : vector<128x512xbf16>, vector<512x128xbf16>, vector<128x128xf32> -> vector<128x128xf32>
    %26 = arith.addf %17, %25 : vector<128x128xf32>
    %c1_i32_18 = arith.constant 1 : i32
    %27 = arith.addi %0, %c1_i32_18 : i32
    %c0_19 = arith.constant 0 : index
    %28 = arith.index_cast %27 : i32 to index
    %c1_20 = arith.constant 1 : index
    %c0_21 = arith.constant 0 : index
    %29 = vector.load %arg2[%c0_19, %28, %c1_20, %c0_21] : memref<1x17x17x512xbf16, #tpu.memory_space<vmem>>, vector<1x8x16x512xbf16>
    %30 = vector.shape_cast %29 : vector<1x8x16x512xbf16> to vector<8x16x512xbf16>
    %31 = vector.shape_cast %30 : vector<8x16x512xbf16> to vector<128x512xbf16>
    %c3 = arith.constant 3 : index
    %c0_22 = arith.constant 0 : index
    %c0_23 = arith.constant 0 : index
    %32 = vector.load %arg3[%c3, %c0_22, %c0_23] : memref<4x512x128xbf16, #tpu.memory_space<vmem>>, vector<1x512x128xbf16>
    %33 = vector.shape_cast %32 : vector<1x512x128xbf16> to vector<512x128xbf16>
    %cst_24 = arith.constant dense<0.000000e+00> : vector<128x128xf32>
    %34 = tpu.matmul %31, %33, %cst_24 {dimension_numbers = #tpu.dot_dimension_numbers<[1], [0], [0], [1], [0, 0, 1, 1], [], []>} : vector<128x512xbf16>, vector<512x128xbf16>, vector<128x128xf32> -> vector<128x128xf32>
    %35 = arith.addf %26, %34 : vector<128x128xf32>
    %c0_25 = arith.constant 0 : index
    %c0_26 = arith.constant 0 : index
    %36 = vector.load %arg4[%c0_25, %c0_26] : memref<1x128xf32, #tpu.memory_space<vmem>>, vector<1x128xf32>
    %37 = vector.broadcast %36 : vector<1x128xf32> to vector<128x128xf32>
    %38 = arith.addf %35, %37 : vector<128x128xf32>
    %cst_27 = arith.constant 2.000000e-01 : f32
    %39 = vector.broadcast %cst_27 : f32 to vector<128x128xf32>
    %40 = arith.mulf %39, %38 : vector<128x128xf32>
    %41 = arith.maximumf %38, %40 : vector<128x128xf32>
    %42 = arith.truncf %41 : vector<128x128xf32> to vector<128x128xbf16>
    %c0_28 = arith.constant 0 : index
    %c0_29 = arith.constant 0 : index
    %43 = vector.load %arg5[%c0_28, %c0_29] : memref<128x128xbf16, #tpu.memory_space<vmem>>, vector<128x128xbf16>
    tpu.vector_store %arg5[%c0_28, %c0_29], %42 {strides = array<i32>} : memref<128x128xbf16, #tpu.memory_space<vmem>>, vector<128x128xbf16>,
    return
  }
  func.func @transform_0(%arg0: i32, %arg1: i32) -> (i32, i32, i32, i32) {
    %c0_i32 = arith.constant 0 : i32
    %c0_i32_0 = arith.constant 0 : i32
    %c0_i32_1 = arith.constant 0 : i32
    %c0_i32_2 = arith.constant 0 : i32
    return %arg0, %c0_i32, %c0_i32_0, %c0_i32_1 : i32, i32, i32, i32
  }
  func.func @transform_1(%arg0: i32, %arg1: i32) -> (i32, i32, i32) {
    %c0_i32 = arith.constant 0 : i32
    %c0_i32_0 = arith.constant 0 : i32
    %c0_i32_1 = arith.constant 0 : i32
    %c0_i32_2 = arith.constant 0 : i32
    return %c0_i32, %c0_i32_0, %c0_i32_1 : i32, i32, i32
  }
  func.func @transform_2(%arg0: i32, %arg1: i32) -> (i32, i32) {
    %c0_i32 = arith.constant 0 : i32
    %c0_i32_0 = arith.constant 0 : i32
    %c0_i32_1 = arith.constant 0 : i32
    return %c0_i32, %c0_i32_0 : i32, i32
  }
  func.func @transform_3(%arg0: i32, %arg1: i32) -> (i32, i32) {
    %c2_i32 = arith.constant 2 : i32
    %0 = arith.muli %arg0, %c2_i32 : i32
    %1 = arith.addi %0, %arg1 : i32
    %c0_i32 = arith.constant 0 : i32
    %c0_i32_0 = arith.constant 0 : i32
    return %1, %c0_i32 : i32, i32
  }
}

module attributes {stable_mosaic.version = 11 : i64} {
  func.func @_conv_pool_fc_kernel(%arg0: i32, %arg1: memref<1x9x9x512xbf16, #tpu.memory_space<vmem>>, %arg2: memref<4x512x128xbf16, #tpu.memory_space<vmem>>, %arg3: memref<1x128xf32, #tpu.memory_space<vmem>>, %arg4: memref<128x128xf32, #tpu.memory_space<vmem>>, %arg5: memref<1x128xf32, #tpu.memory_space<vmem>>, %arg6: memref<1x8x128xf32, #tpu.memory_space<vmem>>) attributes {dimension_semantics = [#tpu.dimension_semantics<parallel>], iteration_bounds = array<i64: 2>, scalar_prefetch = 0 : i64, scratch_operands = 0 : i64, tpu.core_type = #tpu.core_type<tc>, window_params = [{transform_indices = @transform_0, window_bounds = array<i64: 1, 9, 9, 512>}, {pipeline_mode = #tpu.pipeline_mode<synchronous>, transform_indices = @transform_1, window_bounds = array<i64: 4, 512, 128>}, {pipeline_mode = #tpu.pipeline_mode<synchronous>, transform_indices = @transform_2, window_bounds = array<i64: 1, 128>}, {pipeline_mode = #tpu.pipeline_mode<synchronous>, transform_indices = @transform_3, window_bounds = array<i64: 128, 128>}, {pipeline_mode = #tpu.pipeline_mode<synchronous>, transform_indices = @transform_4, window_bounds = array<i64: 1, 128>}, {transform_indices = @transform_5, window_bounds = array<i64: 1, 8, 128>}]} {
    %c0 = arith.constant 0 : index
    %c0_0 = arith.constant 0 : index
    %c0_1 = arith.constant 0 : index
    %c0_2 = arith.constant 0 : index
    %0 = vector.load %arg1[%c0, %c0_0, %c0_1, %c0_2] : memref<1x9x9x512xbf16, #tpu.memory_space<vmem>>, vector<1x8x8x512xbf16>
    %1 = vector.shape_cast %0 : vector<1x8x8x512xbf16> to vector<8x8x512xbf16>
    %2 = vector.shape_cast %1 : vector<8x8x512xbf16> to vector<64x512xbf16>
    %c0_3 = arith.constant 0 : index
    %c0_4 = arith.constant 0 : index
    %c0_5 = arith.constant 0 : index
    %3 = vector.load %arg2[%c0_3, %c0_4, %c0_5] : memref<4x512x128xbf16, #tpu.memory_space<vmem>>, vector<1x512x128xbf16>
    %4 = vector.shape_cast %3 : vector<1x512x128xbf16> to vector<512x128xbf16>
    %cst = arith.constant dense<0.000000e+00> : vector<64x128xf32>
    %5 = tpu.matmul %2, %4, %cst {dimension_numbers = #tpu.dot_dimension_numbers<[1], [0], [0], [1], [0, 0, 1, 1], [], []>} : vector<64x512xbf16>, vector<512x128xbf16>, vector<64x128xf32> -> vector<64x128xf32>
    %c0_6 = arith.constant 0 : index
    %c0_7 = arith.constant 0 : index
    %c1 = arith.constant 1 : index
    %c0_8 = arith.constant 0 : index
    %6 = vector.load %arg1[%c0_6, %c0_7, %c1, %c0_8] : memref<1x9x9x512xbf16, #tpu.memory_space<vmem>>, vector<1x8x8x512xbf16>
    %7 = vector.shape_cast %6 : vector<1x8x8x512xbf16> to vector<8x8x512xbf16>
    %8 = vector.shape_cast %7 : vector<8x8x512xbf16> to vector<64x512xbf16>
    %c1_9 = arith.constant 1 : index
    %c0_10 = arith.constant 0 : index
    %c0_11 = arith.constant 0 : index
    %9 = vector.load %arg2[%c1_9, %c0_10, %c0_11] : memref<4x512x128xbf16, #tpu.memory_space<vmem>>, vector<1x512x128xbf16>
    %10 = vector.shape_cast %9 : vector<1x512x128xbf16> to vector<512x128xbf16>
    %cst_12 = arith.constant dense<0.000000e+00> : vector<64x128xf32>
    %11 = tpu.matmul %8, %10, %cst_12 {dimension_numbers = #tpu.dot_dimension_numbers<[1], [0], [0], [1], [0, 0, 1, 1], [], []>} : vector<64x512xbf16>, vector<512x128xbf16>, vector<64x128xf32> -> vector<64x128xf32>
    %12 = arith.addf %5, %11 : vector<64x128xf32>
    %c0_13 = arith.constant 0 : index
    %c1_14 = arith.constant 1 : index
    %c0_15 = arith.constant 0 : index
    %c0_16 = arith.constant 0 : index
    %13 = vector.load %arg1[%c0_13, %c1_14, %c0_15, %c0_16] : memref<1x9x9x512xbf16, #tpu.memory_space<vmem>>, vector<1x8x8x512xbf16>
    %14 = vector.shape_cast %13 : vector<1x8x8x512xbf16> to vector<8x8x512xbf16>
    %15 = vector.shape_cast %14 : vector<8x8x512xbf16> to vector<64x512xbf16>
    %c2 = arith.constant 2 : index
    %c0_17 = arith.constant 0 : index
    %c0_18 = arith.constant 0 : index
    %16 = vector.load %arg2[%c2, %c0_17, %c0_18] : memref<4x512x128xbf16, #tpu.memory_space<vmem>>, vector<1x512x128xbf16>
    %17 = vector.shape_cast %16 : vector<1x512x128xbf16> to vector<512x128xbf16>
    %cst_19 = arith.constant dense<0.000000e+00> : vector<64x128xf32>
    %18 = tpu.matmul %15, %17, %cst_19 {dimension_numbers = #tpu.dot_dimension_numbers<[1], [0], [0], [1], [0, 0, 1, 1], [], []>} : vector<64x512xbf16>, vector<512x128xbf16>, vector<64x128xf32> -> vector<64x128xf32>
    %19 = arith.addf %12, %18 : vector<64x128xf32>
    %c0_20 = arith.constant 0 : index
    %c1_21 = arith.constant 1 : index
    %c1_22 = arith.constant 1 : index
    %c0_23 = arith.constant 0 : index
    %20 = vector.load %arg1[%c0_20, %c1_21, %c1_22, %c0_23] : memref<1x9x9x512xbf16, #tpu.memory_space<vmem>>, vector<1x8x8x512xbf16>
    %21 = vector.shape_cast %20 : vector<1x8x8x512xbf16> to vector<8x8x512xbf16>
    %22 = vector.shape_cast %21 : vector<8x8x512xbf16> to vector<64x512xbf16>
    %c3 = arith.constant 3 : index
    %c0_24 = arith.constant 0 : index
    %c0_25 = arith.constant 0 : index
    %23 = vector.load %arg2[%c3, %c0_24, %c0_25] : memref<4x512x128xbf16, #tpu.memory_space<vmem>>, vector<1x512x128xbf16>
    %24 = vector.shape_cast %23 : vector<1x512x128xbf16> to vector<512x128xbf16>
    %cst_26 = arith.constant dense<0.000000e+00> : vector<64x128xf32>
    %25 = tpu.matmul %22, %24, %cst_26 {dimension_numbers = #tpu.dot_dimension_numbers<[1], [0], [0], [1], [0, 0, 1, 1], [], []>} : vector<64x512xbf16>, vector<512x128xbf16>, vector<64x128xf32> -> vector<64x128xf32>
    %26 = arith.addf %19, %25 : vector<64x128xf32>
    %c0_27 = arith.constant 0 : index
    %c0_28 = arith.constant 0 : index
    %27 = vector.load %arg3[%c0_27, %c0_28] : memref<1x128xf32, #tpu.memory_space<vmem>>, vector<1x128xf32>
    %28 = vector.broadcast %27 : vector<1x128xf32> to vector<64x128xf32>
    %29 = arith.addf %26, %28 : vector<64x128xf32>
    %cst_29 = arith.constant 2.000000e-01 : f32
    %30 = vector.broadcast %cst_29 : f32 to vector<64x128xf32>
    %31 = arith.mulf %30, %29 : vector<64x128xf32>
    %32 = arith.maximumf %29, %31 : vector<64x128xf32>
    %c0_30 = arith.constant 0 : index
    %c0_31 = arith.constant 0 : index
    %33 = vector.load %arg4[%c0_30, %c0_31] : memref<128x128xf32, #tpu.memory_space<vmem>>, vector<128x128xf32>
    %cst_32 = arith.constant dense<0.000000e+00> : vector<64x128xf32>
    %34 = tpu.matmul %32, %33, %cst_32 {dimension_numbers = #tpu.dot_dimension_numbers<[1], [0], [0], [1], [0, 0, 1, 1], [], []>} : vector<64x128xf32>, vector<128x128xf32>, vector<64x128xf32> -> vector<64x128xf32>
    %cst_33 = arith.constant dense<0.000000e+00> : vector<128xf32>
    %35 = vector.multi_reduction <add>, %34, %cst_33 [0] : vector<64x128xf32> to vector<128xf32>
    %36 = vector.shape_cast %35 : vector<128xf32> to vector<1x128xf32>
    %cst_34 = arith.constant 1.562500e-02 : f32
    %37 = vector.broadcast %cst_34 : f32 to vector<1x128xf32>
    %38 = arith.mulf %36, %37 : vector<1x128xf32>
    %c0_35 = arith.constant 0 : index
    %c0_36 = arith.constant 0 : index
    %39 = vector.load %arg5[%c0_35, %c0_36] : memref<1x128xf32, #tpu.memory_space<vmem>>, vector<1x128xf32>
    %40 = arith.addf %38, %39 : vector<1x128xf32>
    %41 = vector.shape_cast %40 : vector<1x128xf32> to vector<1x128xf32>
    %42 = vector.broadcast %41 : vector<1x128xf32> to vector<8x128xf32>
    %c0_37 = arith.constant 0 : index
    %c0_38 = arith.constant 0 : index
    %c0_39 = arith.constant 0 : index
    %43 = vector.load %arg6[%c0_37, %c0_38, %c0_39] : memref<1x8x128xf32, #tpu.memory_space<vmem>>, vector<1x8x128xf32>
    %44 = vector.shape_cast %43 : vector<1x8x128xf32> to vector<8x128xf32>
    %45 = vector.shape_cast %42 : vector<8x128xf32> to vector<1x8x128xf32>
    tpu.vector_store %arg6[%c0_37, %c0_38, %c0_39], %45 {strides = array<i32>} : memref<1x8x128xf32, #tpu.memory_space<vmem>>, vector<1x8x128xf32>,
    return
  }
  func.func @transform_0(%arg0: i32) -> (i32, i32, i32, i32) {
    %c0_i32 = arith.constant 0 : i32
    %c0_i32_0 = arith.constant 0 : i32
    %c0_i32_1 = arith.constant 0 : i32
    %c0_i32_2 = arith.constant 0 : i32
    return %arg0, %c0_i32, %c0_i32_0, %c0_i32_1 : i32, i32, i32, i32
  }
  func.func @transform_1(%arg0: i32) -> (i32, i32, i32) {
    %c0_i32 = arith.constant 0 : i32
    %c0_i32_0 = arith.constant 0 : i32
    %c0_i32_1 = arith.constant 0 : i32
    %c0_i32_2 = arith.constant 0 : i32
    return %c0_i32, %c0_i32_0, %c0_i32_1 : i32, i32, i32
  }
  func.func @transform_2(%arg0: i32) -> (i32, i32) {
    %c0_i32 = arith.constant 0 : i32
    %c0_i32_0 = arith.constant 0 : i32
    %c0_i32_1 = arith.constant 0 : i32
    return %c0_i32, %c0_i32_0 : i32, i32
  }
  func.func @transform_3(%arg0: i32) -> (i32, i32) {
    %c0_i32 = arith.constant 0 : i32
    %c0_i32_0 = arith.constant 0 : i32
    %c0_i32_1 = arith.constant 0 : i32
    return %c0_i32, %c0_i32_0 : i32, i32
  }
  func.func @transform_4(%arg0: i32) -> (i32, i32) {
    %c0_i32 = arith.constant 0 : i32
    %c0_i32_0 = arith.constant 0 : i32
    %c0_i32_1 = arith.constant 0 : i32
    return %c0_i32, %c0_i32_0 : i32, i32
  }
  func.func @transform_5(%arg0: i32) -> (i32, i32, i32) {
    %c0_i32 = arith.constant 0 : i32
    %c0_i32_0 = arith.constant 0 : i32
    %c0_i32_1 = arith.constant 0 : i32
    return %arg0, %c0_i32, %c0_i32_0 : i32, i32, i32
  }
}

</mosaic_0001>

<bundles_post_ra>
// kernel: e_nlayers_forward.3
= control target key start
LH: loop header
LB: loop body
LE: loop exit
PB: predicated region body
PF: predicated region fallthrough
CT: control target
= control target key end

     0   :  { %s6234_s12 = smov 0   ;;  %s6236_s13 = smov 0   ;;  %s7079_s0 = inlined_call_operand.vmem [shape: bf16[2,33,33,12], index: 0, kind: input, shape index: {}]   ;;  %s7080_s1 = inlined_call_operand.vmem [shape: bf16[4,12,128], index: 1, kind: input, shape index: {}]   ;;  %s7081_s2 = inlined_call_operand.vmem [shape: f32[1,128], index: 2, kind: input, shape index: {}]   ;;  %s7082_s3 = inlined_call_operand.vmem [shape: bf16[2048,128], index: 3, kind: output, shape index: {}]  }
   0x1   :  { %s6238_s14 = smov 0   ;;  %s6240_s15 = smov 0  }
   0x2   :  { %s6242_s16 = smov 0  }
   0x3 LB: > { %s22_s17 = sadd.s32 1, %s6204_s14  ;;  %s25_s18 = sadd.s32 1, %s6208_s15  ;;  %s6212_s16 = sphi %s6242_s16, %s13_s16   ;;  %s6208_s15 = sphi %s6240_s15, %s7088_s15   ;;  %s6204_s14 = sphi %s6238_s14, %s7087_s14   ;;  %s6200_s13 = sphi %s6236_s13, %s7086_s13   ;;  %s6196_s12 = sphi %s6234_s12, %s7085_s12  }
   0x4   : > { %p23_p0 = scmp.ge.s32.totalorder %s22_s17, 2  ;;  %p4668_p1 = scmp.ge.s32.totalorder %s6212_s16, 1 }
   0x5   : > { %p153_p2 = scmp.lt.s32.totalorder %s6212_s16, 5 }
   0x6   : > { %s7090_s17 = smov (%p23_p0, %s22_s17), 0  ;;  %s7092_s18 = smov (!%p23_p0, %s25_s18), %s6208_s15 }
   0x7   : > { %p154_p3 = pnand %p4668_p1, %p153_p2  ;;  %p27_p4 = scmp.ge.s32.totalorder %s7092_s18, 2 }
   0x8   : > { %vm1189_vm0 = vcmask (!%p154_p3), 1045504   ;;  %p179_p5 = scmp.lt.s32.totalorder (!%p154_p3), %s6200_s13, 1  ;;  %v6044_v0 = vld [vmem:[%s7080_s1 + $0x10] sm:$0x3f] (!%p154_p3)   ;;  %v6047_v1 = vld [vmem:[%s7080_s1 + $0x8] sm:$0x3f] (!%p154_p3)  }
   0x9   : > { %s7094_s18 = smov (%p27_p4, %s7092_s18), 0  ;;  %157 = sbr.rel (%p154_p3) target bundleno = 520 (0x208), region = 32 }
   0xa   : > { %6001 = vmatprep.subr.msk.bf16.mxu0 (!%p154_p3), %vm1189_vm0, %v6044_v0  ;;  %v2368_v2 = vsel (!%p154_p3), %vm1189_vm0, %v6044_v0, 0  ;;  %s5155_s24 = smul.u32 (!%p154_p3), 320, %s6196_s12  ;;  %5999 = vmatprep.subr.msk.bf16.mxu1 (!%p154_p3), %vm1189_vm0, %v6047_v1  ;;  %v1191_v3 = vsel (!%p154_p3), %vm1189_vm0, %v6047_v1, 0  ;;  %v6050_v4 = vld [vmem:[%s7080_s1] sm:$0x3f] (!%p154_p3)   ;;  %vm1092_vm1 = vcmask (!%p154_p3), 97280  }
   0xb   : > { %5676 = vmatpush3.bf16.msra.mxu0 (!%p154_p3), %v2368_v2  ;;  %5544 = vmatpush3.bf16.msra.mxu1 (!%p154_p3), %v1191_v3  ;;  %v6052_v5 = vld [vmem:[%s7080_s1 + $0x18] sm:$0x3f] (!%p154_p3)   ;;  %vm281_vm2 = vsmask.f32 (!%p154_p3), 3328  ;;  %vm282_vm3 = vsmask.f32 (!%p154_p3), 7440 }
   0xc   : > { %6000 = vmatprep.subr.msk.bf16.mxu1 (!%p154_p3), %vm1189_vm0, %v6050_v4  ;;  %6002 = vmatprep.subr.msk.bf16.mxu0 (!%p154_p3), %vm1189_vm0, %v6052_v5  ;;  %v3708_v8 = vsel (!%p154_p3), %vm1189_vm0, %v6052_v5, 0  ;;  %v6300_v10 = vsel (!%p154_p3), %vm1189_vm0, %v6050_v4, 0  ;;  %vm6323_vm4 = vmor (!%p154_p3), %vm281_vm2, %vm282_vm3  ;;  %s4670_s7 = sshll.u32 (!%p154_p3), %s6200_s13, 1  ;;  %v6961_v36 = vld [vmem:[%s7081_s2] ss:$0 sm:$0xff] (!%p154_p3) }
   0xd   : > { %s185_s8 = sadd.s32 (!%p154_p3), %s6196_s12, %s4670_s7 }
   0xe   : > { %s4671_s9 = sshll.u32 (!%p154_p3), %s185_s8, 6 }
   0xf   : > { %p187_p6 = scmp.lt.s32.totalorder (!%p154_p3), %s4671_s9, 255 }
  0x10   : > { %s180_s21 = scalar_select %p179_p5, %s6200_s13, 1 }
  0x11   : > { %s7096_s9 = smov (!%p187_p6, %s4671_s9), 255 }
  0x12   : > { %s6003_s25 = smul.u32 660, %s180_s21  ;;  %s4672_s12 = sshll.u32 %s7096_s9, 2 }
  0x13   : > { %s6970_s20 = scalar_lea.vmem %s7082_s3, %s4672_s12 }
  0x14   : > { %s183_s30 = scalar_lea.vmem %s7079_s0, %s6003_s25 }
  0x15   : > { %s6290_s6 = scalar_lea.vmem %s183_s30, %s5155_s24 }
  0x16   : > { %v6045_v6 = vld [vmem:[%s6290_s6 + $0x14] sm:$0xff]   ;;  %v6046_v7 = vld [vmem:[%s6290_s6 + $0x1c] sm:$0xff]   ;;  %v6048_v9 = vld [vmem:[%s6290_s6 + $0x28] sm:$0xff]  }
  0x17   : > { %5677 = vmatprep.mubr.msk.bf16.mxu0 %vm1092_vm1, %v6045_v6  ;;  %v199_v11 = vld [vmem:[%s6290_s6] sm:$0xf]  ;;  %v200_v12 = vld [vmem:[%s6290_s6 + $0x4] sm:$0xf]  ;;  %v6306_v13 = vld [vmem:[%s6290_s6 + $0x8] sm:$0xf] }
  0x18   : > { %5678 = vmatmul.mubr.msk.bf16.vlgmr.msra.gmra.mrb[0].mxu0 %vm1092_vm1, %v6046_v7  ;;  %v6310_v14 = vld [vmem:[%s6290_s6 + $0xc] sm:$0xf]  ;;  %v285_v15 = vshrl.u32 %v199_v11, 16  ;;  %v288_v16 = vshll.u32 %v199_v11, 16  ;;  %v294_v17 = vshll.u32 %v200_v12, 16  ;;  %v298_v18 = vshrl.u32 %v200_v12, 16 }
  0x19   : > { %5681 = vmatprep.mubr.msk.bf16.mxu0 %vm1092_vm1, %v6048_v9  ;;  %5742 = vmatpush3.bf16.msra.mxu0 %v3708_v8  ;;  %v304_v19 = vshll.u32 %v6306_v13, 16  ;;  %v308_v20 = vshrl.u32 %v6306_v13, 16  ;;  %v4744_v21 = vcombine.low %v6306_v13, %v6310_v14  ;;  %v6051_v26 = vld [vmem:[%s6290_s6 + $0x30] sm:$0xff]   ;;  %v314_v30 = vshll.u32 %v6310_v14, 16  ;;  %v6053_v35 = vld [vmem:[%s6290_s6 + $0x3c] sm:$0xff]   ;;  %v6054_v3 = vld [vmem:[%s6290_s6 + $0x44] sm:$0xff]  }
  0x1a   : > { %v287_v22 = vrot.slane %v285_v15, 4  ;;  %v290_v23 = vrot.slane %v288_v16, 5  ;;  %v296_v24 = vrot.slane %v294_v17, 5  ;;  %v300_v25 = vrot.slane %v298_v18, 4  ;;  %v265_v29 = vld [vmem:[%s6290_s6 + $0x10] sm:$0x1] }
  0x1b   : > { %v306_v27 = vrot.slane %v304_v19, 5  ;;  %v310_v28 = vrot.slane %v308_v20, 4  ;;  %v318_v31 = vshrl.u32 %v6310_v14, 16  ;;  %v324_v34 = vshll.u32 %v265_v29, 16  ;;  %v203_v40 = vld [vmem:[%s6290_s6 + $0x14] sm:$0xf] }
  0x1c   : > { %v291_v32 = vor.u32 %v290_v23, %v287_v22  ;;  %v301_v33 = vor.u32 %v300_v25, %v296_v24  ;;  %v316_v38 = vrot.slane %v314_v30, 5  ;;  %v204_v41 = vld [vmem:[%s6290_s6 + $0x18] sm:$0xf]  ;;  %v205_v45 = vld [vmem:[%s6290_s6 + $0x1c] sm:$0xf]  ;;  %v329_v46 = vshrl.u32 %v203_v40, 16 }
  0x1d   : > { %v311_v37 = vor.u32 %v310_v28, %v306_v27  ;;  %v320_v39 = vrot.slane %v318_v31, 4  ;;  %v326_v44 = vrot.slane %v324_v34, 5  ;;  %v332_v49 = vshll.u32 %v203_v40, 16  ;;  %v206_v55 = vld [vmem:[%s6290_s6 + $0x20] sm:$0xf]  ;;  %v6055_v6 = vld [vmem:[%s6290_s6 + $0x50] sm:$0xff]  }
  0x1e   : > { %v292_v42 = vrot.slane %v291_v32, 4  ;;  %v302_v43 = vrot.slane %v301_v33, 4  ;;  %v338_v50 = vshll.u32 %v204_v41, 16  ;;  %v331_v53 = vrot.slane %v329_v46, 4  ;;  %v266_v60 = vld [vmem:[%s6290_s6 + $0x24] sm:$0x1] }
  0x1f   : > { %v312_v47 = vrot.slane %v311_v37, 4  ;;  %v321_v48 = vor.u32 %v320_v39, %v316_v38  ;;  %v342_v54 = vshrl.u32 %v204_v41, 16  ;;  %v334_v59 = vrot.slane %v332_v49, 5  ;;  %v207_v7 = vld [vmem:[%s6290_s6 + $0x28] sm:$0xf] }
  0x20   : > { %5682 = vmatmul.mubr.msk.bf16.gmra.mrb[4].mxu0 %vm1092_vm1, %v6051_v26  ;;  %v297_v51 = vsel %vm6323_vm4, %v292_v42, %v296_v24  ;;  %v307_v52 = vsel %vm6323_vm4, %v302_v43, %v306_v27  ;;  %v340_v61 = vrot.slane %v338_v50, 5  ;;  %v348_v63 = vshll.u32 %v205_v45, 16  ;;  %v208_v15 = vld [vmem:[%s6290_s6 + $0x2c] sm:$0xf]  ;;  %v209_v23 = vld [vmem:[%s6290_s6 + $0x30] sm:$0xf] }
  0x21   : > { %5685 = vmatprep.mubr.msk.bf16.mxu0 %vm1092_vm1, %v6053_v35  ;;  %v4678_v56 = vcombine.low %v297_v51, %v307_v52  ;;  %v317_v57 = vsel %vm6323_vm4, %v312_v47, %v316_v38  ;;  %v322_v58 = vrot.slane %v321_v48, 4  ;;  %v344_v62 = vrot.slane %v342_v54, 4  ;;  %v210_v30 = vld [vmem:[%s6290_s6 + $0x34] sm:$0xf]  ;;  %v267_v39 = vld [vmem:[%s6290_s6 + $0x38] sm:$0x1] }
  0x22   : > { %v352_v0 = vshrl.u32 %v205_v45, 16  ;;  %v335_v2 = vor.u32 %v334_v59, %v331_v53  ;;  %v358_v4 = vshll.u32 %v206_v55, 16  ;;  %v362_v5 = vshrl.u32 %v206_v55, 16  ;;  %v212_v45 = vld [vmem:[%s6290_s6 + $0x40] sm:$0xf]  ;;  %v6056_v48 = vld [vmem:[%s6290_s6 + $0x58] sm:$0xff]  }
  0x23   : > { %5545 = vmatprep.mubr.msk.bf16.mxu1 %vm1092_vm1, %v4678_v56  ;;  %v327_v1 = vsel %vm6323_vm4, %v322_v58, %v326_v44  ;;  %v345_v9 = vor.u32 %v344_v62, %v340_v61  ;;  %v350_v11 = vrot.slane %v348_v63, 5  ;;  %v368_v19 = vshll.u32 %v266_v60, 16  ;;  %v211_v44 = vld [vmem:[%s6290_s6 + $0x3c] sm:$0xf]  ;;  %v6057_v55 = vld [vmem:[%s6290_s6 + $0x64] sm:$0xff]  }
  0x24   : > { %v4679_v8 = vcombine.low %v317_v57, %v327_v1  ;;  %v354_v12 = vrot.slane %v352_v0, 4  ;;  %v336_v16 = vrot.slane %v335_v2, 4  ;;  %v360_v17 = vrot.slane %v358_v4, 5  ;;  %v213_v62 = vld [vmem:[%s6290_s6 + $0x44] sm:$0xf] }
  0x25   : > { %v364_v18 = vrot.slane %v362_v5, 4  ;;  %v346_v20 = vrot.slane %v345_v9, 4  ;;  %v373_v24 = vshrl.u32 %v207_v7, 16  ;;  %v376_v25 = vshll.u32 %v207_v7, 16  ;;  %v214_v9 = vld [vmem:[%s6290_s6 + $0x48] sm:$0xf] }
  0x26   : > { %5546 = vmatmul.mubr.msk.bf16.vlgmr.msra.gmra.mrb[0].mxu1 %vm1092_vm1, %v4679_v8  ;;  %v355_v22 = vor.u32 %v354_v12, %v350_v11  ;;  %v341_v26 = vsel %vm6323_vm4, %v336_v16, %v340_v61  ;;  %v370_v28 = vrot.slane %v368_v19, 5  ;;  %v382_v29 = vshll.u32 %v208_v15, 16 }
  0x27   : > { %5610 = vmatpush3.bf16.msra.mxu1 %v6300_v10  ;;  %v365_v27 = vor.u32 %v364_v18, %v360_v17  ;;  %v351_v31 = vsel %vm6323_vm4, %v346_v20, %v350_v11  ;;  %v375_v33 = vrot.slane %v373_v24, 4  ;;  %v378_v10 = vrot.slane %v376_v25, 5  ;;  %v215_v24 = vld [vmem:[%s6290_s6 + $0x50] sm:$0xf] }
  0x28   : > { %5686 = vmatmul.mubr.msk.bf16.gmra.mrb[8].mxu0 %vm1092_vm1, %v6054_v3  ;;  %v356_v32 = vrot.slane %v355_v22, 4  ;;  %v4680_v34 = vcombine.low %v341_v26, %v351_v31  ;;  %v384_v37 = vrot.slane %v382_v29, 5  ;;  %v386_v38 = vshrl.u32 %v208_v15, 16  ;;  %v6059_v29 = vld [vmem:[%s6290_s6 + $0x78] sm:$0xff]  }
  0x29   : > { %5689 = vmatprep.mubr.msk.bf16.mxu0 %vm1092_vm1, %v6055_v6  ;;  %v366_v35 = vrot.slane %v365_v27, 4  ;;  %v379_v41 = vor.u32 %v378_v10, %v375_v33  ;;  %v392_v42 = vshll.u32 %v209_v23, 16  ;;  %v396_v43 = vshrl.u32 %v209_v23, 16  ;;  %v6058_v23 = vld [vmem:[%s6290_s6 + $0x6c] sm:$0xff]   ;;  %v216_v10 = vld [vmem:[%s6290_s6 + $0x54] sm:$0xf] }
  0x2a   : > { %v361_v40 = vsel %vm6323_vm4, %v356_v32, %v360_v17  ;;  %5549 = vmatprep.mubr.msk.bf16.mxu1 %vm1092_vm1, %v4680_v34  ;;  %v388_v47 = vrot.slane %v386_v38, 4  ;;  %v402_v49 = vshll.u32 %v210_v30, 16  ;;  %v406_v50 = vshrl.u32 %v210_v30, 16  ;;  %v268_v17 = vld [vmem:[%s6290_s6 + $0x4c] sm:$0x1] }
  0x2b   : > { %v371_v46 = vsel %vm6323_vm4, %v366_v35, %v370_v28  ;;  %v380_v52 = vrot.slane %v379_v41, 4  ;;  %v394_v53 = vrot.slane %v392_v42, 5  ;;  %v398_v54 = vrot.slane %v396_v43, 4  ;;  %v217_v34 = vld [vmem:[%s6290_s6 + $0x58] sm:$0xf] }
  0x2c   : > { %v4681_v51 = vcombine.low %v361_v40, %v371_v46  ;;  %v389_v56 = vor.u32 %v388_v47, %v384_v37  ;;  %v404_v57 = vrot.slane %v402_v49, 5  ;;  %v408_v58 = vrot.slane %v406_v50, 4 }
  0x2d   : > { %v412_v59 = vshll.u32 %v267_v39, 16  ;;  %v385_v60 = vsel %vm6323_vm4, %v380_v52, %v384_v37  ;;  %v399_v61 = vor.u32 %v398_v54, %v394_v53  ;;  %v417_v63 = vshrl.u32 %v211_v44, 16  ;;  %v218_v52 = vld [vmem:[%s6290_s6 + $0x5c] sm:$0xf] }
  0x2e   : > { %5550 = vmatmul.mubr.msk.bf16.gmra.mrb[4].mxu1 %vm1092_vm1, %v4681_v51  ;;  %v420_v0 = vshll.u32 %v211_v44, 16  ;;  %v390_v1 = vrot.slane %v389_v56, 4  ;;  %v409_v2 = vor.u32 %v408_v58, %v404_v57  ;;  %v426_v4 = vshll.u32 %v212_v45, 16 }
  0x2f   : > { %v414_v3 = vrot.slane %v412_v59, 5  ;;  %v400_v5 = vrot.slane %v399_v61, 4  ;;  %v419_v6 = vrot.slane %v417_v63, 4  ;;  %v430_v8 = vshrl.u32 %v212_v45, 16  ;;  %v6060_v61 = vld [vmem:[%s6290_s6 + $0x80] sm:$0xff]  }
  0x30   : > { %5690 = vmatmul.mubr.msk.bf16.gmra.mrb[12].mxu0 %vm1092_vm1, %v6056_v48  ;;  %v422_v7 = vrot.slane %v420_v0, 5  ;;  %v395_v11 = vsel %vm6323_vm4, %v390_v1, %v394_v53  ;;  %v410_v12 = vrot.slane %v409_v2, 4  ;;  %v428_v15 = vrot.slane %v426_v4, 5  ;;  %v269_v53 = vld [vmem:[%s6290_s6 + $0x60] sm:$0x1] }
  0x31   : > { %5693 = vmatprep.mubr.msk.bf16.mxu0 %vm1092_vm1, %v6057_v55  ;;  %v436_v16 = vshll.u32 %v213_v62, 16  ;;  %v4682_v18 = vcombine.low %v385_v60, %v395_v11  ;;  %v405_v19 = vsel %vm6323_vm4, %v400_v5, %v404_v57  ;;  %v432_v22 = vrot.slane %v430_v8, 4  ;;  %v219_v4 = vld [vmem:[%s6290_s6 + $0x64] sm:$0xf] }
  0x32   : > { %v423_v20 = vor.u32 %v422_v7, %v419_v6  ;;  %v415_v25 = vsel %vm6323_vm4, %v410_v12, %v414_v3  ;;  %v440_v27 = vshrl.u32 %v213_v62, 16  ;;  %v446_v28 = vshll.u32 %v214_v9, 16  ;;  %v6061_v3 = vld [vmem:[%s6290_s6 + $0x8c] sm:$0xff]  }
  0x33   : > { %v438_v26 = vrot.slane %v436_v16, 5  ;;  %5553 = vmatprep.mubr.msk.bf16.mxu1 %vm1092_vm1, %v4682_v18  ;;  %v4683_v30 = vcombine.low %v405_v19, %v415_v25  ;;  %v433_v32 = vor.u32 %v432_v22, %v428_v15  ;;  %v450_v33 = vshrl.u32 %v214_v9, 16  ;;  %v220_v9 = vld [vmem:[%s6290_s6 + $0x68] sm:$0xf] }
  0x34   : > { %v424_v31 = vrot.slane %v423_v20, 4  ;;  %v442_v35 = vrot.slane %v440_v27, 4  ;;  %v448_v37 = vrot.slane %v446_v28, 5  ;;  %v456_v38 = vshll.u32 %v268_v17, 16  ;;  %v221_v20 = vld [vmem:[%s6290_s6 + $0x6c] sm:$0xf] }
  0x35   : > { %v461_v39 = vshrl.u32 %v215_v24, 16  ;;  %v434_v41 = vrot.slane %v433_v32, 4  ;;  %v452_v42 = vrot.slane %v450_v33, 4  ;;  %v464_v43 = vshll.u32 %v215_v24, 16  ;;  %v222_v27 = vld [vmem:[%s6290_s6 + $0x70] sm:$0xf] }
  0x36   : > { %5554 = vmatmul.mubr.msk.bf16.gmra.mrb[8].mxu1 %vm1092_vm1, %v4683_v30  ;;  %v429_v40 = vsel %vm6323_vm4, %v424_v31, %v428_v15  ;;  %v443_v44 = vor.u32 %v442_v35, %v438_v26  ;;  %v458_v45 = vrot.slane %v456_v38, 5  ;;  %v470_v47 = vshll.u32 %v216_v10, 16  ;;  %v6062_v35 = vld [vmem:[%s6290_s6 + $0x94] sm:$0xff]  }
  0x37   : > { %v463_v46 = vrot.slane %v461_v39, 4  ;;  %v439_v48 = vsel %vm6323_vm4, %v434_v41, %v438_v26  ;;  %v453_v49 = vor.u32 %v452_v42, %v448_v37  ;;  %v466_v50 = vrot.slane %v464_v43, 5  ;;  %v6063_v42 = vld [vmem:[%s6290_s6 + $0xa0] sm:$0xff]  }
  0x38   : > { %5694 = vmatmul.mubr.msk.bf16.gmra.mrb[16].mxu0 %vm1092_vm1, %v6058_v23  ;;  %v474_v51 = vshrl.u32 %v216_v10, 16  ;;  %v4684_v54 = vcombine.low %v429_v40, %v439_v48  ;;  %v444_v55 = vrot.slane %v443_v44, 4  ;;  %v472_v56 = vrot.slane %v470_v47, 5  ;;  %v270_v40 = vld [vmem:[%s6290_s6 + $0x74] sm:$0x1] }
  0x39   : > { %5697 = vmatprep.mubr.msk.bf16.mxu0 %vm1092_vm1, %v6059_v29  ;;  %v480_v57 = vshll.u32 %v217_v34, 16  ;;  %v454_v58 = vrot.slane %v453_v49, 4  ;;  %v467_v59 = vor.u32 %v466_v50, %v463_v46  ;;  %v484_v62 = vshrl.u32 %v217_v34, 16  ;;  %v223_v47 = vld [vmem:[%s6290_s6 + $0x78] sm:$0xf] }
  0x3a   : > { %v476_v60 = vrot.slane %v474_v51, 4  ;;  %5557 = vmatprep.mubr.msk.bf16.mxu1 %vm1092_vm1, %v4684_v54  ;;  %v449_v63 = vsel %vm6323_vm4, %v444_v55, %v448_v37  ;;  %v490_v1 = vshll.u32 %v218_v52, 16  ;;  %v494_v2 = vshrl.u32 %v218_v52, 16  ;;  %v224_v52 = vld [vmem:[%s6290_s6 + $0x7c] sm:$0xf] }
  0x3b   : > { %v482_v0 = vrot.slane %v480_v57, 5  ;;  %v459_v5 = vsel %vm6323_vm4, %v454_v58, %v458_v45  ;;  %v468_v6 = vrot.slane %v467_v59, 4  ;;  %v486_v8 = vrot.slane %v484_v62, 4  ;;  %v225_v59 = vld [vmem:[%s6290_s6 + $0x80] sm:$0xf] }
  0x3c   : > { %v477_v7 = vor.u32 %v476_v60, %v472_v56  ;;  %v4685_v11 = vcombine.low %v449_v63, %v459_v5  ;;  %v492_v12 = vrot.slane %v490_v1, 5  ;;  %v496_v15 = vrot.slane %v494_v2, 4 }
  0x3d   : > { %v500_v16 = vshll.u32 %v269_v53, 16  ;;  %v473_v17 = vsel %vm6323_vm4, %v468_v6, %v472_v56  ;;  %v487_v19 = vor.u32 %v486_v8, %v482_v0  ;;  %v505_v22 = vshrl.u32 %v219_v4, 16  ;;  %v226_v6 = vld [vmem:[%s6290_s6 + $0x84] sm:$0xf] }
  0x3e   : > { %v478_v18 = vrot.slane %v477_v7, 4  ;;  %5558 = vmatmul.mubr.msk.bf16.gmra.mrb[12].mxu1 %vm1092_vm1, %v4685_v11  ;;  %v497_v23 = vor.u32 %v496_v15, %v492_v12  ;;  %v508_v25 = vshll.u32 %v219_v4, 16  ;;  %v514_v26 = vshll.u32 %v220_v9, 16 }
  0x3f   : > { %v502_v24 = vrot.slane %v500_v16, 5  ;;  %v488_v29 = vrot.slane %v487_v19, 4  ;;  %v507_v30 = vrot.slane %v505_v22, 4  ;;  %v518_v31 = vshrl.u32 %v220_v9, 16  ;;  %v6064_v22 = vld [vmem:[%s6290_s6 + $0xa8] sm:$0xff]  }
  0x40   : > { %5698 = vmatmul.mubr.msk.bf16.gmra.mrb[20].mxu0 %vm1092_vm1, %v6060_v61  ;;  %v483_v28 = vsel %vm6323_vm4, %v478_v18, %v482_v0  ;;  %v498_v33 = vrot.slane %v497_v23, 4  ;;  %v510_v10 = vrot.slane %v508_v25, 5  ;;  %v516_v34 = vrot.slane %v514_v26, 5  ;;  %v227_v25 = vld [vmem:[%s6290_s6 + $0x8c] sm:$0xf] }
  0x41   : > { %5701 = vmatprep.mubr.msk.bf16.mxu0 %vm1092_vm1, %v6061_v3  ;;  %v4686_v32 = vcombine.low %v473_v17, %v483_v28  ;;  %v493_v37 = vsel %vm6323_vm4, %v488_v29, %v492_v12  ;;  %v520_v38 = vrot.slane %v518_v31, 4  ;;  %v524_v39 = vshll.u32 %v221_v20, 16  ;;  %v271_v12 = vld [vmem:[%s6290_s6 + $0x88] sm:$0x1]  ;;  %v228_v31 = vld [vmem:[%s6290_s6 + $0x90] sm:$0xf] }
  0x42   : > { %v528_v41 = vshrl.u32 %v221_v20, 16  ;;  %v503_v43 = vsel %vm6323_vm4, %v498_v33, %v502_v24  ;;  %v511_v44 = vor.u32 %v510_v10, %v507_v30  ;;  %v534_v45 = vshll.u32 %v222_v27, 16  ;;  %v6065_v30 = vld [vmem:[%s6290_s6 + $0xb4] sm:$0xff]  }
  0x43   : > { %5561 = vmatprep.mubr.msk.bf16.mxu1 %vm1092_vm1, %v4686_v32  ;;  %v538_v46 = vshrl.u32 %v222_v27, 16  ;;  %v4687_v48 = vcombine.low %v493_v37, %v503_v43  ;;  %v521_v49 = vor.u32 %v520_v38, %v516_v34  ;;  %v526_v50 = vrot.slane %v524_v39, 5 }
  0x44   : > { %v530_v51 = vrot.slane %v528_v41, 4  ;;  %v512_v53 = vrot.slane %v511_v44, 4  ;;  %v536_v54 = vrot.slane %v534_v45, 5  ;;  %v544_v56 = vshll.u32 %v270_v40, 16  ;;  %v230_v45 = vld [vmem:[%s6290_s6 + $0x98] sm:$0xf] }
  0x45   : > { %v540_v55 = vrot.slane %v538_v46, 4  ;;  %v522_v57 = vrot.slane %v521_v49, 4  ;;  %v549_v60 = vshrl.u32 %v223_v47, 16  ;;  %v552_v61 = vshll.u32 %v223_v47, 16 }
  0x46   : > { %v531_v58 = vor.u32 %v530_v51, %v526_v50  ;;  %5562 = vmatmul.mubr.msk.bf16.gmra.mrb[16].mxu1 %vm1092_vm1, %v4687_v48  ;;  %v517_v62 = vsel %vm6323_vm4, %v512_v53, %v516_v34  ;;  %v546_v0 = vrot.slane %v544_v56, 5  ;;  %v558_v1 = vshll.u32 %v224_v52, 16 }
  0x47   : > { %v541_v63 = vor.u32 %v540_v55, %v536_v54  ;;  %v527_v2 = vsel %vm6323_vm4, %v522_v57, %v526_v50  ;;  %v551_v4 = vrot.slane %v549_v60, 4  ;;  %v554_v5 = vrot.slane %v552_v61, 5  ;;  %v272_v50 = vld [vmem:[%s6290_s6 + $0x9c] sm:$0x1] }
  0x48   : > { %5702 = vmatmul.mubr.msk.bf16.gmra.mrb[24].mxu0 %vm1092_vm1, %v6062_v35  ;;  %v532_v3 = vrot.slane %v531_v58, 4  ;;  %v4688_v7 = vcombine.low %v517_v62, %v527_v2  ;;  %v560_v9 = vrot.slane %v558_v1, 5  ;;  %v562_v11 = vshrl.u32 %v224_v52, 16  ;;  %v229_v35 = vld [vmem:[%s6290_s6 + $0x94] sm:$0xf]  ;;  %v6066_v62 = vld [vmem:[%s6290_s6 + $0xbc] sm:$0xff]  }
  0x49   : > { %5705 = vmatprep.mubr.msk.bf16.mxu0 %vm1092_vm1, %v6063_v42  ;;  %v542_v8 = vrot.slane %v541_v63, 4  ;;  %v555_v16 = vor.u32 %v554_v5, %v551_v4  ;;  %v568_v17 = vshll.u32 %v225_v59, 16  ;;  %v572_v18 = vshrl.u32 %v225_v59, 16  ;;  %v231_v59 = vld [vmem:[%s6290_s6 + $0xa0] sm:$0xf]  ;;  %v6067_v1 = vld [vmem:[%s6290_s6 + $0xc8] sm:$0xff]  }
  0x4a   : > { %v537_v15 = vsel %vm6323_vm4, %v532_v3, %v536_v54  ;;  %5565 = vmatprep.mubr.msk.bf16.mxu1 %vm1092_vm1, %v4688_v7  ;;  %v564_v20 = vrot.slane %v562_v11, 4  ;;  %v578_v23 = vshll.u32 %v226_v6, 16  ;;  %v582_v24 = vshrl.u32 %v226_v6, 16  ;;  %v232_v6 = vld [vmem:[%s6290_s6 + $0xa4] sm:$0xf] }
  0x4b   : > { %v547_v19 = vsel %vm6323_vm4, %v542_v8, %v546_v0  ;;  %v556_v27 = vrot.slane %v555_v16, 4  ;;  %v570_v28 = vrot.slane %v568_v17, 5  ;;  %v574_v29 = vrot.slane %v572_v18, 4  ;;  %v233_v17 = vld [vmem:[%s6290_s6 + $0xa8] sm:$0xf] }
  0x4c   : > { %v4689_v26 = vcombine.low %v537_v15, %v547_v19  ;;  %v565_v32 = vor.u32 %v564_v20, %v560_v9  ;;  %v580_v33 = vrot.slane %v578_v23, 5  ;;  %v584_v10 = vrot.slane %v582_v24, 4  ;;  %v234_v24 = vld [vmem:[%s6290_s6 + $0xac] sm:$0xf] }
  0x4d   : > { %v588_v34 = vshll.u32 %v271_v12, 16  ;;  %v561_v37 = vsel %vm6323_vm4, %v556_v27, %v560_v9  ;;  %v575_v38 = vor.u32 %v574_v29, %v570_v28  ;;  %v593_v39 = vshrl.u32 %v227_v25, 16 }
  0x4e   : > { %v596_v40 = vshll.u32 %v227_v25, 16  ;;  %5566 = vmatmul.mubr.msk.bf16.gmra.mrb[20].mxu1 %vm1092_vm1, %v4689_v26  ;;  %v566_v41 = vrot.slane %v565_v32, 4  ;;  %v585_v42 = vor.u32 %v584_v10, %v580_v33  ;;  %v602_v44 = vshll.u32 %v228_v31, 16 }
  0x4f   : > { %v590_v43 = vrot.slane %v588_v34, 5  ;;  %v576_v46 = vrot.slane %v575_v38, 4  ;;  %v595_v47 = vrot.slane %v593_v39, 4  ;;  %v606_v49 = vshrl.u32 %v228_v31, 16  ;;  %v235_v39 = vld [vmem:[%s6290_s6 + $0xb4] sm:$0xf] }
  0x50   : > { %5706 = vmatmul.mubr.msk.bf16.gmra.mrb[28].mxu0 %vm1092_vm1, %v6064_v22  ;;  %v598_v48 = vrot.slane %v596_v40, 5  ;;  %v571_v51 = vsel %vm6323_vm4, %v566_v41, %v570_v28  ;;  %v586_v52 = vrot.slane %v585_v42, 4  ;;  %v604_v53 = vrot.slane %v602_v44, 5  ;;  %v6069_v44 = vld [vmem:[%s6290_s6 + $0xdc] sm:$0xff]  }
  0x51   : > { %5709 = vmatprep.mubr.msk.bf16.mxu0 %vm1092_vm1, %v6065_v30  ;;  %v612_v54 = vshll.u32 %v229_v35, 16  ;;  %v4690_v55 = vcombine.low %v561_v37, %v571_v51  ;;  %v581_v56 = vsel %vm6323_vm4, %v576_v46, %v580_v33  ;;  %v608_v58 = vrot.slane %v606_v49, 4  ;;  %v273_v33 = vld [vmem:[%s6290_s6 + $0xb0] sm:$0x1] }
  0x52   : > { %v599_v57 = vor.u32 %v598_v48, %v595_v47  ;;  %v591_v60 = vsel %vm6323_vm4, %v586_v52, %v590_v43  ;;  %v616_v63 = vshrl.u32 %v229_v35, 16  ;;  %v622_v0 = vshll.u32 %v230_v45, 16  ;;  %v6068_v37 = vld [vmem:[%s6290_s6 + $0xd0] sm:$0xff]  }
  0x53   : > { %v614_v61 = vrot.slane %v612_v54, 5  ;;  %5569 = vmatprep.mubr.msk.bf16.mxu1 %vm1092_vm1, %v4690_v55  ;;  %v4691_v2 = vcombine.low %v581_v56, %v591_v60  ;;  %v609_v4 = vor.u32 %v608_v58, %v604_v53  ;;  %v626_v5 = vshrl.u32 %v230_v45, 16  ;;  %v236_v45 = vld [vmem:[%s6290_s6 + $0xb8] sm:$0xf] }
  0x54   : > { %v600_v3 = vrot.slane %v599_v57, 4  ;;  %v618_v7 = vrot.slane %v616_v63, 4  ;;  %v624_v8 = vrot.slane %v622_v0, 5  ;;  %v632_v9 = vshll.u32 %v272_v50, 16  ;;  %v237_v57 = vld [vmem:[%s6290_s6 + $0xbc] sm:$0xf] }
  0x55   : > { %v637_v11 = vshrl.u32 %v231_v59, 16  ;;  %v610_v15 = vrot.slane %v609_v4, 4  ;;  %v628_v16 = vrot.slane %v626_v5, 4  ;;  %v640_v18 = vshll.u32 %v231_v59, 16 }
  0x56   : > { %v605_v12 = vsel %vm6323_vm4, %v600_v3, %v604_v53  ;;  %5570 = vmatmul.mubr.msk.bf16.gmra.mrb[24].mxu1 %vm1092_vm1, %v4691_v2  ;;  %v619_v19 = vor.u32 %v618_v7, %v614_v61  ;;  %v634_v20 = vrot.slane %v632_v9, 5  ;;  %v646_v23 = vshll.u32 %v232_v6, 16  ;;  %v238_v3 = vld [vmem:[%s6290_s6 + $0xc0] sm:$0xf] }
  0x57   : > { %v639_v22 = vrot.slane %v637_v11, 4  ;;  %v615_v25 = vsel %vm6323_vm4, %v610_v15, %v614_v61  ;;  %v629_v26 = vor.u32 %v628_v16, %v624_v8  ;;  %v642_v27 = vrot.slane %v640_v18, 5  ;;  %v6070_v15 = vld [vmem:[%s6290_s6 + $0xe4] sm:$0xff]  }
  0x58   : > { %5710 = vmatmul.mubr.msk.bf16.gmra.mrb[32].mxu0 %vm1092_vm1, %v6066_v62  ;;  %v650_v28 = vshrl.u32 %v232_v6, 16  ;;  %v4692_v29 = vcombine.low %v605_v12, %v615_v25  ;;  %v620_v30 = vrot.slane %v619_v19, 4  ;;  %v648_v31 = vrot.slane %v646_v23, 5 }
  0x59   : > { %5713 = vmatprep.mubr.msk.bf16.mxu0 %vm1092_vm1, %v6067_v1  ;;  %v656_v32 = vshll.u32 %v233_v17, 16  ;;  %v630_v10 = vrot.slane %v629_v26, 4  ;;  %v643_v34 = vor.u32 %v642_v27, %v639_v22  ;;  %v660_v38 = vshrl.u32 %v233_v17, 16  ;;  %v239_v17 = vld [vmem:[%s6290_s6 + $0xc8] sm:$0xf]  ;;  %v6071_v27 = vld [vmem:[%s6290_s6 + $0xf0] sm:$0xff]  }
  0x5a   : > { %v652_v35 = vrot.slane %v650_v28, 4  ;;  %5573 = vmatprep.mubr.msk.bf16.mxu1 %vm1092_vm1, %v4692_v29  ;;  %v625_v40 = vsel %vm6323_vm4, %v620_v30, %v624_v8  ;;  %v666_v42 = vshll.u32 %v234_v24, 16  ;;  %v670_v43 = vshrl.u32 %v234_v24, 16  ;;  %v274_v8 = vld [vmem:[%s6290_s6 + $0xc4] sm:$0x1] }
  0x5b   : > { %v658_v41 = vrot.slane %v656_v32, 5  ;;  %v635_v46 = vsel %vm6323_vm4, %v630_v10, %v634_v20  ;;  %v644_v47 = vrot.slane %v643_v34, 4  ;;  %v662_v49 = vrot.slane %v660_v38, 4  ;;  %v240_v28 = vld [vmem:[%s6290_s6 + $0xcc] sm:$0xf] }
  0x5c   : > { %v653_v48 = vor.u32 %v652_v35, %v648_v31  ;;  %v4693_v50 = vcombine.low %v625_v40, %v635_v46  ;;  %v668_v51 = vrot.slane %v666_v42, 5  ;;  %v672_v52 = vrot.slane %v670_v43, 4  ;;  %v241_v40 = vld [vmem:[%s6290_s6 + $0xd0] sm:$0xf]  ;;  %v242_v42 = vld [vmem:[%s6290_s6 + $0xd4] sm:$0xf] }
  0x5d   : > { %v676_v53 = vshll.u32 %v273_v33, 16  ;;  %v649_v54 = vsel %vm6323_vm4, %v644_v47, %v648_v31  ;;  %v663_v56 = vor.u32 %v662_v49, %v658_v41  ;;  %v681_v58 = vshrl.u32 %v235_v39, 16  ;;  %v275_v47 = vld [vmem:[%s6290_s6 + $0xd8] sm:$0x1] }
  0x5e   : > { %v654_v55 = vrot.slane %v653_v48, 4  ;;  %5574 = vmatmul.mubr.msk.bf16.gmra.mrb[28].mxu1 %vm1092_vm1, %v4693_v50  ;;  %v673_v59 = vor.u32 %v672_v52, %v668_v51  ;;  %v684_v61 = vshll.u32 %v235_v39, 16  ;;  %v690_v62 = vshll.u32 %v236_v45, 16 }
  0x5f   : > { %v678_v60 = vrot.slane %v676_v53, 5  ;;  %v664_v0 = vrot.slane %v663_v56, 4  ;;  %v683_v1 = vrot.slane %v681_v58, 4  ;;  %v694_v2 = vshrl.u32 %v236_v45, 16  ;;  %v243_v56 = vld [vmem:[%s6290_s6 + $0xdc] sm:$0xf] }
  0x60   : > { %5714 = vmatmul.mubr.msk.bf16.gmra.mrb[36].mxu0 %vm1092_vm1, %v6068_v37  ;;  %v659_v63 = vsel %vm6323_vm4, %v654_v55, %v658_v41  ;;  %v674_v5 = vrot.slane %v673_v59, 4  ;;  %v686_v6 = vrot.slane %v684_v61, 5  ;;  %v692_v7 = vrot.slane %v690_v62, 5  ;;  %v6072_v59 = vld [vmem:[%s6290_s6 + $0xf8] sm:$0xff]   ;;  %v244_v62 = vld [vmem:[%s6290_s6 + $0xe0] sm:$0xf] }
  0x61   : > { %5717 = vmatprep.mubr.msk.bf16.mxu0 %vm1092_vm1, %v6069_v44  ;;  %v4694_v4 = vcombine.low %v649_v54, %v659_v63  ;;  %v669_v9 = vsel %vm6323_vm4, %v664_v0, %v668_v51  ;;  %v696_v11 = vrot.slane %v694_v2, 4  ;;  %v700_v12 = vshll.u32 %v237_v57, 16 }
  0x62   : > { %v704_v16 = vshrl.u32 %v237_v57, 16  ;;  %v679_v18 = vsel %vm6323_vm4, %v674_v5, %v678_v60  ;;  %v687_v19 = vor.u32 %v686_v6, %v683_v1  ;;  %v710_v20 = vshll.u32 %v238_v3, 16 }
  0x63   : > { %5577 = vmatprep.mubr.msk.bf16.mxu1 %vm1092_vm1, %v4694_v4  ;;  %v714_v22 = vshrl.u32 %v238_v3, 16  ;;  %v4695_v23 = vcombine.low %v669_v9, %v679_v18  ;;  %v697_v24 = vor.u32 %v696_v11, %v692_v7  ;;  %v702_v25 = vrot.slane %v700_v12, 5  ;;  %v6073_v3 = vld [vmem:[%s6290_s6 + $0x104] sm:$0xff]  }
  0x64   : > { %v706_v26 = vrot.slane %v704_v16, 4  ;;  %v688_v29 = vrot.slane %v687_v19, 4  ;;  %v712_v30 = vrot.slane %v710_v20, 5  ;;  %v720_v32 = vshll.u32 %v274_v8, 16  ;;  %v245_v11 = vld [vmem:[%s6290_s6 + $0xe4] sm:$0xf] }
  0x65   : > { %v716_v31 = vrot.slane %v714_v22, 4  ;;  %v698_v33 = vrot.slane %v697_v24, 4  ;;  %v725_v34 = vshrl.u32 %v239_v17, 16  ;;  %v728_v35 = vshll.u32 %v239_v17, 16  ;;  %v246_v20 = vld [vmem:[%s6290_s6 + $0xe8] sm:$0xf] }
  0x66   : > { %v707_v10 = vor.u32 %v706_v26, %v702_v25  ;;  %5578 = vmatmul.mubr.msk.bf16.gmra.mrb[32].mxu1 %vm1092_vm1, %v4695_v23  ;;  %v693_v37 = vsel %vm6323_vm4, %v688_v29, %v692_v7  ;;  %v722_v39 = vrot.slane %v720_v32, 5  ;;  %v734_v41 = vshll.u32 %v240_v28, 16 }
  0x67   : > { %v717_v38 = vor.u32 %v716_v31, %v712_v30  ;;  %v703_v43 = vsel %vm6323_vm4, %v698_v33, %v702_v25  ;;  %v727_v45 = vrot.slane %v725_v34, 4  ;;  %v730_v46 = vrot.slane %v728_v35, 5  ;;  %v276_v34 = vld [vmem:[%s6290_s6 + $0xec] sm:$0x1]  ;;  %v247_v35 = vld [vmem:[%s6290_s6 + $0xf0] sm:$0xf] }
  0x68   : > { %5718 = vmatmul.mubr.msk.bf16.gmra.mrb[40].mxu0 %vm1092_vm1, %v6070_v15  ;;  %v708_v44 = vrot.slane %v707_v10, 4  ;;  %v4696_v48 = vcombine.low %v693_v37, %v703_v43  ;;  %v736_v50 = vrot.slane %v734_v41, 5  ;;  %v738_v51 = vshrl.u32 %v240_v28, 16  ;;  %v6074_v10 = vld [vmem:[%s6290_s6 + $0x10c] sm:$0xff]   ;;  %v6075_v41 = vld [vmem:[%s6290_s6 + $0x118] sm:$0xff]  }
  0x69   : > { %5721 = vmatprep.mubr.msk.bf16.mxu0 %vm1092_vm1, %v6071_v27  ;;  %v718_v49 = vrot.slane %v717_v38, 4  ;;  %v731_v53 = vor.u32 %v730_v46, %v727_v45  ;;  %v744_v54 = vshll.u32 %v241_v40, 16  ;;  %v748_v55 = vshrl.u32 %v241_v40, 16  ;;  %v248_v46 = vld [vmem:[%s6290_s6 + $0xf4] sm:$0xf] }
  0x6a   : > { %v713_v52 = vsel %vm6323_vm4, %v708_v44, %v712_v30  ;;  %5581 = vmatprep.mubr.msk.bf16.mxu1 %vm1092_vm1, %v4696_v48  ;;  %v740_v58 = vrot.slane %v738_v51, 4  ;;  %v754_v60 = vshll.u32 %v242_v42, 16  ;;  %v758_v61 = vshrl.u32 %v242_v42, 16 }
  0x6b   : > { %v723_v57 = vsel %vm6323_vm4, %v718_v49, %v722_v39  ;;  %v732_v0 = vrot.slane %v731_v53, 4  ;;  %v746_v1 = vrot.slane %v744_v54, 5  ;;  %v750_v2 = vrot.slane %v748_v55, 4  ;;  %v249_v54 = vld [vmem:[%s6290_s6 + $0xf8] sm:$0xf] }
  0x6c   : > { %v4697_v63 = vcombine.low %v713_v52, %v723_v57  ;;  %v741_v4 = vor.u32 %v740_v58, %v736_v50  ;;  %v756_v5 = vrot.slane %v754_v60, 5  ;;  %v760_v6 = vrot.slane %v758_v61, 4 }
  0x6d   : > { %v764_v7 = vshll.u32 %v275_v47, 16  ;;  %v737_v8 = vsel %vm6323_vm4, %v732_v0, %v736_v50  ;;  %v751_v9 = vor.u32 %v750_v2, %v746_v1  ;;  %v769_v12 = vshrl.u32 %v243_v56, 16  ;;  %v250_v0 = vld [vmem:[%s6290_s6 + $0xfc] sm:$0xf] }
  0x6e   : > { %v772_v15 = vshll.u32 %v243_v56, 16  ;;  %5582 = vmatmul.mubr.msk.bf16.gmra.mrb[36].mxu1 %vm1092_vm1, %v4697_v63  ;;  %v742_v16 = vrot.slane %v741_v4, 4  ;;  %v761_v17 = vor.u32 %v760_v6, %v756_v5  ;;  %v778_v19 = vshll.u32 %v244_v62, 16 }
  0x6f   : > { %v766_v18 = vrot.slane %v764_v7, 5  ;;  %v752_v22 = vrot.slane %v751_v9, 4  ;;  %v771_v23 = vrot.slane %v769_v12, 4  ;;  %v782_v25 = vshrl.u32 %v244_v62, 16 }
  0x70   : > { %5722 = vmatmul.mubr.msk.bf16.gmra.mrb[44].mxu0 %vm1092_vm1, %v6072_v59  ;;  %v774_v24 = vrot.slane %v772_v15, 5  ;;  %v747_v26 = vsel %vm6323_vm4, %v742_v16, %v746_v1  ;;  %v762_v27 = vrot.slane %v761_v17, 4  ;;  %v780_v28 = vrot.slane %v778_v19, 5  ;;  %v6076_v15 = vld [vmem:[%s6290_s6 + $0x120] sm:$0xff]  }
  0x71   : > { %5725 = vmatprep.mubr.msk.bf16.mxu0 %vm1092_vm1, %v6073_v3  ;;  %v788_v29 = vshll.u32 %v245_v11, 16  ;;  %v4698_v30 = vcombine.low %v737_v8, %v747_v26  ;;  %v757_v31 = vsel %vm6323_vm4, %v752_v22, %v756_v5  ;;  %v784_v33 = vrot.slane %v782_v25, 4  ;;  %v277_v8 = vld [vmem:[%s6290_s6 + $0x100] sm:$0x1]  ;;  %v252_v25 = vld [vmem:[%s6290_s6 + $0x108] sm:$0xf] }
  0x72   : > { %v775_v32 = vor.u32 %v774_v24, %v771_v23  ;;  %v767_v37 = vsel %vm6323_vm4, %v762_v27, %v766_v18  ;;  %v792_v39 = vshrl.u32 %v245_v11, 16  ;;  %v798_v40 = vshll.u32 %v246_v20, 16  ;;  %v251_v18 = vld [vmem:[%s6290_s6 + $0x104] sm:$0xf]  ;;  %v6077_v24 = vld [vmem:[%s6290_s6 + $0x12c] sm:$0xff]  }
  0x73   : > { %v790_v38 = vrot.slane %v788_v29, 5  ;;  %5585 = vmatprep.mubr.msk.bf16.mxu1 %vm1092_vm1, %v4698_v30  ;;  %v4699_v42 = vcombine.low %v757_v31, %v767_v37  ;;  %v785_v44 = vor.u32 %v784_v33, %v780_v28  ;;  %v802_v45 = vshrl.u32 %v246_v20, 16 }
  0x74   : > { %v776_v43 = vrot.slane %v775_v32, 4  ;;  %v794_v47 = vrot.slane %v792_v39, 4  ;;  %v800_v48 = vrot.slane %v798_v40, 5  ;;  %v808_v49 = vshll.u32 %v276_v34, 16 }
  0x75   : > { %v813_v50 = vshrl.u32 %v247_v35, 16  ;;  %v786_v52 = vrot.slane %v785_v44, 4  ;;  %v804_v53 = vrot.slane %v802_v45, 4  ;;  %v816_v55 = vshll.u32 %v247_v35, 16  ;;  %v253_v35 = vld [vmem:[%s6290_s6 + $0x10c] sm:$0xf] }
  0x76   : > { %v781_v51 = vsel %vm6323_vm4, %v776_v43, %v780_v28  ;;  %5586 = vmatmul.mubr.msk.bf16.gmra.mrb[40].mxu1 %vm1092_vm1, %v4699_v42  ;;  %v795_v56 = vor.u32 %v794_v47, %v790_v38  ;;  %v810_v57 = vrot.slane %v808_v49, 5  ;;  %v822_v59 = vshll.u32 %v248_v46, 16  ;;  %v254_v43 = vld [vmem:[%s6290_s6 + $0x110] sm:$0xf] }
  0x77   : > { %v815_v58 = vrot.slane %v813_v50, 4  ;;  %v791_v60 = vsel %vm6323_vm4, %v786_v52, %v790_v38  ;;  %v805_v61 = vor.u32 %v804_v53, %v800_v48  ;;  %v818_v62 = vrot.slane %v816_v55, 5  ;;  %v6078_v55 = vld [vmem:[%s6290_s6 + $0x134] sm:$0xff]  }
  0x78   : > { %5726 = vmatmul.mubr.msk.bf16.gmra.mrb[48].mxu0 %vm1092_vm1, %v6074_v10  ;;  %v826_v63 = vshrl.u32 %v248_v46, 16  ;;  %v4700_v1 = vcombine.low %v781_v51, %v791_v60  ;;  %v796_v2 = vrot.slane %v795_v56, 4  ;;  %v824_v3 = vrot.slane %v822_v59, 5  ;;  %v278_v51 = vld [vmem:[%s6290_s6 + $0x114] sm:$0x1] }
  0x79   : > { %5729 = vmatprep.mubr.msk.bf16.mxu0 %vm1092_vm1, %v6075_v41  ;;  %v832_v4 = vshll.u32 %v249_v54, 16  ;;  %v806_v5 = vrot.slane %v805_v61, 4  ;;  %v819_v6 = vor.u32 %v818_v62, %v815_v58  ;;  %v836_v9 = vshrl.u32 %v249_v54, 16  ;;  %v255_v58 = vld [vmem:[%s6290_s6 + $0x118] sm:$0xf] }
  0x7a   : > { %v828_v7 = vrot.slane %v826_v63, 4  ;;  %5589 = vmatprep.mubr.msk.bf16.mxu1 %vm1092_vm1, %v4700_v1  ;;  %v801_v11 = vsel %vm6323_vm4, %v796_v2, %v800_v48  ;;  %v842_v16 = vshll.u32 %v250_v0, 16  ;;  %v846_v17 = vshrl.u32 %v250_v0, 16  ;;  %v6079_v63 = vld [vmem:[%s6290_s6 + $0x140] sm:$0xff]   ;;  %v256_v0 = vld [vmem:[%s6290_s6 + $0x11c] sm:$0xf] }
  0x7b   : > { %v834_v12 = vrot.slane %v832_v4, 5  ;;  %v811_v19 = vsel %vm6323_vm4, %v806_v5, %v810_v57  ;;  %v820_v20 = vrot.slane %v819_v6, 4  ;;  %v838_v23 = vrot.slane %v836_v9, 4 }
  0x7c   : > { %v829_v22 = vor.u32 %v828_v7, %v824_v3  ;;  %v4701_v26 = vcombine.low %v801_v11, %v811_v19  ;;  %v844_v27 = vrot.slane %v842_v16, 5  ;;  %v848_v28 = vrot.slane %v846_v17, 4 }
  0x7d   : > { %v852_v29 = vshll.u32 %v277_v8, 16  ;;  %v825_v30 = vsel %vm6323_vm4, %v820_v20, %v824_v3  ;;  %v839_v32 = vor.u32 %v838_v23, %v834_v12  ;;  %v857_v33 = vshrl.u32 %v251_v18, 16 }
  0x7e   : > { %v830_v31 = vrot.slane %v829_v22, 4  ;;  %5590 = vmatmul.mubr.msk.bf16.gmra.mrb[44].mxu1 %vm1092_vm1, %v4701_v26  ;;  %v849_v10 = vor.u32 %v848_v28, %v844_v27  ;;  %v860_v37 = vshll.u32 %v251_v18, 16  ;;  %v866_v38 = vshll.u32 %v252_v25, 16  ;;  %v258_v22 = vld [vmem:[%s6290_s6 + $0x124] sm:$0xf] }
  0x7f   : > { %v854_v34 = vrot.slane %v852_v29, 5  ;;  %v840_v40 = vrot.slane %v839_v32, 4  ;;  %v859_v41 = vrot.slane %v857_v33, 4  ;;  %v870_v42 = vshrl.u32 %v252_v25, 16 }
  0x80   : > { %5730 = vmatmul.mubr.msk.bf16.gmra.mrb[52].mxu0 %vm1092_vm1, %v6076_v15  ;;  %v835_v39 = vsel %vm6323_vm4, %v830_v31, %v834_v12  ;;  %v850_v45 = vrot.slane %v849_v10, 4  ;;  %v862_v46 = vrot.slane %v860_v37, 5  ;;  %v868_v47 = vrot.slane %v866_v38, 5  ;;  %v257_v15 = vld [vmem:[%s6290_s6 + $0x120] sm:$0xf]  ;;  %v6080_v10 = vld [vmem:[%s6290_s6 + $0x148] sm:$0xff]  }
  0x81   : > { %5733 = vmatprep.mubr.msk.bf16.mxu0 %vm1092_vm1, %v6077_v24  ;;  %v4702_v44 = vcombine.low %v825_v30, %v835_v39  ;;  %v845_v48 = vsel %vm6323_vm4, %v840_v40, %v844_v27  ;;  %v872_v49 = vrot.slane %v870_v42, 4  ;;  %v876_v50 = vshll.u32 %v253_v35, 16  ;;  %v279_v30 = vld [vmem:[%s6290_s6 + $0x128] sm:$0x1]  ;;  %v4941_v37 = vld [vmem:[%s6290_s6 + $0x14] sm:$0xf] }
  0x82   : > { %v880_v52 = vshrl.u32 %v253_v35, 16  ;;  %v855_v53 = vsel %vm6323_vm4, %v850_v45, %v854_v34  ;;  %v863_v54 = vor.u32 %v862_v46, %v859_v41  ;;  %v886_v56 = vshll.u32 %v254_v43, 16  ;;  %v4942_v42 = vld [vmem:[%s6290_s6 + $0x18] sm:$0xf] }
  0x83   : > { %5593 = vmatprep.mubr.msk.bf16.mxu1 %vm1092_vm1, %v4702_v44  ;;  %v890_v57 = vshrl.u32 %v254_v43, 16  ;;  %v4703_v59 = vcombine.low %v845_v48, %v855_v53  ;;  %v873_v60 = vor.u32 %v872_v49, %v868_v47  ;;  %v878_v61 = vrot.slane %v876_v50, 5  ;;  %v4943_v49 = vld [vmem:[%s6290_s6 + $0x1c] sm:$0xf] }
  0x84   : > { %v882_v62 = vrot.slane %v880_v52, 4  ;;  %v864_v1 = vrot.slane %v863_v54, 4  ;;  %v888_v2 = vrot.slane %v886_v56, 5  ;;  %v896_v4 = vshll.u32 %v278_v51, 16 }
  0x85   : > { %v892_v3 = vrot.slane %v890_v57, 4  ;;  %v874_v5 = vrot.slane %v873_v60, 4  ;;  %v901_v7 = vshrl.u32 %v255_v58, 16  ;;  %v904_v8 = vshll.u32 %v255_v58, 16  ;;  %v259_v60 = vld [vmem:[%s6290_s6 + $0x12c] sm:$0xf] }
  0x86   : > { %v883_v6 = vor.u32 %v882_v62, %v878_v61  ;;  %5594 = vmatmul.mubr.msk.bf16.gmra.mrb[48].mxu1 %vm1092_vm1, %v4703_v59  ;;  %v869_v9 = vsel %vm6323_vm4, %v864_v1, %v868_v47  ;;  %v898_v12 = vrot.slane %v896_v4, 5  ;;  %v910_v16 = vshll.u32 %v256_v0, 16 }
  0x87   : > { %v893_v11 = vor.u32 %v892_v3, %v888_v2  ;;  %v879_v17 = vsel %vm6323_vm4, %v874_v5, %v878_v61  ;;  %v903_v19 = vrot.slane %v901_v7, 4  ;;  %v906_v20 = vrot.slane %v904_v8, 5  ;;  %v260_v5 = vld [vmem:[%s6290_s6 + $0x130] sm:$0xf] }
  0x88   : > { %5734 = vmatmul.mubr.msk.bf16.gmra.mrb[56].mxu0 %vm1092_vm1, %v6078_v55  ;;  %v884_v18 = vrot.slane %v883_v6, 4  ;;  %v4704_v23 = vcombine.low %v869_v9, %v879_v17  ;;  %v912_v25 = vrot.slane %v910_v16, 5  ;;  %v914_v26 = vshrl.u32 %v256_v0, 16  ;;  %v261_v9 = vld [vmem:[%s6290_s6 + $0x134] sm:$0xf] }
  0x89   : > { %5737 = vmatprep.mubr.msk.bf16.mxu0 %vm1092_vm1, %v6079_v63  ;;  %v894_v24 = vrot.slane %v893_v11, 4  ;;  %v907_v28 = vor.u32 %v906_v20, %v903_v19  ;;  %v920_v29 = vshll.u32 %v257_v15, 16  ;;  %v924_v31 = vshrl.u32 %v257_v15, 16 }
  0x8a   : > { %v889_v27 = vsel %vm6323_vm4, %v884_v18, %v888_v2  ;;  %5597 = vmatprep.mubr.msk.bf16.mxu1 %vm1092_vm1, %v4704_v23  ;;  %v916_v33 = vrot.slane %v914_v26, 4  ;;  %v930_v34 = vshll.u32 %v258_v22, 16  ;;  %v934_v35 = vshrl.u32 %v258_v22, 16  ;;  %v4944_v18 = vld [vmem:[%s6290_s6 + $0x20] sm:$0xf] }
  0x8b   : > { %v899_v32 = vsel %vm6323_vm4, %v894_v24, %v898_v12  ;;  %v908_v39 = vrot.slane %v907_v28, 4  ;;  %v922_v40 = vrot.slane %v920_v29, 5  ;;  %v926_v41 = vrot.slane %v924_v31, 4  ;;  %v4945_v31 = vld [vmem:[%s6290_s6 + $0x24] sm:$0x1] }
  0x8c   : > { %v4705_v38 = vcombine.low %v889_v27, %v899_v32  ;;  %v917_v43 = vor.u32 %v916_v33, %v912_v25  ;;  %v932_v44 = vrot.slane %v930_v34, 5  ;;  %v936_v45 = vrot.slane %v934_v35, 4 }
  0x8d   : > { %v940_v46 = vshll.u32 %v279_v30, 16  ;;  %v913_v47 = vsel %vm6323_vm4, %v908_v39, %v912_v25  ;;  %v927_v48 = vor.u32 %v926_v41, %v922_v40  ;;  %v2804_v50 = vshrl.u32 %v4941_v37, 16 }
  0x8e   : > { %v2807_v51 = vshll.u32 %v4941_v37, 16  ;;  %5598 = vmatmul.mubr.msk.bf16.gmra.mrb[52].mxu1 %vm1092_vm1, %v4705_v38  ;;  %v918_v52 = vrot.slane %v917_v43, 4  ;;  %v937_v53 = vor.u32 %v936_v45, %v932_v44  ;;  %v2813_v55 = vshll.u32 %v4942_v42, 16  ;;  %v262_v37 = vld [vmem:[%s6290_s6 + $0x138] sm:$0xf] }
  0x8f   : > { %v942_v54 = vrot.slane %v940_v46, 5  ;;  %v928_v56 = vrot.slane %v927_v48, 4  ;;  %v2806_v57 = vrot.slane %v2804_v50, 4  ;;  %v2817_v59 = vshrl.u32 %v4942_v42, 16  ;;  %v280_v45 = vld [vmem:[%s6290_s6 + $0x13c] sm:$0x1] }
  0x90   : > { %5738 = vmatmul.mubr.msk.bf16.gmra.mrb[60].mxu0 %vm1092_vm1, %v6080_v10  ;;  %v2809_v58 = vrot.slane %v2807_v51, 5  ;;  %v923_v61 = vsel %vm6323_vm4, %v918_v52, %v922_v40  ;;  %v938_v62 = vrot.slane %v937_v53, 4  ;;  %v2815_v63 = vrot.slane %v2813_v55, 5  ;;  %v4946_v51 = vld [vmem:[%s6290_s6 + $0x28] sm:$0xf] }
  0x91   : > { %v2823_v0 = vshll.u32 %v4943_v49, 16  ;;  %v4706_v1 = vcombine.low %v913_v47, %v923_v61  ;;  %v933_v2 = vsel %vm6323_vm4, %v928_v56, %v932_v44  ;;  %v2819_v4 = vrot.slane %v2817_v59, 4  ;;  %v4947_v56 = vld [vmem:[%s6290_s6 + $0x2c] sm:$0xf] }
  0x92   : > { %v2810_v3 = vor.u32 %v2809_v58, %v2806_v57  ;;  %v943_v6 = vsel %vm6323_vm4, %v938_v62, %v942_v54  ;;  %v2827_v8 = vshrl.u32 %v4943_v49, 16  ;;  %v945_v11 = vshrl.u32 %v259_v60, 16 }
  0x93   : > { %v2825_v7 = vrot.slane %v2823_v0, 5  ;;  %5601 = vmatprep.mubr.msk.bf16.mxu1 %vm1092_vm1, %v4706_v1  ;;  %v4707_v12 = vcombine.low %v933_v2, %v943_v6  ;;  %v2820_v16 = vor.u32 %v2819_v4, %v2815_v63  ;;  %v948_v17 = vshll.u32 %v259_v60, 16 }
  0x94   : > { %v2811_v15 = vrot.slane %v2810_v3, 4  ;;  %v2829_v19 = vrot.slane %v2827_v8, 4  ;;  %v947_v20 = vrot.slane %v945_v11, 4  ;;  %v954_v22 = vshll.u32 %v260_v5, 16  ;;  %v4948_v3 = vld [vmem:[%s6290_s6 + $0x30] sm:$0xf] }
  0x95   : > { %v958_v23 = vshrl.u32 %v260_v5, 16  ;;  %v2821_v25 = vrot.slane %v2820_v16, 4  ;;  %v950_v26 = vrot.slane %v948_v17, 5  ;;  %v964_v27 = vshll.u32 %v261_v9, 16  ;;  %v4949_v11 = vld [vmem:[%s6290_s6 + $0x34] sm:$0xf] }
  0x96   : > { %v2816_v24 = vsel %vm6323_vm4, %v2811_v15, %v2815_v63  ;;  %5602 = vmatmul.mubr.msk.bf16.gmra.mrb[56].mxu1 %vm1092_vm1, %v4707_v12  ;;  %v2830_v28 = vor.u32 %v2829_v19, %v2825_v7  ;;  %v956_v29 = vrot.slane %v954_v22, 5  ;;  %v2833_v32 = vshll.u32 %v4944_v18, 16 }
  0x97   : > { %v960_v30 = vrot.slane %v958_v23, 4  ;;  %v2826_v33 = vsel %vm6323_vm4, %v2821_v25, %v2825_v7  ;;  %v951_v10 = vor.u32 %v950_v26, %v947_v20  ;;  %v966_v34 = vrot.slane %v964_v27, 5  ;;  %v4950_v23 = vld [vmem:[%s6290_s6 + $0x38] sm:$0x1]  ;;  %v6112_v26 = vld [vmem:[%s6290_s6] sm:$0xf] }
  0x98   : > { %v2837_v35 = vshrl.u32 %v4944_v18, 16  ;;  %v2831_v38 = vrot.slane %v2830_v28, 4  ;;  %v5023_v39 = vcombine.low %v2816_v24, %v2826_v33  ;;  %v2835_v41 = vrot.slane %v2833_v32, 5  ;;  %v6113_v27 = vld [vmem:[%s6290_s6 + $0x4] sm:$0xf] }
  0x99   : > { %v961_v40 = vor.u32 %v960_v30, %v956_v29  ;;  %v952_v42 = vrot.slane %v951_v10, 4  ;;  %v2843_v44 = vshll.u32 %v4945_v31, 16  ;;  %v968_v46 = vshrl.u32 %v261_v9, 16  ;;  %v4951_v30 = vld [vmem:[%s6290_s6 + $0x3c] sm:$0xf] }
  0x9a   : > { %v2839_v43 = vrot.slane %v2837_v35, 4  ;;  %5743 = vmatprep.mubr.msk.bf16.mxu0 %vm1092_vm1, %v5023_v39  ;;  %v2836_v48 = vsel %vm6323_vm4, %v2831_v38, %v2835_v41  ;;  %v974_v49 = vshll.u32 %v262_v37, 16  ;;  %v978_v50 = vshrl.u32 %v262_v37, 16 }
  0x9b   : > { %v962_v47 = vrot.slane %v961_v40, 4  ;;  %v957_v52 = vsel %vm6323_vm4, %v952_v42, %v956_v29  ;;  %v2845_v54 = vrot.slane %v2843_v44, 5  ;;  %v970_v55 = vrot.slane %v968_v46, 4 }
  0x9c   : > { %v2840_v53 = vor.u32 %v2839_v43, %v2835_v41  ;;  %v976_v58 = vrot.slane %v974_v49, 5  ;;  %v980_v59 = vrot.slane %v978_v50, 4  ;;  %v984_v60 = vshll.u32 %v280_v45, 16 }
  0x9d   : > { %v967_v57 = vsel %vm6323_vm4, %v962_v47, %v966_v34  ;;  %v971_v63 = vor.u32 %v970_v55, %v966_v34  ;;  %v2848_v0 = vshrl.u32 %v4946_v51, 16  ;;  %v2851_v4 = vshll.u32 %v4946_v51, 16  ;;  %v4952_v34 = vld [vmem:[%s6290_s6 + $0x40] sm:$0xf]  ;;  %v4953_v47 = vld [vmem:[%s6290_s6 + $0x44] sm:$0xf] }
  0x9e   : > { %v4708_v61 = vcombine.low %v957_v52, %v967_v57  ;;  %v2841_v62 = vrot.slane %v2840_v53, 4  ;;  %v981_v1 = vor.u32 %v980_v59, %v976_v58  ;;  %v986_v2 = vrot.slane %v984_v60, 5  ;;  %v4954_v53 = vld [vmem:[%s6290_s6 + $0x48] sm:$0xf] }
  0x9f   : > { %v2857_v5 = vshll.u32 %v4947_v56, 16  ;;  %v972_v7 = vrot.slane %v971_v63, 4  ;;  %v2850_v8 = vrot.slane %v2848_v0, 4  ;;  %v2861_v9 = vshrl.u32 %v4947_v56, 16 }
  0xa0   : > { %5605 = vmatprep.mubr.msk.bf16.mxu1 %vm1092_vm1, %v4708_v61  ;;  %v2846_v6 = vsel %vm6323_vm4, %v2841_v62, %v2845_v54  ;;  %v982_v15 = vrot.slane %v981_v1, 4  ;;  %v2853_v16 = vrot.slane %v2851_v4, 5  ;;  %v2867_v20 = vshll.u32 %v4948_v3, 16  ;;  %v4955_v62 = vld [vmem:[%s6290_s6 + $0x4c] sm:$0x1] }
  0xa1   : > { %v5024_v12 = vcombine.low %v2836_v48, %v2846_v6  ;;  %v2859_v17 = vrot.slane %v2857_v5, 5  ;;  %v977_v18 = vsel %vm6323_vm4, %v972_v7, %v976_v58  ;;  %v2863_v19 = vrot.slane %v2861_v9, 4  ;;  %v6114_v1 = vld [vmem:[%s6290_s6 + $0x14] sm:$0xf]  ;;  %v4956_v9 = vld [vmem:[%s6290_s6 + $0x50] sm:$0xf] }
  0xa2   : > { %v2871_v22 = vshrl.u32 %v4948_v3, 16  ;;  %v987_v24 = vsel %vm6323_vm4, %v982_v15, %v986_v2  ;;  %v2854_v25 = vor.u32 %v2853_v16, %v2850_v8  ;;  %v4743_v28 = vcombine.low %v6112_v26, %v6113_v27  ;;  %v6115_v2 = vld [vmem:[%s6290_s6 + $0x18] sm:$0xf]  ;;  %v6116_v26 = vld [vmem:[%s6290_s6 + $0x1c] sm:$0xf] }
  0xa3   : > { %5744 = vmatmul.mubr.msk.bf16.vlgmr.msra.gmra.mrb[0].mxu0 %vm1092_vm1, %v5024_v12  ;;  %v2877_v29 = vshll.u32 %v4949_v11, 16  ;;  %v4709_v31 = vcombine.low %v977_v18, %v987_v24  ;;  %v2864_v32 = vor.u32 %v2863_v19, %v2859_v17  ;;  %v2869_v33 = vrot.slane %v2867_v20, 5  ;;  %v6117_v27 = vld [vmem:[%s6290_s6 + $0x20] sm:$0xf] }
  0xa4   : > { %v2873_v10 = vrot.slane %v2871_v22, 4  ;;  %v2855_v35 = vrot.slane %v2854_v25, 4  ;;  %v2881_v38 = vshrl.u32 %v4949_v11, 16  ;;  %v2887_v39 = vshll.u32 %v4950_v23, 16  ;;  %v4958_v23 = vld [vmem:[%s6290_s6 + $0x58] sm:$0xf] }
  0xa5   : > { %v2879_v37 = vrot.slane %v2877_v29, 5  ;;  %5606 = vmatmul.mubr.msk.bf16.gmra.mrb[60].mxu1 %vm1092_vm1, %v4709_v31  ;;  %v2865_v40 = vrot.slane %v2864_v32, 4  ;;  %v2892_v42 = vshrl.u32 %v4951_v30, 16  ;;  %v2895_v43 = vshll.u32 %v4951_v30, 16 }
  0xa6   : > { %v2874_v41 = vor.u32 %v2873_v10, %v2869_v33  ;;  %v2860_v44 = vsel %vm6323_vm4, %v2855_v35, %v2859_v17  ;;  %5611 = vmatprep.mubr.msk.bf16.mxu1 %vm1092_vm1, %v4743_v28  ;;  %v2883_v45 = vrot.slane %v2881_v38, 4  ;;  %v2889_v46 = vrot.slane %v2887_v39, 5  ;;  %v4957_v17 = vld [vmem:[%s6290_s6 + $0x54] sm:$0xf] }
  0xa7   : > { %v2901_v48 = vshll.u32 %v4952_v34, 16  ;;  %v2870_v49 = vsel %vm6323_vm4, %v2865_v40, %v2869_v33  ;;  %v2894_v51 = vrot.slane %v2892_v42, 4  ;;  %v2897_v52 = vrot.slane %v2895_v43, 5 }
  0xa8   : > { %v2875_v50 = vrot.slane %v2874_v41, 4  ;;  %v5025_v54 = vcombine.low %v2860_v44, %v2870_v49  ;;  %v2884_v55 = vor.u32 %v2883_v45, %v2879_v37  ;;  %v2905_v57 = vshrl.u32 %v4952_v34, 16  ;;  %v4959_v34 = vld [vmem:[%s6290_s6 + $0x5c] sm:$0xf]  ;;  %v4960_v44 = vld [vmem:[%s6290_s6 + $0x60] sm:$0x1] }
  0xa9   : > { %v2903_v56 = vrot.slane %v2901_v48, 5  ;;  %v2898_v59 = vor.u32 %v2897_v52, %v2894_v51  ;;  %v2911_v60 = vshll.u32 %v4953_v47, 16  ;;  %v2915_v61 = vshrl.u32 %v4953_v47, 16  ;;  %v6118_v47 = vld [vmem:[%s6290_s6 + $0x28] sm:$0xf] }
  0xaa   : > { %v2880_v58 = vsel %vm6323_vm4, %v2875_v50, %v2879_v37  ;;  %5747 = vmatprep.mubr.msk.bf16.mxu0 %vm1092_vm1, %v5025_v54  ;;  %v2885_v63 = vrot.slane %v2884_v55, 4  ;;  %v2907_v0 = vrot.slane %v2905_v57, 4  ;;  %v4745_v3 = vcombine.low %v6114_v1, %v6115_v2  ;;  %v6119_v48 = vld [vmem:[%s6290_s6 + $0x2c] sm:$0xf]  ;;  %v4961_v51 = vld [vmem:[%s6290_s6 + $0x64] sm:$0xf] }
  0xab   : > { %v2921_v4 = vshll.u32 %v4954_v53, 16  ;;  %v2899_v5 = vrot.slane %v2898_v59, 4  ;;  %v2913_v6 = vrot.slane %v2911_v60, 5  ;;  %v2917_v7 = vrot.slane %v2915_v61, 4  ;;  %v6120_v60 = vld [vmem:[%s6290_s6 + $0x30] sm:$0xf] }
  0xac   : > { %v2925_v8 = vshrl.u32 %v4954_v53, 16  ;;  %v2890_v11 = vsel %vm6323_vm4, %v2885_v63, %v2889_v46  ;;  %v2908_v12 = vor.u32 %v2907_v0, %v2903_v56  ;;  %v2931_v16 = vshll.u32 %v4955_v62, 16  ;;  %v6121_v61 = vld [vmem:[%s6290_s6 + $0x34] sm:$0xf] }
  0xad   : > { %v2923_v15 = vrot.slane %v2921_v4, 5  ;;  %v5026_v18 = vcombine.low %v2880_v58, %v2890_v11  ;;  %5612 = vmatmul.mubr.msk.bf16.vlgmr.msra.gmra.mrb[0].mxu1 %vm1092_vm1, %v4744_v21  ;;  %v2904_v19 = vsel %vm6323_vm4, %v2899_v5, %v2903_v56  ;;  %v2918_v20 = vor.u32 %v2917_v7, %v2913_v6  ;;  %v4962_v56 = vld [vmem:[%s6290_s6 + $0x68] sm:$0xf]  ;;  %v4963_v5 = vld [vmem:[%s6290_s6 + $0x6c] sm:$0xf] }
  0xae   : > { %v2927_v22 = vrot.slane %v2925_v8, 4  ;;  %v2909_v24 = vrot.slane %v2908_v12, 4  ;;  %5615 = vmatprep.mubr.msk.bf16.mxu1 %vm1092_vm1, %v4745_v3  ;;  %v2933_v25 = vrot.slane %v2931_v16, 5  ;;  %v4746_v28 = vcombine.low %v6116_v26, %v6117_v27  ;;  %v6122_v27 = vld [vmem:[%s6290_s6 + $0x3c] sm:$0xf] }
  0xaf   : > { %v2936_v29 = vshrl.u32 %v4956_v9, 16  ;;  %5748 = vmatmul.mubr.msk.bf16.gmra.mrb[4].mxu0 %vm1092_vm1, %v5026_v18  ;;  %v2919_v13 = vrot.slane %v2918_v20, 4  ;;  %v2939_v21 = vshll.u32 %v4956_v9, 16  ;;  %v2945_v30 = vshll.u32 %v4957_v17, 16 }
  0xb0   : > { %v2928_v14 = vor.u32 %v2927_v22, %v2923_v15  ;;  %v2914_v31 = vsel %vm6323_vm4, %v2909_v24, %v2913_v6  ;;  %v2949_v33 = vshrl.u32 %v4957_v17, 16  ;;  %v2955_v10 = vshll.u32 %v4958_v23, 16 }
  0xb1   : > { %v2938_v32 = vrot.slane %v2936_v29, 4  ;;  %v5027_v35 = vcombine.low %v2904_v19, %v2914_v31  ;;  %v2924_v37 = vsel %vm6323_vm4, %v2919_v13, %v2923_v15  ;;  %v2941_v39 = vrot.slane %v2939_v21, 5  ;;  %v4964_v15 = vld [vmem:[%s6290_s6 + $0x70] sm:$0xf]  ;;  %v4965_v13 = vld [vmem:[%s6290_s6 + $0x74] sm:$0x1] }
  0xb2   : > { %v2929_v38 = vrot.slane %v2928_v14, 4  ;;  %v2947_v40 = vrot.slane %v2945_v30, 5  ;;  %v2951_v41 = vrot.slane %v2949_v33, 4  ;;  %v2957_v42 = vrot.slane %v2955_v10, 5  ;;  %v4966_v33 = vld [vmem:[%s6290_s6 + $0x78] sm:$0xf] }
  0xb3   : > { %v2959_v43 = vshrl.u32 %v4958_v23, 16  ;;  %5751 = vmatprep.mubr.msk.bf16.mxu0 %vm1092_vm1, %v5027_v35  ;;  %v2942_v46 = vor.u32 %v2941_v39, %v2938_v32  ;;  %v4747_v49 = vcombine.low %v6118_v47, %v6119_v48  ;;  %v2965_v50 = vshll.u32 %v4959_v34, 16 }
  0xb4   : > { %v2934_v45 = vsel %vm6323_vm4, %v2929_v38, %v2933_v25  ;;  %v2952_v53 = vor.u32 %v2951_v41, %v2947_v40  ;;  %v2969_v55 = vshrl.u32 %v4959_v34, 16  ;;  %v2975_v59 = vshll.u32 %v4960_v44, 16  ;;  %v4967_v38 = vld [vmem:[%s6290_s6 + $0x7c] sm:$0xf] }
  0xb5   : > { %v5028_v52 = vcombine.low %v2924_v37, %v2934_v45  ;;  %v2961_v54 = vrot.slane %v2959_v43, 4  ;;  %5616 = vmatmul.mubr.msk.bf16.gmra.mrb[4].mxu1 %vm1092_vm1, %v4746_v28  ;;  %v2943_v57 = vrot.slane %v2942_v46, 4  ;;  %v2967_v58 = vrot.slane %v2965_v50, 5  ;;  %v6123_v28 = vld [vmem:[%s6290_s6 + $0x40] sm:$0xf] }
  0xb6   : > { %v4748_v62 = vcombine.low %v6120_v60, %v6121_v61  ;;  %v2953_v63 = vrot.slane %v2952_v53, 4  ;;  %5619 = vmatprep.mubr.msk.bf16.mxu1 %vm1092_vm1, %v4747_v49  ;;  %v2971_v1 = vrot.slane %v2969_v55, 4  ;;  %v2980_v2 = vshrl.u32 %v4961_v51, 16  ;;  %v6125_v43 = vld [vmem:[%s6290_s6 + $0x48] sm:$0xf] }
  0xb7   : > { %v2962_v0 = vor.u32 %v2961_v54, %v2957_v42  ;;  %5752 = vmatmul.mubr.msk.bf16.gmra.mrb[8].mxu0 %vm1092_vm1, %v5028_v52  ;;  %v2948_v3 = vsel %vm6323_vm4, %v2943_v57, %v2947_v40  ;;  %v2977_v4 = vrot.slane %v2975_v59, 5  ;;  %v2983_v6 = vshll.u32 %v4961_v51, 16  ;;  %v4968_v52 = vld [vmem:[%s6290_s6 + $0x80] sm:$0xf] }
  0xb8   : > { %v2989_v7 = vshll.u32 %v4962_v56, 16  ;;  %v2958_v8 = vsel %vm6323_vm4, %v2953_v63, %v2957_v42  ;;  %v2972_v11 = vor.u32 %v2971_v1, %v2967_v58  ;;  %v2982_v12 = vrot.slane %v2980_v2, 4  ;;  %v6124_v42 = vld [vmem:[%s6290_s6 + $0x44] sm:$0xf] }
  0xb9   : > { %v2963_v9 = vrot.slane %v2962_v0, 4  ;;  %v5029_v16 = vcombine.low %v2948_v3, %v2958_v8  ;;  %v2985_v17 = vrot.slane %v2983_v6, 5  ;;  %v2993_v19 = vshrl.u32 %v4962_v56, 16  ;;  %v4970_v3 = vld [vmem:[%s6290_s6 + $0x88] sm:$0x1] }
  0xba   : > { %v2991_v18 = vrot.slane %v2989_v7, 5  ;;  %v2973_v22 = vrot.slane %v2972_v11, 4  ;;  %v2999_v23 = vshll.u32 %v4963_v5, 16  ;;  %v3003_v24 = vshrl.u32 %v4963_v5, 16  ;;  %v6126_v5 = vld [vmem:[%s6290_s6 + $0x50] sm:$0xf] }
  0xbb   : > { %v2968_v20 = vsel %vm6323_vm4, %v2963_v9, %v2967_v58  ;;  %5755 = vmatprep.mubr.msk.bf16.mxu0 %vm1092_vm1, %v5029_v16  ;;  %v2986_v25 = vor.u32 %v2985_v17, %v2982_v12  ;;  %v2995_v26 = vrot.slane %v2993_v19, 4  ;;  %v4749_v29 = vcombine.low %v6122_v27, %v6123_v28  ;;  %v4969_v58 = vld [vmem:[%s6290_s6 + $0x84] sm:$0xf]  ;;  %v6127_v6 = vld [vmem:[%s6290_s6 + $0x54] sm:$0xf] }
  0xbc   : > { %v3009_v14 = vshll.u32 %v4964_v15, 16  ;;  %v2978_v21 = vsel %vm6323_vm4, %v2973_v22, %v2977_v4  ;;  %v3001_v30 = vrot.slane %v2999_v23, 5  ;;  %v3005_v31 = vrot.slane %v3003_v24, 4  ;;  %v4971_v11 = vld [vmem:[%s6290_s6 + $0x8c] sm:$0xf] }
  0xbd   : > { %v3013_v32 = vshrl.u32 %v4964_v15, 16  ;;  %v5030_v10 = vcombine.low %v2968_v20, %v2978_v21  ;;  %5620 = vmatmul.mubr.msk.bf16.gmra.mrb[8].mxu1 %vm1092_vm1, %v4748_v62  ;;  %v2987_v34 = vrot.slane %v2986_v25, 4  ;;  %v2996_v35 = vor.u32 %v2995_v26, %v2991_v18  ;;  %v4972_v23 = vld [vmem:[%s6290_s6 + $0x90] sm:$0xf]  ;;  %v6128_v26 = vld [vmem:[%s6290_s6 + $0x58] sm:$0xf] }
  0xbe   : > { %v3011_v37 = vrot.slane %v3009_v14, 5  ;;  %5623 = vmatprep.mubr.msk.bf16.mxu1 %vm1092_vm1, %v4749_v29  ;;  %v3006_v39 = vor.u32 %v3005_v31, %v3001_v30  ;;  %v3019_v41 = vshll.u32 %v4965_v13, 16  ;;  %v4750_v44 = vcombine.low %v6124_v42, %v6125_v43  ;;  %v6129_v27 = vld [vmem:[%s6290_s6 + $0x5c] sm:$0xf] }
  0xbf   : > { %v3015_v40 = vrot.slane %v3013_v32, 4  ;;  %5756 = vmatmul.mubr.msk.bf16.gmra.mrb[12].mxu0 %vm1092_vm1, %v5030_v10  ;;  %v2992_v45 = vsel %vm6323_vm4, %v2987_v34, %v2991_v18  ;;  %v2997_v46 = vrot.slane %v2996_v35, 4  ;;  %v3024_v47 = vshrl.u32 %v4966_v33, 16 }
  0xc0   : > { %v3027_v48 = vshll.u32 %v4966_v33, 16  ;;  %v3007_v49 = vrot.slane %v3006_v39, 4  ;;  %v3021_v51 = vrot.slane %v3019_v41, 5  ;;  %v3033_v53 = vshll.u32 %v4967_v38, 16 }
  0xc1   : > { %v3016_v50 = vor.u32 %v3015_v40, %v3011_v37  ;;  %v3002_v54 = vsel %vm6323_vm4, %v2997_v46, %v3001_v30  ;;  %v3026_v55 = vrot.slane %v3024_v47, 4  ;;  %v3037_v57 = vshrl.u32 %v4967_v38, 16  ;;  %v4973_v30 = vld [vmem:[%s6290_s6 + $0x94] sm:$0xf]  ;;  %v4974_v40 = vld [vmem:[%s6290_s6 + $0x98] sm:$0xf] }
  0xc2   : > { %v3029_v56 = vrot.slane %v3027_v48, 5  ;;  %v5031_v59 = vcombine.low %v2992_v45, %v3002_v54  ;;  %v3012_v60 = vsel %vm6323_vm4, %v3007_v49, %v3011_v37  ;;  %v3035_v62 = vrot.slane %v3033_v53, 5  ;;  %v4975_v45 = vld [vmem:[%s6290_s6 + $0x9c] sm:$0x1]  ;;  %v6130_v49 = vld [vmem:[%s6290_s6 + $0x64] sm:$0xf] }
  0xc3   : > { %v3017_v61 = vrot.slane %v3016_v50, 4  ;;  %v3039_v0 = vrot.slane %v3037_v57, 4  ;;  %v3043_v1 = vshll.u32 %v4968_v52, 16  ;;  %v3047_v2 = vshrl.u32 %v4968_v52, 16  ;;  %v6131_v50 = vld [vmem:[%s6290_s6 + $0x68] sm:$0xf] }
  0xc4   : > { %v3030_v63 = vor.u32 %v3029_v56, %v3026_v55  ;;  %5759 = vmatprep.mubr.msk.bf16.mxu0 %vm1092_vm1, %v5031_v59  ;;  %v4751_v7 = vcombine.low %v6126_v5, %v6127_v6  ;;  %v3053_v8 = vshll.u32 %v4969_v58, 16  ;;  %v3057_v9 = vshrl.u32 %v4969_v58, 16  ;;  %v4976_v52 = vld [vmem:[%s6290_s6 + $0xa0] sm:$0xf] }
  0xc5   : > { %v3022_v4 = vsel %vm6323_vm4, %v3017_v61, %v3021_v51  ;;  %5624 = vmatmul.mubr.msk.bf16.gmra.mrb[12].mxu1 %vm1092_vm1, %v4750_v44  ;;  %v3040_v16 = vor.u32 %v3039_v0, %v3035_v62  ;;  %v3045_v17 = vrot.slane %v3043_v1, 5  ;;  %v3049_v18 = vrot.slane %v3047_v2, 4  ;;  %v6133_v0 = vld [vmem:[%s6290_s6 + $0x70] sm:$0xf]  ;;  %v4977_v2 = vld [vmem:[%s6290_s6 + $0xa4] sm:$0xf] }
  0xc6   : > { %v5032_v12 = vcombine.low %v3012_v60, %v3022_v4  ;;  %v3031_v15 = vrot.slane %v3030_v63, 4  ;;  %5627 = vmatprep.mubr.msk.bf16.mxu1 %vm1092_vm1, %v4751_v7  ;;  %v3055_v19 = vrot.slane %v3053_v8, 5  ;;  %v3059_v20 = vrot.slane %v3057_v9, 4  ;;  %v6132_v63 = vld [vmem:[%s6290_s6 + $0x6c] sm:$0xf] }
  0xc7   : > { %v3063_v22 = vshll.u32 %v4970_v3, 16  ;;  %v3041_v25 = vrot.slane %v3040_v16, 4  ;;  %v4752_v28 = vcombine.low %v6128_v26, %v6129_v27  ;;  %v3068_v29 = vshrl.u32 %v4971_v11, 16  ;;  %v4978_v8 = vld [vmem:[%s6290_s6 + $0xa8] sm:$0xf] }
  0xc8   : > { %5760 = vmatmul.mubr.msk.bf16.gmra.mrb[16].mxu0 %vm1092_vm1, %v5032_v12  ;;  %v3036_v24 = vsel %vm6323_vm4, %v3031_v15, %v3035_v62  ;;  %v3050_v13 = vor.u32 %v3049_v18, %v3045_v17  ;;  %v3060_v14 = vor.u32 %v3059_v20, %v3055_v19  ;;  %v3071_v31 = vshll.u32 %v4971_v11, 16  ;;  %v4979_v20 = vld [vmem:[%s6290_s6 + $0xac] sm:$0xf]  ;;  %v4980_v26 = vld [vmem:[%s6290_s6 + $0xb0] sm:$0x1] }
  0xc9   : > { %v3065_v21 = vrot.slane %v3063_v22, 5  ;;  %v3046_v32 = vsel %vm6323_vm4, %v3041_v25, %v3045_v17  ;;  %v3070_v33 = vrot.slane %v3068_v29, 4  ;;  %v3077_v10 = vshll.u32 %v4972_v23, 16 }
  0xca   : > { %v3081_v34 = vshrl.u32 %v4972_v23, 16  ;;  %v5033_v35 = vcombine.low %v3036_v24, %v3046_v32  ;;  %v3051_v37 = vrot.slane %v3050_v13, 4  ;;  %v3061_v38 = vrot.slane %v3060_v14, 4  ;;  %v6134_v13 = vld [vmem:[%s6290_s6 + $0x78] sm:$0xf] }
  0xcb   : > { %v3073_v39 = vrot.slane %v3071_v31, 5  ;;  %v3079_v41 = vrot.slane %v3077_v10, 5  ;;  %v3087_v43 = vshll.u32 %v4973_v30, 16  ;;  %v3091_v44 = vshrl.u32 %v4973_v30, 16  ;;  %v6135_v14 = vld [vmem:[%s6290_s6 + $0x7c] sm:$0xf] }
  0xcc   : > { %v3083_v42 = vrot.slane %v3081_v34, 4  ;;  %5763 = vmatprep.mubr.msk.bf16.mxu0 %vm1092_vm1, %v5033_v35  ;;  %v3056_v46 = vsel %vm6323_vm4, %v3051_v37, %v3055_v19  ;;  %v3066_v47 = vsel %vm6323_vm4, %v3061_v38, %v3065_v21  ;;  %v4753_v51 = vcombine.low %v6130_v49, %v6131_v50  ;;  %v4981_v38 = vld [vmem:[%s6290_s6 + $0xb4] sm:$0xf] }
  0xcd   : > { %v3074_v48 = vor.u32 %v3073_v39, %v3070_v33  ;;  %v5034_v53 = vcombine.low %v3056_v46, %v3066_v47  ;;  %5628 = vmatmul.mubr.msk.bf16.gmra.mrb[16].mxu1 %vm1092_vm1, %v4752_v28  ;;  %v3089_v55 = vrot.slane %v3087_v43, 5  ;;  %v3093_v56 = vrot.slane %v3091_v44, 4  ;;  %v4982_v43 = vld [vmem:[%s6290_s6 + $0xb8] sm:$0xf]  ;;  %v6136_v47 = vld [vmem:[%s6290_s6 + $0x80] sm:$0xf] }
  0xce   : > { %v3084_v54 = vor.u32 %v3083_v42, %v3079_v41  ;;  %5631 = vmatprep.mubr.msk.bf16.mxu1 %vm1092_vm1, %v4753_v51  ;;  %v3097_v58 = vshll.u32 %v4974_v40, 16  ;;  %v3101_v59 = vshrl.u32 %v4974_v40, 16  ;;  %v3107_v60 = vshll.u32 %v4975_v45, 16 }
  0xcf   : > { %v3075_v57 = vrot.slane %v3074_v48, 4  ;;  %v3094_v62 = vor.u32 %v3093_v56, %v3089_v55  ;;  %v4754_v1 = vcombine.low %v6132_v63, %v6133_v0  ;;  %v3112_v3 = vshrl.u32 %v4976_v52, 16  ;;  %v6137_v48 = vld [vmem:[%s6290_s6 + $0x84] sm:$0xf] }
  0xd0   : > { %5764 = vmatmul.mubr.msk.bf16.gmra.mrb[20].mxu0 %vm1092_vm1, %v5034_v53  ;;  %v3085_v61 = vrot.slane %v3084_v54, 4  ;;  %v3099_v5 = vrot.slane %v3097_v58, 5  ;;  %v3103_v6 = vrot.slane %v3101_v59, 4  ;;  %v3109_v7 = vrot.slane %v3107_v60, 5  ;;  %v4984_v59 = vld [vmem:[%s6290_s6 + $0xc0] sm:$0xf] }
  0xd1   : > { %v3080_v4 = vsel %vm6323_vm4, %v3075_v57, %v3079_v41  ;;  %v3095_v11 = vrot.slane %v3094_v62, 4  ;;  %v3114_v12 = vrot.slane %v3112_v3, 4  ;;  %v3115_v15 = vshll.u32 %v4976_v52, 16  ;;  %v4983_v52 = vld [vmem:[%s6290_s6 + $0xbc] sm:$0xf] }
  0xd2   : > { %v3090_v9 = vsel %vm6323_vm4, %v3085_v61, %v3089_v55  ;;  %v3104_v17 = vor.u32 %v3103_v6, %v3099_v5  ;;  %v3121_v18 = vshll.u32 %v4977_v2, 16  ;;  %v3125_v19 = vshrl.u32 %v4977_v2, 16  ;;  %v6138_v6 = vld [vmem:[%s6290_s6 + $0x8c] sm:$0xf] }
  0xd3   : > { %v5035_v16 = vcombine.low %v3080_v4, %v3090_v9  ;;  %v3100_v22 = vsel %vm6323_vm4, %v3095_v11, %v3099_v5  ;;  %v3117_v23 = vrot.slane %v3115_v15, 5  ;;  %v3131_v24 = vshll.u32 %v4978_v8, 16  ;;  %v4985_v9 = vld [vmem:[%s6290_s6 + $0xc4] sm:$0x1] }
  0xd4   : > { %v3135_v25 = vshrl.u32 %v4978_v8, 16  ;;  %v3105_v27 = vrot.slane %v3104_v17, 4  ;;  %v3123_v28 = vrot.slane %v3121_v18, 5  ;;  %v3127_v29 = vrot.slane %v3125_v19, 4  ;;  %v4986_v18 = vld [vmem:[%s6290_s6 + $0xc8] sm:$0xf] }
  0xd5   : > { %5767 = vmatprep.mubr.msk.bf16.mxu0 %vm1092_vm1, %v5035_v16  ;;  %v4755_v21 = vcombine.low %v6134_v13, %v6135_v14  ;;  %5632 = vmatmul.mubr.msk.bf16.gmra.mrb[20].mxu1 %vm1092_vm1, %v4754_v1  ;;  %v3118_v30 = vor.u32 %v3117_v23, %v3114_v12  ;;  %v3133_v31 = vrot.slane %v3131_v24, 5  ;;  %v3141_v33 = vshll.u32 %v4979_v20, 16  ;;  %v4987_v24 = vld [vmem:[%s6290_s6 + $0xcc] sm:$0xf] }
  0xd6   : > { %v3137_v32 = vrot.slane %v3135_v25, 4  ;;  %v3110_v10 = vsel %vm6323_vm4, %v3105_v27, %v3109_v7  ;;  %v3128_v34 = vor.u32 %v3127_v29, %v3123_v28  ;;  %v3145_v35 = vshrl.u32 %v4979_v20, 16  ;;  %v6139_v7 = vld [vmem:[%s6290_s6 + $0x90] sm:$0xf]  ;;  %v6141_v29 = vld [vmem:[%s6290_s6 + $0x98] sm:$0xf] }
  0xd7   : > { %5635 = vmatprep.mubr.msk.bf16.mxu1 %vm1092_vm1, %v4755_v21  ;;  %v3151_v37 = vshll.u32 %v4980_v26, 16  ;;  %v5036_v39 = vcombine.low %v3100_v22, %v3110_v10  ;;  %v3119_v40 = vrot.slane %v3118_v30, 4  ;;  %v3143_v42 = vrot.slane %v3141_v33, 5  ;;  %v4988_v30 = vld [vmem:[%s6290_s6 + $0xd0] sm:$0xf] }
  0xd8   : > { %v3138_v41 = vor.u32 %v3137_v32, %v3133_v31  ;;  %v3129_v44 = vrot.slane %v3128_v34, 4  ;;  %v3147_v45 = vrot.slane %v3145_v35, 4  ;;  %v4756_v49 = vcombine.low %v6136_v47, %v6137_v48 }
  0xd9   : > { %v3153_v46 = vrot.slane %v3151_v37, 5  ;;  %5768 = vmatmul.mubr.msk.bf16.gmra.mrb[24].mxu0 %vm1092_vm1, %v5036_v39  ;;  %v3124_v50 = vsel %vm6323_vm4, %v3119_v40, %v3123_v28  ;;  %v3156_v53 = vshrl.u32 %v4981_v38, 16  ;;  %v3159_v54 = vshll.u32 %v4981_v38, 16  ;;  %v6140_v28 = vld [vmem:[%s6290_s6 + $0x94] sm:$0xf] }
  0xda   : > { %v3139_v51 = vrot.slane %v3138_v41, 4  ;;  %v3134_v55 = vsel %vm6323_vm4, %v3129_v44, %v3133_v31  ;;  %v3148_v56 = vor.u32 %v3147_v45, %v3143_v42  ;;  %v3165_v57 = vshll.u32 %v4982_v43, 16  ;;  %v4989_v41 = vld [vmem:[%s6290_s6 + $0xd4] sm:$0xf] }
  0xdb   : > { %v3169_v58 = vshrl.u32 %v4982_v43, 16  ;;  %v5037_v60 = vcombine.low %v3124_v50, %v3134_v55  ;;  %v3158_v62 = vrot.slane %v3156_v53, 4  ;;  %v3161_v63 = vrot.slane %v3159_v54, 5  ;;  %v6143_v50 = vld [vmem:[%s6290_s6 + $0xa4] sm:$0xf] }
  0xdc   : > { %v3144_v61 = vsel %vm6323_vm4, %v3139_v51, %v3143_v42  ;;  %v3149_v0 = vrot.slane %v3148_v56, 4  ;;  %v3167_v1 = vrot.slane %v3165_v57, 5  ;;  %v3175_v3 = vshll.u32 %v4983_v52, 16  ;;  %v4991_v57 = vld [vmem:[%s6290_s6 + $0xdc] sm:$0xf] }
  0xdd   : > { %v3171_v2 = vrot.slane %v3169_v58, 4  ;;  %5771 = vmatprep.mubr.msk.bf16.mxu0 %vm1092_vm1, %v5037_v60  ;;  %5636 = vmatmul.mubr.msk.bf16.gmra.mrb[24].mxu1 %vm1092_vm1, %v4756_v49  ;;  %v3162_v4 = vor.u32 %v3161_v63, %v3158_v62  ;;  %v3179_v5 = vshrl.u32 %v4983_v52, 16  ;;  %v4757_v8 = vcombine.low %v6138_v6, %v6139_v7  ;;  %v6142_v49 = vld [vmem:[%s6290_s6 + $0xa0] sm:$0xf]  ;;  %v4990_v52 = vld [vmem:[%s6290_s6 + $0xd8] sm:$0x1] }
  0xde   : > { %v3185_v11 = vshll.u32 %v4984_v59, 16  ;;  %v3154_v12 = vsel %vm6323_vm4, %v3149_v0, %v3153_v46  ;;  %v3177_v16 = vrot.slane %v3175_v3, 5  ;;  %v3189_v17 = vshrl.u32 %v4984_v59, 16  ;;  %v4992_v62 = vld [vmem:[%s6290_s6 + $0xe0] sm:$0xf] }
  0xdf   : > { %v3172_v15 = vor.u32 %v3171_v2, %v3167_v1  ;;  %v5038_v19 = vcombine.low %v3144_v61, %v3154_v12  ;;  %v3163_v20 = vrot.slane %v3162_v4, 4  ;;  %5639 = vmatprep.mubr.msk.bf16.mxu1 %vm1092_vm1, %v4757_v8  ;;  %v3181_v22 = vrot.slane %v3179_v5, 4  ;;  %v6144_v2 = vld [vmem:[%s6290_s6 + $0xa8] sm:$0xf]  ;;  %v6145_v3 = vld [vmem:[%s6290_s6 + $0xac] sm:$0xf] }
  0xe0   : > { %v3187_v23 = vrot.slane %v3185_v11, 5  ;;  %v3191_v26 = vrot.slane %v3189_v17, 4  ;;  %v3195_v27 = vshll.u32 %v4985_v9, 16  ;;  %v4758_v13 = vcombine.low %v6140_v28, %v6141_v29  ;;  %v4993_v8 = vld [vmem:[%s6290_s6 + $0xe4] sm:$0xf] }
  0xe1   : > { %v3173_v25 = vrot.slane %v3172_v15, 4  ;;  %5772 = vmatmul.mubr.msk.bf16.gmra.mrb[28].mxu0 %vm1092_vm1, %v5038_v19  ;;  %v3168_v14 = vsel %vm6323_vm4, %v3163_v20, %v3167_v1  ;;  %v3182_v21 = vor.u32 %v3181_v22, %v3177_v16  ;;  %v3200_v31 = vshrl.u32 %v4986_v18, 16 }
  0xe2   : > { %v3203_v32 = vshll.u32 %v4986_v18, 16  ;;  %v3192_v10 = vor.u32 %v3191_v26, %v3187_v23  ;;  %v3197_v34 = vrot.slane %v3195_v27, 5  ;;  %v3209_v35 = vshll.u32 %v4987_v24, 16  ;;  %v4994_v26 = vld [vmem:[%s6290_s6 + $0xe8] sm:$0xf] }
  0xe3   : > { %v3178_v33 = vsel %vm6323_vm4, %v3173_v25, %v3177_v16  ;;  %v3183_v38 = vrot.slane %v3182_v21, 4  ;;  %v3202_v39 = vrot.slane %v3200_v31, 4  ;;  %v3213_v44 = vshrl.u32 %v4987_v24, 16 }
  0xe4   : > { %v5039_v37 = vcombine.low %v3168_v14, %v3178_v33  ;;  %v3205_v40 = vrot.slane %v3203_v32, 5  ;;  %v3193_v42 = vrot.slane %v3192_v10, 4  ;;  %v3211_v43 = vrot.slane %v3209_v35, 5  ;;  %v4995_v14 = vld [vmem:[%s6290_s6 + $0xec] sm:$0x1] }
  0xe5   : > { %v3219_v45 = vshll.u32 %v4988_v30, 16  ;;  %v3188_v46 = vsel %vm6323_vm4, %v3183_v38, %v3187_v23  ;;  %5640 = vmatmul.mubr.msk.bf16.gmra.mrb[28].mxu1 %vm1092_vm1, %v4758_v13  ;;  %v3223_v48 = vshrl.u32 %v4988_v30, 16  ;;  %v4759_v51 = vcombine.low %v6142_v49, %v6143_v50  ;;  %v6146_v32 = vld [vmem:[%s6290_s6 + $0xb4] sm:$0xf]  ;;  %v6147_v33 = vld [vmem:[%s6290_s6 + $0xb8] sm:$0xf] }
  0xe6   : > { %5775 = vmatprep.mubr.msk.bf16.mxu0 %vm1092_vm1, %v5039_v37  ;;  %v3206_v47 = vor.u32 %v3205_v40, %v3202_v39  ;;  %v3198_v53 = vsel %vm6323_vm4, %v3193_v42, %v3197_v34  ;;  %v3215_v54 = vrot.slane %v3213_v44, 4  ;;  %v3229_v56 = vshll.u32 %v4989_v41, 16  ;;  %v4996_v39 = vld [vmem:[%s6290_s6 + $0xf0] sm:$0xf]  ;;  %v4997_v44 = vld [vmem:[%s6290_s6 + $0xf4] sm:$0xf] }
  0xe7   : > { %v3221_v55 = vrot.slane %v3219_v45, 5  ;;  %v5040_v58 = vcombine.low %v3188_v46, %v3198_v53  ;;  %5643 = vmatprep.mubr.msk.bf16.mxu1 %vm1092_vm1, %v4759_v51  ;;  %v3225_v60 = vrot.slane %v3223_v48, 4  ;;  %v3233_v61 = vshrl.u32 %v4989_v41, 16  ;;  %v6148_v48 = vld [vmem:[%s6290_s6 + $0xbc] sm:$0xf] }
  0xe8   : > { %v3207_v59 = vrot.slane %v3206_v47, 4  ;;  %v3216_v63 = vor.u32 %v3215_v54, %v3211_v43  ;;  %v3231_v0 = vrot.slane %v3229_v56, 5  ;;  %v3239_v1 = vshll.u32 %v4990_v52, 16  ;;  %v6149_v49 = vld [vmem:[%s6290_s6 + $0xc0] sm:$0xf] }
  0xe9   : > { %v4760_v4 = vcombine.low %v6144_v2, %v6145_v3  ;;  %5776 = vmatmul.mubr.msk.bf16.gmra.mrb[32].mxu0 %vm1092_vm1, %v5040_v58  ;;  %v3226_v6 = vor.u32 %v3225_v60, %v3221_v55  ;;  %v3235_v7 = vrot.slane %v3233_v61, 4  ;;  %v3244_v9 = vshrl.u32 %v4991_v57, 16  ;;  %v4998_v54 = vld [vmem:[%s6290_s6 + $0xf8] sm:$0xf] }
  0xea   : > { %v3212_v5 = vsel %vm6323_vm4, %v3207_v59, %v3211_v43  ;;  %v3217_v11 = vrot.slane %v3216_v63, 4  ;;  %v3241_v12 = vrot.slane %v3239_v1, 5  ;;  %v3247_v15 = vshll.u32 %v4991_v57, 16 }
  0xeb   : > { %v3253_v16 = vshll.u32 %v4992_v62, 16  ;;  %v3227_v17 = vrot.slane %v3226_v6, 4  ;;  %v3236_v18 = vor.u32 %v3235_v7, %v3231_v0  ;;  %v3246_v19 = vrot.slane %v3244_v9, 4  ;;  %v6151_v9 = vld [vmem:[%s6290_s6 + $0xcc] sm:$0xf] }
  0xec   : > { %v3257_v20 = vshrl.u32 %v4992_v62, 16  ;;  %v3222_v22 = vsel %vm6323_vm4, %v3217_v11, %v3221_v55  ;;  %v3249_v23 = vrot.slane %v3247_v15, 5  ;;  %v3263_v25 = vshll.u32 %v4993_v8, 16 }
  0xed   : > { %v3255_v24 = vrot.slane %v3253_v16, 5  ;;  %v5041_v27 = vcombine.low %v3212_v5, %v3222_v22  ;;  %v3232_v28 = vsel %vm6323_vm4, %v3227_v17, %v3231_v0  ;;  %v3237_v29 = vrot.slane %v3236_v18, 4  ;;  %5644 = vmatmul.mubr.msk.bf16.gmra.mrb[32].mxu1 %vm1092_vm1, %v4760_v4  ;;  %v4999_v0 = vld [vmem:[%s6290_s6 + $0xfc] sm:$0xf] }
  0xee   : > { %v3259_v13 = vrot.slane %v3257_v20, 4  ;;  %v3250_v21 = vor.u32 %v3249_v23, %v3246_v19  ;;  %v3265_v30 = vrot.slane %v3263_v25, 5  ;;  %v3267_v31 = vshrl.u32 %v4993_v8, 16  ;;  %v6150_v8 = vld [vmem:[%s6290_s6 + $0xc8] sm:$0xf] }
  0xef   : > { %v4761_v10 = vcombine.low %v6146_v32, %v6147_v33  ;;  %5779 = vmatprep.mubr.msk.bf16.mxu0 %vm1092_vm1, %v5041_v27  ;;  %v3242_v34 = vsel %vm6323_vm4, %v3237_v29, %v3241_v12  ;;  %v3273_v37 = vshll.u32 %v4994_v26, 16  ;;  %v3277_v38 = vshrl.u32 %v4994_v26, 16  ;;  %v5000_v12 = vld [vmem:[%s6290_s6 + $0x100] sm:$0x1]  ;;  %v5001_v19 = vld [vmem:[%s6290_s6 + $0x104] sm:$0xf] }
  0xf0   : > { %v3260_v35 = vor.u32 %v3259_v13, %v3255_v24  ;;  %v5042_v40 = vcombine.low %v3232_v28, %v3242_v34  ;;  %v3251_v41 = vrot.slane %v3250_v21, 4  ;;  %v3269_v42 = vrot.slane %v3267_v31, 4  ;;  %v5002_v25 = vld [vmem:[%s6290_s6 + $0x108] sm:$0xf]  ;;  %v6152_v29 = vld [vmem:[%s6290_s6 + $0xd0] sm:$0xf] }
  0xf1   : > { %5647 = vmatprep.mubr.msk.bf16.mxu1 %vm1092_vm1, %v4761_v10  ;;  %v3283_v43 = vshll.u32 %v4995_v14, 16  ;;  %v3275_v46 = vrot.slane %v3273_v37, 5  ;;  %v3279_v47 = vrot.slane %v3277_v38, 4  ;;  %v4762_v50 = vcombine.low %v6148_v48, %v6149_v49  ;;  %v6153_v13 = vld [vmem:[%s6290_s6 + $0xd4] sm:$0xf] }
  0xf2   : > { %v3261_v45 = vrot.slane %v3260_v35, 4  ;;  %5780 = vmatmul.mubr.msk.bf16.gmra.mrb[36].mxu0 %vm1092_vm1, %v5042_v40  ;;  %v3256_v51 = vsel %vm6323_vm4, %v3251_v41, %v3255_v24  ;;  %v3270_v52 = vor.u32 %v3269_v42, %v3265_v30  ;;  %v3288_v55 = vshrl.u32 %v4996_v39, 16  ;;  %v5003_v34 = vld [vmem:[%s6290_s6 + $0x10c] sm:$0xf]  ;;  %v5004_v42 = vld [vmem:[%s6290_s6 + $0x110] sm:$0xf] }
  0xf3   : > { %v3285_v53 = vrot.slane %v3283_v43, 5  ;;  %v3280_v57 = vor.u32 %v3279_v47, %v3275_v46  ;;  %v3291_v58 = vshll.u32 %v4996_v39, 16  ;;  %v3297_v59 = vshll.u32 %v4997_v44, 16 }
  0xf4   : > { %v3266_v56 = vsel %vm6323_vm4, %v3261_v45, %v3265_v30  ;;  %v3271_v61 = vrot.slane %v3270_v52, 4  ;;  %v3290_v62 = vrot.slane %v3288_v55, 4  ;;  %v3301_v63 = vshrl.u32 %v4997_v44, 16 }
  0xf5   : > { %v5043_v60 = vcombine.low %v3256_v51, %v3266_v56  ;;  %v3281_v1 = vrot.slane %v3280_v57, 4  ;;  %5648 = vmatmul.mubr.msk.bf16.gmra.mrb[36].mxu1 %vm1092_vm1, %v4762_v50  ;;  %v3293_v2 = vrot.slane %v3291_v58, 5  ;;  %v3299_v3 = vrot.slane %v3297_v59, 5  ;;  %v5005_v56 = vld [vmem:[%s6290_s6 + $0x114] sm:$0x1] }
  0xf6   : > { %v3307_v4 = vshll.u32 %v4998_v54, 16  ;;  %v3276_v5 = vsel %vm6323_vm4, %v3271_v61, %v3275_v46  ;;  %v3303_v6 = vrot.slane %v3301_v63, 4  ;;  %v3311_v7 = vshrl.u32 %v4998_v54, 16  ;;  %v6155_v54 = vld [vmem:[%s6290_s6 + $0xe0] sm:$0xf] }
  0xf7   : > { %5783 = vmatprep.mubr.msk.bf16.mxu0 %vm1092_vm1, %v5043_v60  ;;  %v4763_v11 = vcombine.low %v6150_v8, %v6151_v9  ;;  %v3286_v15 = vsel %vm6323_vm4, %v3281_v1, %v3285_v53  ;;  %v3294_v16 = vor.u32 %v3293_v2, %v3290_v62  ;;  %v3317_v18 = vshll.u32 %v4999_v0, 16  ;;  %v6154_v53 = vld [vmem:[%s6290_s6 + $0xdc] sm:$0xf]  ;;  %v5006_v62 = vld [vmem:[%s6290_s6 + $0x118] sm:$0xf] }
  0xf8   : > { %v3309_v17 = vrot.slane %v3307_v4, 5  ;;  %v5044_v20 = vcombine.low %v3276_v5, %v3286_v15  ;;  %v3304_v22 = vor.u32 %v3303_v6, %v3299_v3  ;;  %v3313_v23 = vrot.slane %v3311_v7, 4  ;;  %v6156_v7 = vld [vmem:[%s6290_s6 + $0xe4] sm:$0xf]  ;;  %v6157_v8 = vld [vmem:[%s6290_s6 + $0xe8] sm:$0xf] }
  0xf9   : > { %5651 = vmatprep.mubr.msk.bf16.mxu1 %vm1092_vm1, %v4763_v11  ;;  %v3321_v24 = vshrl.u32 %v4999_v0, 16  ;;  %v3295_v26 = vrot.slane %v3294_v16, 4  ;;  %v3319_v27 = vrot.slane %v3317_v18, 5  ;;  %v3327_v28 = vshll.u32 %v5000_v12, 16 }
  0xfa   : > { %v4764_v14 = vcombine.low %v6152_v29, %v6153_v13  ;;  %5784 = vmatmul.mubr.msk.bf16.gmra.mrb[40].mxu0 %vm1092_vm1, %v5044_v20  ;;  %v3305_v21 = vrot.slane %v3304_v22, 4  ;;  %v3314_v30 = vor.u32 %v3313_v23, %v3309_v17  ;;  %v3332_v32 = vshrl.u32 %v5001_v19, 16  ;;  %v5008_v20 = vld [vmem:[%s6290_s6 + $0x120] sm:$0xf] }
  0xfb   : > { %v3323_v31 = vrot.slane %v3321_v24, 4  ;;  %v3300_v33 = vsel %vm6323_vm4, %v3295_v26, %v3299_v3  ;;  %v3329_v10 = vrot.slane %v3327_v28, 5  ;;  %v3335_v35 = vshll.u32 %v5001_v19, 16  ;;  %v5007_v3 = vld [vmem:[%s6290_s6 + $0x11c] sm:$0xf] }
  0xfc   : > { %v3341_v37 = vshll.u32 %v5002_v25, 16  ;;  %v3310_v38 = vsel %vm6323_vm4, %v3305_v21, %v3309_v17  ;;  %v3315_v39 = vrot.slane %v3314_v30, 4  ;;  %v3334_v41 = vrot.slane %v3332_v32, 4 }
  0xfd   : > { %v3324_v40 = vor.u32 %v3323_v31, %v3319_v27  ;;  %v5045_v43 = vcombine.low %v3300_v33, %v3310_v38  ;;  %5652 = vmatmul.mubr.msk.bf16.gmra.mrb[40].mxu1 %vm1092_vm1, %v4764_v14  ;;  %v3337_v44 = vrot.slane %v3335_v35, 5  ;;  %v3345_v46 = vshrl.u32 %v5002_v25, 16  ;;  %v5010_v33 = vld [vmem:[%s6290_s6 + $0x128] sm:$0x1]  ;;  %v6159_v35 = vld [vmem:[%s6290_s6 + $0xf4] sm:$0xf] }
  0xfe   : > { %v3343_v45 = vrot.slane %v3341_v37, 5  ;;  %v3320_v47 = vsel %vm6323_vm4, %v3315_v39, %v3319_v27  ;;  %v3351_v49 = vshll.u32 %v5003_v34, 16  ;;  %v3355_v50 = vshrl.u32 %v5003_v34, 16  ;;  %v5009_v27 = vld [vmem:[%s6290_s6 + $0x124] sm:$0xf] }
  0xff   : > { %v3325_v48 = vrot.slane %v3324_v40, 4  ;;  %5787 = vmatprep.mubr.msk.bf16.mxu0 %vm1092_vm1, %v5045_v43  ;;  %v3338_v51 = vor.u32 %v3337_v44, %v3334_v41  ;;  %v3347_v52 = vrot.slane %v3345_v46, 4  ;;  %v4765_v55 = vcombine.low %v6154_v53, %v6155_v54  ;;  %v6158_v34 = vld [vmem:[%s6290_s6 + $0xf0] sm:$0xf]  ;;  %v5011_v40 = vld [vmem:[%s6290_s6 + $0x12c] sm:$0xf] }
 0x100   : > { %v3361_v57 = vshll.u32 %v5004_v42, 16  ;;  %v3353_v59 = vrot.slane %v3351_v49, 5  ;;  %v3357_v60 = vrot.slane %v3355_v50, 4  ;;  %v3365_v61 = vshrl.u32 %v5004_v42, 16  ;;  %v5012_v49 = vld [vmem:[%s6290_s6 + $0x130] sm:$0xf] }
 0x101   : > { %v3330_v58 = vsel %vm6323_vm4, %v3325_v48, %v3329_v10  ;;  %v3339_v0 = vrot.slane %v3338_v51, 4  ;;  %v3348_v1 = vor.u32 %v3347_v52, %v3343_v45  ;;  %5655 = vmatprep.mubr.msk.bf16.mxu1 %vm1092_vm1, %v4765_v55  ;;  %v3371_v6 = vshll.u32 %v5005_v56, 16  ;;  %v6160_v52 = vld [vmem:[%s6290_s6 + $0xf8] sm:$0xf]  ;;  %v6161_v53 = vld [vmem:[%s6290_s6 + $0xfc] sm:$0xf] }
 0x102   : > { %v5046_v63 = vcombine.low %v3320_v47, %v3330_v58  ;;  %v3363_v2 = vrot.slane %v3361_v57, 5  ;;  %v3358_v4 = vor.u32 %v3357_v60, %v3353_v59  ;;  %v3367_v5 = vrot.slane %v3365_v61, 4 }
 0x103   : > { %v4766_v9 = vcombine.low %v6156_v7, %v6157_v8  ;;  %v3344_v11 = vsel %vm6323_vm4, %v3339_v0, %v3343_v45  ;;  %v3349_v12 = vrot.slane %v3348_v1, 4  ;;  %v3376_v15 = vshrl.u32 %v5006_v62, 16 }
 0x104   : > { %5788 = vmatmul.mubr.msk.bf16.gmra.mrb[44].mxu0 %vm1092_vm1, %v5046_v63  ;;  %v3379_v16 = vshll.u32 %v5006_v62, 16  ;;  %v3359_v17 = vrot.slane %v3358_v4, 4  ;;  %v3368_v18 = vor.u32 %v3367_v5, %v3363_v2  ;;  %v3373_v19 = vrot.slane %v3371_v6, 5  ;;  %v5014_v5 = vld [vmem:[%s6290_s6 + $0x138] sm:$0xf] }
 0x105   : > { %v3385_v22 = vshll.u32 %v5007_v3, 16  ;;  %v3354_v23 = vsel %vm6323_vm4, %v3349_v12, %v3353_v59  ;;  %5656 = vmatmul.mubr.msk.bf16.gmra.mrb[44].mxu1 %vm1092_vm1, %v4766_v9  ;;  %v3378_v24 = vrot.slane %v3376_v15, 4  ;;  %v3389_v26 = vshrl.u32 %v5007_v3, 16  ;;  %v5013_v59 = vld [vmem:[%s6290_s6 + $0x134] sm:$0xf] }
 0x106   : > { %v3381_v25 = vrot.slane %v3379_v16, 5  ;;  %v5047_v28 = vcombine.low %v3344_v11, %v3354_v23  ;;  %v3364_v29 = vsel %vm6323_vm4, %v3359_v17, %v3363_v2  ;;  %v3369_v13 = vrot.slane %v3368_v18, 4  ;;  %v5015_v11 = vld [vmem:[%s6290_s6 + $0x13c] sm:$0x1]  ;;  %v6162_v17 = vld [vmem:[%s6290_s6 + $0x104] sm:$0xf] }
 0x107   : > { %v3387_v14 = vrot.slane %v3385_v22, 5  ;;  %v3391_v30 = vrot.slane %v3389_v26, 4  ;;  %v3395_v31 = vshll.u32 %v5008_v20, 16  ;;  %v3399_v32 = vshrl.u32 %v5008_v20, 16  ;;  %v6163_v18 = vld [vmem:[%s6290_s6 + $0x108] sm:$0xf] }
 0x108   : > { %v3382_v21 = vor.u32 %v3381_v25, %v3378_v24  ;;  %5791 = vmatprep.mubr.msk.bf16.mxu0 %vm1092_vm1, %v5047_v28  ;;  %v3374_v10 = vsel %vm6323_vm4, %v3369_v13, %v3373_v19  ;;  %v4767_v37 = vcombine.low %v6158_v34, %v6159_v35  ;;  %v3405_v38 = vshll.u32 %v5009_v27, 16  ;;  %v5016_v20 = vld [vmem:[%s6290_s6 + $0x140] sm:$0xf] }
 0x109   : > { %v3409_v39 = vshrl.u32 %v5009_v27, 16  ;;  %v5048_v41 = vcombine.low %v3364_v29, %v3374_v10  ;;  %v3392_v43 = vor.u32 %v3391_v30, %v3387_v14  ;;  %v3397_v44 = vrot.slane %v3395_v31, 5  ;;  %v6165_v30 = vld [vmem:[%s6290_s6 + $0x110] sm:$0xf] }
 0x10a   : > { %v3383_v42 = vrot.slane %v3382_v21, 4  ;;  %5659 = vmatprep.mubr.msk.bf16.mxu1 %vm1092_vm1, %v4767_v37  ;;  %v3401_v45 = vrot.slane %v3399_v32, 4  ;;  %v3407_v46 = vrot.slane %v3405_v38, 5  ;;  %v3415_v48 = vshll.u32 %v5010_v33, 16  ;;  %v6164_v21 = vld [vmem:[%s6290_s6 + $0x10c] sm:$0xf] }
 0x10b   : > { %v3411_v47 = vrot.slane %v3409_v39, 4  ;;  %v3393_v51 = vrot.slane %v3392_v43, 4  ;;  %v4768_v54 = vcombine.low %v6160_v52, %v6161_v53  ;;  %v3420_v55 = vshrl.u32 %v5011_v40, 16  ;;  %v5017_v32 = vld [vmem:[%s6290_s6 + $0x144] sm:$0xf] }
 0x10c   : > { %5792 = vmatmul.mubr.msk.bf16.gmra.mrb[48].mxu0 %vm1092_vm1, %v5048_v41  ;;  %v3388_v50 = vsel %vm6323_vm4, %v3383_v42, %v3387_v14  ;;  %v3402_v56 = vor.u32 %v3401_v45, %v3397_v44  ;;  %v3417_v58 = vrot.slane %v3415_v48, 5  ;;  %v3423_v60 = vshll.u32 %v5011_v40, 16  ;;  %v5018_v38 = vld [vmem:[%s6290_s6 + $0x148] sm:$0xf]  ;;  %v5020_v52 = vld [vmem:[%s6290_s6 + $0x150] sm:$0x1] }
 0x10d   : > { %v3412_v57 = vor.u32 %v3411_v47, %v3407_v46  ;;  %v3398_v61 = vsel %vm6323_vm4, %v3393_v51, %v3397_v44  ;;  %5660 = vmatmul.mubr.msk.bf16.gmra.mrb[48].mxu1 %vm1092_vm1, %v4768_v54  ;;  %v3422_v62 = vrot.slane %v3420_v55, 4  ;;  %v3429_v63 = vshll.u32 %v5012_v49, 16  ;;  %v5019_v47 = vld [vmem:[%s6290_s6 + $0x14c] sm:$0xf] }
 0x10e   : > { %v3433_v0 = vshrl.u32 %v5012_v49, 16  ;;  %v5049_v1 = vcombine.low %v3388_v50, %v3398_v61  ;;  %v3403_v2 = vrot.slane %v3402_v56, 4  ;;  %v3425_v4 = vrot.slane %v3423_v60, 5  ;;  %v6166_v56 = vld [vmem:[%s6290_s6 + $0x118] sm:$0xf] }
 0x10f   : > { %v3413_v3 = vrot.slane %v3412_v57, 4  ;;  %v3431_v6 = vrot.slane %v3429_v63, 5  ;;  %v3439_v8 = vshll.u32 %v5013_v59, 16  ;;  %v3443_v9 = vshrl.u32 %v5013_v59, 16  ;;  %v6167_v57 = vld [vmem:[%s6290_s6 + $0x11c] sm:$0xf] }
 0x110   : > { %v3435_v7 = vrot.slane %v3433_v0, 4  ;;  %5795 = vmatprep.mubr.msk.bf16.mxu0 %vm1092_vm1, %v5049_v1  ;;  %v3408_v12 = vsel %vm6323_vm4, %v3403_v2, %v3407_v46  ;;  %v3426_v16 = vor.u32 %v3425_v4, %v3422_v62  ;;  %v4769_v19 = vcombine.low %v6162_v17, %v6163_v18  ;;  %v6170_v17 = vld [vmem:[%s6290_s6 + $0x12c] sm:$0xf]  ;;  %v6171_v18 = vld [vmem:[%s6290_s6 + $0x130] sm:$0xf] }
 0x111   : > { %v3418_v15 = vsel %vm6323_vm4, %v3413_v3, %v3417_v58  ;;  %v3441_v24 = vrot.slane %v3439_v8, 5  ;;  %v3445_v25 = vrot.slane %v3443_v9, 4  ;;  %v3449_v27 = vshll.u32 %v5014_v5, 16  ;;  %v6168_v9 = vld [vmem:[%s6290_s6 + $0x120] sm:$0xf] }
 0x112   : > { %v5050_v22 = vcombine.low %v3408_v12, %v3418_v15  ;;  %v3436_v23 = vor.u32 %v3435_v7, %v3431_v6  ;;  %v3427_v26 = vrot.slane %v3426_v16, 4  ;;  %5663 = vmatprep.mubr.msk.bf16.mxu1 %vm1092_vm1, %v4769_v19  ;;  %v3453_v28 = vshrl.u32 %v5014_v5, 16 }
 0x113   : > { %v3459_v29 = vshll.u32 %v5015_v11, 16  ;;  %v3446_v14 = vor.u32 %v3445_v25, %v3441_v24  ;;  %v4770_v31 = vcombine.low %v6164_v21, %v6165_v30  ;;  %v3464_v33 = vshrl.u32 %v5016_v20, 16  ;;  %v6169_v11 = vld [vmem:[%s6290_s6 + $0x124] sm:$0xf] }
 0x114   : > { %5796 = vmatmul.mubr.msk.bf16.gmra.mrb[52].mxu0 %vm1092_vm1, %v5050_v22  ;;  %v3437_v13 = vrot.slane %v3436_v23, 4  ;;  %v3432_v10 = vsel %vm6323_vm4, %v3427_v26, %v3431_v6  ;;  %v3451_v34 = vrot.slane %v3449_v27, 5  ;;  %v3455_v35 = vrot.slane %v3453_v28, 4  ;;  %v6172_v28 = vld [vmem:[%s6290_s6 + $0x134] sm:$0xf] }
 0x115   : > { %v3461_v37 = vrot.slane %v3459_v29, 5  ;;  %v3447_v40 = vrot.slane %v3446_v14, 4  ;;  %5664 = vmatmul.mubr.msk.bf16.gmra.mrb[52].mxu1 %vm1092_vm1, %v4770_v31  ;;  %v3466_v41 = vrot.slane %v3464_v33, 4  ;;  %v3467_v42 = vshll.u32 %v5016_v20, 16  ;;  %v6173_v29 = vld [vmem:[%s6290_s6 + $0x138] sm:$0xf] }
 0x116   : > { %v3442_v39 = vsel %vm6323_vm4, %v3437_v13, %v3441_v24  ;;  %v3456_v44 = vor.u32 %v3455_v35, %v3451_v34  ;;  %v3473_v45 = vshll.u32 %v5017_v32, 16  ;;  %v3477_v46 = vshrl.u32 %v5017_v32, 16 }
 0x117   : > { %v5051_v43 = vcombine.low %v3432_v10, %v3442_v39  ;;  %v3452_v48 = vsel %vm6323_vm4, %v3447_v40, %v3451_v34  ;;  %v3469_v49 = vrot.slane %v3467_v42, 5  ;;  %v3483_v50 = vshll.u32 %v5018_v38, 16 }
 0x118   : > { %v3487_v51 = vshrl.u32 %v5018_v38, 16  ;;  %v3457_v53 = vrot.slane %v3456_v44, 4  ;;  %v3475_v54 = vrot.slane %v3473_v45, 5  ;;  %v3479_v55 = vrot.slane %v3477_v46, 4 }
 0x119   : > { %5799 = vmatprep.mubr.msk.bf16.mxu0 %vm1092_vm1, %v5051_v43  ;;  %v4771_v58 = vcombine.low %v6166_v56, %v6167_v57  ;;  %v3470_v59 = vor.u32 %v3469_v49, %v3466_v41  ;;  %v3485_v60 = vrot.slane %v3483_v50, 5  ;;  %v3493_v62 = vshll.u32 %v5019_v47, 16 }
 0x11a   : > { %v3489_v61 = vrot.slane %v3487_v51, 4  ;;  %v3462_v63 = vsel %vm6323_vm4, %v3457_v53, %v3461_v37  ;;  %v3480_v0 = vor.u32 %v3479_v55, %v3475_v54  ;;  %v3497_v1 = vshrl.u32 %v5019_v47, 16 }
 0x11b   : > { %5667 = vmatprep.mubr.msk.bf16.mxu1 %vm1092_vm1, %v4771_v58  ;;  %v3503_v2 = vshll.u32 %v5020_v52, 16  ;;  %v5052_v3 = vcombine.low %v3452_v48, %v3462_v63  ;;  %v3471_v4 = vrot.slane %v3470_v59, 4  ;;  %v3495_v6 = vrot.slane %v3493_v62, 5 }
 0x11c   : > { %v3490_v5 = vor.u32 %v3489_v61, %v3485_v60  ;;  %v3481_v7 = vrot.slane %v3480_v0, 4  ;;  %v3499_v8 = vrot.slane %v3497_v1, 4  ;;  %v4772_v12 = vcombine.low %v6168_v9, %v6169_v11 }
 0x11d   : > { %5800 = vmatmul.mubr.msk.bf16.gmra.mrb[56].mxu0 %vm1092_vm1, %v5052_v3  ;;  %v3476_v15 = vsel %vm6323_vm4, %v3471_v4, %v3475_v54  ;;  %v4773_v19 = vcombine.low %v6170_v17, %v6171_v18  ;;  %v3505_v23 = vrot.slane %v3503_v2, 5  ;;  %v4774_v13 = vcombine.low %v6172_v28, %v6173_v29 }
 0x11e   : > { %v3491_v16 = vrot.slane %v3490_v5, 4  ;;  %v3486_v20 = vsel %vm6323_vm4, %v3481_v7, %v3485_v60  ;;  %v3500_v22 = vor.u32 %v3499_v8, %v3495_v6  ;;  %5668 = vmatmul.mubr.msk.bf16.gmra.mrb[56].mxu1 %vm1092_vm1, %v4772_v12 }
 0x11f   : > { %v5053_v24 = vcombine.low %v3476_v15, %v3486_v20  ;;  %5671 = vmatprep.mubr.msk.bf16.mxu1 %vm1092_vm1, %v4773_v19 }
 0x120   : > { %v3496_v25 = vsel %vm6323_vm4, %v3491_v16, %v3495_v6  ;;  %v3501_v26 = vrot.slane %v3500_v22, 4 }
 0x121   : > { %5803 = vmatprep.mubr.msk.bf16.mxu0 %vm1092_vm1, %v5053_v24 }
 0x122   : > { %v3506_v27 = vsel %vm6323_vm4, %v3501_v26, %v3505_v23 }
 0x123   : > { %v5054_v14 = vcombine.low %v3496_v25, %v3506_v27 }
 0x125   : > { %5804 = vmatmul.mubr.msk.bf16.gmra.mrb[60].mxu0 %vm1092_vm1, %v5054_v14 }
 0x126   : > { %5672 = vmatmul.mubr.msk.bf16.gmra.mrb[60].mxu1 %vm1092_vm1, %v4774_v13 }
 0x176   : > { %v5745_v21 = vpop.f32.mrb[0].mxu0 }
 0x177   : > { %v3744_v30 = vpop.f32.mrb[1].mxu0 }
 0x178   : > { %v5746_v31 = vpop.f32.mrb[2].mxu0 }
 0x179   : > { %v3747_v32 = vpop.f32.mrb[3].mxu0 }
 0x180   : > { %v5613_v33 = vpop.f32.mrb[0].mxu1 }
 0x181   : > { %v5807_v10 = vadd.f32 %v5745_v21, %v5613_v33  ;;  %v1780_v34 = vpop.f32.mrb[1].mxu1 }
 0x182   : > { %v5749_v35 = vpop.f32.mrb[4].mxu0  ;;  %v5808_v37 = vadd.f32 %v3744_v30, %v1780_v34  ;;  %v5614_v38 = vpop.f32.mrb[2].mxu1 }
 0x183   : > { %v4072_v39 = vadd.f32 %v5807_v10, %v6961_v36  ;;  %v3760_v40 = vpop.f32.mrb[5].mxu0  ;;  %v5809_v41 = vadd.f32 %v5746_v31, %v5614_v38  ;;  %v1783_v42 = vpop.f32.mrb[3].mxu1 }
 0x184   : > { %v4070_v43 = vadd.f32 %v5808_v37, %v6961_v36  ;;  %v5750_v44 = vpop.f32.mrb[6].mxu0  ;;  %v5810_v45 = vadd.f32 %v3747_v32, %v1783_v42 }
 0x185   : > { %v4136_v46 = vmul.f32 0.2, %v4072_v39  ;;  %v4073_v47 = vadd.f32 %v5809_v41, %v6961_v36  ;;  %v3763_v48 = vpop.f32.mrb[7].mxu0 }
 0x186   : > { %v4134_v49 = vmul.f32 0.2, %v4070_v43  ;;  %v4071_v50 = vadd.f32 %v5810_v45, %v6961_v36 }
 0x187   : > { %v4137_v51 = vmul.f32 0.2, %v4073_v47  ;;  %v4200_v54 = vmax.f32 %v4072_v39, %v4136_v46 }
 0x188   : > { %v4135_v52 = vmul.f32 0.2, %v4071_v50  ;;  %v5617_v53 = vpop.f32.mrb[4].mxu1  ;;  %v4198_v58 = vmax.f32 %v4070_v43, %v4134_v49 }
 0x189   : > { %v4201_v55 = vmax.f32 %v4073_v47, %v4137_v51  ;;  %v5811_v56 = vadd.f32 %v5749_v35, %v5617_v53  ;;  %v1796_v57 = vpop.f32.mrb[5].mxu1 }
 0x18a   : > { %v4199_v59 = vmax.f32 %v4071_v50, %v4135_v52  ;;  %v5753_v60 = vpop.f32.mrb[8].mxu0  ;;  %v5812_v61 = vadd.f32 %v3760_v40, %v1796_v57  ;;  %v5618_v62 = vpop.f32.mrb[6].mxu1 }
 0x18b   : > { %v5228_v63 = vpack.c.bf16 %v4201_v55, %v4200_v54  ;;  %v4076_v0 = vadd.f32 %v5811_v56, %v6961_v36  ;;  %v3776_v1 = vpop.f32.mrb[9].mxu0  ;;  %v5813_v2 = vadd.f32 %v5750_v44, %v5618_v62  ;;  %v1799_v3 = vpop.f32.mrb[7].mxu1 }
 0x18c   : > { %v5223_v4 = vpack.c.bf16 %v4199_v59, %v4198_v58  ;;  %v4074_v5 = vadd.f32 %v5812_v61, %v6961_v36  ;;  %v5754_v6 = vpop.f32.mrb[10].mxu0  ;;  %v5814_v7 = vadd.f32 %v3763_v48, %v1799_v3 }
 0x18d   : > { %5380 = vst [vmem:[%s6970_s20 + $0x8] sm:$0xff] %v5228_v63   ;;  %v4140_v8 = vmul.f32 0.2, %v4076_v0  ;;  %v4077_v9 = vadd.f32 %v5813_v2, %v6961_v36  ;;  %v3779_v11 = vpop.f32.mrb[11].mxu0 }
 0x18e   : > { %5224 = vst [vmem:[%s6970_s20] sm:$0xff] %v5223_v4   ;;  %v4138_v12 = vmul.f32 0.2, %v4074_v5  ;;  %v4075_v15 = vadd.f32 %v5814_v7, %v6961_v36 }
 0x18f   : > { %v4141_v16 = vmul.f32 0.2, %v4077_v9  ;;  %v4204_v19 = vmax.f32 %v4076_v0, %v4140_v8 }
 0x190   : > { %v4139_v17 = vmul.f32 0.2, %v4075_v15  ;;  %v5621_v18 = vpop.f32.mrb[8].mxu1  ;;  %v4202_v24 = vmax.f32 %v4074_v5, %v4138_v12 }
 0x191   : > { %v4205_v20 = vmax.f32 %v4077_v9, %v4141_v16  ;;  %v5815_v22 = vadd.f32 %v5753_v60, %v5621_v18  ;;  %v1812_v23 = vpop.f32.mrb[9].mxu1 }
 0x192   : > { %v4203_v25 = vmax.f32 %v4075_v15, %v4139_v17  ;;  %v5757_v26 = vpop.f32.mrb[12].mxu0  ;;  %v5816_v27 = vadd.f32 %v3776_v1, %v1812_v23  ;;  %v5622_v28 = vpop.f32.mrb[10].mxu1 }
 0x193   : > { %v5238_v29 = vpack.c.bf16 %v4205_v20, %v4204_v19  ;;  %v4080_v13 = vadd.f32 %v5815_v22, %v6961_v36  ;;  %v3792_v14 = vpop.f32.mrb[13].mxu0  ;;  %v5817_v21 = vadd.f32 %v5754_v6, %v5622_v28  ;;  %v1815_v30 = vpop.f32.mrb[11].mxu1 }
 0x194   : > { %v5233_v31 = vpack.c.bf16 %v4203_v25, %v4202_v24  ;;  %v4078_v32 = vadd.f32 %v5816_v27, %v6961_v36  ;;  %v5758_v33 = vpop.f32.mrb[14].mxu0  ;;  %v5818_v10 = vadd.f32 %v3779_v11, %v1815_v30 }
 0x195   : > { %5382 = vst [vmem:[%s6970_s20 + $0x18] sm:$0xff] %v5238_v29   ;;  %v4144_v34 = vmul.f32 0.2, %v4080_v13  ;;  %v4081_v35 = vadd.f32 %v5817_v21, %v6961_v36  ;;  %v3795_v37 = vpop.f32.mrb[15].mxu0 }
 0x196   : > { %5381 = vst [vmem:[%s6970_s20 + $0x10] sm:$0xff] %v5233_v31   ;;  %v4142_v38 = vmul.f32 0.2, %v4078_v32  ;;  %v4079_v39 = vadd.f32 %v5818_v10, %v6961_v36 }
 0x197   : > { %v4145_v40 = vmul.f32 0.2, %v4081_v35  ;;  %v4208_v43 = vmax.f32 %v4080_v13, %v4144_v34 }
 0x198   : > { %v4143_v41 = vmul.f32 0.2, %v4079_v39  ;;  %v5625_v42 = vpop.f32.mrb[12].mxu1  ;;  %v4206_v47 = vmax.f32 %v4078_v32, %v4142_v38 }
 0x199   : > { %v4209_v44 = vmax.f32 %v4081_v35, %v4145_v40  ;;  %v5819_v45 = vadd.f32 %v5757_v26, %v5625_v42  ;;  %v1828_v46 = vpop.f32.mrb[13].mxu1 }
 0x19a   : > { %v4207_v48 = vmax.f32 %v4079_v39, %v4143_v41  ;;  %v5820_v50 = vadd.f32 %v3792_v14, %v1828_v46  ;;  %v5626_v51 = vpop.f32.mrb[14].mxu1 }
 0x19b   : > { %v5761_v49 = vpop.f32.mrb[16].mxu0  ;;  %v5248_v52 = vpack.c.bf16 %v4209_v44, %v4208_v43  ;;  %v4084_v53 = vadd.f32 %v5819_v45, %v6961_v36  ;;  %v5821_v55 = vadd.f32 %v5758_v33, %v5626_v51  ;;  %v1831_v56 = vpop.f32.mrb[15].mxu1 }
 0x19c   : > { %v3808_v54 = vpop.f32.mrb[17].mxu0  ;;  %v5243_v57 = vpack.c.bf16 %v4207_v48, %v4206_v47  ;;  %v4082_v58 = vadd.f32 %v5820_v50, %v6961_v36  ;;  %v5822_v60 = vadd.f32 %v3795_v37, %v1831_v56 }
 0x19d   : > { %v5762_v59 = vpop.f32.mrb[18].mxu0  ;;  %5384 = vst [vmem:[%s6970_s20 + $0x28] sm:$0xff] %v5248_v52   ;;  %v4148_v61 = vmul.f32 0.2, %v4084_v53  ;;  %v4085_v62 = vadd.f32 %v5821_v55, %v6961_v36 }
 0x19e   : > { %v3811_v63 = vpop.f32.mrb[19].mxu0  ;;  %5383 = vst [vmem:[%s6970_s20 + $0x20] sm:$0xff] %v5243_v57   ;;  %v4146_v0 = vmul.f32 0.2, %v4082_v58  ;;  %v4083_v1 = vadd.f32 %v5822_v60, %v6961_v36 }
 0x19f   : > { %v4149_v2 = vmul.f32 0.2, %v4085_v62  ;;  %v4212_v5 = vmax.f32 %v4084_v53, %v4148_v61 }
 0x1a0   : > { %v4147_v3 = vmul.f32 0.2, %v4083_v1  ;;  %v5629_v4 = vpop.f32.mrb[16].mxu1  ;;  %v4210_v9 = vmax.f32 %v4082_v58, %v4146_v0 }
 0x1a1   : > { %v4213_v6 = vmax.f32 %v4085_v62, %v4149_v2  ;;  %v5823_v7 = vadd.f32 %v5761_v49, %v5629_v4  ;;  %v1844_v8 = vpop.f32.mrb[17].mxu1 }
 0x1a2   : > { %v4211_v11 = vmax.f32 %v4083_v1, %v4147_v3  ;;  %v5824_v15 = vadd.f32 %v3808_v54, %v1844_v8  ;;  %v5630_v16 = vpop.f32.mrb[18].mxu1 }
 0x1a3   : > { %v5765_v12 = vpop.f32.mrb[20].mxu0  ;;  %v5258_v17 = vpack.c.bf16 %v4213_v6, %v4212_v5  ;;  %v4088_v18 = vadd.f32 %v5823_v7, %v6961_v36  ;;  %v5825_v20 = vadd.f32 %v5762_v59, %v5630_v16  ;;  %v1847_v22 = vpop.f32.mrb[19].mxu1 }
 0x1a4   : > { %v3824_v19 = vpop.f32.mrb[21].mxu0  ;;  %v5253_v23 = vpack.c.bf16 %v4211_v11, %v4210_v9  ;;  %v4086_v24 = vadd.f32 %v5824_v15, %v6961_v36  ;;  %v5826_v26 = vadd.f32 %v3811_v63, %v1847_v22 }
 0x1a5   : > { %v5766_v25 = vpop.f32.mrb[22].mxu0  ;;  %5386 = vst [vmem:[%s6970_s20 + $0x38] sm:$0xff] %v5258_v17   ;;  %v4152_v27 = vmul.f32 0.2, %v4088_v18  ;;  %v4089_v28 = vadd.f32 %v5825_v20, %v6961_v36 }
 0x1a6   : > { %v3827_v29 = vpop.f32.mrb[23].mxu0  ;;  %5385 = vst [vmem:[%s6970_s20 + $0x30] sm:$0xff] %v5253_v23   ;;  %v4150_v13 = vmul.f32 0.2, %v4086_v24  ;;  %v4087_v14 = vadd.f32 %v5826_v26, %v6961_v36 }
 0x1a7   : > { %v4153_v21 = vmul.f32 0.2, %v4089_v28  ;;  %v4216_v32 = vmax.f32 %v4088_v18, %v4152_v27 }
 0x1a8   : > { %v4151_v30 = vmul.f32 0.2, %v4087_v14  ;;  %v5633_v31 = vpop.f32.mrb[20].mxu1  ;;  %v4214_v35 = vmax.f32 %v4086_v24, %v4150_v13 }
 0x1a9   : > { %v4217_v33 = vmax.f32 %v4089_v28, %v4153_v21  ;;  %v5827_v10 = vadd.f32 %v5765_v12, %v5633_v31  ;;  %v1860_v34 = vpop.f32.mrb[21].mxu1 }
 0x1aa   : > { %v4215_v37 = vmax.f32 %v4087_v14, %v4151_v30  ;;  %v5828_v38 = vadd.f32 %v3824_v19, %v1860_v34  ;;  %v5634_v39 = vpop.f32.mrb[22].mxu1 }
 0x1ab   : > { %v5268_v40 = vpack.c.bf16 %v4217_v33, %v4216_v32  ;;  %v4092_v41 = vadd.f32 %v5827_v10, %v6961_v36  ;;  %v5829_v42 = vadd.f32 %v5766_v25, %v5634_v39  ;;  %v1863_v43 = vpop.f32.mrb[23].mxu1 }
 0x1ac   : > { %v5263_v44 = vpack.c.bf16 %v4215_v37, %v4214_v35  ;;  %v5769_v45 = vpop.f32.mrb[24].mxu0  ;;  %v4090_v46 = vadd.f32 %v5828_v38, %v6961_v36  ;;  %v5830_v47 = vadd.f32 %v3827_v29, %v1863_v43 }
 0x1ad   : > { %5388 = vst [vmem:[%s6970_s20 + $0x48] sm:$0xff] %v5268_v40   ;;  %v4156_v48 = vmul.f32 0.2, %v4092_v41  ;;  %v3840_v49 = vpop.f32.mrb[25].mxu0  ;;  %v4093_v50 = vadd.f32 %v5829_v42, %v6961_v36 }
 0x1ae   : > { %5387 = vst [vmem:[%s6970_s20 + $0x40] sm:$0xff] %v5263_v44   ;;  %v4154_v51 = vmul.f32 0.2, %v4090_v46  ;;  %v5770_v52 = vpop.f32.mrb[26].mxu0  ;;  %v4091_v53 = vadd.f32 %v5830_v47, %v6961_v36 }
 0x1af   : > { %v4157_v54 = vmul.f32 0.2, %v4093_v50  ;;  %v3843_v55 = vpop.f32.mrb[27].mxu0  ;;  %v4220_v58 = vmax.f32 %v4092_v41, %v4156_v48 }
 0x1b0   : > { %v4155_v56 = vmul.f32 0.2, %v4091_v53  ;;  %v5637_v57 = vpop.f32.mrb[24].mxu1  ;;  %v4218_v62 = vmax.f32 %v4090_v46, %v4154_v51 }
 0x1b1   : > { %v4221_v59 = vmax.f32 %v4093_v50, %v4157_v54  ;;  %v5831_v60 = vadd.f32 %v5769_v45, %v5637_v57  ;;  %v1876_v61 = vpop.f32.mrb[25].mxu1 }
 0x1b2   : > { %v4219_v63 = vmax.f32 %v4091_v53, %v4155_v56  ;;  %v5832_v0 = vadd.f32 %v3840_v49, %v1876_v61  ;;  %v5638_v1 = vpop.f32.mrb[26].mxu1 }
 0x1b3   : > { %v5278_v2 = vpack.c.bf16 %v4221_v59, %v4220_v58  ;;  %v4096_v3 = vadd.f32 %v5831_v60, %v6961_v36  ;;  %v5833_v4 = vadd.f32 %v5770_v52, %v5638_v1  ;;  %v1879_v5 = vpop.f32.mrb[27].mxu1 }
 0x1b4   : > { %v5273_v6 = vpack.c.bf16 %v4219_v63, %v4218_v62  ;;  %v5773_v7 = vpop.f32.mrb[28].mxu0  ;;  %v4094_v8 = vadd.f32 %v5832_v0, %v6961_v36  ;;  %v5834_v9 = vadd.f32 %v3843_v55, %v1879_v5 }
 0x1b5   : > { %5390 = vst [vmem:[%s6970_s20 + $0x58] sm:$0xff] %v5278_v2   ;;  %v4160_v11 = vmul.f32 0.2, %v4096_v3  ;;  %v3856_v12 = vpop.f32.mrb[29].mxu0  ;;  %v4097_v15 = vadd.f32 %v5833_v4, %v6961_v36 }
 0x1b6   : > { %5389 = vst [vmem:[%s6970_s20 + $0x50] sm:$0xff] %v5273_v6   ;;  %v4158_v16 = vmul.f32 0.2, %v4094_v8  ;;  %v5774_v17 = vpop.f32.mrb[30].mxu0  ;;  %v4095_v18 = vadd.f32 %v5834_v9, %v6961_v36 }
 0x1b7   : > { %v4161_v19 = vmul.f32 0.2, %v4097_v15  ;;  %v3859_v20 = vpop.f32.mrb[31].mxu0  ;;  %v4224_v24 = vmax.f32 %v4096_v3, %v4160_v11 }
 0x1b8   : > { %v4159_v22 = vmul.f32 0.2, %v4095_v18  ;;  %v5641_v23 = vpop.f32.mrb[28].mxu1  ;;  %v4222_v28 = vmax.f32 %v4094_v8, %v4158_v16 }
 0x1b9   : > { %v4225_v25 = vmax.f32 %v4097_v15, %v4161_v19  ;;  %v5835_v26 = vadd.f32 %v5773_v7, %v5641_v23  ;;  %v1892_v27 = vpop.f32.mrb[29].mxu1 }
 0x1ba   : > { %v4223_v29 = vmax.f32 %v4095_v18, %v4159_v22  ;;  %v5836_v13 = vadd.f32 %v3856_v12, %v1892_v27  ;;  %v5642_v14 = vpop.f32.mrb[30].mxu1 }
 0x1bb   : > { %v5288_v21 = vpack.c.bf16 %v4225_v25, %v4224_v24  ;;  %v4100_v30 = vadd.f32 %v5835_v26, %v6961_v36  ;;  %v5837_v31 = vadd.f32 %v5774_v17, %v5642_v14  ;;  %v1895_v32 = vpop.f32.mrb[31].mxu1 }
 0x1bc   : > { %v5283_v33 = vpack.c.bf16 %v4223_v29, %v4222_v28  ;;  %v5777_v10 = vpop.f32.mrb[32].mxu0  ;;  %v4098_v34 = vadd.f32 %v5836_v13, %v6961_v36  ;;  %v5838_v35 = vadd.f32 %v3859_v20, %v1895_v32 }
 0x1bd   : > { %5392 = vst [vmem:[%s6970_s20 + $0x68] sm:$0xff] %v5288_v21   ;;  %v4164_v37 = vmul.f32 0.2, %v4100_v30  ;;  %v3872_v38 = vpop.f32.mrb[33].mxu0  ;;  %v4101_v39 = vadd.f32 %v5837_v31, %v6961_v36 }
 0x1be   : > { %5391 = vst [vmem:[%s6970_s20 + $0x60] sm:$0xff] %v5283_v33   ;;  %v4162_v40 = vmul.f32 0.2, %v4098_v34  ;;  %v5778_v41 = vpop.f32.mrb[34].mxu0  ;;  %v4099_v42 = vadd.f32 %v5838_v35, %v6961_v36 }
 0x1bf   : > { %v4165_v43 = vmul.f32 0.2, %v4101_v39  ;;  %v3875_v44 = vpop.f32.mrb[35].mxu0  ;;  %v4228_v47 = vmax.f32 %v4100_v30, %v4164_v37 }
 0x1c0   : > { %v4163_v45 = vmul.f32 0.2, %v4099_v42  ;;  %v5645_v46 = vpop.f32.mrb[32].mxu1  ;;  %v4226_v51 = vmax.f32 %v4098_v34, %v4162_v40 }
 0x1c1   : > { %v4229_v48 = vmax.f32 %v4101_v39, %v4165_v43  ;;  %v5839_v49 = vadd.f32 %v5777_v10, %v5645_v46  ;;  %v1908_v50 = vpop.f32.mrb[33].mxu1 }
 0x1c2   : > { %v4227_v52 = vmax.f32 %v4099_v42, %v4163_v45  ;;  %v5840_v53 = vadd.f32 %v3872_v38, %v1908_v50  ;;  %v5646_v54 = vpop.f32.mrb[34].mxu1 }
 0x1c3   : > { %v5298_v55 = vpack.c.bf16 %v4229_v48, %v4228_v47  ;;  %v4104_v56 = vadd.f32 %v5839_v49, %v6961_v36  ;;  %v5841_v57 = vadd.f32 %v5778_v41, %v5646_v54  ;;  %v1911_v58 = vpop.f32.mrb[35].mxu1 }
 0x1c4   : > { %v5293_v59 = vpack.c.bf16 %v4227_v52, %v4226_v51  ;;  %v4102_v60 = vadd.f32 %v5840_v53, %v6961_v36  ;;  %v5842_v61 = vadd.f32 %v3875_v44, %v1911_v58 }
 0x1c5   : > { %5394 = vst [vmem:[%s6970_s20 + $0x78] sm:$0xff] %v5298_v55   ;;  %v5781_v62 = vpop.f32.mrb[36].mxu0  ;;  %v4168_v63 = vmul.f32 0.2, %v4104_v56  ;;  %v4105_v0 = vadd.f32 %v5841_v57, %v6961_v36 }
 0x1c6   : > { %5393 = vst [vmem:[%s6970_s20 + $0x70] sm:$0xff] %v5293_v59   ;;  %v3888_v1 = vpop.f32.mrb[37].mxu0  ;;  %v4166_v2 = vmul.f32 0.2, %v4102_v60  ;;  %v4103_v3 = vadd.f32 %v5842_v61, %v6961_v36 }
 0x1c7   : > { %v5782_v4 = vpop.f32.mrb[38].mxu0  ;;  %v4169_v5 = vmul.f32 0.2, %v4105_v0  ;;  %v4232_v9 = vmax.f32 %v4104_v56, %v4168_v63 }
 0x1c8   : > { %v3891_v6 = vpop.f32.mrb[39].mxu0  ;;  %v4167_v7 = vmul.f32 0.2, %v4103_v3  ;;  %v5649_v8 = vpop.f32.mrb[36].mxu1  ;;  %v4230_v16 = vmax.f32 %v4102_v60, %v4166_v2 }
 0x1c9   : > { %v4233_v11 = vmax.f32 %v4105_v0, %v4169_v5  ;;  %v5843_v12 = vadd.f32 %v5781_v62, %v5649_v8  ;;  %v1924_v15 = vpop.f32.mrb[37].mxu1 }
 0x1ca   : > { %v4231_v17 = vmax.f32 %v4103_v3, %v4167_v7  ;;  %v5844_v18 = vadd.f32 %v3888_v1, %v1924_v15  ;;  %v5650_v19 = vpop.f32.mrb[38].mxu1 }
 0x1cb   : > { %v5308_v20 = vpack.c.bf16 %v4233_v11, %v4232_v9  ;;  %v4108_v22 = vadd.f32 %v5843_v12, %v6961_v36  ;;  %v5845_v23 = vadd.f32 %v5782_v4, %v5650_v19  ;;  %v1927_v24 = vpop.f32.mrb[39].mxu1 }
 0x1cc   : > { %v5303_v25 = vpack.c.bf16 %v4231_v17, %v4230_v16  ;;  %v4106_v26 = vadd.f32 %v5844_v18, %v6961_v36  ;;  %v5846_v27 = vadd.f32 %v3891_v6, %v1927_v24 }
 0x1cd   : > { %5396 = vst [vmem:[%s6970_s20 + $0x88] sm:$0xff] %v5308_v20   ;;  %v5785_v28 = vpop.f32.mrb[40].mxu0  ;;  %v4172_v29 = vmul.f32 0.2, %v4108_v22  ;;  %v4109_v13 = vadd.f32 %v5845_v23, %v6961_v36 }
 0x1ce   : > { %5395 = vst [vmem:[%s6970_s20 + $0x80] sm:$0xff] %v5303_v25   ;;  %v3904_v14 = vpop.f32.mrb[41].mxu0  ;;  %v4170_v21 = vmul.f32 0.2, %v4106_v26  ;;  %v4107_v30 = vadd.f32 %v5846_v27, %v6961_v36 }
 0x1cf   : > { %v5786_v31 = vpop.f32.mrb[42].mxu0  ;;  %v4173_v32 = vmul.f32 0.2, %v4109_v13  ;;  %v4236_v35 = vmax.f32 %v4108_v22, %v4172_v29 }
 0x1d0   : > { %v3907_v33 = vpop.f32.mrb[43].mxu0  ;;  %v4171_v10 = vmul.f32 0.2, %v4107_v30  ;;  %v5653_v34 = vpop.f32.mrb[40].mxu1  ;;  %v4234_v40 = vmax.f32 %v4106_v26, %v4170_v21 }
 0x1d1   : > { %v4237_v37 = vmax.f32 %v4109_v13, %v4173_v32  ;;  %v5847_v38 = vadd.f32 %v5785_v28, %v5653_v34  ;;  %v1940_v39 = vpop.f32.mrb[41].mxu1 }
 0x1d2   : > { %v4235_v41 = vmax.f32 %v4107_v30, %v4171_v10  ;;  %v5848_v42 = vadd.f32 %v3904_v14, %v1940_v39  ;;  %v5654_v43 = vpop.f32.mrb[42].mxu1 }
 0x1d3   : > { %v5318_v44 = vpack.c.bf16 %v4237_v37, %v4236_v35  ;;  %v4112_v45 = vadd.f32 %v5847_v38, %v6961_v36  ;;  %v5849_v46 = vadd.f32 %v5786_v31, %v5654_v43  ;;  %v1943_v47 = vpop.f32.mrb[43].mxu1 }
 0x1d4   : > { %v5313_v48 = vpack.c.bf16 %v4235_v41, %v4234_v40  ;;  %v4110_v49 = vadd.f32 %v5848_v42, %v6961_v36  ;;  %v5850_v50 = vadd.f32 %v3907_v33, %v1943_v47 }
 0x1d5   : > { %5398 = vst [vmem:[%s6970_s20 + $0x98] sm:$0xff] %v5318_v44   ;;  %v4176_v51 = vmul.f32 0.2, %v4112_v45  ;;  %v4113_v52 = vadd.f32 %v5849_v46, %v6961_v36 }
 0x1d6   : > { %5397 = vst [vmem:[%s6970_s20 + $0x90] sm:$0xff] %v5313_v48   ;;  %v4174_v54 = vmul.f32 0.2, %v4110_v49  ;;  %v4111_v55 = vadd.f32 %v5850_v50, %v6961_v36 }
 0x1d7   : > { %v5789_v53 = vpop.f32.mrb[44].mxu0  ;;  %v4177_v57 = vmul.f32 0.2, %v4113_v52  ;;  %v4240_v61 = vmax.f32 %v4112_v45, %v4176_v51 }
 0x1d8   : > { %v3920_v56 = vpop.f32.mrb[45].mxu0  ;;  %v4175_v59 = vmul.f32 0.2, %v4111_v55  ;;  %v5657_v60 = vpop.f32.mrb[44].mxu1  ;;  %v4238_v2 = vmax.f32 %v4110_v49, %v4174_v54 }
 0x1d9   : > { %v5790_v58 = vpop.f32.mrb[46].mxu0  ;;  %v4241_v62 = vmax.f32 %v4113_v52, %v4177_v57  ;;  %v5851_v0 = vadd.f32 %v5789_v53, %v5657_v60  ;;  %v1956_v1 = vpop.f32.mrb[45].mxu1 }
 0x1da   : > { %v3923_v63 = vpop.f32.mrb[47].mxu0  ;;  %v4239_v3 = vmax.f32 %v4111_v55, %v4175_v59  ;;  %v5852_v4 = vadd.f32 %v3920_v56, %v1956_v1  ;;  %v5658_v5 = vpop.f32.mrb[46].mxu1 }
 0x1db   : > { %v5328_v6 = vpack.c.bf16 %v4241_v62, %v4240_v61  ;;  %v4116_v7 = vadd.f32 %v5851_v0, %v6961_v36  ;;  %v5853_v8 = vadd.f32 %v5790_v58, %v5658_v5  ;;  %v1959_v9 = vpop.f32.mrb[47].mxu1 }
 0x1dc   : > { %v5323_v11 = vpack.c.bf16 %v4239_v3, %v4238_v2  ;;  %v4114_v12 = vadd.f32 %v5852_v4, %v6961_v36  ;;  %v5854_v15 = vadd.f32 %v3923_v63, %v1959_v9 }
 0x1dd   : > { %5400 = vst [vmem:[%s6970_s20 + $0xa8] sm:$0xff] %v5328_v6   ;;  %v4180_v16 = vmul.f32 0.2, %v4116_v7  ;;  %v4117_v17 = vadd.f32 %v5853_v8, %v6961_v36 }
 0x1de   : > { %5399 = vst [vmem:[%s6970_s20 + $0xa0] sm:$0xff] %v5323_v11   ;;  %v4178_v19 = vmul.f32 0.2, %v4114_v12  ;;  %v4115_v20 = vadd.f32 %v5854_v15, %v6961_v36 }
 0x1df   : > { %v5793_v18 = vpop.f32.mrb[48].mxu0  ;;  %v4181_v23 = vmul.f32 0.2, %v4117_v17  ;;  %v4244_v27 = vmax.f32 %v4116_v7, %v4180_v16 }
 0x1e0   : > { %v3936_v22 = vpop.f32.mrb[49].mxu0  ;;  %v4179_v25 = vmul.f32 0.2, %v4115_v20  ;;  %v5661_v26 = vpop.f32.mrb[48].mxu1  ;;  %v4242_v21 = vmax.f32 %v4114_v12, %v4178_v19 }
 0x1e1   : > { %v5794_v24 = vpop.f32.mrb[50].mxu0  ;;  %v4245_v28 = vmax.f32 %v4117_v17, %v4181_v23  ;;  %v5855_v13 = vadd.f32 %v5793_v18, %v5661_v26  ;;  %v1972_v14 = vpop.f32.mrb[49].mxu1 }
 0x1e2   : > { %v3939_v29 = vpop.f32.mrb[51].mxu0  ;;  %v4243_v30 = vmax.f32 %v4115_v20, %v4179_v25  ;;  %v5856_v31 = vadd.f32 %v3936_v22, %v1972_v14  ;;  %v5662_v32 = vpop.f32.mrb[50].mxu1 }
 0x1e3   : > { %v5338_v33 = vpack.c.bf16 %v4245_v28, %v4244_v27  ;;  %v4120_v10 = vadd.f32 %v5855_v13, %v6961_v36  ;;  %v5857_v34 = vadd.f32 %v5794_v24, %v5662_v32  ;;  %v1975_v35 = vpop.f32.mrb[51].mxu1 }
 0x1e4   : > { %v5333_v37 = vpack.c.bf16 %v4243_v30, %v4242_v21  ;;  %v4118_v38 = vadd.f32 %v5856_v31, %v6961_v36  ;;  %v5858_v39 = vadd.f32 %v3939_v29, %v1975_v35 }
 0x1e5   : > { %5402 = vst [vmem:[%s6970_s20 + $0xb8] sm:$0xff] %v5338_v33   ;;  %v4184_v40 = vmul.f32 0.2, %v4120_v10  ;;  %v4121_v41 = vadd.f32 %v5857_v34, %v6961_v36 }
 0x1e6   : > { %5401 = vst [vmem:[%s6970_s20 + $0xb0] sm:$0xff] %v5333_v37   ;;  %v4182_v43 = vmul.f32 0.2, %v4118_v38  ;;  %v4119_v44 = vadd.f32 %v5858_v39, %v6961_v36 }
 0x1e7   : > { %v5797_v42 = vpop.f32.mrb[52].mxu0  ;;  %v4185_v46 = vmul.f32 0.2, %v4121_v41  ;;  %v4248_v50 = vmax.f32 %v4120_v10, %v4184_v40 }
 0x1e8   : > { %v3952_v45 = vpop.f32.mrb[53].mxu0  ;;  %v4183_v48 = vmul.f32 0.2, %v4119_v44  ;;  %v5665_v49 = vpop.f32.mrb[52].mxu1  ;;  %v4246_v55 = vmax.f32 %v4118_v38, %v4182_v43 }
 0x1e9   : > { %v5798_v47 = vpop.f32.mrb[54].mxu0  ;;  %v4249_v51 = vmax.f32 %v4121_v41, %v4185_v46  ;;  %v5859_v53 = vadd.f32 %v5797_v42, %v5665_v49  ;;  %v1988_v54 = vpop.f32.mrb[53].mxu1 }
 0x1ea   : > { %v3955_v52 = vpop.f32.mrb[55].mxu0  ;;  %v4247_v56 = vmax.f32 %v4119_v44, %v4183_v48  ;;  %v5860_v57 = vadd.f32 %v3952_v45, %v1988_v54  ;;  %v5666_v58 = vpop.f32.mrb[54].mxu1 }
 0x1eb   : > { %v5348_v59 = vpack.c.bf16 %v4249_v51, %v4248_v50  ;;  %v4124_v60 = vadd.f32 %v5859_v53, %v6961_v36  ;;  %v5861_v61 = vadd.f32 %v5798_v47, %v5666_v58  ;;  %v1991_v62 = vpop.f32.mrb[55].mxu1 }
 0x1ec   : > { %v5343_v63 = vpack.c.bf16 %v4247_v56, %v4246_v55  ;;  %v4122_v0 = vadd.f32 %v5860_v57, %v6961_v36  ;;  %v5862_v1 = vadd.f32 %v3955_v52, %v1991_v62 }
 0x1ed   : > { %5404 = vst [vmem:[%s6970_s20 + $0xc8] sm:$0xff] %v5348_v59   ;;  %v4188_v2 = vmul.f32 0.2, %v4124_v60  ;;  %v4125_v3 = vadd.f32 %v5861_v61, %v6961_v36 }
 0x1ee   : > { %5403 = vst [vmem:[%s6970_s20 + $0xc0] sm:$0xff] %v5343_v63   ;;  %v4186_v4 = vmul.f32 0.2, %v4122_v0  ;;  %v4123_v5 = vadd.f32 %v5862_v1, %v6961_v36 }
 0x1ef   : > { %v4189_v6 = vmul.f32 0.2, %v4125_v3  ;;  %v4252_v9 = vmax.f32 %v4124_v60, %v4188_v2 }
 0x1f0   : > { %v5801_v7 = vpop.f32.mrb[56].mxu0  ;;  %v4187_v8 = vmul.f32 0.2, %v4123_v5  ;;  %v4250_v16 = vmax.f32 %v4122_v0, %v4186_v4 }
 0x1f1   : > { %v3968_v11 = vpop.f32.mrb[57].mxu0  ;;  %v4253_v12 = vmax.f32 %v4125_v3, %v4189_v6  ;;  %v5669_v15 = vpop.f32.mrb[56].mxu1 }
 0x1f2   : > { %v5802_v17 = vpop.f32.mrb[58].mxu0  ;;  %v4251_v18 = vmax.f32 %v4123_v5, %v4187_v8  ;;  %v5863_v19 = vadd.f32 %v5801_v7, %v5669_v15  ;;  %v2004_v20 = vpop.f32.mrb[57].mxu1 }
 0x1f3   : > { %v5358_v22 = vpack.c.bf16 %v4253_v12, %v4252_v9  ;;  %v3971_v23 = vpop.f32.mrb[59].mxu0  ;;  %v5864_v24 = vadd.f32 %v3968_v11, %v2004_v20  ;;  %v5670_v25 = vpop.f32.mrb[58].mxu1 }
 0x1f4   : > { %v5353_v26 = vpack.c.bf16 %v4251_v18, %v4250_v16  ;;  %v4128_v27 = vadd.f32 %v5863_v19, %v6961_v36  ;;  %v5865_v28 = vadd.f32 %v5802_v17, %v5670_v25  ;;  %v2007_v29 = vpop.f32.mrb[59].mxu1 }
 0x1f5   : > { %5406 = vst [vmem:[%s6970_s20 + $0xd8] sm:$0xff] %v5358_v22   ;;  %v4126_v13 = vadd.f32 %v5864_v24, %v6961_v36  ;;  %v5866_v14 = vadd.f32 %v3971_v23, %v2007_v29 }
 0x1f6   : > { %5405 = vst [vmem:[%s6970_s20 + $0xd0] sm:$0xff] %v5353_v26   ;;  %v4192_v21 = vmul.f32 0.2, %v4128_v27  ;;  %v4129_v30 = vadd.f32 %v5865_v28, %v6961_v36 }
 0x1f7   : > { %v4190_v31 = vmul.f32 0.2, %v4126_v13  ;;  %v4127_v32 = vadd.f32 %v5866_v14, %v6961_v36 }
 0x1f8   : > { %v5805_v33 = vpop.f32.mrb[60].mxu0  ;;  %v4193_v10 = vmul.f32 0.2, %v4129_v30  ;;  %v4256_v38 = vmax.f32 %v4128_v27, %v4192_v21 }
 0x1f9   : > { %v3984_v34 = vpop.f32.mrb[61].mxu0  ;;  %v4191_v35 = vmul.f32 0.2, %v4127_v32  ;;  %v5673_v37 = vpop.f32.mrb[60].mxu1  ;;  %v4254_v43 = vmax.f32 %v4126_v13, %v4190_v31 }
 0x1fa   : > { %v5806_v39 = vpop.f32.mrb[62].mxu0  ;;  %v4257_v40 = vmax.f32 %v4129_v30, %v4193_v10  ;;  %v5867_v41 = vadd.f32 %v5805_v33, %v5673_v37  ;;  %v2020_v42 = vpop.f32.mrb[61].mxu1 }
 0x1fb   : > { %v3987_v44 = vpop.f32.mrb[63].mxu0  ;;  %v4255_v45 = vmax.f32 %v4127_v32, %v4191_v35  ;;  %v5868_v46 = vadd.f32 %v3984_v34, %v2020_v42  ;;  %v5674_v47 = vpop.f32.mrb[62].mxu1 }
 0x1fc   : > { %v5368_v48 = vpack.c.bf16 %v4257_v40, %v4256_v38  ;;  %v4132_v49 = vadd.f32 %v5867_v41, %v6961_v36  ;;  %v5869_v50 = vadd.f32 %v5806_v39, %v5674_v47  ;;  %v2023_v51 = vpop.f32.mrb[63].mxu1 }
 0x1fd   : > { %v5363_v52 = vpack.c.bf16 %v4255_v45, %v4254_v43  ;;  %v4130_v53 = vadd.f32 %v5868_v46, %v6961_v36  ;;  %v5870_v54 = vadd.f32 %v3987_v44, %v2023_v51 }
 0x1fe   : > { %5408 = vst [vmem:[%s6970_s20 + $0xe8] sm:$0xff] %v5368_v48   ;;  %v4196_v55 = vmul.f32 0.2, %v4132_v49  ;;  %v4133_v56 = vadd.f32 %v5869_v50, %v6961_v36 }
 0x1ff   : > { %5407 = vst [vmem:[%s6970_s20 + $0xe0] sm:$0xff] %v5363_v52   ;;  %v4194_v57 = vmul.f32 0.2, %v4130_v53  ;;  %v4131_v58 = vadd.f32 %v5870_v54, %v6961_v36 }
 0x200   : > { %v4197_v59 = vmul.f32 0.2, %v4133_v56  ;;  %v4260_v61 = vmax.f32 %v4132_v49, %v4196_v55 }
 0x201   : > { %v4195_v60 = vmul.f32 0.2, %v4131_v58  ;;  %v4258_v63 = vmax.f32 %v4130_v53, %v4194_v57 }
 0x202   : > { %v4261_v62 = vmax.f32 %v4133_v56, %v4197_v59 }
 0x203   : > { %v4259_v0 = vmax.f32 %v4131_v58, %v4195_v60 }
 0x204   : > { %v5378_v1 = vpack.c.bf16 %v4261_v62, %v4260_v61 }
 0x205   : > { %v5373_v2 = vpack.c.bf16 %v4259_v0, %v4258_v63 }
 0x206   : > { %5410 = vst [vmem:[%s6970_s20 + $0xf8] sm:$0xff] %v5378_v1  }
 0x207   : > { %5409 = vst [vmem:[%s6970_s20 + $0xf0] sm:$0xff] %v5373_v2  }
 0x208 PF: > { %s13_s16 = sadd.s32 1, %s6212_s16   ;;  %s7085_s12 = smov %s6204_s14 }
 0x209   : > { %p10_p7 = scmp.ge.s32.totalorder %s13_s16, 6   ;;  %s7086_s13 = smov %s6208_s15 }
 0x20a   : > { %s7087_s14 = smov %s7090_s17  ;;  %s7088_s15 = smov %s7094_s18 }
 0x20b   :  { %12 = sbr.rel (!%p10_p7) target bundleno = 3 (0x3), region = 67 }

// kernel: e_nlayers_forward.4
= control target key start
LH: loop header
LB: loop body
LE: loop exit
PB: predicated region body
PF: predicated region fallthrough
CT: control target
= control target key end

     0   :  { %s5146_s12 = smov 0   ;;  %s5148_s13 = smov 0   ;;  %s6561_s0 = inlined_call_operand.vmem [shape: bf16[2,17,17,512], index: 0, kind: input, shape index: {}]   ;;  %s6562_s1 = inlined_call_operand.vmem [shape: bf16[4,512,128], index: 1, kind: input, shape index: {}]   ;;  %s6563_s2 = inlined_call_operand.vmem [shape: f32[1,128], index: 2, kind: input, shape index: {}]   ;;  %s6564_s3 = inlined_call_operand.vmem [shape: bf16[512,128], index: 3, kind: output, shape index: {}]  }
   0x1   :  { %s5150_s14 = smov 0   ;;  %s5152_s15 = smov 0  }
   0x2   :  { %s5154_s16 = smov 0  }
   0x3 LB: > { %s22_s17 = sadd.s32 1, %s5116_s14  ;;  %s25_s18 = sadd.s32 1, %s5120_s15  ;;  %s5124_s16 = sphi %s5154_s16, %s13_s16   ;;  %s5120_s15 = sphi %s5152_s15, %s6570_s15   ;;  %s5116_s14 = sphi %s5150_s14, %s6569_s14   ;;  %s5112_s13 = sphi %s5148_s13, %s6568_s13   ;;  %s5108_s12 = sphi %s5146_s12, %s6567_s12  }
   0x4   : > { %p23_p0 = scmp.ge.s32.totalorder %s22_s17, 2  ;;  %p3734_p1 = scmp.ge.s32.totalorder %s5124_s16, 1 }
   0x5   : > { %p153_p2 = scmp.lt.s32.totalorder %s5124_s16, 5 }
   0x6   : > { %s6572_s17 = smov (%p23_p0, %s22_s17), 0  ;;  %s6574_s18 = smov (!%p23_p0, %s25_s18), %s5120_s15 }
   0x7   : > { %p154_p3 = pnand %p3734_p1, %p153_p2  ;;  %p27_p4 = scmp.ge.s32.totalorder %s6574_s18, 2 }
   0x8   : > { %v4908_v0 = vld [vmem:[%s6562_s1 + $0x140] sm:$0xff] (!%p154_p3)   ;;  %v4912_v4 = vld [vmem:[%s6562_s1 + $0x148] sm:$0xff] (!%p154_p3)   ;;  %v4916_v8 = vld [vmem:[%s6562_s1 + $0x150] sm:$0xff] (!%p154_p3)   ;;  %p179_p5 = scmp.lt.s32.totalorder (!%p154_p3), %s5112_s13, 1  ;;  %s4291_s6 = smul.u32 (!%p154_p3), 384, %s5108_s12 }
   0x9   : > { %s6576_s18 = smov (%p27_p4, %s6574_s18), 0  ;;  %157 = sbr.rel (%p154_p3) target bundleno = 527 (0x20f), region = 32 }
   0xa   : > { %v4909_v1 = vld [vmem:[%s6562_s1 + $0x1c0] sm:$0xff] (!%p154_p3)   ;;  %4355 = vmatprep.subr.bf16.mxu0 (!%p154_p3), %v4908_v0  ;;  %v4913_v5 = vld [vmem:[%s6562_s1 + $0x1c8] sm:$0xff] (!%p154_p3)   ;;  %v4917_v9 = vld [vmem:[%s6562_s1 + $0x1d0] sm:$0xff] (!%p154_p3)   ;;  %vm311_vm0 = vsmask.f32 (!%p154_p3), 3328 }
   0xb   : > { %v4910_v2 = vld [vmem:[%s6562_s1 + $0x100] sm:$0xff] (!%p154_p3)   ;;  %4419 = vmatprep.subr.bf16.mxu1 (!%p154_p3), %v4909_v1  ;;  %v4914_v6 = vld [vmem:[%s6562_s1 + $0x108] sm:$0xff] (!%p154_p3)   ;;  %v4918_v10 = vld [vmem:[%s6562_s1 + $0x110] sm:$0xff] (!%p154_p3)   ;;  %vm312_vm1 = vsmask.f32 (!%p154_p3), 7440 }
   0xc   : > { %v4911_v3 = vld [vmem:[%s6562_s1 + $0x180] sm:$0xff] (!%p154_p3)   ;;  %4356 = vmatpush3.bf16.msra.mxu0 (!%p154_p3), %v4910_v2  ;;  %v4915_v7 = vld [vmem:[%s6562_s1 + $0x188] sm:$0xff] (!%p154_p3)   ;;  %v4919_v11 = vld [vmem:[%s6562_s1 + $0x190] sm:$0xff] (!%p154_p3)  }
   0xd   : > { %4420 = vmatpush3.bf16.msra.mxu1 (!%p154_p3), %v4911_v3  ;;  %4357 = vmatprep.subr.bf16.mxu0 (!%p154_p3), %v4912_v4  ;;  %v4920_v12 = vld [vmem:[%s6562_s1 + $0x158] sm:$0xff] (!%p154_p3)   ;;  %v4924_v16 = vld [vmem:[%s6562_s1 + $0x160] sm:$0xff] (!%p154_p3)   ;;  %v4928_v20 = vld [vmem:[%s6562_s1 + $0x168] sm:$0xff] (!%p154_p3)  }
   0xe   : > { %4421 = vmatprep.subr.bf16.mxu1 (!%p154_p3), %v4913_v5  ;;  %v4921_v13 = vld [vmem:[%s6562_s1 + $0x1d8] sm:$0xff] (!%p154_p3)   ;;  %v4925_v17 = vld [vmem:[%s6562_s1 + $0x1e0] sm:$0xff] (!%p154_p3)   ;;  %v4929_v21 = vld [vmem:[%s6562_s1 + $0x1e8] sm:$0xff] (!%p154_p3)  }
   0xf   : > { %v4922_v14 = vld [vmem:[%s6562_s1 + $0x118] sm:$0xff] (!%p154_p3)   ;;  %v4926_v18 = vld [vmem:[%s6562_s1 + $0x120] sm:$0xff] (!%p154_p3)   ;;  %v4930_v22 = vld [vmem:[%s6562_s1 + $0x128] sm:$0xff] (!%p154_p3)  }
  0x10   : > { %4358 = vmatpush3.bf16.msra.mxu0 %v4914_v6  ;;  %v4923_v15 = vld [vmem:[%s6562_s1 + $0x198] sm:$0xff]   ;;  %s180_s10 = scalar_select %p179_p5, %s5112_s13, 1  ;;  %v4927_v19 = vld [vmem:[%s6562_s1 + $0x1a0] sm:$0xff]   ;;  %v4931_v23 = vld [vmem:[%s6562_s1 + $0x1a8] sm:$0xff]  }
  0x11   : > { %4422 = vmatpush3.bf16.msra.mxu1 %v4915_v7  ;;  %4359 = vmatprep.subr.bf16.mxu0 %v4916_v8  ;;  %v4932_v24 = vld [vmem:[%s6562_s1 + $0x170] sm:$0xff]   ;;  %v4936_v28 = vld [vmem:[%s6562_s1 + $0x178] sm:$0xff]   ;;  %vm5309_vm2 = vmor %vm311_vm0, %vm312_vm1 }
  0x12   : > { %4423 = vmatprep.subr.bf16.mxu1 %v4917_v9  ;;  %s4867_s26 = smul.u32 816, %s180_s10  ;;  %v4933_v25 = vld [vmem:[%s6562_s1 + $0x1f0] sm:$0xff]   ;;  %v4937_v29 = vld [vmem:[%s6562_s1 + $0x1f8] sm:$0xff]   ;;  %v4940_v58 = vld [vmem:[%s6562_s1 + $0x40] sm:$0xff]  }
  0x13   : > { %v4934_v26 = vld [vmem:[%s6562_s1 + $0x130] sm:$0xff]   ;;  %v4938_v30 = vld [vmem:[%s6562_s1 + $0x138] sm:$0xff]   ;;  %v4941_v61 = vld [vmem:[%s6562_s1 + $0xc0] sm:$0xff]  }
  0x14   : > { %4360 = vmatpush3.bf16.msra.mxu0 %v4918_v10  ;;  %s183_s11 = scalar_lea.vmem %s6561_s0, %s4867_s26  ;;  %v4935_v27 = vld [vmem:[%s6562_s1 + $0x1b0] sm:$0xff]   ;;  %v4939_v31 = vld [vmem:[%s6562_s1 + $0x1b8] sm:$0xff]  }
  0x15   : > { %4424 = vmatpush3.bf16.msra.mxu1 %v4919_v11  ;;  %4361 = vmatprep.subr.bf16.mxu0 %v4920_v12  ;;  %s5276_s25 = scalar_lea.vmem %s183_s11, %s4291_s6 }
  0x16   : > { %4425 = vmatprep.subr.bf16.mxu1 %v4921_v13  ;;  %v5285_v32 = vld [vmem:[%s5276_s25] sm:$0xff]  ;;  %v5288_v33 = vld [vmem:[%s5276_s25 + $0x10] sm:$0xff]  ;;  %v5295_v38 = vld [vmem:[%s5276_s25 + $0x8] sm:$0xff] }
  0x17   : > { %v295_v34 = vld [vmem:[%s5276_s25 + $0x20] sm:$0x11]  ;;  %v315_v35 = vshrl.u32 %v5285_v32, 16  ;;  %v318_v36 = vshll.u32 %v5285_v32, 16  ;;  %v324_v37 = vshll.u32 %v5288_v33, 16  ;;  %v342_v39 = vshrl.u32 %v5288_v33, 16 }
  0x18   : > { %4362 = vmatpush3.bf16.msra.mxu0 %v4922_v14  ;;  %v348_v40 = vshll.u32 %v295_v34, 16  ;;  %v5299_v41 = vld [vmem:[%s5276_s25 + $0x18] sm:$0xff]  ;;  %v296_v42 = vld [vmem:[%s5276_s25 + $0x28] sm:$0x11]  ;;  %v329_v43 = vshrl.u32 %v5295_v38, 16  ;;  %v3871_v44 = vcombine.high %v5285_v32, %v5288_v33  ;;  %v332_v48 = vshll.u32 %v5295_v38, 16 }
  0x19   : > { %4426 = vmatpush3.bf16.msra.mxu1 %v4923_v15  ;;  %4363 = vmatprep.subr.bf16.mxu0 %v4924_v16  ;;  %v317_v45 = vrot.slane %v315_v35, 4  ;;  %v320_v46 = vrot.slane %v318_v36, 5  ;;  %v326_v47 = vrot.slane %v324_v37, 5  ;;  %v344_v49 = vrot.slane %v342_v39, 4  ;;  %v5329_v9 = vld [vmem:[%s5276_s25 + $0x30] sm:$0xff]  ;;  %v5332_v10 = vld [vmem:[%s5276_s25 + $0x40] sm:$0xff] }
  0x1a   : > { %4427 = vmatprep.subr.bf16.mxu1 %v4925_v17  ;;  %v350_v50 = vrot.slane %v348_v40, 5  ;;  %v331_v51 = vrot.slane %v329_v43, 4  ;;  %v338_v52 = vshll.u32 %v5299_v41, 16  ;;  %v334_v55 = vrot.slane %v332_v48, 5  ;;  %v297_v11 = vld [vmem:[%s5276_s25 + $0x50] sm:$0x11] }
  0x1b   : > { %v321_v54 = vor.u32 %v320_v46, %v317_v45  ;;  %v352_v56 = vshrl.u32 %v5299_v41, 16  ;;  %v358_v57 = vshll.u32 %v296_v42, 16  ;;  %v345_v59 = vor.u32 %v344_v49, %v326_v47  ;;  %v4942_v13 = vld [vmem:[%s6562_s1] sm:$0xff]   ;;  %v5344_v17 = vld [vmem:[%s5276_s25 + $0x38] sm:$0xff]  ;;  %v4945_v36 = vld [vmem:[%s6562_s1 + $0xc8] sm:$0xff]  }
  0x1c   : > { %4364 = vmatpush3.bf16.msra.mxu0 %v4926_v18  ;;  %v340_v60 = vrot.slane %v338_v52, 5  ;;  %v3873_v62 = vcombine.high %v5295_v38, %v5299_v41  ;;  %v3870_v63 = vcombine.low %v5285_v32, %v5288_v33  ;;  %v335_v1 = vor.u32 %v334_v55, %v331_v51  ;;  %v5347_v18 = vld [vmem:[%s5276_s25 + $0x48] sm:$0xff]  ;;  %v4992_v32 = vld [vmem:[%s6562_s1 + $0x250] sm:$0xff]  }
  0x1d   : > { %4428 = vmatpush3.bf16.msra.mxu1 %v4927_v19  ;;  %4365 = vmatprep.subr.bf16.mxu0 %v4928_v20  ;;  %v322_v0 = vrot.slane %v321_v54, 4  ;;  %v354_v2 = vrot.slane %v352_v56, 4  ;;  %v346_v3 = vrot.slane %v345_v59, 4  ;;  %v3872_v4 = vcombine.low %v5295_v38, %v5299_v41  ;;  %v4946_v43 = vld [vmem:[%s6562_s1 + $0x8] sm:$0xff]   ;;  %v5372_v54 = vld [vmem:[%s5276_s25 + $0x60] sm:$0xff]  ;;  %v4993_v38 = vld [vmem:[%s6562_s1 + $0x2d0] sm:$0xff]  }
  0x1e   : > { %4429 = vmatprep.subr.bf16.mxu1 %v4929_v21  ;;  %v336_v6 = vrot.slane %v335_v1, 4  ;;  %v360_v8 = vrot.slane %v358_v57, 5  ;;  %v363_v14 = vshrl.u32 %v5329_v9, 16  ;;  %v366_v15 = vshll.u32 %v5329_v9, 16  ;;  %v5375_v57 = vld [vmem:[%s5276_s25 + $0x70] sm:$0xff]  ;;  %v4987_v33 = vld [vmem:[%s6562_s1 + $0x288] sm:$0xff]  }
  0x1f   : > { %v327_v5 = vsel %vm5309_vm2, %v322_v0, %v326_v47  ;;  %v355_v7 = vor.u32 %v354_v2, %v340_v60  ;;  %v351_v12 = vsel %vm5309_vm2, %v346_v3, %v350_v50  ;;  %v372_v16 = vshll.u32 %v5332_v10, 16  ;;  %v4947_v3 = vld [vmem:[%s6562_s1 + $0x88] sm:$0xff]   ;;  %v4995_v41 = vld [vmem:[%s6562_s1 + $0x290] sm:$0xff]  }
  0x20   : > { %4366 = vmatpush3.bf16.msra.mxu0 %v4930_v22  ;;  %v3806_v19 = vcombine.low %v327_v5, %v351_v12  ;;  %v3807_v20 = vcombine.high %v327_v5, %v351_v12  ;;  %v341_v21 = vsel %vm5309_vm2, %v336_v6, %v340_v60  ;;  %v377_v34 = vshrl.u32 %v5344_v17, 16  ;;  %v4948_v5 = vld [vmem:[%s6562_s1 + $0x50] sm:$0xff]   ;;  %v5394_v12 = vld [vmem:[%s5276_s25 + $0x68] sm:$0xff] }
  0x21   : > { %4430 = vmatpush3.bf16.msra.mxu1 %v4931_v23  ;;  %4367 = vmatprep.subr.bf16.mxu0 %v4932_v24  ;;  %v356_v22 = vrot.slane %v355_v7, 4  ;;  %v298_v23 = vld [vmem:[%s5276_s25 + $0x58] sm:$0x11]  ;;  %v4944_v24 = vld [vmem:[%s6562_s1 + $0x48] sm:$0xff]   ;;  %v380_v35 = vshll.u32 %v5344_v17, 16  ;;  %v386_v48 = vshll.u32 %v5347_v18, 16  ;;  %v3875_v59 = vcombine.high %v5329_v9, %v5332_v10 }
  0x22   : > { %4431 = vmatprep.subr.bf16.mxu1 %v4933_v25  ;;  %v4943_v25 = vld [vmem:[%s6562_s1 + $0x80] sm:$0xff]   ;;  %1115 = vmatprep.mubr.bf16.mxu0 %v3807_v20  ;;  %v379_v46 = vrot.slane %v377_v34, 4  ;;  %v400_v51 = vshrl.u32 %v5347_v18, 16  ;;  %v406_v52 = vshll.u32 %v298_v23, 16  ;;  %v3877_v60 = vcombine.high %v5344_v17, %v5347_v18 }
  0x23   : > { %v382_v47 = vrot.slane %v380_v35, 5  ;;  %v388_v56 = vrot.slane %v386_v48, 5  ;;  %v411_v7 = vshrl.u32 %v5372_v54, 16  ;;  %v428_v34 = vshll.u32 %v5394_v12, 16  ;;  %v4951_v48 = vld [vmem:[%s6562_s1 + $0x90] sm:$0xff]  }
  0x24   : > { %4368 = vmatpush3.bf16.msra.mxu0 %v4934_v26  ;;  %v365_v26 = vrot.slane %v363_v14, 4  ;;  %v402_v1 = vrot.slane %v400_v51, 4  ;;  %v408_v2 = vrot.slane %v406_v52, 5 }
  0x25   : > { %4432 = vmatpush3.bf16.msra.mxu1 %v4935_v27  ;;  %4369 = vmatprep.subr.bf16.mxu0 %v4936_v28  ;;  %v368_v27 = vrot.slane %v366_v15, 5  ;;  %v374_v28 = vrot.slane %v372_v16, 5  ;;  %v383_v55 = vor.u32 %v382_v47, %v379_v46  ;;  %v438_v16 = vshrl.u32 %v5375_v57, 16 }
  0x26   : > { %4433 = vmatprep.subr.bf16.mxu1 %v4937_v29  ;;  %v390_v29 = vshrl.u32 %v5332_v10, 16  ;;  %v403_v15 = vor.u32 %v402_v1, %v388_v56  ;;  %v413_v23 = vrot.slane %v411_v7, 4  ;;  %v430_v47 = vrot.slane %v428_v34, 5 }
  0x27   : > { %v369_v40 = vor.u32 %v368_v27, %v365_v26  ;;  %v384_v6 = vrot.slane %v383_v55, 4 }
  0x28   : > { %4370 = vmatpush3.bf16.msra.mxu0 %v4938_v30  ;;  %v361_v30 = vsel %vm5309_vm2, %v356_v22, %v360_v8  ;;  %v392_v42 = vrot.slane %v390_v29, 4  ;;  %v414_v8 = vshll.u32 %v5372_v54, 16  ;;  %v300_v29 = vld [vmem:[%s5276_s25 + $0x88] sm:$0x11] }
  0x29   : > { %4434 = vmatpush3.bf16.msra.mxu1 %v4939_v31  ;;  %4483 = vmatprep.subr.bf16.mxu0 %v4940_v58  ;;  %v396_v31 = vshll.u32 %v297_v11, 16  ;;  %v3808_v37 = vcombine.low %v341_v21, %v361_v30  ;;  %v3809_v39 = vcombine.high %v341_v21, %v361_v30  ;;  %v370_v49 = vrot.slane %v369_v40, 4  ;;  %v299_v58 = vld [vmem:[%s5276_s25 + $0x80] sm:$0x11] }
  0x2a   : > { %4547 = vmatprep.subr.bf16.mxu1 %v4941_v61  ;;  %v393_v50 = vor.u32 %v392_v42, %v374_v28  ;;  %v420_v11 = vshll.u32 %v5375_v57, 16  ;;  %v389_v21 = vsel %vm5309_vm2, %v384_v6, %v388_v56  ;;  %v416_v26 = vrot.slane %v414_v8, 5  ;;  %v4950_v42 = vld [vmem:[%s6562_s1 + $0x10] sm:$0xff]  }
  0x2b   : > { %1116 = vmatmul.mubr.bf16.vlgmr.msra.gmra.mrb[0].mxu0 %v3806_v19  ;;  %v398_v45 = vrot.slane %v396_v31, 5  ;;  %1212 = vmatprep.mubr.bf16.mxu1 %v3809_v39  ;;  %v375_v61 = vsel %vm5309_vm2, %v370_v49, %v374_v28  ;;  %v444_v19 = vshll.u32 %v299_v58, 16  ;;  %v440_v28 = vrot.slane %v438_v16, 4  ;;  %v5421_v49 = vld [vmem:[%s5276_s25 + $0x90] sm:$0xff] }
  0x2c   : > { %4484 = vmatpush3.bf16.msra.mxu0 %v4942_v13  ;;  %1213 = vmatmul.mubr.bf16.vlgmr.msra.gmra.mrb[0].mxu1 %v3808_v37  ;;  %v394_v0 = vrot.slane %v393_v50, 4  ;;  %v5397_v13 = vld [vmem:[%s5276_s25 + $0x78] sm:$0xff]  ;;  %v422_v27 = vrot.slane %v420_v11, 5  ;;  %v425_v31 = vshrl.u32 %v5394_v12, 16  ;;  %v417_v37 = vor.u32 %v416_v26, %v413_v23  ;;  %v5424_v50 = vld [vmem:[%s5276_s25 + $0xa0] sm:$0xff] }
  0x2d   : > { %4485 = vmatprep.subr.bf16.mxu0 %v4944_v24  ;;  %4548 = vmatpush3.bf16.msra.mxu1 %v4943_v25  ;;  %v4949_v24 = vld [vmem:[%s6562_s1 + $0xd0] sm:$0xff]   ;;  %v404_v25 = vrot.slane %v403_v15, 4  ;;  %v446_v30 = vrot.slane %v444_v19, 5  ;;  %v434_v35 = vshll.u32 %v5397_v13, 16  ;;  %v448_v40 = vshrl.u32 %v5397_v13, 16  ;;  %v4953_v15 = vld [vmem:[%s6562_s1 + $0xd8] sm:$0xff]  }
  0x2e   : > { %4549 = vmatprep.subr.bf16.mxu1 %v4945_v36  ;;  %v399_v14 = vsel %vm5309_vm2, %v394_v0, %v398_v45  ;;  %v441_v39 = vor.u32 %v440_v28, %v422_v27  ;;  %v427_v46 = vrot.slane %v425_v31, 4  ;;  %v418_v51 = vrot.slane %v417_v37, 4  ;;  %v301_v58 = vld [vmem:[%s5276_s25 + $0xb0] sm:$0x11]  ;;  %v302_v26 = vld [vmem:[%s5276_s25 + $0xb8] sm:$0x11] }
  0x2f   : > { %v3811_v20 = vcombine.high %v375_v61, %v399_v14  ;;  %v3810_v22 = vcombine.low %v375_v61, %v399_v14  ;;  %v409_v36 = vsel %vm5309_vm2, %v404_v25, %v408_v2  ;;  %v436_v55 = vrot.slane %v434_v35, 5  ;;  %v5441_v14 = vld [vmem:[%s5276_s25 + $0xa8] sm:$0xff]  ;;  %v4954_v31 = vld [vmem:[%s6562_s1 + $0x18] sm:$0xff]  }
  0x30   : > { %4486 = vmatpush3.bf16.msra.mxu0 %v4946_v43  ;;  %v3813_v43 = vcombine.high %v389_v21, %v409_v36  ;;  %v3812_v45 = vcombine.low %v389_v21, %v409_v36  ;;  %v442_v52 = vrot.slane %v441_v39, 4  ;;  %v450_v56 = vrot.slane %v448_v40, 4 }
  0x31   : > { %4487 = vmatprep.subr.bf16.mxu0 %v4948_v5  ;;  %4550 = vmatpush3.bf16.msra.mxu1 %v4947_v3  ;;  %v431_v61 = vor.u32 %v430_v47, %v427_v46  ;;  %v454_v0 = vshll.u32 %v300_v29, 16  ;;  %v459_v1 = vshrl.u32 %v5421_v49, 16  ;;  %v462_v2 = vshll.u32 %v5421_v49, 16  ;;  %v5430_v3 = vld [vmem:[%s5276_s25 + $0x98] sm:$0xff]  ;;  %v5462_v46 = vld [vmem:[%s5276_s25 + $0xc0] sm:$0xff] }
  0x32   : > { %1123 = vmatprep.mubr.bf16.mxu0 %v3811_v20  ;;  %4551 = vmatprep.subr.bf16.mxu1 %v4949_v24  ;;  %v4952_v5 = vld [vmem:[%s6562_s1 + $0x58] sm:$0xff]   ;;  %v423_v6 = vsel %vm5309_vm2, %v418_v51, %v422_v27  ;;  %v447_v7 = vsel %vm5309_vm2, %v442_v52, %v446_v30  ;;  %v451_v8 = vor.u32 %v450_v56, %v436_v55  ;;  %v468_v11 = vshll.u32 %v5424_v50, 16 }
  0x33   : > { %1124 = vmatmul.mubr.bf16.gmra.mrb[4].mxu0 %v3810_v22  ;;  %1220 = vmatprep.mubr.bf16.mxu1 %v3813_v43  ;;  %v3815_v16 = vcombine.high %v423_v6, %v447_v7  ;;  %v432_v19 = vrot.slane %v431_v61, 4  ;;  %v456_v20 = vrot.slane %v454_v0, 5  ;;  %v3814_v21 = vcombine.low %v423_v6, %v447_v7  ;;  %v303_v6 = vld [vmem:[%s5276_s25 + $0xe0] sm:$0x11] }
  0x34   : > { %4488 = vmatpush3.bf16.msra.mxu0 %v4950_v42  ;;  %1221 = vmatmul.mubr.bf16.gmra.mrb[4].mxu1 %v3812_v45  ;;  %v452_v22 = vrot.slane %v451_v8, 4  ;;  %v461_v23 = vrot.slane %v459_v1, 4  ;;  %v464_v24 = vrot.slane %v462_v2, 5  ;;  %v470_v25 = vrot.slane %v468_v11, 5  ;;  %v4955_v45 = vld [vmem:[%s6562_s1 + $0x98] sm:$0xff]   ;;  %v5470_v1 = vld [vmem:[%s5276_s25 + $0xc8] sm:$0xff] }
  0x35   : > { %4552 = vmatpush3.bf16.msra.mxu1 %v4951_v48  ;;  %4489 = vmatprep.subr.bf16.mxu0 %v4952_v5  ;;  %v437_v27 = vsel %vm5309_vm2, %v432_v19, %v436_v55  ;;  %v486_v28 = vshrl.u32 %v5424_v50, 16  ;;  %v492_v29 = vshll.u32 %v301_v58, 16  ;;  %v473_v30 = vshrl.u32 %v5430_v3, 16  ;;  %v5465_v55 = vld [vmem:[%s5276_s25 + $0xd0] sm:$0xff] }
  0x36   : > { %4553 = vmatprep.subr.bf16.mxu1 %v4953_v15  ;;  %1131 = vmatprep.mubr.bf16.mxu0 %v3815_v16  ;;  %v457_v34 = vsel %vm5309_vm2, %v452_v22, %v456_v20  ;;  %v465_v35 = vor.u32 %v464_v24, %v461_v23  ;;  %v476_v36 = vshll.u32 %v5430_v3, 16  ;;  %v482_v37 = vshll.u32 %v5441_v14, 16  ;;  %v5478_v20 = vld [vmem:[%s5276_s25 + $0xd8] sm:$0xff] }
  0x37   : > { %v3817_v39 = vcombine.high %v437_v27, %v457_v34  ;;  %v3816_v40 = vcombine.low %v437_v27, %v457_v34  ;;  %v488_v42 = vrot.slane %v486_v28, 4  ;;  %v494_v43 = vrot.slane %v492_v29, 5  ;;  %v4957_v27 = vld [vmem:[%s6562_s1 + $0xe0] sm:$0xff]  }
  0x38   : > { %4490 = vmatpush3.bf16.msra.mxu0 %v4954_v31  ;;  %v466_v47 = vrot.slane %v465_v35, 4  ;;  %v475_v48 = vrot.slane %v473_v30, 4  ;;  %v478_v51 = vrot.slane %v476_v36, 5  ;;  %v484_v52 = vrot.slane %v482_v37, 5 }
  0x39   : > { %1228 = vmatprep.mubr.bf16.mxu1 %v3817_v39  ;;  %v489_v56 = vor.u32 %v488_v42, %v470_v25  ;;  %v496_v58 = vshrl.u32 %v5441_v14, 16  ;;  %v502_v61 = vshll.u32 %v302_v26, 16  ;;  %4554 = vmatpush3.bf16.msra.mxu1 %v4955_v45  ;;  %v507_v0 = vshrl.u32 %v5462_v46, 16  ;;  %v304_v26 = vld [vmem:[%s5276_s25 + $0xe8] sm:$0x11]  ;;  %v4958_v39 = vld [vmem:[%s6562_s1 + $0x20] sm:$0xff]  }
  0x3a   : > { %v471_v2 = vsel %vm5309_vm2, %v466_v47, %v470_v25  ;;  %v479_v5 = vor.u32 %v478_v51, %v475_v48  ;;  %v510_v7 = vshll.u32 %v5462_v46, 16  ;;  %v516_v8 = vshll.u32 %v5465_v55, 16  ;;  %v4956_v25 = vld [vmem:[%s6562_s1 + $0x60] sm:$0xff]   ;;  %4555 = vmatprep.subr.bf16.mxu1 %v4957_v27 }
  0x3b   : > { %1132 = vmatmul.mubr.bf16.gmra.mrb[8].mxu0 %v3814_v21  ;;  %v490_v11 = vrot.slane %v489_v56, 4  ;;  %v498_v15 = vrot.slane %v496_v58, 4  ;;  %v504_v16 = vrot.slane %v502_v61, 5  ;;  %v509_v19 = vrot.slane %v507_v0, 4  ;;  %4491 = vmatprep.subr.bf16.mxu0 %v4956_v25  ;;  %v4959_v0 = vld [vmem:[%s6562_s1 + $0xa0] sm:$0xff]  }
  0x3c   : > { %1229 = vmatmul.mubr.bf16.gmra.mrb[8].mxu1 %v3816_v40  ;;  %v480_v21 = vrot.slane %v479_v5, 4  ;;  %v512_v22 = vrot.slane %v510_v7, 5  ;;  %v518_v23 = vrot.slane %v516_v8, 5  ;;  %v534_v24 = vshrl.u32 %v5465_v55, 16  ;;  %4492 = vmatpush3.bf16.msra.mxu0 %v4958_v39  ;;  %v5508_v5 = vld [vmem:[%s5276_s25 + $0x100] sm:$0xff] }
  0x3d   : > { %v495_v28 = vsel %vm5309_vm2, %v490_v11, %v494_v43  ;;  %v499_v29 = vor.u32 %v498_v15, %v484_v52  ;;  %v540_v30 = vshll.u32 %v303_v6, 16  ;;  %v521_v31 = vshrl.u32 %v5470_v1, 16  ;;  %4556 = vmatpush3.bf16.msra.mxu1 %v4959_v0 }
  0x3e   : > { %v3819_v34 = vcombine.high %v471_v2, %v495_v28  ;;  %v485_v35 = vsel %vm5309_vm2, %v480_v21, %v484_v52  ;;  %v3818_v36 = vcombine.low %v471_v2, %v495_v28  ;;  %v513_v37 = vor.u32 %v512_v22, %v509_v19  ;;  %v5505_v2 = vld [vmem:[%s5276_s25 + $0xf0] sm:$0xff] }
  0x3f   : > { %v500_v40 = vrot.slane %v499_v29, 4  ;;  %v536_v42 = vrot.slane %v534_v24, 4  ;;  %v542_v43 = vrot.slane %v540_v30, 5  ;;  %v523_v45 = vrot.slane %v521_v31, 4  ;;  %v5522_v30 = vld [vmem:[%s5276_s25 + $0x108] sm:$0xff] }
  0x40   : > { %1139 = vmatprep.mubr.bf16.mxu0 %v3819_v34  ;;  %v514_v47 = vrot.slane %v513_v37, 4  ;;  %v524_v48 = vshll.u32 %v5470_v1, 16  ;;  %v530_v51 = vshll.u32 %v5478_v20, 16  ;;  %v544_v52 = vshrl.u32 %v5478_v20, 16 }
  0x41   : > { %v505_v56 = vsel %vm5309_vm2, %v500_v40, %v504_v16  ;;  %v537_v58 = vor.u32 %v536_v42, %v518_v23  ;;  %v550_v61 = vshll.u32 %v304_v26, 16  ;;  %v3874_v6 = vcombine.low %v5329_v9, %v5332_v10  ;;  %v305_v16 = vld [vmem:[%s5276_s25 + $0x110] sm:$0x11]  ;;  %v5516_v26 = vld [vmem:[%s5276_s25 + $0xf8] sm:$0xff]  ;;  %v5008_v10 = vld [vmem:[%s6562_s1 + $0x260] sm:$0xff]  }
  0x42   : > { %v3821_v7 = vcombine.high %v485_v35, %v505_v56  ;;  %v3820_v8 = vcombine.low %v485_v35, %v505_v56  ;;  %v519_v11 = vsel %vm5309_vm2, %v514_v47, %v518_v23  ;;  %v526_v15 = vrot.slane %v524_v48, 5  ;;  %v4960_v23 = vld [vmem:[%s6562_s1 + $0x68] sm:$0xff]   ;;  %v306_v56 = vld [vmem:[%s5276_s25 + $0x118] sm:$0x11] }
  0x43   : > { %1140 = vmatmul.mubr.bf16.gmra.mrb[12].mxu0 %v3818_v36  ;;  %v538_v19 = vrot.slane %v537_v58, 4  ;;  %v532_v21 = vrot.slane %v530_v51, 5  ;;  %v546_v22 = vrot.slane %v544_v52, 4  ;;  %v552_v24 = vrot.slane %v550_v61, 5  ;;  %4493 = vmatprep.subr.bf16.mxu0 %v4960_v23  ;;  %v4962_v47 = vld [vmem:[%s6562_s1 + $0x28] sm:$0xff]   ;;  %v5001_v9 = vld [vmem:[%s6562_s1 + $0x2d8] sm:$0xff]  }
  0x44   : > { %1236 = vmatprep.mubr.bf16.mxu1 %v3821_v7  ;;  %v527_v25 = vor.u32 %v526_v15, %v523_v45  ;;  %v555_v27 = vshrl.u32 %v5505_v2, 16  ;;  %v558_v28 = vshll.u32 %v5505_v2, 16  ;;  %v564_v29 = vshll.u32 %v5508_v5, 16  ;;  %v4961_v45 = vld [vmem:[%s6562_s1 + $0xe8] sm:$0xff]   ;;  %4494 = vmatpush3.bf16.msra.mxu0 %v4962_v47  ;;  %v5564_v47 = vld [vmem:[%s5276_s25 + $0x138] sm:$0xff] }
  0x45   : > { %1237 = vmatmul.mubr.bf16.gmra.mrb[12].mxu1 %v3820_v8  ;;  %v543_v31 = vsel %vm5309_vm2, %v538_v19, %v542_v43  ;;  %v547_v34 = vor.u32 %v546_v22, %v532_v21  ;;  %v582_v35 = vshrl.u32 %v5508_v5, 16  ;;  %v588_v36 = vshll.u32 %v305_v16, 16  ;;  %4557 = vmatprep.subr.bf16.mxu1 %v4961_v45  ;;  %v4963_v8 = vld [vmem:[%s6562_s1 + $0xa8] sm:$0xff]  }
  0x46   : > { %v3823_v37 = vcombine.high %v519_v11, %v543_v31  ;;  %v528_v39 = vrot.slane %v527_v25, 4  ;;  %v3822_v40 = vcombine.low %v519_v11, %v543_v31  ;;  %v557_v42 = vrot.slane %v555_v27, 4  ;;  %4558 = vmatpush3.bf16.msra.mxu1 %v4963_v8  ;;  %v5561_v45 = vld [vmem:[%s5276_s25 + $0x128] sm:$0xff] }
  0x47   : > { %v548_v48 = vrot.slane %v547_v34, 4  ;;  %v560_v51 = vrot.slane %v558_v28, 5  ;;  %v566_v43 = vrot.slane %v564_v29, 5  ;;  %v584_v52 = vrot.slane %v582_v35, 4  ;;  %v5551_v29 = vld [vmem:[%s5276_s25 + $0x130] sm:$0xff] }
  0x48   : > { %1147 = vmatprep.mubr.bf16.mxu0 %v3823_v37  ;;  %v533_v58 = vsel %vm5309_vm2, %v528_v39, %v532_v21  ;;  %v590_v61 = vrot.slane %v588_v36, 5  ;;  %v569_v0 = vshrl.u32 %v5516_v26, 16  ;;  %v572_v7 = vshll.u32 %v5516_v26, 16  ;;  %v5548_v21 = vld [vmem:[%s5276_s25 + $0x120] sm:$0xff]  ;;  %v4964_v36 = vld [vmem:[%s6562_s1 + $0x70] sm:$0xff]  }
  0x49   : > { %v553_v11 = vsel %vm5309_vm2, %v548_v48, %v552_v24  ;;  %v561_v15 = vor.u32 %v560_v51, %v557_v42  ;;  %v585_v16 = vor.u32 %v584_v52, %v566_v43  ;;  %v578_v19 = vshll.u32 %v5522_v30, 16  ;;  %v307_v35 = vld [vmem:[%s5276_s25 + $0x140] sm:$0x11]  ;;  %v4965_v48 = vld [vmem:[%s6562_s1 + $0xf0] sm:$0xff]   ;;  %4495 = vmatprep.subr.bf16.mxu0 %v4964_v36 }
  0x4a   : > { %v3825_v22 = vcombine.high %v533_v58, %v553_v11  ;;  %v3824_v25 = vcombine.low %v533_v58, %v553_v11  ;;  %v571_v27 = vrot.slane %v569_v0, 4  ;;  %v574_v28 = vrot.slane %v572_v7, 5  ;;  %4559 = vmatprep.subr.bf16.mxu1 %v4965_v48 }
  0x4b   : > { %1148 = vmatmul.mubr.bf16.gmra.mrb[16].mxu0 %v3822_v40  ;;  %v562_v23 = vrot.slane %v561_v15, 4  ;;  %v586_v24 = vrot.slane %v585_v16, 4  ;;  %v580_v31 = vrot.slane %v578_v19, 5  ;;  %v592_v34 = vshrl.u32 %v5522_v30, 16 }
  0x4c   : > { %1244 = vmatprep.mubr.bf16.mxu1 %v3825_v22  ;;  %v575_v37 = vor.u32 %v574_v28, %v571_v27  ;;  %v598_v39 = vshll.u32 %v306_v56, 16  ;;  %v603_v40 = vshrl.u32 %v5548_v21, 16  ;;  %v606_v42 = vshll.u32 %v5548_v21, 16  ;;  %v308_v28 = vld [vmem:[%s5276_s25 + $0x148] sm:$0x11] }
  0x4d   : > { %1245 = vmatmul.mubr.bf16.gmra.mrb[16].mxu1 %v3824_v25  ;;  %v567_v51 = vsel %vm5309_vm2, %v562_v23, %v566_v43  ;;  %v591_v52 = vsel %vm5309_vm2, %v586_v24, %v590_v61  ;;  %v594_v56 = vrot.slane %v592_v34, 4  ;;  %v612_v58 = vshll.u32 %v5551_v29, 16  ;;  %v4966_v43 = vld [vmem:[%s6562_s1 + $0x30] sm:$0xff]  }
  0x4e   : > { %v3827_v0 = vcombine.high %v567_v51, %v591_v52  ;;  %v576_v7 = vrot.slane %v575_v37, 4  ;;  %v600_v8 = vrot.slane %v598_v39, 5  ;;  %v3826_v11 = vcombine.low %v567_v51, %v591_v52  ;;  %v4967_v24 = vld [vmem:[%s6562_s1 + $0xb0] sm:$0xff]   ;;  %4496 = vmatpush3.bf16.msra.mxu0 %v4966_v43 }
  0x4f   : > { %v595_v15 = vor.u32 %v594_v56, %v580_v31  ;;  %v605_v16 = vrot.slane %v603_v40, 4  ;;  %v608_v19 = vrot.slane %v606_v42, 5  ;;  %v614_v22 = vrot.slane %v612_v58, 5  ;;  %v5588_v40 = vld [vmem:[%s5276_s25 + $0x150] sm:$0xff]  ;;  %4560 = vmatpush3.bf16.msra.mxu1 %v4967_v24  ;;  %v5601_v24 = vld [vmem:[%s5276_s25 + $0x158] sm:$0xff] }
  0x50   : > { %1155 = vmatprep.mubr.bf16.mxu0 %v3827_v0  ;;  %v581_v61 = vsel %vm5309_vm2, %v576_v7, %v580_v31  ;;  %v630_v25 = vshrl.u32 %v5551_v29, 16  ;;  %v636_v27 = vshll.u32 %v307_v35, 16  ;;  %v617_v23 = vshrl.u32 %v5561_v45, 16  ;;  %v5594_v0 = vld [vmem:[%s5276_s25 + $0x160] sm:$0xff] }
  0x51   : > { %v596_v34 = vrot.slane %v595_v15, 4  ;;  %v609_v36 = vor.u32 %v608_v19, %v605_v16  ;;  %v620_v37 = vshll.u32 %v5561_v45, 16  ;;  %v626_v39 = vshll.u32 %v5564_v47, 16 }
  0x52   : > { %v632_v31 = vrot.slane %v630_v25, 4  ;;  %v638_v42 = vrot.slane %v636_v27, 5  ;;  %v619_v35 = vrot.slane %v617_v23, 4  ;;  %v640_v48 = vshrl.u32 %v5564_v47, 16  ;;  %v309_v27 = vld [vmem:[%s5276_s25 + $0x170] sm:$0x11] }
  0x53   : > { %1156 = vmatmul.mubr.bf16.gmra.mrb[20].mxu0 %v3826_v11  ;;  %v601_v51 = vsel %vm5309_vm2, %v596_v34, %v600_v8  ;;  %v610_v52 = vrot.slane %v609_v36, 4  ;;  %v622_v56 = vrot.slane %v620_v37, 5  ;;  %v628_v58 = vrot.slane %v626_v39, 5 }
  0x54   : > { %v3829_v7 = vcombine.high %v581_v61, %v601_v51  ;;  %v3828_v11 = vcombine.low %v581_v61, %v601_v51  ;;  %v633_v15 = vor.u32 %v632_v31, %v614_v22  ;;  %v642_v16 = vrot.slane %v640_v48, 4 }
  0x55   : > { %v615_v19 = vsel %vm5309_vm2, %v610_v52, %v614_v22  ;;  %v623_v25 = vor.u32 %v622_v56, %v619_v35  ;;  %v646_v43 = vshll.u32 %v308_v28, 16  ;;  %v651_v23 = vshrl.u32 %v5588_v40, 16  ;;  %v4968_v22 = vld [vmem:[%s6562_s1 + $0x78] sm:$0xff]   ;;  %v5610_v35 = vld [vmem:[%s5276_s25 + $0x168] sm:$0xff] }
  0x56   : > { %1252 = vmatprep.mubr.bf16.mxu1 %v3829_v7  ;;  %v634_v8 = vrot.slane %v633_v15, 4  ;;  %v643_v34 = vor.u32 %v642_v16, %v628_v58  ;;  %v654_v36 = vshll.u32 %v5588_v40, 16  ;;  %v660_v61 = vshll.u32 %v5594_v0, 16  ;;  %v310_v7 = vld [vmem:[%s5276_s25 + $0x178] sm:$0x11]  ;;  %4497 = vmatprep.subr.bf16.mxu0 %v4968_v22 }
  0x57   : > { %1253 = vmatmul.mubr.bf16.gmra.mrb[20].mxu1 %v3828_v11  ;;  %v624_v37 = vrot.slane %v623_v25, 4  ;;  %v648_v28 = vrot.slane %v646_v43, 5  ;;  %v653_v39 = vrot.slane %v651_v23, 4  ;;  %v678_v31 = vshrl.u32 %v5594_v0, 16  ;;  %v4969_v15 = vld [vmem:[%s6562_s1 + $0xf8] sm:$0xff]  }
  0x58   : > { %v639_v48 = vsel %vm5309_vm2, %v634_v8, %v638_v42  ;;  %v644_v51 = vrot.slane %v643_v34, 4  ;;  %v656_v52 = vrot.slane %v654_v36, 5  ;;  %v662_v56 = vrot.slane %v660_v61, 5  ;;  %v4970_v23 = vld [vmem:[%s6562_s1 + $0x38] sm:$0xff]   ;;  %4561 = vmatprep.subr.bf16.mxu1 %v4969_v15 }
  0x59   : > { %v3831_v11 = vcombine.high %v615_v19, %v639_v48  ;;  %v629_v16 = vsel %vm5309_vm2, %v624_v37, %v628_v58  ;;  %v3830_v25 = vcombine.low %v615_v19, %v639_v48  ;;  %v680_v43 = vrot.slane %v678_v31, 4  ;;  %v4971_v61 = vld [vmem:[%s6562_s1 + $0xb8] sm:$0xff]   ;;  %v4976_v58 = vld [vmem:[%s6562_s1 + $0x240] sm:$0xff]   ;;  %4498 = vmatpush3.bf16.msra.mxu0 %v4970_v23 }
  0x5a   : > { %v649_v42 = vsel %vm5309_vm2, %v644_v51, %v648_v28  ;;  %v657_v8 = vor.u32 %v656_v52, %v653_v39  ;;  %v684_v34 = vshll.u32 %v309_v27, 16  ;;  %v665_v36 = vshrl.u32 %v5601_v24, 16  ;;  %v4977_v27 = vld [vmem:[%s6562_s1 + $0x2c0] sm:$0xff]   ;;  %4562 = vmatpush3.bf16.msra.mxu1 %v4971_v61  ;;  %4611 = vmatprep.subr.bf16.mxu0 %v4976_v58 }
  0x5b   : > { %1163 = vmatprep.mubr.bf16.mxu0 %v3831_v11  ;;  %v3833_v19 = vcombine.high %v629_v16, %v649_v42  ;;  %v3832_v22 = vcombine.low %v629_v16, %v649_v42  ;;  %v681_v37 = vor.u32 %v680_v43, %v662_v56  ;;  %v668_v31 = vshll.u32 %v5601_v24, 16  ;;  %4675 = vmatprep.subr.bf16.mxu1 %v4977_v27 }
  0x5c   : > { %1164 = vmatmul.mubr.bf16.gmra.mrb[24].mxu0 %v3830_v25  ;;  %v658_v28 = vrot.slane %v657_v8, 4  ;;  %v686_v39 = vrot.slane %v684_v34, 5  ;;  %v667_v48 = vrot.slane %v665_v36, 4  ;;  %v674_v51 = vshll.u32 %v5610_v35, 16 }
  0x5d   : > { %1260 = vmatprep.mubr.bf16.mxu1 %v3833_v19  ;;  %v682_v52 = vrot.slane %v681_v37, 4  ;;  %v670_v15 = vrot.slane %v668_v31, 5  ;;  %v688_v11 = vshrl.u32 %v5610_v35, 16  ;;  %v694_v16 = vshll.u32 %v310_v7, 16 }
  0x5e   : > { %v663_v43 = vsel %vm5309_vm2, %v658_v28, %v662_v56  ;;  %v676_v23 = vrot.slane %v674_v51, 5  ;;  %v3876_v25 = vcombine.low %v5344_v17, %v5347_v18  ;;  %v3879_v42 = vcombine.high %v5372_v54, %v5375_v57  ;;  %v5009_v17 = vld [vmem:[%s6562_s1 + $0x2e0] sm:$0xff]  }
  0x5f   : > { %1261 = vmatmul.mubr.bf16.gmra.mrb[24].mxu1 %v3832_v22  ;;  %v687_v8 = vsel %vm5309_vm2, %v682_v52, %v686_v39  ;;  %v671_v34 = vor.u32 %v670_v15, %v667_v48  ;;  %v690_v36 = vrot.slane %v688_v11, 4  ;;  %v696_v61 = vrot.slane %v694_v16, 5  ;;  %v5011_v18 = vld [vmem:[%s6562_s1 + $0x2a0] sm:$0xff]  }
  0x60   : > { %v3835_v7 = vcombine.high %v663_v43, %v687_v8  ;;  %v3834_v58 = vcombine.low %v663_v43, %v687_v8  ;;  %v3881_v56 = vcombine.high %v5394_v12, %v5397_v13  ;;  %v3878_v19 = vcombine.low %v5372_v54, %v5375_v57  ;;  %v5017_v54 = vld [vmem:[%s6562_s1 + $0x2e8] sm:$0xff]   ;;  %v5024_v57 = vld [vmem:[%s6562_s1 + $0x270] sm:$0xff]  }
  0x61   : > { %v672_v37 = vrot.slane %v671_v34, 4  ;;  %v691_v31 = vor.u32 %v690_v36, %v676_v23  ;;  %v3880_v27 = vcombine.low %v5394_v12, %v5397_v13  ;;  %v3883_v22 = vcombine.high %v5421_v49, %v5424_v50  ;;  %v5025_v12 = vld [vmem:[%s6562_s1 + $0x2f0] sm:$0xff]   ;;  %v5034_v13 = vld [vmem:[%s6562_s1 + $0x238] sm:$0xff]  }
  0x62   : > { %1171 = vmatprep.mubr.bf16.mxu0 %v3835_v7  ;;  %v3885_v28 = vcombine.high %v5430_v3, %v5441_v14  ;;  %v3882_v39 = vcombine.low %v5421_v49, %v5424_v50  ;;  %v3884_v48 = vcombine.low %v5430_v3, %v5441_v14  ;;  %v3887_v51 = vcombine.high %v5462_v46, %v5465_v55  ;;  %v5033_v49 = vld [vmem:[%s6562_s1 + $0x2f8] sm:$0xff]   ;;  %v5040_v50 = vld [vmem:[%s6562_s1 + $0x340] sm:$0xff]   ;;  %v5885_v3 = vld [vmem:[%s5276_s25 + $0x30] sm:$0xff] }
  0x63   : > { %v677_v52 = vsel %vm5309_vm2, %v672_v37, %v676_v23  ;;  %v692_v15 = vrot.slane %v691_v31, 4  ;;  %v5666_v11 = vcombine.high %v5470_v1, %v5478_v20  ;;  %v3886_v16 = vcombine.low %v5462_v46, %v5465_v55  ;;  %v5041_v37 = vld [vmem:[%s6562_s1 + $0x3c0] sm:$0xff]   ;;  %v5895_v55 = vld [vmem:[%s5276_s25 + $0x38] sm:$0xff]  ;;  %v5898_v31 = vld [vmem:[%s5276_s25 + $0x48] sm:$0xff] }
  0x64   : > { %1172 = vmatmul.mubr.bf16.gmra.mrb[28].mxu0 %v3834_v58  ;;  %v5672_v43 = vcombine.low %v5470_v1, %v5478_v20  ;;  %v5676_v8 = vcombine.high %v5505_v2, %v5508_v5  ;;  %v5680_v23 = vcombine.high %v5516_v26, %v5522_v30  ;;  %v5684_v34 = vcombine.low %v5505_v2, %v5508_v5  ;;  %v5888_v14 = vld [vmem:[%s5276_s25 + $0x40] sm:$0xff] }
  0x65   : > { %v697_v36 = vsel %vm5309_vm2, %v692_v15, %v696_v61  ;;  %1661 = vmatprep.mubr.bf16.mxu0 %v3871_v44  ;;  %v5693_v1 = vcombine.low %v5516_v26, %v5522_v30  ;;  %v5697_v20 = vcombine.high %v5548_v21, %v5551_v29  ;;  %v5701_v7 = vcombine.high %v5561_v45, %v5564_v47  ;;  %v5921_v15 = vld [vmem:[%s5276_s25 + $0x68] sm:$0xff] }
  0x66   : > { %v3837_v2 = vcombine.high %v677_v52, %v697_v36  ;;  %v3836_v5 = vcombine.low %v677_v52, %v697_v36  ;;  %v5705_v61 = vcombine.low %v5548_v21, %v5551_v29  ;;  %v5709_v44 = vcombine.low %v5561_v45, %v5564_v47  ;;  %v4978_v29 = vld [vmem:[%s6562_s1 + $0x200] sm:$0xff]   ;;  %v4984_v45 = vld [vmem:[%s6562_s1 + $0x248] sm:$0xff]  }
  0x67   : > { %v5713_v26 = vcombine.high %v5588_v40, %v5594_v0  ;;  %v5717_v30 = vcombine.high %v5601_v24, %v5610_v35  ;;  %v5721_v58 = vcombine.low %v5588_v40, %v5594_v0  ;;  %v5725_v21 = vcombine.low %v5601_v24, %v5610_v35  ;;  %v4979_v47 = vld [vmem:[%s6562_s1 + $0x280] sm:$0xff]   ;;  %v4985_v40 = vld [vmem:[%s6562_s1 + $0x2c8] sm:$0xff]   ;;  %v5026_v35 = vld [vmem:[%s6562_s1 + $0x230] sm:$0xff]  }
  0x68   : > { %1268 = vmatprep.mubr.bf16.mxu1 %v3837_v2  ;;  %v5016_v0 = vld [vmem:[%s6562_s1 + $0x268] sm:$0xff]   ;;  %v4033_v46 = vcombine.high %v5885_v3, %v5888_v14  ;;  %v4034_v36 = vcombine.low %v5895_v55, %v5898_v31 }
  0x69   : > { %1269 = vmatmul.mubr.bf16.gmra.mrb[28].mxu1 %v3836_v5  ;;  %v5018_v24 = vld [vmem:[%s6562_s1 + $0x228] sm:$0xff]   ;;  %v5043_v5 = vld [vmem:[%s6562_s1 + $0x380] sm:$0xff]  }
  0x6a   : > { %1758 = vmatprep.mubr.bf16.mxu1 %v3873_v62  ;;  %v4986_v62 = vld [vmem:[%s6562_s1 + $0x208] sm:$0xff]  }
  0x6b   : > { %v5048_v52 = vld [vmem:[%s6562_s1 + $0x348] sm:$0xff]  }
  0x6c   : > { %1662 = vmatmul.mubr.bf16.vlgmr.msra.gmra.mrb[32].mxu0 %v3870_v63  ;;  %v4994_v63 = vld [vmem:[%s6562_s1 + $0x210] sm:$0xff]   ;;  %v5050_v2 = vld [vmem:[%s6562_s1 + $0x308] sm:$0xff]  }
  0x6d   : > { %4612 = vmatpush3.bf16.msra.mxu0 %v4978_v29  ;;  %1669 = vmatprep.mubr.bf16.mxu0 %v3875_v59  ;;  %v5000_v59 = vld [vmem:[%s6562_s1 + $0x258] sm:$0xff]  }
  0x6e   : > { %4613 = vmatprep.subr.bf16.mxu0 %v4984_v45  ;;  %v5937_v45 = vld [vmem:[%s5276_s25 + $0x90] sm:$0xff] }
  0x71   : > { %1759 = vmatmul.mubr.bf16.vlgmr.msra.gmra.mrb[32].mxu1 %v3872_v4  ;;  %4614 = vmatpush3.bf16.msra.mxu0 %v4986_v62  ;;  %v5002_v4 = vld [vmem:[%s6562_s1 + $0x218] sm:$0xff]   ;;  %v5049_v62 = vld [vmem:[%s6562_s1 + $0x3c8] sm:$0xff]  }
  0x72   : > { %4676 = vmatpush3.bf16.msra.mxu1 %v4979_v47  ;;  %1766 = vmatprep.mubr.bf16.mxu1 %v3877_v60  ;;  %v5003_v60 = vld [vmem:[%s6562_s1 + $0x298] sm:$0xff]   ;;  %v5940_v47 = vld [vmem:[%s5276_s25 + $0xa0] sm:$0xff] }
  0x73   : > { %4677 = vmatprep.subr.bf16.mxu1 %v4985_v40  ;;  %4615 = vmatprep.subr.bf16.mxu0 %v4992_v32  ;;  %v5056_v40 = vld [vmem:[%s6562_s1 + $0x350] sm:$0xff]  }
  0x74   : > { %1670 = vmatmul.mubr.bf16.gmra.mrb[36].mxu0 %v3874_v6  ;;  %v5010_v6 = vld [vmem:[%s6562_s1 + $0x220] sm:$0xff]  }
  0x75   : > { %1677 = vmatprep.mubr.bf16.mxu0 %v3879_v42  ;;  %4616 = vmatpush3.bf16.msra.mxu0 %v4994_v63  ;;  %v5032_v42 = vld [vmem:[%s6562_s1 + $0x278] sm:$0xff]   ;;  %v5058_v63 = vld [vmem:[%s6562_s1 + $0x310] sm:$0xff]  }
  0x76   : > { %4678 = vmatpush3.bf16.msra.mxu1 %v4987_v33  ;;  %4617 = vmatprep.subr.bf16.mxu0 %v5000_v59  ;;  %v4041_v33 = vcombine.high %v5937_v45, %v5940_v47  ;;  %v5051_v59 = vld [vmem:[%s6562_s1 + $0x388] sm:$0xff]  }
  0x77   : > { %4679 = vmatprep.subr.bf16.mxu1 %v4993_v38  ;;  %v5062_v38 = vld [vmem:[%s6562_s1 + $0x358] sm:$0xff]  }
  0x79   : > { %1767 = vmatmul.mubr.bf16.gmra.mrb[36].mxu1 %v3876_v25  ;;  %4618 = vmatpush3.bf16.msra.mxu0 %v5002_v4  ;;  %v5019_v25 = vld [vmem:[%s6562_s1 + $0x2a8] sm:$0xff]  }
  0x7a   : > { %1774 = vmatprep.mubr.bf16.mxu1 %v3881_v56  ;;  %4680 = vmatpush3.bf16.msra.mxu1 %v4995_v41  ;;  %v5027_v56 = vld [vmem:[%s6562_s1 + $0x2b0] sm:$0xff]   ;;  %v5962_v41 = vld [vmem:[%s5276_s25 + $0x98] sm:$0xff]  ;;  %v5965_v4 = vld [vmem:[%s5276_s25 + $0xa8] sm:$0xff] }
  0x7b   : > { %4681 = vmatprep.subr.bf16.mxu1 %v5001_v9  ;;  %4619 = vmatprep.subr.bf16.mxu0 %v5008_v10  ;;  %v5057_v9 = vld [vmem:[%s6562_s1 + $0x3d0] sm:$0xff]  }
  0x7c   : > { %1678 = vmatmul.mubr.bf16.gmra.mrb[40].mxu0 %v3878_v19  ;;  %v5035_v19 = vld [vmem:[%s6562_s1 + $0x2b8] sm:$0xff]  }
  0x7d   : > { %1685 = vmatprep.mubr.bf16.mxu0 %v3883_v22  ;;  %4620 = vmatpush3.bf16.msra.mxu0 %v5010_v6  ;;  %v5904_v22 = vld [vmem:[%s5276_s25 + $0x60] sm:$0xff]  ;;  %v4043_v6 = vcombine.high %v5962_v41, %v5965_v4 }
  0x7e   : > { %4682 = vmatpush3.bf16.msra.mxu1 %v5003_v60  ;;  %4621 = vmatprep.subr.bf16.mxu0 %v5016_v0  ;;  %v5064_v60 = vld [vmem:[%s6562_s1 + $0x318] sm:$0xff]   ;;  %v5059_v0 = vld [vmem:[%s6562_s1 + $0x390] sm:$0xff]  }
  0x7f   : > { %4683 = vmatprep.subr.bf16.mxu1 %v5009_v17  ;;  %v5981_v17 = vld [vmem:[%s5276_s25 + $0xc0] sm:$0xff] }
  0x81   : > { %1775 = vmatmul.mubr.bf16.gmra.mrb[40].mxu1 %v3880_v27  ;;  %4622 = vmatpush3.bf16.msra.mxu0 %v5018_v24  ;;  %v4035_v27 = vcombine.high %v5895_v55, %v5898_v31  ;;  %v5063_v24 = vld [vmem:[%s6562_s1 + $0x3d8] sm:$0xff]  }
  0x82   : > { %1782 = vmatprep.mubr.bf16.mxu1 %v3885_v28  ;;  %4684 = vmatpush3.bf16.msra.mxu1 %v5011_v18  ;;  %v5907_v28 = vld [vmem:[%s5276_s25 + $0x70] sm:$0xff] }
  0x83   : > { %4685 = vmatprep.subr.bf16.mxu1 %v5017_v54  ;;  %4623 = vmatprep.subr.bf16.mxu0 %v5024_v57  ;;  %v4036_v32 = vcombine.low %v5904_v22, %v5907_v28  ;;  %v5984_v18 = vld [vmem:[%s5276_s25 + $0xd0] sm:$0xff]  ;;  %v5066_v54 = vld [vmem:[%s6562_s1 + $0x360] sm:$0xff]   ;;  %v4040_v57 = vcombine.low %v5937_v45, %v5940_v47 }
  0x84   : > { %1686 = vmatmul.mubr.bf16.gmra.mrb[44].mxu0 %v3882_v39  ;;  %v4032_v39 = vcombine.low %v5885_v3, %v5888_v14 }
  0x85   : > { %1693 = vmatprep.mubr.bf16.mxu0 %v3887_v51  ;;  %4624 = vmatpush3.bf16.msra.mxu0 %v5026_v35  ;;  %v4037_v51 = vcombine.high %v5904_v22, %v5907_v28  ;;  %v4045_v35 = vcombine.high %v5981_v17, %v5984_v18 }
  0x86   : > { %4686 = vmatpush3.bf16.msra.mxu1 %v5019_v25  ;;  %4625 = vmatprep.subr.bf16.mxu0 %v5032_v42  ;;  %v5068_v25 = vld [vmem:[%s6562_s1 + $0x320] sm:$0xff]   ;;  %v5065_v42 = vld [vmem:[%s6562_s1 + $0x398] sm:$0xff]  }
  0x87   : > { %4687 = vmatprep.subr.bf16.mxu1 %v5025_v12  ;;  %v5070_v12 = vld [vmem:[%s6562_s1 + $0x368] sm:$0xff]  }
  0x89   : > { %1783 = vmatmul.mubr.bf16.gmra.mrb[44].mxu1 %v3884_v48  ;;  %4626 = vmatpush3.bf16.msra.mxu0 %v5034_v13  ;;  %v5042_v48 = vld [vmem:[%s6562_s1 + $0x300] sm:$0xff]  }
  0x8a   : > { %1790 = vmatprep.mubr.bf16.mxu1 %v5666_v11  ;;  %4688 = vmatpush3.bf16.msra.mxu1 %v5027_v56  ;;  %v5067_v13 = vld [vmem:[%s6562_s1 + $0x3e0] sm:$0xff]   ;;  %v4042_v56 = vcombine.low %v5962_v41, %v5965_v4 }
  0x8b   : > { %4689 = vmatprep.subr.bf16.mxu1 %v5033_v49  ;;  %4739 = vmatprep.subr.bf16.mxu0 %v5040_v50  ;;  %v5072_v49 = vld [vmem:[%s6562_s1 + $0x328] sm:$0xff]   ;;  %v5069_v50 = vld [vmem:[%s6562_s1 + $0x3a0] sm:$0xff]  }
  0x8c   : > { %1694 = vmatmul.mubr.bf16.gmra.mrb[48].mxu0 %v3886_v16  ;;  %v5924_v16 = vld [vmem:[%s5276_s25 + $0x78] sm:$0xff] }
  0x8d   : > { %1701 = vmatprep.mubr.bf16.mxu0 %v5676_v8  ;;  %v4039_v29 = vcombine.high %v5921_v15, %v5924_v16  ;;  %v4038_v10 = vcombine.low %v5921_v15, %v5924_v16 }
  0x8e   : > { %4690 = vmatpush3.bf16.msra.mxu1 %v5035_v19  ;;  %v5071_v19 = vld [vmem:[%s6562_s1 + $0x3e8] sm:$0xff]  }
  0x8f   : > { %4803 = vmatprep.subr.bf16.mxu1 %v5041_v37  ;;  %v5074_v37 = vld [vmem:[%s6562_s1 + $0x370] sm:$0xff]  }
  0x91   : > { %1791 = vmatmul.mubr.bf16.gmra.mrb[48].mxu1 %v5672_v43 }
  0x92   : > { %1798 = vmatprep.mubr.bf16.mxu1 %v5680_v23 }
  0x94   : > { %1702 = vmatmul.mubr.bf16.gmra.mrb[52].mxu0 %v5684_v34 }
  0x95   : > { %1709 = vmatprep.mubr.bf16.mxu0 %v5697_v20 }
  0x99   : > { %1799 = vmatmul.mubr.bf16.gmra.mrb[52].mxu1 %v5693_v1 }
  0x9a   : > { %1806 = vmatprep.mubr.bf16.mxu1 %v5701_v7 }
  0x9c   : > { %1710 = vmatmul.mubr.bf16.gmra.mrb[56].mxu0 %v5705_v61 }
  0x9d   : > { %1717 = vmatprep.mubr.bf16.mxu0 %v5713_v26 }
  0xa1   : > { %1807 = vmatmul.mubr.bf16.gmra.mrb[56].mxu1 %v5709_v44 }
  0xa2   : > { %1814 = vmatprep.mubr.bf16.mxu1 %v5717_v30 }
  0xa4   : > { %1718 = vmatmul.mubr.bf16.gmra.mrb[60].mxu0 %v5721_v58 }
  0xa5   : > { %2308 = vmatprep.mubr.bf16.mxu0 %v4033_v46  ;;  %v4044_v46 = vcombine.low %v5981_v17, %v5984_v18 }
  0xa9   : > { %1815 = vmatmul.mubr.bf16.gmra.mrb[60].mxu1 %v5725_v21 }
  0xaa   : > { %2405 = vmatprep.mubr.bf16.mxu1 %v4035_v27  ;;  %v5076_v27 = vld [vmem:[%s6562_s1 + $0x330] sm:$0xff]  }
  0xac   : > { %2309 = vmatmul.mubr.bf16.vlgmr.msra.gmra.mrb[64].mxu0 %v4032_v39  ;;  %v5073_v39 = vld [vmem:[%s6562_s1 + $0x3a8] sm:$0xff]  }
  0xad   : > { %4740 = vmatpush3.bf16.msra.mxu0 %v5042_v48  ;;  %2316 = vmatprep.mubr.bf16.mxu0 %v4037_v51  ;;  %v5082_v48 = vld [vmem:[%s6562_s1 + $0x378] sm:$0xff]   ;;  %v5075_v51 = vld [vmem:[%s6562_s1 + $0x3f0] sm:$0xff]  }
  0xae   : > { %4741 = vmatprep.subr.bf16.mxu0 %v5048_v52  ;;  %v2535_v52 = vshrl.u32 %v5885_v3, 16 }
  0xb1   : > { %2406 = vmatmul.mubr.bf16.vlgmr.msra.gmra.mrb[64].mxu1 %v4034_v36  ;;  %4742 = vmatpush3.bf16.msra.mxu0 %v5050_v2  ;;  %v2538_v36 = vshll.u32 %v5885_v3, 16  ;;  %v5077_v2 = vld [vmem:[%s6562_s1 + $0x3b0] sm:$0xff]   ;;  %v2537_v3 = vrot.slane %v2535_v52, 4 }
  0xb2   : > { %4804 = vmatpush3.bf16.msra.mxu1 %v5043_v5  ;;  %2413 = vmatprep.mubr.bf16.mxu1 %v4039_v29  ;;  %v2549_v5 = vshrl.u32 %v5895_v55, 16  ;;  %v2552_v29 = vshll.u32 %v5895_v55, 16  ;;  %v2562_v55 = vshrl.u32 %v5888_v14, 16 }
  0xb3   : > { %4805 = vmatprep.subr.bf16.mxu1 %v5049_v62  ;;  %4743 = vmatprep.subr.bf16.mxu0 %v5056_v40  ;;  %v2583_v62 = vshrl.u32 %v5904_v22, 16  ;;  %v2586_v40 = vshll.u32 %v5904_v22, 16 }
  0xb4   : > { %2317 = vmatmul.mubr.bf16.gmra.mrb[68].mxu0 %v4036_v32  ;;  %v2540_v32 = vrot.slane %v2538_v36, 5  ;;  %v2554_v22 = vrot.slane %v2552_v29, 5 }
  0xb5   : > { %2324 = vmatprep.mubr.bf16.mxu0 %v4041_v33  ;;  %4744 = vmatpush3.bf16.msra.mxu0 %v5058_v63  ;;  %v2544_v33 = vshll.u32 %v5888_v14, 16  ;;  %v5085_v63 = vld [vmem:[%s6562_s1 + $0x3b8] sm:$0xff]   ;;  %v2592_v14 = vshll.u32 %v5907_v28, 16 }
  0xb6   : > { %4806 = vmatpush3.bf16.msra.mxu1 %v5051_v59  ;;  %4745 = vmatprep.subr.bf16.mxu0 %v5062_v38  ;;  %v2551_v59 = vrot.slane %v2549_v5, 4  ;;  %v2558_v38 = vshll.u32 %v5898_v31, 16 }
  0xb7   : > { %4807 = vmatprep.subr.bf16.mxu1 %v5057_v9  ;;  %v2597_v9 = vshrl.u32 %v5921_v15, 16 }
  0xb9   : > { %2414 = vmatmul.mubr.bf16.gmra.mrb[68].mxu1 %v4038_v10  ;;  %4746 = vmatpush3.bf16.msra.mxu0 %v5064_v60  ;;  %v2600_v10 = vshll.u32 %v5921_v15, 16  ;;  %v2588_v60 = vrot.slane %v2586_v40, 5  ;;  %v2634_v15 = vshll.u32 %v5937_v45, 16 }
  0xba   : > { %2421 = vmatprep.mubr.bf16.mxu1 %v4043_v6  ;;  %4808 = vmatpush3.bf16.msra.mxu1 %v5059_v0  ;;  %v2541_v6 = vor.u32 %v2540_v32, %v2537_v3  ;;  %v2546_v0 = vrot.slane %v2544_v33, 5 }
  0xbb   : > { %4809 = vmatprep.subr.bf16.mxu1 %v5063_v24  ;;  %4747 = vmatprep.subr.bf16.mxu0 %v5066_v54  ;;  %v2610_v24 = vshrl.u32 %v5907_v28, 16  ;;  %v2564_v54 = vrot.slane %v2562_v55, 4  ;;  %v4100_v28 = vld [vmem:[%s5276_s25 + $0x50] sm:$0x11] }
  0xbc   : > { %2325 = vmatmul.mubr.bf16.gmra.mrb[72].mxu0 %v4040_v57  ;;  %v2631_v57 = vshrl.u32 %v5937_v45, 16  ;;  %v4112_v55 = vld [vmem:[%s5276_s25 + $0xb0] sm:$0x11] }
  0xbd   : > { %2332 = vmatprep.mubr.bf16.mxu0 %v4045_v35  ;;  %4748 = vmatpush3.bf16.msra.mxu0 %v5068_v25  ;;  %v2599_v25 = vrot.slane %v2597_v9, 4 }
  0xbe   : > { %4810 = vmatpush3.bf16.msra.mxu1 %v5065_v42  ;;  %4749 = vmatprep.subr.bf16.mxu0 %v5070_v12  ;;  %v2602_v42 = vrot.slane %v2600_v10, 5  ;;  %v2606_v12 = vshll.u32 %v5924_v16, 16  ;;  %v2633_v45 = vrot.slane %v2631_v57, 4 }
  0xbf   : > { %4811 = vmatprep.subr.bf16.mxu1 %v5067_v13  ;;  %v2620_v13 = vshrl.u32 %v5924_v16, 16 }
  0xc1   : > { %2422 = vmatmul.mubr.bf16.gmra.mrb[72].mxu1 %v4042_v56  ;;  %4750 = vmatpush3.bf16.msra.mxu0 %v5072_v49  ;;  %v2542_v56 = vrot.slane %v2541_v6, 4  ;;  %v2594_v49 = vrot.slane %v2592_v14, 5  ;;  %v2622_v52 = vrot.slane %v2620_v13, 4 }
  0xc2   : > { %2429 = vmatprep.mubr.bf16.mxu1 %v5666_v11  ;;  %4812 = vmatpush3.bf16.msra.mxu1 %v5069_v50  ;;  %v5084_v11 = vld [vmem:[%s6562_s1 + $0x338] sm:$0xff]   ;;  %v2612_v50 = vrot.slane %v2610_v24, 4 }
  0xc3   : > { %4813 = vmatprep.subr.bf16.mxu1 %v5071_v19  ;;  %4751 = vmatprep.subr.bf16.mxu0 %v5074_v37  ;;  %v4101_v19 = vld [vmem:[%s5276_s25 + $0x58] sm:$0x11]  ;;  %v2636_v37 = vrot.slane %v2634_v15, 5  ;;  %v6089_v29 = vsel %vm5309_vm2, %v2542_v56, %v2546_v0 }
  0xc4   : > { %2333 = vmatmul.mubr.bf16.gmra.mrb[76].mxu0 %v4044_v46  ;;  %v2640_v46 = vshll.u32 %v5940_v47, 16  ;;  %v2578_v36 = vshll.u32 %v4101_v19, 16  ;;  %v2613_v5 = vor.u32 %v2612_v50, %v2594_v49 }
  0xc5   : > { %2340 = vmatprep.mubr.bf16.mxu0 %v5676_v8  ;;  %4752 = vmatpush3.bf16.msra.mxu0 %v5076_v27  ;;  %v5083_v8 = vld [vmem:[%s6562_s1 + $0x3f8] sm:$0xff]   ;;  %v2658_v27 = vshrl.u32 %v5940_v47, 16  ;;  %v6082_v47 = vld [vmem:[%s5276_s25 + $0x180] sm:$0xff] }
  0xc6   : > { %4814 = vmatpush3.bf16.msra.mxu1 %v5073_v39  ;;  %4753 = vmatprep.subr.bf16.mxu0 %v5082_v48  ;;  %v2565_v39 = vor.u32 %v2564_v54, %v2546_v0  ;;  %v2603_v48 = vor.u32 %v2602_v42, %v2599_v25  ;;  %v2642_v40 = vrot.slane %v2640_v46, 5  ;;  %v2614_v6 = vrot.slane %v2613_v5, 4  ;;  %v4115_v46 = vld [vmem:[%s5276_s25 + $0xc8] sm:$0xff] }
  0xc7   : > { %4815 = vmatprep.subr.bf16.mxu1 %v5075_v51  ;;  %v2568_v51 = vshll.u32 %v4100_v28, 16  ;;  %v2660_v3 = vrot.slane %v2658_v27, 4  ;;  %v2664_v54 = vshll.u32 %v4112_v55, 16  ;;  %v2693_v5 = vshrl.u32 %v4115_v46, 16 }
  0xc8   : > { %v2566_v32 = vrot.slane %v2565_v39, 4 }
  0xc9   : > { %2430 = vmatmul.mubr.bf16.gmra.mrb[76].mxu1 %v5672_v43  ;;  %4754 = vmatpush3.bf16.msra.mxu0 %v5084_v11  ;;  %v2572_v43 = vshrl.u32 %v5898_v31, 16  ;;  %v2560_v31 = vrot.slane %v2558_v38, 5  ;;  %v6101_v38 = vld [vmem:[%s5276_s25 + $0x198] sm:$0xff]  ;;  %v2661_v24 = vor.u32 %v2660_v3, %v2642_v40  ;;  %v2666_v56 = vrot.slane %v2664_v54, 5 }
  0xca   : > { %2437 = vmatprep.mubr.bf16.mxu1 %v5680_v23  ;;  %4816 = vmatpush3.bf16.msra.mxu1 %v5077_v2  ;;  %v2585_v23 = vrot.slane %v2583_v62, 4  ;;  %v4106_v2 = vld [vmem:[%s5276_s25 + $0x80] sm:$0x11]  ;;  %v2637_v62 = vor.u32 %v2636_v37, %v2633_v45  ;;  %v2679_v37 = vshrl.u32 %v5981_v17, 16 }
  0xcb   : > { %4817 = vmatprep.subr.bf16.mxu1 %v5083_v8  ;;  %v2574_v35 = vrot.slane %v2572_v43, 4  ;;  %v6085_v8 = vld [vmem:[%s5276_s25 + $0x190] sm:$0xff]  ;;  %v2616_v9 = vshll.u32 %v4106_v2, 16  ;;  %v2662_v28 = vrot.slane %v2661_v24, 4  ;;  %v4122_v2 = vld [vmem:[%s5276_s25 + $0x100] sm:$0xff] }
  0xcc   : > { %2341 = vmatmul.mubr.bf16.gmra.mrb[80].mxu0 %v5684_v34  ;;  %v2555_v34 = vor.u32 %v2554_v22, %v2551_v59  ;;  %v6098_v59 = vld [vmem:[%s5276_s25 + $0x188] sm:$0xff]  ;;  %v2570_v22 = vrot.slane %v2568_v51, 5  ;;  %v2638_v14 = vrot.slane %v2637_v62, 4  ;;  %v4060_v15 = vcombine.low %v6082_v47, %v6085_v8 }
  0xcd   : > { %2348 = vmatprep.mubr.bf16.mxu0 %v5697_v20  ;;  %v2589_v20 = vor.u32 %v2588_v60, %v2585_v23  ;;  %v4061_v23 = vcombine.high %v6082_v47, %v6085_v8  ;;  %v2580_v60 = vrot.slane %v2578_v36, 5  ;;  %v4063_v57 = vcombine.high %v6098_v59, %v6101_v38  ;;  %v4120_v36 = vld [vmem:[%s5276_s25 + $0xf0] sm:$0xff] }
  0xce   : > { %4818 = vmatpush3.bf16.msra.mxu1 %v5085_v63  ;;  %v2556_v16 = vrot.slane %v2555_v34, 4  ;;  %v2604_v63 = vrot.slane %v2603_v48, 4  ;;  %v2648_v34 = vshll.u32 %v5962_v41, 16  ;;  %v2618_v25 = vrot.slane %v2616_v9, 5 }
  0xcf   : > { %v2590_v11 = vrot.slane %v2589_v20, 4  ;;  %v6136_v13 = vsel %vm5309_vm2, %v2638_v14, %v2642_v40  ;;  %v2682_v48 = vshll.u32 %v5981_v17, 16  ;;  %v2736_v55 = vshll.u32 %v4122_v2, 16 }
  0xd0   : > { %v2650_v45 = vrot.slane %v2648_v34, 5  ;;  %v4119_v34 = vld [vmem:[%s5276_s25 + $0xe8] sm:$0x11] }
  0xd1   : > { %2438 = vmatmul.mubr.bf16.gmra.mrb[80].mxu1 %v5693_v1  ;;  %v2575_v1 = vor.u32 %v2574_v35, %v2560_v31  ;;  %v6105_v43 = vsel %vm5309_vm2, %v2590_v11, %v2594_v49  ;;  %v6126_v35 = vsel %vm5309_vm2, %v2566_v32, %v2570_v22  ;;  %v2681_v32 = vrot.slane %v2679_v37, 4 }
  0xd2   : > { %2445 = vmatprep.mubr.bf16.mxu1 %v5701_v7  ;;  %v2608_v7 = vrot.slane %v2606_v12, 5  ;;  %v4208_v50 = vcombine.low %v6089_v29, %v6126_v35  ;;  %v4209_v19 = vcombine.high %v6089_v29, %v6126_v35  ;;  %v2684_v9 = vrot.slane %v2682_v48, 5  ;;  %v4126_v35 = vld [vmem:[%s5276_s25 + $0x120] sm:$0xff] }
  0xd3   : > { %v2576_v33 = vrot.slane %v2575_v1, 4  ;;  %v4113_v1 = vld [vmem:[%s5276_s25 + $0xb8] sm:$0x11] }
  0xd4   : > { %2349 = vmatmul.mubr.bf16.gmra.mrb[84].mxu0 %v5705_v61  ;;  %v4107_v61 = vld [vmem:[%s5276_s25 + $0x88] sm:$0x11]  ;;  %v2623_v10 = vor.u32 %v2622_v52, %v2608_v7  ;;  %v2706_v52 = vshrl.u32 %v5984_v18, 16 }
  0xd5   : > { %2356 = vmatprep.mubr.bf16.mxu0 %v5713_v26  ;;  %v6094_v26 = vsel %vm5309_vm2, %v2556_v16, %v2560_v31  ;;  %v2626_v0 = vshll.u32 %v4107_v61, 16  ;;  %v2645_v31 = vshrl.u32 %v5962_v41, 16  ;;  %v6130_v20 = vsel %vm5309_vm2, %v2576_v33, %v2580_v60  ;;  %v4118_v60 = vld [vmem:[%s5276_s25 + $0xe0] sm:$0x11] }
  0xd6   : > { %v2624_v42 = vrot.slane %v2623_v10, 4  ;;  %v2668_v41 = vshrl.u32 %v5965_v4, 16  ;;  %v4210_v27 = vcombine.low %v6094_v26, %v6130_v20  ;;  %v4211_v39 = vcombine.high %v6094_v26, %v6130_v20 }
  0xd7   : > { %v2628_v12 = vrot.slane %v2626_v0, 5  ;;  %v2647_v49 = vrot.slane %v2645_v31, 4  ;;  %v6151_v16 = vsel %vm5309_vm2, %v2614_v6, %v2618_v25  ;;  %v2696_v61 = vshll.u32 %v4115_v46, 16  ;;  %v4124_v25 = vld [vmem:[%s5276_s25 + $0x110] sm:$0x11] }
  0xd8   : > { %v2670_v11 = vrot.slane %v2668_v41, 4  ;;  %v2727_v33 = vshrl.u32 %v4120_v36, 16  ;;  %v2695_v6 = vrot.slane %v2693_v5, 4  ;;  %v4213_v54 = vcombine.high %v6105_v43, %v6151_v16 }
  0xd9   : > { %2446 = vmatmul.mubr.bf16.gmra.mrb[84].mxu1 %v5709_v44  ;;  %v6118_v44 = vsel %vm5309_vm2, %v2604_v63, %v2608_v7  ;;  %v2688_v7 = vshll.u32 %v5984_v18, 16  ;;  %v6162_v3 = vsel %vm5309_vm2, %v2624_v42, %v2628_v12  ;;  %v2651_v17 = vor.u32 %v2650_v45, %v2647_v49 }
  0xda   : > { %2453 = vmatprep.mubr.bf16.mxu1 %v5717_v30  ;;  %v4062_v30 = vcombine.low %v6098_v59, %v6101_v38  ;;  %v2730_v63 = vshll.u32 %v4120_v36, 16  ;;  %v2754_v18 = vshrl.u32 %v4122_v2, 16  ;;  %v2698_v0 = vrot.slane %v2696_v61, 5  ;;  %v4123_v36 = vld [vmem:[%s5276_s25 + $0x108] sm:$0xff] }
  0xdb   : > { %v6164_v10 = vrot.slane %v2688_v7, 5  ;;  %v6171_v31 = vsel %vm5309_vm2, %v2662_v28, %v2666_v56  ;;  %v2729_v42 = vrot.slane %v2727_v33, 4  ;;  %v2712_v37 = vshll.u32 %v4118_v60, 16  ;;  %v4121_v7 = vld [vmem:[%s5276_s25 + $0xf8] sm:$0xff] }
  0xdc   : > { %2357 = vmatmul.mubr.bf16.gmra.mrb[88].mxu0 %v5721_v58  ;;  %v2654_v58 = vshll.u32 %v5965_v4, 16  ;;  %v4117_v4 = vld [vmem:[%s5276_s25 + $0xd8] sm:$0xff]  ;;  %v2732_v12 = vrot.slane %v2730_v63, 5  ;;  %v2756_v41 = vrot.slane %v2754_v18, 4  ;;  %v4215_v28 = vcombine.high %v6118_v44, %v6162_v3 }
  0xdd   : > { %2364 = vmatprep.mubr.bf16.mxu0 %v4061_v23  ;;  %v2702_v62 = vshll.u32 %v4117_v4, 16  ;;  %v2716_v40 = vshrl.u32 %v4117_v4, 16  ;;  %v2708_v23 = vrot.slane %v2706_v52, 4  ;;  %v2699_v56 = vor.u32 %v2698_v0, %v2695_v6 }
  0xde   : > { %v2656_v51 = vrot.slane %v2654_v58, 5  ;;  %v2738_v58 = vrot.slane %v2736_v55, 5  ;;  %v2722_v4 = vshll.u32 %v4119_v34, 16  ;;  %v4217_v48 = vcombine.high %v6136_v13, %v6171_v31 }
  0xdf   : > { %v2704_v14 = vrot.slane %v2702_v62, 5  ;;  %v2718_v24 = vrot.slane %v2716_v40, 4  ;;  %v2709_v45 = vor.u32 %v2708_v23, %v6164_v10  ;;  %v2714_v29 = vrot.slane %v2712_v37, 5 }
  0xe0   : > { %v2671_v22 = vor.u32 %v2670_v11, %v2656_v51  ;;  %v2760_v11 = vshll.u32 %v4124_v25, 16  ;;  %v2757_v52 = vor.u32 %v2756_v41, %v2738_v58  ;;  %v2724_v40 = vrot.slane %v2722_v4, 5 }
  0xe1   : > { %2454 = vmatmul.mubr.bf16.gmra.mrb[88].mxu1 %v5725_v21  ;;  %v2674_v21 = vshll.u32 %v4113_v1, 16  ;;  %v2719_v46 = vor.u32 %v2718_v24, %v2704_v14  ;;  %v4212_v1 = vcombine.low %v6105_v43, %v6151_v16  ;;  %v4216_v43 = vcombine.low %v6136_v13, %v6171_v31 }
  0xe2   : > { %2461 = vmatprep.mubr.bf16.mxu1 %v4063_v57  ;;  %v2652_v57 = vrot.slane %v2651_v17, 4  ;;  %v2672_v49 = vrot.slane %v2671_v22, 4  ;;  %v2733_v16 = vor.u32 %v2732_v12, %v2729_v42  ;;  %v2710_v61 = vrot.slane %v2709_v45, 4  ;;  %v4128_v17 = vld [vmem:[%s5276_s25 + $0x130] sm:$0xff]  ;;  %v4129_v42 = vld [vmem:[%s5276_s25 + $0x138] sm:$0xff] }
  0xe3   : > { %v2720_v62 = vrot.slane %v2719_v46, 4  ;;  %v2750_v33 = vshll.u32 %v4123_v36, 16  ;;  %v2764_v63 = vshrl.u32 %v4123_v36, 16  ;;  %v2758_v18 = vrot.slane %v2757_v52, 4  ;;  %v4132_v36 = vld [vmem:[%s5276_s25 + $0x150] sm:$0xff] }
  0xe4   : > { %2365 = vmatmul.mubr.bf16.gmra.mrb[92].mxu0 %v4060_v15  ;;  %v2676_v15 = vrot.slane %v2674_v21, 5  ;;  %v2762_v21 = vrot.slane %v2760_v11, 5  ;;  %v2734_v55 = vrot.slane %v2733_v16, 4  ;;  %v2775_v22 = vshrl.u32 %v4126_v35, 16 }
  0xe5   : > { %3335 = vmatprep.mubr.bf16.mxu0 %v4209_v19  ;;  %v2685_v19 = vor.u32 %v2684_v9, %v2681_v32  ;;  %v2744_v32 = vshll.u32 %v4121_v7, 16  ;;  %v2778_v9 = vshll.u32 %v4126_v35, 16  ;;  %v2784_v6 = vshll.u32 %v4128_v17, 16 }
  0xe6   : > { %v6200_v2 = vsel %vm5309_vm2, %v2672_v49, %v2676_v15  ;;  %v2802_v0 = vshrl.u32 %v4128_v17, 16  ;;  %v6226_v20 = vsel %vm5309_vm2, %v2720_v62, %v2724_v40  ;;  %v6230_v25 = vrot.slane %v2750_v33, 5  ;;  %v4134_v62 = vld [vmem:[%s5276_s25 + $0x160] sm:$0xff] }
  0xe7   : > { %v2686_v5 = vrot.slane %v2685_v19, 4  ;;  %v2746_v34 = vrot.slane %v2744_v32, 5  ;;  %v6235_v12 = vsel %vm5309_vm2, %v2734_v55, %v2738_v58  ;;  %v2777_v41 = vrot.slane %v2775_v22, 4  ;;  %v4130_v19 = vld [vmem:[%s5276_s25 + $0x140] sm:$0x11] }
  0xe8   : > { %v2780_v49 = vrot.slane %v2778_v9, 5  ;;  %v6242_v45 = vrot.slane %v2784_v6, 5  ;;  %v2804_v37 = vrot.slane %v2802_v0, 4  ;;  %v2812_v52 = vshrl.u32 %v4129_v42, 16 }
  0xe9   : > { %2462 = vmatmul.mubr.bf16.gmra.mrb[92].mxu1 %v4062_v30  ;;  %v4214_v30 = vcombine.low %v6118_v44, %v6162_v3  ;;  %v6214_v24 = vsel %vm5309_vm2, %v2686_v5, %v6164_v10  ;;  %v2766_v10 = vrot.slane %v2764_v63, 4  ;;  %v2823_v9 = vshrl.u32 %v4132_v36, 16 }
  0xea   : > { %3432 = vmatprep.mubr.bf16.mxu1 %v4211_v39  ;;  %v6193_v39 = vsel %vm5309_vm2, %v2652_v57, %v2656_v51  ;;  %v2741_v51 = vshrl.u32 %v4121_v7, 16  ;;  %v4127_v57 = vld [vmem:[%s5276_s25 + $0x128] sm:$0xff]  ;;  %v2781_v35 = vor.u32 %v2780_v49, %v2777_v41  ;;  %v2805_v17 = vor.u32 %v2804_v37, %v6242_v45 }
  0xeb   : > { %v4219_v23 = vcombine.high %v6193_v39, %v6200_v2  ;;  %v4218_v60 = vcombine.low %v6193_v39, %v6200_v2  ;;  %v2826_v6 = vshll.u32 %v4132_v36, 16  ;;  %v2814_v44 = vrot.slane %v2812_v52, 4 }
  0xec   : > { %3336 = vmatmul.mubr.bf16.vlgmr.msra.gmra.mrb[96].mxu0 %v4208_v50  ;;  %v2700_v50 = vrot.slane %v2699_v56, 4  ;;  %v2743_v15 = vrot.slane %v2741_v51, 4  ;;  %v2792_v56 = vshll.u32 %v4127_v57, 16  ;;  %v2832_v3 = vshll.u32 %v4134_v62, 16 }
  0xed   : > { %3343 = vmatprep.mubr.bf16.mxu0 %v4213_v54  ;;  %v6218_v54 = vsel %vm5309_vm2, %v2710_v61, %v2714_v29  ;;  %v2767_v29 = vor.u32 %v2766_v10, %v6230_v25  ;;  %v2782_v49 = vrot.slane %v2781_v35, 4  ;;  %v2828_v13 = vrot.slane %v2826_v6, 5 }
  0xee   : > { %v6222_v26 = vsel %vm5309_vm2, %v2700_v50, %v2704_v14  ;;  %v6239_v14 = vsel %vm5309_vm2, %v2758_v18, %v2762_v21  ;;  %v4221_v46 = vcombine.high %v6214_v24, %v6218_v54  ;;  %v4220_v58 = vcombine.low %v6214_v24, %v6218_v54  ;;  %v4131_v21 = vld [vmem:[%s5276_s25 + $0x148] sm:$0x11] }
  0xef   : > { %v4222_v7 = vcombine.low %v6222_v26, %v6226_v20  ;;  %v4225_v16 = vcombine.high %v6235_v12, %v6239_v14  ;;  %v2747_v61 = vor.u32 %v2746_v34, %v2743_v15  ;;  %v2808_v50 = vshll.u32 %v4130_v19, 16 }
  0xf0   : > { %v2794_v33 = vrot.slane %v2792_v56, 5  ;;  %v2768_v34 = vrot.slane %v2767_v29, 4  ;;  %v2806_v19 = vrot.slane %v2805_v17, 4  ;;  %v4135_v56 = vld [vmem:[%s5276_s25 + $0x168] sm:$0xff]  ;;  %v6294_v17 = vsel %vm5309_vm2, %v2782_v49, %v6242_v45 }
  0xf1   : > { %3433 = vmatmul.mubr.bf16.vlgmr.msra.gmra.mrb[96].mxu1 %v4210_v27  ;;  %v4125_v27 = vld [vmem:[%s5276_s25 + $0x118] sm:$0x11]  ;;  %v2748_v15 = vrot.slane %v2747_v61, 4  ;;  %v2810_v10 = vrot.slane %v2808_v50, 5  ;;  %v4136_v61 = vld [vmem:[%s5276_s25 + $0x170] sm:$0x11] }
  0xf2   : > { %3440 = vmatprep.mubr.bf16.mxu1 %v4215_v28  ;;  %v2789_v28 = vshrl.u32 %v4127_v57, 16  ;;  %v2770_v4 = vshll.u32 %v4125_v27, 16  ;;  %v2846_v29 = vshll.u32 %v4135_v56, 16  ;;  %v2860_v35 = vshrl.u32 %v4135_v56, 16 }
  0xf3   : > { %v6301_v2 = vsel %vm5309_vm2, %v2806_v19, %v2810_v10  ;;  %v2856_v45 = vshll.u32 %v4136_v61, 16  ;;  %v2874_v24 = vshll.u32 %v6082_v47, 16 }
  0xf4   : > { %3344 = vmatmul.mubr.bf16.gmra.mrb[100].mxu0 %v4212_v1  ;;  %v2798_v1 = vshll.u32 %v4129_v42, 16  ;;  %v2791_v32 = vrot.slane %v2789_v28, 4  ;;  %v2772_v18 = vrot.slane %v2770_v4, 5  ;;  %v4133_v42 = vld [vmem:[%s5276_s25 + $0x158] sm:$0xff]  ;;  %v2818_v28 = vshll.u32 %v4131_v21, 16 }
  0xf5   : > { %3351 = vmatprep.mubr.bf16.mxu0 %v4217_v48  ;;  %v4223_v48 = vcombine.high %v6222_v26, %v6226_v20  ;;  %v2837_v36 = vshrl.u32 %v4133_v42, 16  ;;  %v6307_v6 = vrot.slane %v2846_v29, 5  ;;  %v2858_v10 = vrot.slane %v2856_v45, 5  ;;  %v4142_v20 = vld [vmem:[%s5276_s25 + $0x1a0] sm:$0x11] }
  0xf6   : > { %v6262_v22 = vrot.slane %v2798_v1, 5  ;;  %v2795_v37 = vor.u32 %v2794_v33, %v2791_v32  ;;  %v2908_v29 = vshrl.u32 %v6101_v38, 16 }
  0xf8   : > { %v2815_v31 = vor.u32 %v2814_v44, %v6262_v22 }
  0xf9   : > { %3441 = vmatmul.mubr.bf16.gmra.mrb[100].mxu1 %v4214_v30  ;;  %v2850_v30 = vshrl.u32 %v4134_v62, 16  ;;  %v6283_v62 = vsel %vm5309_vm2, %v2748_v15, %v6230_v25  ;;  %v2820_v25 = vrot.slane %v2818_v28, 5 }
  0xfa   : > { %3448 = vmatprep.mubr.bf16.mxu1 %v4219_v23 }
  0xfb   : > { %v2852_v52 = vrot.slane %v2850_v30, 4  ;;  %v4137_v30 = vld [vmem:[%s5276_s25 + $0x178] sm:$0x11] }
  0xfc   : > { %3352 = vmatmul.mubr.bf16.gmra.mrb[104].mxu0 %v4216_v43  ;;  %v6272_v43 = vrot.slane %v2832_v3, 5 }
  0xfd   : > { %3359 = vmatprep.mubr.bf16.mxu0 %v4221_v46  ;;  %v2840_v46 = vshll.u32 %v4133_v42, 16 }
  0xfe   : > { %v4371_v11 = vpop.f32.mrb[0].mxu0 }
  0xff   : > { %v4372_v5 = vpop.f32.mrb[1].mxu0  ;;  %v4435_v63 = vpop.f32.mrb[0].mxu1 }
 0x100   : > { %v4373_v40 = vadd.f32 %v4372_v5, %v4371_v11  ;;  %v4374_v51 = vpop.f32.mrb[2].mxu0  ;;  %v4436_v0 = vpop.f32.mrb[1].mxu1  ;;  %v2825_v11 = vrot.slane %v2823_v9, 4  ;;  %v2842_v9 = vrot.slane %v2840_v46, 5 }
 0x101   : > { %v4375_v55 = vpop.f32.mrb[3].mxu0  ;;  %v4437_v57 = vadd.f32 %v4436_v0, %v4435_v63  ;;  %v4438_v23 = vpop.f32.mrb[2].mxu1  ;;  %3449 = vmatmul.mubr.bf16.gmra.mrb[104].mxu1 %v4218_v60  ;;  %v2796_v60 = vrot.slane %v2795_v37, 4  ;;  %v2816_v63 = vrot.slane %v2815_v31, 4  ;;  %v2862_v0 = vrot.slane %v2860_v35, 4 }
 0x102   : > { %v4376_v27 = vadd.f32 %v4375_v55, %v4374_v51  ;;  %v4439_v41 = vpop.f32.mrb[3].mxu1  ;;  %v4224_v51 = vcombine.low %v6235_v12, %v6239_v14  ;;  %3456 = vmatprep.mubr.bf16.mxu1 %v4223_v48  ;;  %v2829_v21 = vor.u32 %v2828_v13, %v2825_v11  ;;  %v2853_v55 = vor.u32 %v2852_v52, %v6272_v43 }
 0x103   : > { %v6269_v4 = vadd.f32 %v4437_v57, %v4373_v40  ;;  %v4440_v1 = vadd.f32 %v4439_v41, %v4438_v23  ;;  %v6287_v40 = vsel %vm5309_vm2, %v2768_v34, %v2772_v18  ;;  %v2839_v18 = vrot.slane %v2837_v36, 4 }
 0x104   : > { %3360 = vmatmul.mubr.bf16.gmra.mrb[108].mxu0 %v4220_v58  ;;  %v4227_v3 = vcombine.high %v6283_v62, %v6287_v40  ;;  %v2871_v57 = vshrl.u32 %v6082_v47, 16  ;;  %v4229_v58 = vcombine.high %v6294_v17, %v6301_v2  ;;  %v6322_v23 = vsel %vm5309_vm2, %v2796_v60, %v6262_v22 }
 0x105   : > { %v6274_v5 = vadd.f32 %v4440_v1, %v4376_v27  ;;  %3367 = vmatprep.mubr.bf16.mxu0 %v4225_v16  ;;  %v2880_v12 = vshll.u32 %v6085_v8, 16  ;;  %v2898_v14 = vshrl.u32 %v6085_v8, 16  ;;  %v6328_v34 = vsel %vm5309_vm2, %v2816_v63, %v2820_v25 }
 0x106   : > { %v4377_v50 = vpop.f32.mrb[4].mxu0  ;;  %v2830_v47 = vrot.slane %v2829_v21, 4  ;;  %v2854_v41 = vrot.slane %v2853_v55, 4  ;;  %v2843_v49 = vor.u32 %v2842_v9, %v2839_v18  ;;  %v2863_v19 = vor.u32 %v2862_v0, %v6307_v6 }
 0x107   : > { %v4378_v39 = vpop.f32.mrb[5].mxu0  ;;  %v4441_v27 = vpop.f32.mrb[4].mxu1  ;;  %v2866_v37 = vshll.u32 %v4137_v30, 16  ;;  %v2873_v56 = vrot.slane %v2871_v57, 4  ;;  %v2876_v1 = vrot.slane %v2874_v24, 5  ;;  %v2882_v13 = vrot.slane %v2880_v12, 5 }
 0x108   : > { %v4379_v32 = vadd.f32 %v4378_v39, %v4377_v50  ;;  %v4380_v33 = vpop.f32.mrb[6].mxu0  ;;  %v4442_v54 = vpop.f32.mrb[5].mxu1  ;;  %v2900_v31 = vrot.slane %v2898_v14, 4  ;;  %v2885_v52 = vshrl.u32 %v6098_v59, 16  ;;  %v2888_v36 = vshll.u32 %v6098_v59, 16 }
 0x109   : > { %v4381_v48 = vpop.f32.mrb[7].mxu0  ;;  %v4443_v16 = vadd.f32 %v4442_v54, %v4441_v27  ;;  %v4444_v15 = vpop.f32.mrb[6].mxu1  ;;  %3457 = vmatmul.mubr.bf16.gmra.mrb[108].mxu1 %v4222_v7  ;;  %v2894_v7 = vshll.u32 %v6101_v38, 16  ;;  %v4226_v35 = vcombine.low %v6283_v62, %v6287_v40  ;;  %v4231_v39 = vcombine.high %v6322_v23, %v6328_v34 }
 0x10a   : > { %v4382_v44 = vadd.f32 %v4381_v48, %v4380_v33  ;;  %v4445_v42 = vpop.f32.mrb[7].mxu1  ;;  %3464 = vmatprep.mubr.bf16.mxu1 %v4227_v3  ;;  %v6350_v59 = vsel %vm5309_vm2, %v2830_v47, %v6272_v43  ;;  %v2859_v60 = vsel %vm5309_vm2, %v2854_v41, %v2858_v10  ;;  %v2844_v38 = vrot.slane %v2843_v49, 4 }
 0x10b   : > { %v6334_v8 = vadd.f32 %v4443_v16, %v4379_v32  ;;  %v4446_v22 = vadd.f32 %v4445_v42, %v4444_v15  ;;  %v2868_v32 = vrot.slane %v2866_v37, 5  ;;  %v2877_v40 = vor.u32 %v2876_v1, %v2873_v56 }
 0x10c   : > { %3368 = vmatmul.mubr.bf16.gmra.mrb[112].mxu0 %v4224_v51  ;;  %v2864_v51 = vrot.slane %v2863_v19, 4  ;;  %v2901_v33 = vor.u32 %v2900_v31, %v2882_v13  ;;  %v2904_v63 = vshll.u32 %v4142_v20, 16  ;;  %v2887_v55 = vrot.slane %v2885_v52, 4 }
 0x10d   : > { %v6338_v61 = vadd.f32 %v4446_v22, %v4382_v44  ;;  %3375 = vmatprep.mubr.bf16.mxu0 %v4229_v58  ;;  %v2890_v18 = vrot.slane %v2888_v36, 5  ;;  %v2896_v43 = vrot.slane %v2894_v7, 5  ;;  %v2910_v9 = vrot.slane %v2908_v29, 4  ;;  %v4143_v44 = vld [vmem:[%s5276_s25 + $0x1a8] sm:$0x11]  ;;  %s3736_s25 = sshll.u32 %s5112_s13, 1 }
 0x10e   : > { %v4383_v28 = vpop.f32.mrb[8].mxu0  ;;  %v4228_v27 = vcombine.low %v6294_v17, %v6301_v2  ;;  %v4233_v57 = vcombine.high %v6350_v59, %v2859_v60  ;;  %v2849_v24 = vsel %vm5309_vm2, %v2844_v38, %v6307_v6  ;;  %v2869_v54 = vsel %vm5309_vm2, %v2864_v51, %v2868_v32  ;;  %s185_s5 = sadd.s32 %s5108_s12, %s3736_s25 }
 0x10f   : > { %v4384_v11 = vpop.f32.mrb[9].mxu0  ;;  %v4447_v25 = vpop.f32.mrb[8].mxu1  ;;  %v2878_v58 = vrot.slane %v2877_v40, 4  ;;  %v2902_v12 = vrot.slane %v2901_v33, 4  ;;  %v2906_v14 = vrot.slane %v2904_v63, 5  ;;  %v2891_v17 = vor.u32 %v2890_v18, %v2887_v55  ;;  %s3737_s6 = sshll.u32 %s185_s5, 4 }
 0x110   : > { %v4385_v46 = vadd.f32 %v4384_v11, %v4383_v28  ;;  %v4386_v26 = vpop.f32.mrb[10].mxu0  ;;  %v4448_v62 = vpop.f32.mrb[9].mxu1  ;;  %v2911_v2 = vor.u32 %v2910_v9, %v2896_v43  ;;  %v2914_v15 = vshll.u32 %v4143_v44, 16  ;;  %v4230_v10 = vcombine.low %v6322_v23, %v6328_v34  ;;  %p187_p6 = scmp.lt.s32.totalorder %s3737_s6, 63 }
 0x111   : > { %v4387_v50 = vpop.f32.mrb[11].mxu0  ;;  %v4449_v45 = vadd.f32 %v4448_v62, %v4447_v25  ;;  %v4450_v48 = vpop.f32.mrb[10].mxu1  ;;  %3465 = vmatmul.mubr.bf16.gmra.mrb[112].mxu1 %v4226_v35  ;;  %v4235_v49 = vcombine.high %v2849_v24, %v2869_v54  ;;  %v2883_v19 = vsel %vm5309_vm2, %v2878_v58, %v2882_v13  ;;  %v2907_v37 = vsel %vm5309_vm2, %v2902_v12, %v2906_v14 }
 0x112   : > { %v4388_v21 = vadd.f32 %v4387_v50, %v4386_v26  ;;  %v4451_v0 = vpop.f32.mrb[11].mxu1  ;;  %3472 = vmatprep.mubr.bf16.mxu1 %v4231_v39  ;;  %v2892_v28 = vrot.slane %v2891_v17, 4  ;;  %v2912_v56 = vrot.slane %v2911_v2, 4  ;;  %v2916_v1 = vrot.slane %v2914_v15, 5  ;;  %s6578_s6 = smov (!%p187_p6, %s3737_s6), 63 }
 0x113   : > { %v6357_v3 = vadd.f32 %v4449_v45, %v4385_v46  ;;  %v4452_v30 = vadd.f32 %v4451_v0, %v4450_v48  ;;  %v4232_v52 = vcombine.low %v6350_v59, %v2859_v60  ;;  %v4237_v34 = vcombine.high %v2883_v19, %v2907_v37  ;;  %s3738_s12 = sshll.u32 %s6578_s6, 2 }
 0x114   : > { %3376 = vmatmul.mubr.bf16.gmra.mrb[116].mxu0 %v4228_v27  ;;  %v2897_v13 = vsel %vm5309_vm2, %v2892_v28, %v2896_v43  ;;  %v2917_v20 = vsel %vm5309_vm2, %v2912_v56, %v2916_v1  ;;  %v4234_v50 = vcombine.low %v2849_v24, %v2869_v54  ;;  %v4236_v62 = vcombine.low %v2883_v19, %v2907_v37  ;;  %s6509_s10 = scalar_lea.vmem %s6564_s3, %s3738_s12 }
 0x115   : > { %v6365_v16 = vadd.f32 %v4452_v30, %v4388_v21  ;;  %3383 = vmatprep.mubr.bf16.mxu0 %v4233_v57  ;;  %v4239_v21 = vcombine.high %v2897_v13, %v2917_v20  ;;  %v4238_v18 = vcombine.low %v2897_v13, %v2917_v20 }
 0x116   : > { %v4389_v47 = vpop.f32.mrb[12].mxu0 }
 0x117   : > { %v4390_v42 = vpop.f32.mrb[13].mxu0 }
 0x118   : > { %v4391_v6 = vadd.f32 %v4390_v42, %v4389_v47  ;;  %v4392_v41 = vpop.f32.mrb[14].mxu0  ;;  %v4453_v11 = vpop.f32.mrb[12].mxu1 }
 0x119   : > { %v4393_v22 = vpop.f32.mrb[15].mxu0  ;;  %3473 = vmatmul.mubr.bf16.gmra.mrb[116].mxu1 %v4230_v10  ;;  %v4454_v23 = vpop.f32.mrb[13].mxu1 }
 0x11a   : > { %v4394_v31 = vadd.f32 %v4393_v22, %v4392_v41  ;;  %v4455_v36 = vadd.f32 %v4454_v23, %v4453_v11  ;;  %v4456_v46 = vpop.f32.mrb[14].mxu1  ;;  %3480 = vmatprep.mubr.bf16.mxu1 %v4235_v49 }
 0x11b   : > { %v4457_v26 = vpop.f32.mrb[15].mxu1 }
 0x11c   : > { %v6378_v7 = vadd.f32 %v4455_v36, %v4391_v6  ;;  %v4458_v29 = vadd.f32 %v4457_v26, %v4456_v46  ;;  %3384 = vmatmul.mubr.bf16.gmra.mrb[120].mxu0 %v4232_v52 }
 0x11d   : > { %3391 = vmatprep.mubr.bf16.mxu0 %v4237_v34 }
 0x11e   : > { %v4395_v35 = vpop.f32.mrb[16].mxu0  ;;  %v6380_v59 = vadd.f32 %v4458_v29, %v4394_v31 }
 0x11f   : > { %v4396_v39 = vpop.f32.mrb[17].mxu0 }
 0x120   : > { %v4397_v60 = vadd.f32 %v4396_v39, %v4395_v35  ;;  %v4398_v25 = vpop.f32.mrb[18].mxu0  ;;  %v4459_v51 = vpop.f32.mrb[16].mxu1 }
 0x121   : > { %v4399_v38 = vpop.f32.mrb[19].mxu0  ;;  %3481 = vmatmul.mubr.bf16.gmra.mrb[120].mxu1 %v4234_v50  ;;  %v4460_v53 = vpop.f32.mrb[17].mxu1 }
 0x122   : > { %v4400_v32 = vadd.f32 %v4399_v38, %v4398_v25  ;;  %v4461_v40 = vadd.f32 %v4460_v53, %v4459_v51  ;;  %v4462_v33 = vpop.f32.mrb[18].mxu1  ;;  %3488 = vmatprep.mubr.bf16.mxu1 %v4239_v21 }
 0x123   : > { %v4463_v63 = vpop.f32.mrb[19].mxu1 }
 0x124   : > { %v6382_v55 = vadd.f32 %v4461_v40, %v4397_v60  ;;  %v4464_v45 = vadd.f32 %v4463_v63, %v4462_v33  ;;  %3392 = vmatmul.mubr.bf16.gmra.mrb[124].mxu0 %v4236_v62 }
 0x126   : > { %v4401_v48 = vpop.f32.mrb[20].mxu0  ;;  %v6384_v9 = vadd.f32 %v4464_v45, %v4400_v32 }
 0x127   : > { %v4402_v43 = vpop.f32.mrb[21].mxu0 }
 0x128   : > { %v4403_v0 = vadd.f32 %v4402_v43, %v4401_v48  ;;  %v4404_v27 = vpop.f32.mrb[22].mxu0 }
 0x129   : > { %v4405_v44 = vpop.f32.mrb[23].mxu0  ;;  %3489 = vmatmul.mubr.bf16.gmra.mrb[124].mxu1 %v4238_v18 }
 0x12a   : > { %v4406_v30 = vadd.f32 %v4405_v44, %v4404_v27  ;;  %v4465_v57 = vpop.f32.mrb[20].mxu1 }
 0x12b   : > { %v4466_v24 = vpop.f32.mrb[21].mxu1 }
 0x12c   : > { %v4467_v54 = vadd.f32 %v4466_v24, %v4465_v57  ;;  %v4468_v58 = vpop.f32.mrb[22].mxu1 }
 0x12d   : > { %v4469_v12 = vpop.f32.mrb[23].mxu1 }
 0x12e   : > { %v6386_v14 = vadd.f32 %v4467_v54, %v4403_v0  ;;  %v4470_v17 = vadd.f32 %v4469_v12, %v4468_v58 }
 0x12f   : > { %v4407_v2 = vpop.f32.mrb[24].mxu0 }
 0x130   : > { %v6388_v15 = vadd.f32 %v4470_v17, %v4406_v30  ;;  %v4408_v47 = vpop.f32.mrb[25].mxu0 }
 0x131   : > { %v4409_v10 = vadd.f32 %v4408_v47, %v4407_v2  ;;  %v4410_v42 = vpop.f32.mrb[26].mxu0 }
 0x132   : > { %v4471_v6 = vpop.f32.mrb[24].mxu1  ;;  %v4411_v41 = vpop.f32.mrb[27].mxu0 }
 0x133   : > { %v4472_v49 = vpop.f32.mrb[25].mxu1  ;;  %v4412_v19 = vadd.f32 %v4411_v41, %v4410_v42 }
 0x134   : > { %v4473_v37 = vadd.f32 %v4472_v49, %v4471_v6  ;;  %v4474_v22 = vpop.f32.mrb[26].mxu1 }
 0x135   : > { %v4475_v28 = vpop.f32.mrb[27].mxu1 }
 0x136   : > { %v6390_v56 = vadd.f32 %v4473_v37, %v4409_v10  ;;  %v4476_v1 = vadd.f32 %v4475_v28, %v4474_v22 }
 0x137   : > { %v4413_v11 = vpop.f32.mrb[28].mxu0 }
 0x138   : > { %v6392_v31 = vadd.f32 %v4476_v1, %v4412_v19  ;;  %v4414_v52 = vpop.f32.mrb[29].mxu0 }
 0x139   : > { %v4415_v23 = vadd.f32 %v4414_v52, %v4413_v11  ;;  %v4416_v34 = vpop.f32.mrb[30].mxu0 }
 0x13a   : > { %v4417_v36 = vpop.f32.mrb[31].mxu0 }
 0x13b   : > { %v4418_v46 = vadd.f32 %v4417_v36, %v4416_v34 }
 0x13c   : > { %v4477_v26 = vpop.f32.mrb[28].mxu1 }
 0x13d   : > { %v4478_v13 = vpop.f32.mrb[29].mxu1 }
 0x13e   : > { %v4479_v20 = vadd.f32 %v4478_v13, %v4477_v26  ;;  %v4480_v29 = vpop.f32.mrb[30].mxu1 }
 0x13f   : > { %v4481_v35 = vpop.f32.mrb[31].mxu1  ;;  %v4499_v50 = vpop.f32.mrb[32].mxu0 }
 0x140   : > { %v6394_v39 = vadd.f32 %v4479_v20, %v4415_v23  ;;  %v4482_v60 = vadd.f32 %v4481_v35, %v4480_v29  ;;  %v4500_v25 = vpop.f32.mrb[33].mxu0 }
 0x141   : > { %v4501_v21 = vadd.f32 %v4500_v25, %v4499_v50  ;;  %v4502_v38 = vpop.f32.mrb[34].mxu0 }
 0x142   : > { %v6396_v51 = vadd.f32 %v4482_v60, %v4418_v46  ;;  %v4503_v32 = vpop.f32.mrb[35].mxu0 }
 0x143   : > { %v1664_v62 = vadd.f32 %v4501_v21, %v6269_v4  ;;  %v4504_v53 = vadd.f32 %v4503_v32, %v4502_v38 }
 0x144   : > { %v4563_v40 = vpop.f32.mrb[32].mxu1 }
 0x145   : > { %v4564_v33 = vpop.f32.mrb[33].mxu1  ;;  %v1667_v63 = vadd.f32 %v4504_v53, %v6274_v5 }
 0x146   : > { %v4565_v45 = vadd.f32 %v4564_v33, %v4563_v40  ;;  %v4566_v48 = vpop.f32.mrb[34].mxu1 }
 0x147   : > { %v4567_v18 = vpop.f32.mrb[35].mxu1  ;;  %v4505_v43 = vpop.f32.mrb[36].mxu0 }
 0x148   : > { %v6400_v0 = vadd.f32 %v4565_v45, %v1664_v62  ;;  %v4568_v27 = vadd.f32 %v4567_v18, %v4566_v48  ;;  %v4506_v44 = vpop.f32.mrb[37].mxu0 }
 0x149   : > { %v4507_v30 = vadd.f32 %v4506_v44, %v4505_v43  ;;  %v4508_v57 = vpop.f32.mrb[38].mxu0 }
 0x14a   : > { %v6402_v24 = vadd.f32 %v4568_v27, %v1667_v63  ;;  %v4509_v54 = vpop.f32.mrb[39].mxu0 }
 0x14b   : > { %v1672_v4 = vadd.f32 %v4507_v30, %v6334_v8  ;;  %v4510_v58 = vadd.f32 %v4509_v54, %v4508_v57 }
 0x14c   : > { %v4569_v12 = vpop.f32.mrb[36].mxu1 }
 0x14d   : > { %v4570_v17 = vpop.f32.mrb[37].mxu1  ;;  %v1675_v5 = vadd.f32 %v4510_v58, %v6338_v61 }
 0x14e   : > { %v4571_v2 = vadd.f32 %v4570_v17, %v4569_v12  ;;  %v4572_v47 = vpop.f32.mrb[38].mxu1 }
 0x14f   : > { %v4573_v10 = vpop.f32.mrb[39].mxu1  ;;  %v4511_v42 = vpop.f32.mrb[40].mxu0 }
 0x150   : > { %v6406_v6 = vadd.f32 %v4571_v2, %v1672_v4  ;;  %v4574_v41 = vadd.f32 %v4573_v10, %v4572_v47  ;;  %v4512_v49 = vpop.f32.mrb[41].mxu0 }
 0x151   : > { %v4513_v19 = vadd.f32 %v4512_v49, %v4511_v42  ;;  %v4514_v37 = vpop.f32.mrb[42].mxu0 }
 0x152   : > { %v6408_v22 = vadd.f32 %v4574_v41, %v1675_v5  ;;  %v4515_v28 = vpop.f32.mrb[43].mxu0 }
 0x153   : > { %v1680_v8 = vadd.f32 %v4513_v19, %v6357_v3  ;;  %v4516_v1 = vadd.f32 %v4515_v28, %v4514_v37 }
 0x154   : > { %v4575_v11 = vpop.f32.mrb[40].mxu1 }
 0x155   : > { %v4576_v52 = vpop.f32.mrb[41].mxu1  ;;  %v1683_v61 = vadd.f32 %v4516_v1, %v6365_v16 }
 0x156   : > { %v4577_v23 = vadd.f32 %v4576_v52, %v4575_v11  ;;  %v4578_v34 = vpop.f32.mrb[42].mxu1 }
 0x157   : > { %v4579_v36 = vpop.f32.mrb[43].mxu1  ;;  %v4517_v46 = vpop.f32.mrb[44].mxu0 }
 0x158   : > { %v6412_v26 = vadd.f32 %v4577_v23, %v1680_v8  ;;  %v4580_v13 = vadd.f32 %v4579_v36, %v4578_v34  ;;  %v4518_v20 = vpop.f32.mrb[45].mxu0 }
 0x159   : > { %v4519_v29 = vadd.f32 %v4518_v20, %v4517_v46  ;;  %v4520_v35 = vpop.f32.mrb[46].mxu0 }
 0x15a   : > { %v6414_v50 = vadd.f32 %v4580_v13, %v1683_v61  ;;  %v4521_v60 = vpop.f32.mrb[47].mxu0 }
 0x15b   : > { %v1688_v3 = vadd.f32 %v4519_v29, %v6378_v7  ;;  %v4522_v25 = vadd.f32 %v4521_v60, %v4520_v35 }
 0x15c   : > { %v4581_v21 = vpop.f32.mrb[44].mxu1 }
 0x15d   : > { %v4582_v38 = vpop.f32.mrb[45].mxu1  ;;  %v1691_v16 = vadd.f32 %v4522_v25, %v6380_v59 }
 0x15e   : > { %v4583_v32 = vadd.f32 %v4582_v38, %v4581_v21  ;;  %v4584_v62 = vpop.f32.mrb[46].mxu1 }
 0x15f   : > { %v4585_v53 = vpop.f32.mrb[47].mxu1  ;;  %v4523_v40 = vpop.f32.mrb[48].mxu0 }
 0x160   : > { %v6418_v33 = vadd.f32 %v4583_v32, %v1688_v3  ;;  %v4586_v63 = vadd.f32 %v4585_v53, %v4584_v62  ;;  %v4524_v45 = vpop.f32.mrb[49].mxu0 }
 0x161   : > { %v4525_v48 = vadd.f32 %v4524_v45, %v4523_v40  ;;  %v4526_v18 = vpop.f32.mrb[50].mxu0 }
 0x162   : > { %v6420_v43 = vadd.f32 %v4586_v63, %v1691_v16  ;;  %v4527_v27 = vpop.f32.mrb[51].mxu0 }
 0x163   : > { %v1696_v7 = vadd.f32 %v4525_v48, %v6382_v55  ;;  %v4528_v44 = vadd.f32 %v4527_v27, %v4526_v18 }
 0x164   : > { %v4587_v30 = vpop.f32.mrb[48].mxu1 }
 0x165   : > { %v4588_v57 = vpop.f32.mrb[49].mxu1  ;;  %v1699_v59 = vadd.f32 %v4528_v44, %v6384_v9 }
 0x166   : > { %v4589_v54 = vadd.f32 %v4588_v57, %v4587_v30  ;;  %v4590_v4 = vpop.f32.mrb[50].mxu1 }
 0x167   : > { %v4591_v58 = vpop.f32.mrb[51].mxu1  ;;  %v4529_v12 = vpop.f32.mrb[52].mxu0 }
 0x168   : > { %v6424_v17 = vadd.f32 %v4589_v54, %v1696_v7  ;;  %v4592_v5 = vadd.f32 %v4591_v58, %v4590_v4  ;;  %v4530_v2 = vpop.f32.mrb[53].mxu0 }
 0x169   : > { %v4531_v47 = vadd.f32 %v4530_v2, %v4529_v12  ;;  %v4532_v10 = vpop.f32.mrb[54].mxu0 }
 0x16a   : > { %v6426_v42 = vadd.f32 %v4592_v5, %v1699_v59  ;;  %v4533_v41 = vpop.f32.mrb[55].mxu0 }
 0x16b   : > { %v1704_v55 = vadd.f32 %v4531_v47, %v6386_v14  ;;  %v4534_v49 = vadd.f32 %v4533_v41, %v4532_v10 }
 0x16c   : > { %v4593_v19 = vpop.f32.mrb[52].mxu1 }
 0x16d   : > { %v4594_v37 = vpop.f32.mrb[53].mxu1  ;;  %v1707_v9 = vadd.f32 %v4534_v49, %v6388_v15 }
 0x16e   : > { %v4595_v28 = vadd.f32 %v4594_v37, %v4593_v19  ;;  %v4596_v8 = vpop.f32.mrb[54].mxu1 }
 0x16f   : > { %v4597_v1 = vpop.f32.mrb[55].mxu1  ;;  %v4535_v11 = vpop.f32.mrb[56].mxu0 }
 0x170   : > { %v6430_v52 = vadd.f32 %v4595_v28, %v1704_v55  ;;  %v4598_v61 = vadd.f32 %v4597_v1, %v4596_v8  ;;  %v4536_v23 = vpop.f32.mrb[57].mxu0 }
 0x171   : > { %v4537_v34 = vadd.f32 %v4536_v23, %v4535_v11  ;;  %v4538_v36 = vpop.f32.mrb[58].mxu0 }
 0x172   : > { %v6432_v46 = vadd.f32 %v4598_v61, %v1707_v9  ;;  %v4539_v13 = vpop.f32.mrb[59].mxu0 }
 0x173   : > { %v1712_v14 = vadd.f32 %v4537_v34, %v6390_v56  ;;  %v4540_v20 = vadd.f32 %v4539_v13, %v4538_v36 }
 0x174   : > { %v4599_v29 = vpop.f32.mrb[56].mxu1 }
 0x175   : > { %v4600_v35 = vpop.f32.mrb[57].mxu1  ;;  %v1715_v15 = vadd.f32 %v4540_v20, %v6392_v31 }
 0x176   : > { %v4601_v60 = vadd.f32 %v4600_v35, %v4599_v29  ;;  %v4602_v3 = vpop.f32.mrb[58].mxu1 }
 0x177   : > { %v4603_v25 = vpop.f32.mrb[59].mxu1  ;;  %v4541_v21 = vpop.f32.mrb[60].mxu0 }
 0x178   : > { %v6436_v38 = vadd.f32 %v4601_v60, %v1712_v14  ;;  %v4604_v16 = vadd.f32 %v4603_v25, %v4602_v3  ;;  %v4542_v32 = vpop.f32.mrb[61].mxu0 }
 0x179   : > { %v4543_v62 = vadd.f32 %v4542_v32, %v4541_v21  ;;  %v4544_v53 = vpop.f32.mrb[62].mxu0 }
 0x17a   : > { %v6438_v40 = vadd.f32 %v4604_v16, %v1715_v15  ;;  %v4545_v63 = vpop.f32.mrb[63].mxu0 }
 0x17b   : > { %v1720_v56 = vadd.f32 %v4543_v62, %v6394_v39  ;;  %v4546_v45 = vadd.f32 %v4545_v63, %v4544_v53 }
 0x17c   : > { %v4605_v48 = vpop.f32.mrb[60].mxu1 }
 0x17d   : > { %v4606_v18 = vpop.f32.mrb[61].mxu1  ;;  %v1723_v31 = vadd.f32 %v4546_v45, %v6396_v51 }
 0x17e   : > { %v4607_v27 = vadd.f32 %v4606_v18, %v4605_v48  ;;  %v4608_v7 = vpop.f32.mrb[62].mxu1 }
 0x17f   : > { %v4609_v44 = vpop.f32.mrb[63].mxu1  ;;  %v4627_v30 = vpop.f32.mrb[64].mxu0 }
 0x180   : > { %v6442_v57 = vadd.f32 %v4607_v27, %v1720_v56  ;;  %v4610_v59 = vadd.f32 %v4609_v44, %v4608_v7  ;;  %v4628_v54 = vpop.f32.mrb[65].mxu0 }
 0x181   : > { %v4629_v4 = vadd.f32 %v4628_v54, %v4627_v30  ;;  %v4630_v58 = vpop.f32.mrb[66].mxu0 }
 0x182   : > { %v6444_v12 = vadd.f32 %v4610_v59, %v1723_v31  ;;  %v4631_v5 = vpop.f32.mrb[67].mxu0 }
 0x183   : > { %v4632_v2 = vadd.f32 %v4631_v5, %v4630_v58 }
 0x184   : > { %v4691_v39 = vpop.f32.mrb[64].mxu1 }
 0x185   : > { %v4692_v47 = vpop.f32.mrb[65].mxu1 }
 0x186   : > { %v4693_v10 = vadd.f32 %v4692_v47, %v4691_v39  ;;  %v4694_v41 = vpop.f32.mrb[66].mxu1 }
 0x187   : > { %v4695_v55 = vpop.f32.mrb[67].mxu1  ;;  %v4633_v51 = vpop.f32.mrb[68].mxu0 }
 0x188   : > { %v2408_v49 = vadd.f32 %v4693_v10, %v4629_v4  ;;  %v4696_v19 = vadd.f32 %v4695_v55, %v4694_v41  ;;  %v4634_v37 = vpop.f32.mrb[69].mxu0 }
 0x189   : > { %v4635_v9 = vadd.f32 %v4634_v37, %v4633_v51  ;;  %v4636_v28 = vpop.f32.mrb[70].mxu0 }
 0x18a   : > { %v6447_v8 = vadd.f32 %v2408_v49, %v6400_v0  ;;  %v2411_v1 = vadd.f32 %v4696_v19, %v4632_v2  ;;  %v4637_v11 = vpop.f32.mrb[71].mxu0 }
 0x18b   : > { %v4638_v61 = vadd.f32 %v4637_v11, %v4636_v28 }
 0x18c   : > { %v6450_v23 = vadd.f32 %v2411_v1, %v6402_v24  ;;  %v4697_v34 = vpop.f32.mrb[68].mxu1 }
 0x18d   : > { %v4698_v36 = vpop.f32.mrb[69].mxu1 }
 0x18e   : > { %v4699_v13 = vadd.f32 %v4698_v36, %v4697_v34  ;;  %v4700_v14 = vpop.f32.mrb[70].mxu1 }
 0x18f   : > { %v4701_v20 = vpop.f32.mrb[71].mxu1  ;;  %v4639_v29 = vpop.f32.mrb[72].mxu0 }
 0x190   : > { %v2416_v35 = vadd.f32 %v4699_v13, %v4635_v9  ;;  %v4702_v15 = vadd.f32 %v4701_v20, %v4700_v14  ;;  %v4640_v60 = vpop.f32.mrb[73].mxu0 }
 0x191   : > { %v4641_v3 = vadd.f32 %v4640_v60, %v4639_v29  ;;  %v4642_v25 = vpop.f32.mrb[74].mxu0 }
 0x192   : > { %v6453_v0 = vadd.f32 %v2416_v35, %v6406_v6  ;;  %v2419_v21 = vadd.f32 %v4702_v15, %v4638_v61  ;;  %v4643_v16 = vpop.f32.mrb[75].mxu0 }
 0x193   : > { %v4644_v32 = vadd.f32 %v4643_v16, %v4642_v25 }
 0x194   : > { %v6456_v24 = vadd.f32 %v2419_v21, %v6408_v22  ;;  %v4703_v62 = vpop.f32.mrb[72].mxu1 }
 0x195   : > { %v4704_v53 = vpop.f32.mrb[73].mxu1 }
 0x196   : > { %v4705_v63 = vadd.f32 %v4704_v53, %v4703_v62  ;;  %v4706_v56 = vpop.f32.mrb[74].mxu1 }
 0x197   : > { %v4707_v45 = vpop.f32.mrb[75].mxu1  ;;  %v4645_v48 = vpop.f32.mrb[76].mxu0 }
 0x198   : > { %v2424_v18 = vadd.f32 %v4705_v63, %v4641_v3  ;;  %v4708_v31 = vadd.f32 %v4707_v45, %v4706_v56  ;;  %v4646_v27 = vpop.f32.mrb[77].mxu0 }
 0x199   : > { %v4647_v7 = vadd.f32 %v4646_v27, %v4645_v48  ;;  %v4648_v44 = vpop.f32.mrb[78].mxu0 }
 0x19a   : > { %v6459_v6 = vadd.f32 %v2424_v18, %v6412_v26  ;;  %v2427_v30 = vadd.f32 %v4708_v31, %v4644_v32  ;;  %v4649_v59 = vpop.f32.mrb[79].mxu0 }
 0x19b   : > { %v4650_v54 = vadd.f32 %v4649_v59, %v4648_v44 }
 0x19c   : > { %v6462_v22 = vadd.f32 %v2427_v30, %v6414_v50  ;;  %v4709_v4 = vpop.f32.mrb[76].mxu1 }
 0x19d   : > { %v4710_v58 = vpop.f32.mrb[77].mxu1 }
 0x19e   : > { %v4711_v5 = vadd.f32 %v4710_v58, %v4709_v4  ;;  %v4712_v2 = vpop.f32.mrb[78].mxu1 }
 0x19f   : > { %v4713_v39 = vpop.f32.mrb[79].mxu1  ;;  %v4651_v47 = vpop.f32.mrb[80].mxu0 }
 0x1a0   : > { %v2432_v10 = vadd.f32 %v4711_v5, %v4647_v7  ;;  %v4714_v41 = vadd.f32 %v4713_v39, %v4712_v2  ;;  %v4652_v55 = vpop.f32.mrb[81].mxu0 }
 0x1a1   : > { %v4653_v51 = vadd.f32 %v4652_v55, %v4651_v47  ;;  %v4654_v49 = vpop.f32.mrb[82].mxu0 }
 0x1a2   : > { %v6465_v26 = vadd.f32 %v2432_v10, %v6418_v33  ;;  %v2435_v19 = vadd.f32 %v4714_v41, %v4650_v54  ;;  %v4655_v37 = vpop.f32.mrb[83].mxu0 }
 0x1a3   : > { %v4656_v9 = vadd.f32 %v4655_v37, %v4654_v49 }
 0x1a4   : > { %v6468_v50 = vadd.f32 %v2435_v19, %v6420_v43  ;;  %v4715_v28 = vpop.f32.mrb[80].mxu1 }
 0x1a5   : > { %v4716_v1 = vpop.f32.mrb[81].mxu1 }
 0x1a6   : > { %v4717_v11 = vadd.f32 %v4716_v1, %v4715_v28  ;;  %v4718_v61 = vpop.f32.mrb[82].mxu1 }
 0x1a7   : > { %v4719_v34 = vpop.f32.mrb[83].mxu1  ;;  %v4657_v36 = vpop.f32.mrb[84].mxu0 }
 0x1a8   : > { %v2440_v13 = vadd.f32 %v4717_v11, %v4653_v51  ;;  %v4720_v14 = vadd.f32 %v4719_v34, %v4718_v61  ;;  %v4658_v20 = vpop.f32.mrb[85].mxu0 }
 0x1a9   : > { %v4659_v29 = vadd.f32 %v4658_v20, %v4657_v36  ;;  %v4660_v35 = vpop.f32.mrb[86].mxu0 }
 0x1aa   : > { %v6471_v33 = vadd.f32 %v2440_v13, %v6424_v17  ;;  %v2443_v15 = vadd.f32 %v4720_v14, %v4656_v9  ;;  %v4661_v60 = vpop.f32.mrb[87].mxu0 }
 0x1ab   : > { %v4662_v3 = vadd.f32 %v4661_v60, %v4660_v35 }
 0x1ac   : > { %v6474_v43 = vadd.f32 %v2443_v15, %v6426_v42  ;;  %v4721_v25 = vpop.f32.mrb[84].mxu1 }
 0x1ad   : > { %v4722_v21 = vpop.f32.mrb[85].mxu1 }
 0x1ae   : > { %v4723_v16 = vadd.f32 %v4722_v21, %v4721_v25  ;;  %v4724_v32 = vpop.f32.mrb[86].mxu1 }
 0x1af   : > { %v4725_v62 = vpop.f32.mrb[87].mxu1  ;;  %v4663_v53 = vpop.f32.mrb[88].mxu0 }
 0x1b0   : > { %v2448_v63 = vadd.f32 %v4723_v16, %v4659_v29  ;;  %v4726_v56 = vadd.f32 %v4725_v62, %v4724_v32  ;;  %v4664_v45 = vpop.f32.mrb[89].mxu0 }
 0x1b1   : > { %v4665_v48 = vadd.f32 %v4664_v45, %v4663_v53  ;;  %v4666_v18 = vpop.f32.mrb[90].mxu0 }
 0x1b2   : > { %v6477_v17 = vadd.f32 %v2448_v63, %v6430_v52  ;;  %v2451_v31 = vadd.f32 %v4726_v56, %v4662_v3  ;;  %v4667_v27 = vpop.f32.mrb[91].mxu0 }
 0x1b3   : > { %v4668_v7 = vadd.f32 %v4667_v27, %v4666_v18 }
 0x1b4   : > { %v6480_v42 = vadd.f32 %v2451_v31, %v6432_v46  ;;  %v4727_v44 = vpop.f32.mrb[88].mxu1 }
 0x1b5   : > { %v4728_v30 = vpop.f32.mrb[89].mxu1 }
 0x1b6   : > { %v4729_v59 = vadd.f32 %v4728_v30, %v4727_v44  ;;  %v4730_v54 = vpop.f32.mrb[90].mxu1 }
 0x1b7   : > { %v4731_v4 = vpop.f32.mrb[91].mxu1  ;;  %v4669_v58 = vpop.f32.mrb[92].mxu0 }
 0x1b8   : > { %v2456_v5 = vadd.f32 %v4729_v59, %v4665_v48  ;;  %v4732_v2 = vadd.f32 %v4731_v4, %v4730_v54  ;;  %v4670_v39 = vpop.f32.mrb[93].mxu0 }
 0x1b9   : > { %v4671_v47 = vadd.f32 %v4670_v39, %v4669_v58  ;;  %v4672_v10 = vpop.f32.mrb[94].mxu0 }
 0x1ba   : > { %v6483_v52 = vadd.f32 %v2456_v5, %v6436_v38  ;;  %v2459_v41 = vadd.f32 %v4732_v2, %v4668_v7  ;;  %v4673_v55 = vpop.f32.mrb[95].mxu0 }
 0x1bb   : > { %v4674_v51 = vadd.f32 %v4673_v55, %v4672_v10 }
 0x1bc   : > { %v6486_v46 = vadd.f32 %v2459_v41, %v6438_v40  ;;  %v4733_v49 = vpop.f32.mrb[92].mxu1 }
 0x1bd   : > { %v4734_v19 = vpop.f32.mrb[93].mxu1 }
 0x1be   : > { %v4735_v37 = vadd.f32 %v4734_v19, %v4733_v49  ;;  %v4736_v9 = vpop.f32.mrb[94].mxu1 }
 0x1bf   : > { %v4737_v28 = vpop.f32.mrb[95].mxu1  ;;  %v4755_v1 = vpop.f32.mrb[96].mxu0 }
 0x1c0   : > { %v2464_v11 = vadd.f32 %v4735_v37, %v4671_v47  ;;  %v4738_v61 = vadd.f32 %v4737_v28, %v4736_v9  ;;  %v4756_v34 = vpop.f32.mrb[97].mxu0 }
 0x1c1   : > { %v4757_v36 = vadd.f32 %v4756_v34, %v4755_v1  ;;  %v4758_v38 = vpop.f32.mrb[98].mxu0 }
 0x1c2   : > { %v6490_v13 = vadd.f32 %v2464_v11, %v6442_v57  ;;  %v2467_v14 = vadd.f32 %v4738_v61, %v4674_v51  ;;  %v4759_v20 = vpop.f32.mrb[99].mxu0  ;;  %v6499_v57 = vld [vmem:[%s6563_s2] ss:$0 sm:$0xff] }
 0x1c3   : > { %v4760_v40 = vadd.f32 %v4759_v20, %v4758_v38 }
 0x1c4   : > { %v6494_v29 = vadd.f32 %v2467_v14, %v6444_v12  ;;  %v4819_v35 = vpop.f32.mrb[96].mxu1 }
 0x1c5   : > { %v4820_v15 = vpop.f32.mrb[97].mxu1 }
 0x1c6   : > { %v4821_v60 = vadd.f32 %v4820_v15, %v4819_v35  ;;  %v4822_v3 = vpop.f32.mrb[98].mxu1 }
 0x1c7   : > { %v4823_v25 = vpop.f32.mrb[99].mxu1  ;;  %v4761_v21 = vpop.f32.mrb[100].mxu0 }
 0x1c8   : > { %v3435_v16 = vadd.f32 %v4821_v60, %v4757_v36  ;;  %v4824_v32 = vadd.f32 %v4823_v25, %v4822_v3  ;;  %v4762_v62 = vpop.f32.mrb[101].mxu0 }
 0x1c9   : > { %v4763_v53 = vadd.f32 %v4762_v62, %v4761_v21  ;;  %v4764_v63 = vpop.f32.mrb[102].mxu0 }
 0x1ca   : > { %v3497_v12 = vadd.f32 %v3435_v16, %v6447_v8  ;;  %v3438_v56 = vadd.f32 %v4824_v32, %v4760_v40  ;;  %v4765_v45 = vpop.f32.mrb[103].mxu0 }
 0x1cb   : > { %v4766_v48 = vadd.f32 %v4765_v45, %v4764_v63 }
 0x1cc   : > { %v3520_v18 = vadd.f32 %v6499_v57, %v3497_v12  ;;  %v3498_v31 = vadd.f32 %v3438_v56, %v6450_v23  ;;  %v4825_v27 = vpop.f32.mrb[100].mxu1 }
 0x1cd   : > { %v4826_v7 = vpop.f32.mrb[101].mxu1 }
 0x1ce   : > { %v3536_v44 = vmul.f32 0.2, %v3520_v18  ;;  %v3521_v30 = vadd.f32 %v6499_v57, %v3498_v31  ;;  %v4827_v59 = vadd.f32 %v4826_v7, %v4825_v27  ;;  %v4828_v54 = vpop.f32.mrb[102].mxu1 }
 0x1cf   : > { %v4829_v4 = vpop.f32.mrb[103].mxu1  ;;  %v4767_v58 = vpop.f32.mrb[104].mxu0 }
 0x1d0   : > { %v3537_v5 = vmul.f32 0.2, %v3521_v30  ;;  %v3443_v8 = vadd.f32 %v4827_v59, %v4763_v53  ;;  %v4830_v2 = vadd.f32 %v4829_v4, %v4828_v54  ;;  %v4768_v39 = vpop.f32.mrb[105].mxu0  ;;  %v3552_v41 = vmax.f32 %v3520_v18, %v3536_v44 }
 0x1d1   : > { %v4769_v47 = vadd.f32 %v4768_v39, %v4767_v58  ;;  %v4770_v10 = vpop.f32.mrb[106].mxu0 }
 0x1d2   : > { %v3553_v55 = vmax.f32 %v3521_v30, %v3537_v5  ;;  %v3499_v23 = vadd.f32 %v3443_v8, %v6453_v0  ;;  %v3446_v51 = vadd.f32 %v4830_v2, %v4766_v48  ;;  %v4771_v49 = vpop.f32.mrb[107].mxu0 }
 0x1d3   : > { %v4772_v19 = vadd.f32 %v4771_v49, %v4770_v10 }
 0x1d4   : > { %v4311_v37 = vpack.c.bf16 %v3553_v55, %v3552_v41  ;;  %v3522_v9 = vadd.f32 %v6499_v57, %v3499_v23  ;;  %v3500_v28 = vadd.f32 %v3446_v51, %v6456_v24  ;;  %v4831_v1 = vpop.f32.mrb[104].mxu1 }
 0x1d5   : > { %v4832_v11 = vpop.f32.mrb[105].mxu1 }
 0x1d6   : > { %4312 = vst [vmem:[%s6509_s10] sm:$0xff] %v4311_v37   ;;  %v3538_v61 = vmul.f32 0.2, %v3522_v9  ;;  %v3523_v0 = vadd.f32 %v6499_v57, %v3500_v28  ;;  %v4833_v34 = vadd.f32 %v4832_v11, %v4831_v1  ;;  %v4834_v36 = vpop.f32.mrb[106].mxu1 }
 0x1d7   : > { %v4835_v38 = vpop.f32.mrb[107].mxu1  ;;  %v4773_v14 = vpop.f32.mrb[108].mxu0 }
 0x1d8   : > { %v3539_v20 = vmul.f32 0.2, %v3523_v0  ;;  %v3451_v40 = vadd.f32 %v4833_v34, %v4769_v47  ;;  %v4836_v35 = vadd.f32 %v4835_v38, %v4834_v36  ;;  %v4774_v15 = vpop.f32.mrb[109].mxu0  ;;  %v3554_v25 = vmax.f32 %v3522_v9, %v3538_v61 }
 0x1d9   : > { %v4775_v60 = vadd.f32 %v4774_v15, %v4773_v14  ;;  %v4776_v3 = vpop.f32.mrb[110].mxu0 }
 0x1da   : > { %v3555_v21 = vmax.f32 %v3523_v0, %v3539_v20  ;;  %v3501_v24 = vadd.f32 %v3451_v40, %v6459_v6  ;;  %v3454_v16 = vadd.f32 %v4836_v35, %v4772_v19  ;;  %v4777_v32 = vpop.f32.mrb[111].mxu0 }
 0x1db   : > { %v4778_v62 = vadd.f32 %v4777_v32, %v4776_v3 }
 0x1dc   : > { %v4316_v53 = vpack.c.bf16 %v3555_v21, %v3554_v25  ;;  %v3524_v63 = vadd.f32 %v6499_v57, %v3501_v24  ;;  %v3502_v12 = vadd.f32 %v3454_v16, %v6462_v22  ;;  %v4837_v56 = vpop.f32.mrb[108].mxu1 }
 0x1dd   : > { %v4838_v45 = vpop.f32.mrb[109].mxu1 }
 0x1de   : > { %4348 = vst [vmem:[%s6509_s10 + $0x8] sm:$0xff] %v4316_v53   ;;  %v3540_v48 = vmul.f32 0.2, %v3524_v63  ;;  %v3525_v18 = vadd.f32 %v6499_v57, %v3502_v12  ;;  %v4839_v31 = vadd.f32 %v4838_v45, %v4837_v56  ;;  %v4840_v27 = vpop.f32.mrb[110].mxu1 }
 0x1df   : > { %v4841_v7 = vpop.f32.mrb[111].mxu1  ;;  %v4779_v44 = vpop.f32.mrb[112].mxu0 }
 0x1e0   : > { %v3541_v30 = vmul.f32 0.2, %v3525_v18  ;;  %v3459_v6 = vadd.f32 %v4839_v31, %v4775_v60  ;;  %v4842_v59 = vadd.f32 %v4841_v7, %v4840_v27  ;;  %v4780_v54 = vpop.f32.mrb[113].mxu0  ;;  %v3556_v5 = vmax.f32 %v3524_v63, %v3540_v48 }
 0x1e1   : > { %v4781_v4 = vadd.f32 %v4780_v54, %v4779_v44  ;;  %v4782_v58 = vpop.f32.mrb[114].mxu0 }
 0x1e2   : > { %v3557_v8 = vmax.f32 %v3525_v18, %v3541_v30  ;;  %v3503_v22 = vadd.f32 %v3459_v6, %v6465_v26  ;;  %v3462_v2 = vadd.f32 %v4842_v59, %v4778_v62  ;;  %v4783_v39 = vpop.f32.mrb[115].mxu0 }
 0x1e3   : > { %v4784_v47 = vadd.f32 %v4783_v39, %v4782_v58 }
 0x1e4   : > { %v4321_v10 = vpack.c.bf16 %v3557_v8, %v3556_v5  ;;  %v3526_v41 = vadd.f32 %v6499_v57, %v3503_v22  ;;  %v3504_v55 = vadd.f32 %v3462_v2, %v6468_v50  ;;  %v4843_v23 = vpop.f32.mrb[112].mxu1 }
 0x1e5   : > { %v4844_v51 = vpop.f32.mrb[113].mxu1 }
 0x1e6   : > { %4349 = vst [vmem:[%s6509_s10 + $0x10] sm:$0xff] %v4321_v10   ;;  %v3542_v49 = vmul.f32 0.2, %v3526_v41  ;;  %v3527_v19 = vadd.f32 %v6499_v57, %v3504_v55  ;;  %v4845_v37 = vadd.f32 %v4844_v51, %v4843_v23  ;;  %v4846_v9 = vpop.f32.mrb[114].mxu1 }
 0x1e7   : > { %v4847_v28 = vpop.f32.mrb[115].mxu1  ;;  %v4785_v1 = vpop.f32.mrb[116].mxu0 }
 0x1e8   : > { %v3543_v11 = vmul.f32 0.2, %v3527_v19  ;;  %v3467_v26 = vadd.f32 %v4845_v37, %v4781_v4  ;;  %v4848_v61 = vadd.f32 %v4847_v28, %v4846_v9  ;;  %v4786_v0 = vpop.f32.mrb[117].mxu0  ;;  %v3558_v38 = vmax.f32 %v3526_v41, %v3542_v49 }
 0x1e9   : > { %v4787_v34 = vadd.f32 %v4786_v0, %v4785_v1  ;;  %v4788_v36 = vpop.f32.mrb[118].mxu0 }
 0x1ea   : > { %v3559_v14 = vmax.f32 %v3527_v19, %v3543_v11  ;;  %v3505_v50 = vadd.f32 %v3467_v26, %v6471_v33  ;;  %v3470_v20 = vadd.f32 %v4848_v61, %v4784_v47  ;;  %v4789_v40 = vpop.f32.mrb[119].mxu0 }
 0x1eb   : > { %v4790_v35 = vadd.f32 %v4789_v40, %v4788_v36 }
 0x1ec   : > { %v4326_v15 = vpack.c.bf16 %v3559_v14, %v3558_v38  ;;  %v3528_v60 = vadd.f32 %v6499_v57, %v3505_v50  ;;  %v3506_v3 = vadd.f32 %v3470_v20, %v6474_v43  ;;  %v4849_v25 = vpop.f32.mrb[116].mxu1 }
 0x1ed   : > { %v4850_v21 = vpop.f32.mrb[117].mxu1 }
 0x1ee   : > { %4350 = vst [vmem:[%s6509_s10 + $0x18] sm:$0xff] %v4326_v15   ;;  %v3544_v24 = vmul.f32 0.2, %v3528_v60  ;;  %v3529_v16 = vadd.f32 %v6499_v57, %v3506_v3  ;;  %v4851_v32 = vadd.f32 %v4850_v21, %v4849_v25  ;;  %v4852_v62 = vpop.f32.mrb[118].mxu1 }
 0x1ef   : > { %v4853_v53 = vpop.f32.mrb[119].mxu1  ;;  %v4791_v63 = vpop.f32.mrb[120].mxu0 }
 0x1f0   : > { %v3545_v12 = vmul.f32 0.2, %v3529_v16  ;;  %v3475_v33 = vadd.f32 %v4851_v32, %v4787_v34  ;;  %v4854_v56 = vadd.f32 %v4853_v53, %v4852_v62  ;;  %v4792_v45 = vpop.f32.mrb[121].mxu0  ;;  %v3560_v31 = vmax.f32 %v3528_v60, %v3544_v24 }
 0x1f1   : > { %v4793_v48 = vadd.f32 %v4792_v45, %v4791_v63  ;;  %v4794_v18 = vpop.f32.mrb[122].mxu0 }
 0x1f2   : > { %v3561_v27 = vmax.f32 %v3529_v16, %v3545_v12  ;;  %v3507_v43 = vadd.f32 %v3475_v33, %v6477_v17  ;;  %v3478_v7 = vadd.f32 %v4854_v56, %v4790_v35  ;;  %v4795_v44 = vpop.f32.mrb[123].mxu0 }
 0x1f3   : > { %v4796_v30 = vadd.f32 %v4795_v44, %v4794_v18 }
 0x1f4   : > { %v4331_v6 = vpack.c.bf16 %v3561_v27, %v3560_v31  ;;  %v3530_v59 = vadd.f32 %v6499_v57, %v3507_v43  ;;  %v3508_v54 = vadd.f32 %v3478_v7, %v6480_v42  ;;  %v4855_v4 = vpop.f32.mrb[120].mxu1 }
 0x1f5   : > { %v4856_v58 = vpop.f32.mrb[121].mxu1 }
 0x1f6   : > { %4351 = vst [vmem:[%s6509_s10 + $0x20] sm:$0xff] %v4331_v6   ;;  %v3546_v5 = vmul.f32 0.2, %v3530_v59  ;;  %v3531_v8 = vadd.f32 %v6499_v57, %v3508_v54  ;;  %v4857_v22 = vadd.f32 %v4856_v58, %v4855_v4  ;;  %v4858_v2 = vpop.f32.mrb[122].mxu1 }
 0x1f7   : > { %v4859_v39 = vpop.f32.mrb[123].mxu1  ;;  %v4797_v47 = vpop.f32.mrb[124].mxu0 }
 0x1f8   : > { %v3547_v10 = vmul.f32 0.2, %v3531_v8  ;;  %v3483_v17 = vadd.f32 %v4857_v22, %v4793_v48  ;;  %v4860_v41 = vadd.f32 %v4859_v39, %v4858_v2  ;;  %v4798_v55 = vpop.f32.mrb[125].mxu0  ;;  %v3562_v49 = vmax.f32 %v3530_v59, %v3546_v5 }
 0x1f9   : > { %v4799_v23 = vadd.f32 %v4798_v55, %v4797_v47  ;;  %v4800_v51 = vpop.f32.mrb[126].mxu0 }
 0x1fa   : > { %v3563_v19 = vmax.f32 %v3531_v8, %v3547_v10  ;;  %v3509_v42 = vadd.f32 %v3483_v17, %v6483_v52  ;;  %v3486_v37 = vadd.f32 %v4860_v41, %v4796_v30  ;;  %v4801_v9 = vpop.f32.mrb[127].mxu0 }
 0x1fb   : > { %v4802_v28 = vadd.f32 %v4801_v9, %v4800_v51 }
 0x1fc   : > { %v4336_v1 = vpack.c.bf16 %v3563_v19, %v3562_v49  ;;  %v3532_v11 = vadd.f32 %v6499_v57, %v3509_v42  ;;  %v3510_v26 = vadd.f32 %v3486_v37, %v6486_v46  ;;  %v4861_v61 = vpop.f32.mrb[124].mxu1 }
 0x1fd   : > { %v4862_v0 = vpop.f32.mrb[125].mxu1 }
 0x1fe   : > { %4352 = vst [vmem:[%s6509_s10 + $0x28] sm:$0xff] %v4336_v1   ;;  %v3548_v34 = vmul.f32 0.2, %v3532_v11  ;;  %v3533_v36 = vadd.f32 %v6499_v57, %v3510_v26  ;;  %v4863_v38 = vadd.f32 %v4862_v0, %v4861_v61  ;;  %v4864_v14 = vpop.f32.mrb[126].mxu1 }
 0x1ff   : > { %v4865_v50 = vpop.f32.mrb[127].mxu1 }
 0x200   : > { %v3549_v20 = vmul.f32 0.2, %v3533_v36  ;;  %v3491_v52 = vadd.f32 %v4863_v38, %v4799_v23  ;;  %v4866_v40 = vadd.f32 %v4865_v50, %v4864_v14  ;;  %v3564_v35 = vmax.f32 %v3532_v11, %v3548_v34 }
 0x202   : > { %v3565_v15 = vmax.f32 %v3533_v36, %v3549_v20  ;;  %v3511_v60 = vadd.f32 %v3491_v52, %v6490_v13  ;;  %v3494_v3 = vadd.f32 %v4866_v40, %v4802_v28 }
 0x204   : > { %v4341_v46 = vpack.c.bf16 %v3565_v15, %v3564_v35  ;;  %v3534_v25 = vadd.f32 %v6499_v57, %v3511_v60  ;;  %v3512_v21 = vadd.f32 %v3494_v3, %v6494_v29 }
 0x206   : > { %4353 = vst [vmem:[%s6509_s10 + $0x30] sm:$0xff] %v4341_v46   ;;  %v3550_v24 = vmul.f32 0.2, %v3534_v25  ;;  %v3535_v16 = vadd.f32 %v6499_v57, %v3512_v21 }
 0x208   : > { %v3551_v32 = vmul.f32 0.2, %v3535_v16  ;;  %v3566_v62 = vmax.f32 %v3534_v25, %v3550_v24 }
 0x20a   : > { %v3567_v53 = vmax.f32 %v3535_v16, %v3551_v32 }
 0x20c   : > { %v4346_v63 = vpack.c.bf16 %v3567_v53, %v3566_v62 }
 0x20e   : > { %4354 = vst [vmem:[%s6509_s10 + $0x38] sm:$0xff] %v4346_v63  }
 0x20f PF: > { %s13_s16 = sadd.s32 1, %s5124_s16   ;;  %s6567_s12 = smov %s5116_s14 }
 0x210   : > { %p10_p7 = scmp.ge.s32.totalorder %s13_s16, 6   ;;  %s6568_s13 = smov %s5120_s15 }
 0x211   : > { %s6569_s14 = smov %s6572_s17  ;;  %s6570_s15 = smov %s6576_s18 }
 0x212   :  { %12 = sbr.rel (!%p10_p7) target bundleno = 3 (0x3), region = 67 }

// kernel: e_nlayers_forward.5
= control target key start
LH: loop header
LB: loop body
LE: loop exit
PB: predicated region body
PF: predicated region fallthrough
CT: control target
= control target key end

     0   :  { %s3886_s18 = smov 0   ;;  %s4706_s0 = inlined_call_operand.vmem [shape: bf16[2,9,9,512], index: 0, kind: input, shape index: {}]   ;;  %s4707_s1 = inlined_call_operand.vmem [shape: bf16[4,512,128], index: 1, kind: input, shape index: {}]   ;;  %s4708_s2 = inlined_call_operand.vmem [shape: f32[1,128], index: 2, kind: input, shape index: {}]   ;;  %s4709_s3 = inlined_call_operand.vmem [shape: f32[128,128], index: 3, kind: input, shape index: {}]   ;;  %s4710_s4 = inlined_call_operand.vmem [shape: f32[1,128], index: 4, kind: input, shape index: {}]   ;;  %s4711_s5 = inlined_call_operand.vmem [shape: f32[2,8,128], index: 5, kind: output, shape index: {}]  }
   0x1 LB: > { %s2833_s19 = sadd.s32 4294967295, %s3854_s18   ;;  %p2837_p0 = scmp.ge.s32.totalorder %s3854_s18, 1  ;;  %s3854_s18 = sphi %s3886_s18, %s15_s18  }
   0x2   : > { %p187_p1 = scmp.lt.s32.totalorder %s3854_s18, 3 }
   0x4   : > { %p188_p2 = pnand %p2837_p0, %p187_p1 }
   0x5   : > { %v3720_v0 = vld [vmem:[%s4707_s1 + $0x140] sm:$0xff] (!%p188_p2)   ;;  %v3724_v4 = vld [vmem:[%s4707_s1 + $0x148] sm:$0xff] (!%p188_p2)   ;;  %v3728_v8 = vld [vmem:[%s4707_s1 + $0x150] sm:$0xff] (!%p188_p2)   ;;  %p214_p3 = scmp.lt.s32.totalorder (!%p188_p2), %s2833_s19, 1  ;;  %vm320_vm0 = vsmask.f32 (!%p188_p2), 3328 }
   0x6   : > { %191 = sbr.rel (%p188_p2) target bundleno = 629 (0x275), region = 40  ;;  %v3721_v1 = vld [vmem:[%s4707_s1 + $0x1c0] sm:$0xff] (!%p188_p2)   ;;  %3275 = vmatprep.subr.bf16.mxu0 (!%p188_p2), %v3720_v0  ;;  %v3725_v5 = vld [vmem:[%s4707_s1 + $0x1c8] sm:$0xff] (!%p188_p2)   ;;  %v3729_v9 = vld [vmem:[%s4707_s1 + $0x1d0] sm:$0xff] (!%p188_p2)   ;;  %vm321_vm1 = vsmask.f32 (!%p188_p2), 7440 }
   0x7   : > { %v3722_v2 = vld [vmem:[%s4707_s1 + $0x100] sm:$0xff] (!%p188_p2)   ;;  %3315 = vmatprep.subr.bf16.mxu1 (!%p188_p2), %v3721_v1  ;;  %v3726_v6 = vld [vmem:[%s4707_s1 + $0x108] sm:$0xff] (!%p188_p2)   ;;  %v3730_v10 = vld [vmem:[%s4707_s1 + $0x110] sm:$0xff] (!%p188_p2)  }
   0x8   : > { %v3723_v3 = vld [vmem:[%s4707_s1 + $0x180] sm:$0xff] (!%p188_p2)   ;;  %3276 = vmatpush3.bf16.msra.mxu0 (!%p188_p2), %v3722_v2  ;;  %v3727_v7 = vld [vmem:[%s4707_s1 + $0x188] sm:$0xff] (!%p188_p2)   ;;  %v3731_v11 = vld [vmem:[%s4707_s1 + $0x190] sm:$0xff] (!%p188_p2)  }
   0x9   : > { %3316 = vmatpush3.bf16.msra.mxu1 (!%p188_p2), %v3723_v3  ;;  %3277 = vmatprep.subr.bf16.mxu0 (!%p188_p2), %v3724_v4  ;;  %v3732_v12 = vld [vmem:[%s4707_s1 + $0x158] sm:$0xff] (!%p188_p2)   ;;  %v3736_v16 = vld [vmem:[%s4707_s1 + $0x160] sm:$0xff] (!%p188_p2)   ;;  %v3740_v20 = vld [vmem:[%s4707_s1 + $0x168] sm:$0xff] (!%p188_p2)  }
   0xa   : > { %3317 = vmatprep.subr.bf16.mxu1 (!%p188_p2), %v3725_v5  ;;  %v3733_v13 = vld [vmem:[%s4707_s1 + $0x1d8] sm:$0xff] (!%p188_p2)   ;;  %v3737_v17 = vld [vmem:[%s4707_s1 + $0x1e0] sm:$0xff] (!%p188_p2)   ;;  %v3741_v21 = vld [vmem:[%s4707_s1 + $0x1e8] sm:$0xff] (!%p188_p2)  }
   0xb   : > { %v3734_v14 = vld [vmem:[%s4707_s1 + $0x118] sm:$0xff] (!%p188_p2)   ;;  %v3738_v18 = vld [vmem:[%s4707_s1 + $0x120] sm:$0xff] (!%p188_p2)   ;;  %v3742_v22 = vld [vmem:[%s4707_s1 + $0x128] sm:$0xff] (!%p188_p2)  }
   0xc   : > { %3278 = vmatpush3.bf16.msra.mxu0 (!%p188_p2), %v3726_v6  ;;  %v3735_v15 = vld [vmem:[%s4707_s1 + $0x198] sm:$0xff] (!%p188_p2)   ;;  %v3739_v19 = vld [vmem:[%s4707_s1 + $0x1a0] sm:$0xff] (!%p188_p2)   ;;  %v3743_v23 = vld [vmem:[%s4707_s1 + $0x1a8] sm:$0xff] (!%p188_p2)  }
   0xd   : > { %3318 = vmatpush3.bf16.msra.mxu1 %v3727_v7  ;;  %3279 = vmatprep.subr.bf16.mxu0 %v3728_v8  ;;  %s4715_s19 = smov (!%p214_p3, %s2833_s19), 1  ;;  %v3744_v24 = vld [vmem:[%s4707_s1 + $0x170] sm:$0xff]   ;;  %v3748_v28 = vld [vmem:[%s4707_s1 + $0x178] sm:$0xff]   ;;  %v3752_v56 = vld [vmem:[%s4707_s1 + $0x40] sm:$0xff]  }
   0xe   : > { %3319 = vmatprep.subr.bf16.mxu1 %v3729_v9  ;;  %v3745_v25 = vld [vmem:[%s4707_s1 + $0x1f0] sm:$0xff]   ;;  %s3711_s26 = smul.u32 288, %s4715_s19  ;;  %v3749_v29 = vld [vmem:[%s4707_s1 + $0x1f8] sm:$0xff]   ;;  %vm4029_vm2 = vmor %vm320_vm0, %vm321_vm1  ;;  %s2839_s25 = sshll.u32 %s4715_s19, 3 }
   0xf   : > { %v3746_v26 = vld [vmem:[%s4707_s1 + $0x130] sm:$0xff]   ;;  %v3750_v30 = vld [vmem:[%s4707_s1 + $0x138] sm:$0xff]   ;;  %v3753_v62 = vld [vmem:[%s4707_s1 + $0xc0] sm:$0xff]   ;;  %s222_s28 = scalar_lea.vmem %s4711_s5, %s2839_s25 }
  0x10   : > { %3280 = vmatpush3.bf16.msra.mxu0 %v3730_v10  ;;  %v3747_v27 = vld [vmem:[%s4707_s1 + $0x1b0] sm:$0xff]   ;;  %s3994_s12 = scalar_lea.vmem %s4706_s0, %s3711_s26  ;;  %v3751_v31 = vld [vmem:[%s4707_s1 + $0x1b8] sm:$0xff]  }
  0x11   : > { %3320 = vmatpush3.bf16.msra.mxu1 %v3731_v11  ;;  %3281 = vmatprep.subr.bf16.mxu0 %v3732_v12  ;;  %v4003_v32 = vld [vmem:[%s3994_s12] sm:$0xff]  ;;  %v304_v34 = vld [vmem:[%s3994_s12 + $0x10] sm:$0x11]  ;;  %v4015_v42 = vld [vmem:[%s3994_s12 + $0x8] sm:$0xff] }
  0x12   : > { %3321 = vmatprep.subr.bf16.mxu1 %v3733_v13  ;;  %v4006_v33 = vld [vmem:[%s3994_s12 + $0x20] sm:$0xff]  ;;  %v306_v35 = vld [vmem:[%s3994_s12 + $0x30] sm:$0x11]  ;;  %v324_v36 = vshrl.u32 %v4003_v32, 16  ;;  %v327_v37 = vshll.u32 %v4003_v32, 16  ;;  %v333_v38 = vshll.u32 %v304_v34, 16 }
  0x13   : > { %v352_v39 = vshrl.u32 %v4006_v33, 16  ;;  %v355_v40 = vshll.u32 %v4006_v33, 16  ;;  %v361_v41 = vshll.u32 %v306_v35, 16  ;;  %v4018_v43 = vld [vmem:[%s3994_s12 + $0x28] sm:$0xff]  ;;  %v305_v46 = vld [vmem:[%s3994_s12 + $0x18] sm:$0x11] }
  0x14   : > { %3282 = vmatpush3.bf16.msra.mxu0 %v3734_v14  ;;  %v326_v44 = vrot.slane %v324_v36, 4  ;;  %v329_v45 = vrot.slane %v327_v37, 5  ;;  %v307_v47 = vld [vmem:[%s3994_s12 + $0x38] sm:$0x11]  ;;  %v335_v48 = vrot.slane %v333_v38, 5  ;;  %v338_v53 = vshrl.u32 %v4015_v42, 16 }
  0x15   : > { %3322 = vmatpush3.bf16.msra.mxu1 %v3735_v15  ;;  %3283 = vmatprep.subr.bf16.mxu0 %v3736_v16  ;;  %v354_v49 = vrot.slane %v352_v39, 4  ;;  %v357_v50 = vrot.slane %v355_v40, 5  ;;  %v363_v51 = vrot.slane %v361_v41, 5  ;;  %v341_v54 = vshll.u32 %v4015_v42, 16  ;;  %v3754_v14 = vld [vmem:[%s4707_s1] sm:$0xff]   ;;  %v3756_v16 = vld [vmem:[%s4707_s1 + $0x48] sm:$0xff]  }
  0x16   : > { %3323 = vmatprep.subr.bf16.mxu1 %v3737_v17  ;;  %v330_v52 = vor.u32 %v329_v45, %v326_v44  ;;  %v347_v55 = vshll.u32 %v305_v46, 16  ;;  %v366_v59 = vshrl.u32 %v4018_v43, 16  ;;  %v369_v60 = vshll.u32 %v4018_v43, 16  ;;  %v4076_v36 = vld [vmem:[%s3994_s12 + $0x48] sm:$0xff]  ;;  %v309_v41 = vld [vmem:[%s3994_s12 + $0x58] sm:$0x11] }
  0x17   : > { %v358_v58 = vor.u32 %v357_v50, %v354_v49  ;;  %v375_v61 = vshll.u32 %v307_v47, 16  ;;  %v340_v0 = vrot.slane %v338_v53, 4  ;;  %v343_v1 = vrot.slane %v341_v54, 5  ;;  %v4079_v37 = vld [vmem:[%s3994_s12 + $0x68] sm:$0xff]  ;;  %v311_v44 = vld [vmem:[%s3994_s12 + $0x78] sm:$0x11] }
  0x18   : > { %3284 = vmatpush3.bf16.msra.mxu0 %v3738_v18  ;;  %v331_v63 = vrot.slane %v330_v52, 4  ;;  %v368_v3 = vrot.slane %v366_v59, 4  ;;  %v371_v4 = vrot.slane %v369_v60, 5  ;;  %v349_v7 = vrot.slane %v347_v55, 5  ;;  %v3755_v18 = vld [vmem:[%s4707_s1 + $0x80] sm:$0xff]   ;;  %v3759_v38 = vld [vmem:[%s4707_s1 + $0x88] sm:$0xff]  }
  0x19   : > { %3324 = vmatpush3.bf16.msra.mxu1 %v3739_v19  ;;  %3285 = vmatprep.subr.bf16.mxu0 %v3740_v20  ;;  %v359_v2 = vrot.slane %v358_v58, 4  ;;  %v344_v6 = vor.u32 %v343_v1, %v340_v0  ;;  %v377_v10 = vrot.slane %v375_v61, 5  ;;  %v3757_v20 = vld [vmem:[%s4707_s1 + $0xc8] sm:$0xff]   ;;  %v394_v50 = vshrl.u32 %v4076_v36, 16  ;;  %v3760_v58 = vld [vmem:[%s4707_s1 + $0x50] sm:$0xff]  }
  0x1a   : > { %3325 = vmatprep.subr.bf16.mxu1 %v3741_v21  ;;  %v336_v5 = vsel %vm4029_vm2, %v331_v63, %v335_v48  ;;  %v372_v9 = vor.u32 %v371_v4, %v368_v3  ;;  %v3758_v21 = vld [vmem:[%s4707_s1 + $0x8] sm:$0xff]   ;;  %v403_v52 = vshll.u32 %v309_v41, 16  ;;  %v422_v55 = vshrl.u32 %v4079_v37, 16  ;;  %v3761_v59 = vld [vmem:[%s4707_s1 + $0xd0] sm:$0xff]  }
  0x1b   : > { %v364_v8 = vsel %vm4029_vm2, %v359_v2, %v363_v51  ;;  %v345_v13 = vrot.slane %v344_v6, 4  ;;  %v397_v51 = vshll.u32 %v4076_v36, 16  ;;  %v396_v60 = vrot.slane %v394_v50, 4  ;;  %v3762_v6 = vld [vmem:[%s4707_s1 + $0x10] sm:$0xff]   ;;  %v315_v50 = vld [vmem:[%s3994_s12 + $0xb8] sm:$0x11] }
  0x1c   : > { %3286 = vmatpush3.bf16.msra.mxu0 %v3742_v22  ;;  %v2904_v11 = vcombine.low %v336_v5, %v364_v8  ;;  %v2905_v12 = vcombine.high %v336_v5, %v364_v8  ;;  %v373_v15 = vrot.slane %v372_v9, 4  ;;  %v4062_v22 = vld [vmem:[%s3994_s12 + $0x40] sm:$0xff]  ;;  %v431_v63 = vshll.u32 %v311_v44, 16  ;;  %v2640_v57 = vld [vmem:[%s4709_s3 + $0x10] sm:$0xff] }
  0x1d   : > { %3326 = vmatpush3.bf16.msra.mxu1 %v3743_v23  ;;  %3287 = vmatprep.subr.bf16.mxu0 %v3744_v24  ;;  %v350_v17 = vsel %vm4029_vm2, %v345_v13, %v349_v7  ;;  %v399_v61 = vrot.slane %v397_v51, 5  ;;  %v424_v2 = vrot.slane %v422_v55, 4 }
  0x1e   : > { %3327 = vmatprep.subr.bf16.mxu1 %v3745_v25  ;;  %900 = vmatprep.mubr.bf16.mxu0 %v2905_v12  ;;  %v378_v19 = vsel %vm4029_vm2, %v373_v15, %v377_v10  ;;  %v4065_v25 = vld [vmem:[%s3994_s12 + $0x60] sm:$0xff]  ;;  %v433_v5 = vrot.slane %v431_v63, 5  ;;  %v3763_v10 = vld [vmem:[%s4707_s1 + $0x90] sm:$0xff]   ;;  %v3764_v15 = vld [vmem:[%s4707_s1 + $0x58] sm:$0xff]  }
  0x1f   : > { %v2906_v23 = vcombine.low %v350_v17, %v378_v19  ;;  %v2907_v24 = vcombine.high %v350_v17, %v378_v19  ;;  %v408_v34 = vshrl.u32 %v4065_v25, 16  ;;  %v411_v35 = vshll.u32 %v4065_v25, 16 }
  0x20   : > { %3288 = vmatpush3.bf16.msra.mxu0 %v3746_v26  ;;  %v308_v26 = vld [vmem:[%s3994_s12 + $0x50] sm:$0x11]  ;;  %v400_v4 = vor.u32 %v399_v61, %v396_v60  ;;  %v3083_v19 = vcombine.high %v4018_v43, %v4076_v36 }
  0x21   : > { %3328 = vmatpush3.bf16.msra.mxu1 %v3747_v27  ;;  %3289 = vmatprep.subr.bf16.mxu0 %v3748_v28  ;;  %v310_v27 = vld [vmem:[%s3994_s12 + $0x70] sm:$0x11]  ;;  %v380_v28 = vshrl.u32 %v4062_v22, 16  ;;  %v410_v47 = vrot.slane %v408_v34, 4  ;;  %v413_v48 = vrot.slane %v411_v35, 5 }
  0x22   : > { %3329 = vmatprep.subr.bf16.mxu1 %v3749_v29  ;;  %v3080_v29 = vcombine.low %v4006_v33, %v4062_v22  ;;  %965 = vmatprep.mubr.bf16.mxu1 %v2907_v24  ;;  %v417_v40 = vshll.u32 %v310_v27, 16  ;;  %v401_v13 = vrot.slane %v400_v4, 4  ;;  %v3767_v24 = vld [vmem:[%s4707_s1 + $0x98] sm:$0xff]   ;;  %v314_v34 = vld [vmem:[%s3994_s12 + $0xb0] sm:$0x11] }
  0x23   : > { %v382_v39 = vrot.slane %v380_v28, 4  ;;  %v414_v54 = vor.u32 %v413_v48, %v410_v47  ;;  %v473_v48 = vshll.u32 %v314_v34, 16  ;;  %v3773_v34 = vld [vmem:[%s4707_s1 + $0xe8] sm:$0xff]  }
  0x24   : > { %3290 = vmatpush3.bf16.msra.mxu0 %v3750_v30  ;;  %v383_v30 = vshll.u32 %v4062_v22, 16  ;;  %v419_v49 = vrot.slane %v417_v40, 5 }
  0x25   : > { %3330 = vmatpush3.bf16.msra.mxu1 %v3751_v31  ;;  %3355 = vmatprep.subr.bf16.mxu0 %v3752_v56  ;;  %v389_v31 = vshll.u32 %v308_v26, 16  ;;  %v425_v56 = vshll.u32 %v4079_v37, 16  ;;  %v415_v1 = vrot.slane %v414_v54, 4  ;;  %v4129_v26 = vld [vmem:[%s3994_s12 + $0x80] sm:$0xff]  ;;  %v475_v55 = vrot.slane %v473_v48, 5 }
  0x26   : > { %3395 = vmatprep.subr.bf16.mxu1 %v3753_v62  ;;  %v385_v45 = vrot.slane %v383_v30, 5  ;;  %v405_v62 = vrot.slane %v403_v52, 5  ;;  %v4132_v30 = vld [vmem:[%s3994_s12 + $0xa0] sm:$0xff]  ;;  %v436_v35 = vshrl.u32 %v4129_v26, 16 }
  0x27   : > { %901 = vmatmul.mubr.bf16.vlgmr.msra.gmra.mrb[0].mxu0 %v2904_v11  ;;  %v391_v46 = vrot.slane %v389_v31, 5  ;;  %v427_v3 = vrot.slane %v425_v56, 5  ;;  %v420_v8 = vsel %vm4029_vm2, %v415_v1, %v419_v49  ;;  %v3081_v11 = vcombine.high %v4006_v33, %v4062_v22  ;;  %v312_v31 = vld [vmem:[%s3994_s12 + $0x90] sm:$0x11]  ;;  %v313_v49 = vld [vmem:[%s3994_s12 + $0x98] sm:$0x11] }
  0x28   : > { %3356 = vmatpush3.bf16.msra.mxu0 %v3754_v14  ;;  %966 = vmatmul.mubr.bf16.vlgmr.msra.gmra.mrb[0].mxu1 %v2906_v23  ;;  %v386_v53 = vor.u32 %v385_v45, %v382_v39  ;;  %v439_v39 = vshll.u32 %v4129_v26, 16  ;;  %v445_v40 = vshll.u32 %v312_v31, 16  ;;  %v464_v41 = vshrl.u32 %v4132_v30, 16  ;;  %v4143_v45 = vld [vmem:[%s3994_s12 + $0x88] sm:$0xff]  ;;  %v3769_v1 = vld [vmem:[%s4707_s1 + $0xe0] sm:$0xff]  }
  0x29   : > { %3357 = vmatprep.subr.bf16.mxu0 %v3756_v16  ;;  %3396 = vmatpush3.bf16.msra.mxu1 %v3755_v18  ;;  %v428_v9 = vor.u32 %v427_v3, %v424_v2  ;;  %v3082_v16 = vcombine.low %v4018_v43, %v4076_v36  ;;  %v3765_v18 = vld [vmem:[%s4707_s1 + $0xd8] sm:$0xff]   ;;  %v467_v44 = vshll.u32 %v4132_v30, 16  ;;  %v438_v47 = vrot.slane %v436_v35, 4 }
  0x2a   : > { %3397 = vmatprep.subr.bf16.mxu1 %v3757_v20  ;;  %v387_v0 = vrot.slane %v386_v53, 4  ;;  %v406_v20 = vsel %vm4029_vm2, %v401_v13, %v405_v62  ;;  %v441_v51 = vrot.slane %v439_v39, 5  ;;  %v447_v52 = vrot.slane %v445_v40, 5  ;;  %v3770_v13 = vld [vmem:[%s4707_s1 + $0x20] sm:$0xff]   ;;  %v3774_v40 = vld [vmem:[%s4707_s1 + $0x28] sm:$0xff]  }
  0x2b   : > { %v429_v17 = vrot.slane %v428_v9, 4  ;;  %v466_v53 = vrot.slane %v464_v41, 4  ;;  %v469_v54 = vrot.slane %v467_v44, 5  ;;  %v450_v56 = vshrl.u32 %v4143_v45, 16  ;;  %v3775_v44 = vld [vmem:[%s4707_s1 + $0xa8] sm:$0xff]  }
  0x2c   : > { %3358 = vmatpush3.bf16.msra.mxu0 %v3758_v21  ;;  %v392_v7 = vsel %vm4029_vm2, %v387_v0, %v391_v46  ;;  %v3766_v21 = vld [vmem:[%s4707_s1 + $0x18] sm:$0xff]   ;;  %v4146_v46 = vld [vmem:[%s3994_s12 + $0xa8] sm:$0xff]  ;;  %v442_v60 = vor.u32 %v441_v51, %v438_v47  ;;  %v3768_v0 = vld [vmem:[%s4707_s1 + $0x60] sm:$0xff]   ;;  %v3086_v35 = vcombine.low %v4079_v37, %v4143_v45 }
  0x2d   : > { %3359 = vmatprep.subr.bf16.mxu0 %v3760_v58  ;;  %3398 = vmatpush3.bf16.msra.mxu1 %v3759_v38  ;;  %v2909_v12 = vcombine.high %v392_v7, %v420_v8  ;;  %v2908_v14 = vcombine.low %v392_v7, %v420_v8  ;;  %v434_v23 = vsel %vm4029_vm2, %v429_v17, %v433_v5  ;;  %v453_v58 = vshll.u32 %v4143_v45, 16  ;;  %v4193_v47 = vld [vmem:[%s3994_s12 + $0xc0] sm:$0xff]  ;;  %v316_v51 = vld [vmem:[%s3994_s12 + $0xd0] sm:$0x11] }
  0x2e   : > { %3399 = vmatprep.subr.bf16.mxu1 %v3761_v59  ;;  %v2911_v27 = vcombine.high %v406_v20, %v434_v23  ;;  %v2910_v28 = vcombine.low %v406_v20, %v434_v23  ;;  %v3085_v38 = vcombine.high %v4065_v25, %v4129_v26  ;;  %v459_v59 = vshll.u32 %v313_v49, 16 }
  0x2f   : > { %908 = vmatprep.mubr.bf16.mxu0 %v2909_v12  ;;  %v470_v61 = vor.u32 %v469_v54, %v466_v53  ;;  %v478_v62 = vshrl.u32 %v4146_v46, 16  ;;  %v481_v63 = vshll.u32 %v4146_v46, 16  ;;  %v452_v2 = vrot.slane %v450_v56, 4 }
  0x30   : > { %3360 = vmatpush3.bf16.msra.mxu0 %v3762_v6  ;;  %973 = vmatprep.mubr.bf16.mxu1 %v2911_v27  ;;  %v455_v3 = vrot.slane %v453_v58, 5  ;;  %v461_v4 = vrot.slane %v459_v59, 5  ;;  %v487_v5 = vshll.u32 %v315_v50, 16  ;;  %v443_v6 = vrot.slane %v442_v60, 4  ;;  %v3772_v27 = vld [vmem:[%s4707_s1 + $0x68] sm:$0xff]   ;;  %v4196_v50 = vld [vmem:[%s3994_s12 + $0xe0] sm:$0xff] }
  0x31   : > { %3400 = vmatpush3.bf16.msra.mxu1 %v3763_v10  ;;  %909 = vmatmul.mubr.bf16.gmra.mrb[4].mxu0 %v2908_v14  ;;  %v471_v7 = vrot.slane %v470_v61, 4  ;;  %v480_v8 = vrot.slane %v478_v62, 4  ;;  %v483_v9 = vrot.slane %v481_v63, 5  ;;  %v3087_v20 = vcombine.high %v4079_v37, %v4143_v45  ;;  %v4205_v59 = vld [vmem:[%s3994_s12 + $0xc8] sm:$0xff]  ;;  %v317_v63 = vld [vmem:[%s3994_s12 + $0xd8] sm:$0x11] }
  0x32   : > { %3361 = vmatprep.subr.bf16.mxu0 %v3764_v15  ;;  %3401 = vmatprep.subr.bf16.mxu1 %v3765_v18  ;;  %v456_v10 = vor.u32 %v455_v3, %v452_v2  ;;  %v489_v12 = vrot.slane %v487_v5, 5  ;;  %v448_v14 = vsel %vm4029_vm2, %v443_v6, %v447_v52  ;;  %v3771_v18 = vld [vmem:[%s4707_s1 + $0xa0] sm:$0xff]   ;;  %v318_v52 = vld [vmem:[%s3994_s12 + $0xf0] sm:$0x11]  ;;  %v492_v53 = vshrl.u32 %v4193_v47, 16  ;;  %v4208_v60 = vld [vmem:[%s3994_s12 + $0xe8] sm:$0xff] }
  0x33   : > { %974 = vmatmul.mubr.bf16.gmra.mrb[4].mxu1 %v2910_v28  ;;  %v476_v15 = vsel %vm4029_vm2, %v471_v7, %v475_v55  ;;  %v484_v17 = vor.u32 %v483_v9, %v480_v8  ;;  %v3084_v28 = vcombine.low %v4065_v25, %v4129_v26  ;;  %v495_v54 = vshll.u32 %v4193_v47, 16 }
  0x34   : > { %3362 = vmatpush3.bf16.msra.mxu0 %v3766_v21  ;;  %v2913_v21 = vcombine.high %v448_v14, %v476_v15  ;;  %v457_v23 = vrot.slane %v456_v10, 4  ;;  %v501_v55 = vshll.u32 %v316_v51, 16  ;;  %v520_v56 = vshrl.u32 %v4196_v50, 16 }
  0x35   : > { %3402 = vmatpush3.bf16.msra.mxu1 %v3767_v24  ;;  %3363 = vmatprep.subr.bf16.mxu0 %v3768_v0  ;;  %v2912_v24 = vcombine.low %v448_v14, %v476_v15  ;;  %v485_v31 = vrot.slane %v484_v17, 4  ;;  %v523_v58 = vshll.u32 %v4196_v50, 16  ;;  %v494_v61 = vrot.slane %v492_v53, 4  ;;  %v319_v0 = vld [vmem:[%s3994_s12 + $0xf8] sm:$0x11]  ;;  %v3776_v14 = vld [vmem:[%s4707_s1 + $0x70] sm:$0xff]  }
  0x36   : > { %3403 = vmatprep.subr.bf16.mxu1 %v3769_v1  ;;  %916 = vmatprep.mubr.bf16.mxu0 %v2913_v21  ;;  %v462_v39 = vsel %vm4029_vm2, %v457_v23, %v461_v4  ;;  %v529_v62 = vshll.u32 %v318_v52, 16  ;;  %v497_v1 = vrot.slane %v495_v54, 5  ;;  %v503_v2 = vrot.slane %v501_v55, 5  ;;  %v3777_v15 = vld [vmem:[%s4707_s1 + $0xf0] sm:$0xff]  }
  0x37   : > { %v490_v41 = vsel %vm4029_vm2, %v485_v31, %v489_v12  ;;  %v522_v3 = vrot.slane %v520_v56, 4  ;;  %v525_v4 = vrot.slane %v523_v58, 5  ;;  %v506_v6 = vshrl.u32 %v4205_v59, 16  ;;  %v3779_v52 = vld [vmem:[%s4707_s1 + $0xb0] sm:$0xff]   ;;  %v3780_v56 = vld [vmem:[%s4707_s1 + $0x78] sm:$0xff]  }
  0x38   : > { %3364 = vmatpush3.bf16.msra.mxu0 %v3770_v13  ;;  %v2915_v48 = vcombine.high %v462_v39, %v490_v41  ;;  %v2914_v49 = vcombine.low %v462_v39, %v490_v41  ;;  %v531_v5 = vrot.slane %v529_v62, 5  ;;  %v509_v7 = vshll.u32 %v4205_v59, 16  ;;  %v3781_v62 = vld [vmem:[%s4707_s1 + $0xf8] sm:$0xff]  }
  0x39   : > { %3404 = vmatpush3.bf16.msra.mxu1 %v3771_v18  ;;  %3365 = vmatprep.subr.bf16.mxu0 %v3772_v27  ;;  %v515_v8 = vshll.u32 %v317_v63, 16  ;;  %v498_v9 = vor.u32 %v497_v1, %v494_v61  ;;  %v526_v10 = vor.u32 %v525_v4, %v522_v3  ;;  %v534_v12 = vshrl.u32 %v4208_v60, 16  ;;  %v3782_v1 = vld [vmem:[%s4707_s1 + $0x38] sm:$0xff]  }
  0x3a   : > { %917 = vmatmul.mubr.bf16.gmra.mrb[8].mxu0 %v2912_v24  ;;  %3405 = vmatprep.subr.bf16.mxu1 %v3773_v34  ;;  %v537_v13 = vshll.u32 %v4208_v60, 16  ;;  %v508_v17 = vrot.slane %v506_v6, 4  ;;  %v511_v18 = vrot.slane %v509_v7, 5  ;;  %v543_v21 = vshll.u32 %v319_v0, 16  ;;  %v3783_v3 = vld [vmem:[%s4707_s1 + $0xb8] sm:$0xff]   ;;  %v3784_v7 = vld [vmem:[%s4707_s1 + $0x240] sm:$0xff]  }
  0x3b   : > { %981 = vmatprep.mubr.bf16.mxu1 %v2915_v48  ;;  %v499_v23 = vrot.slane %v498_v9, 4  ;;  %v527_v24 = vrot.slane %v526_v10, 4  ;;  %v536_v27 = vrot.slane %v534_v12, 4  ;;  %v517_v39 = vrot.slane %v515_v8, 5  ;;  %v3785_v8 = vld [vmem:[%s4707_s1 + $0x2c0] sm:$0xff]  }
  0x3c   : > { %3366 = vmatpush3.bf16.msra.mxu0 %v3774_v40  ;;  %982 = vmatmul.mubr.bf16.gmra.mrb[8].mxu1 %v2914_v49  ;;  %v539_v31 = vrot.slane %v537_v13, 5  ;;  %v512_v34 = vor.u32 %v511_v18, %v508_v17  ;;  %v3778_v40 = vld [vmem:[%s4707_s1 + $0x30] sm:$0xff]   ;;  %v2953_v41 = vcombine.high %v4003_v32, %v4006_v33  ;;  %v545_v51 = vrot.slane %v543_v21, 5  ;;  %v3786_v10 = vld [vmem:[%s4707_s1 + $0x200] sm:$0xff]   ;;  %v3788_v13 = vld [vmem:[%s4707_s1 + $0x248] sm:$0xff]  }
  0x3d   : > { %3406 = vmatpush3.bf16.msra.mxu1 %v3775_v44  ;;  %3367 = vmatprep.subr.bf16.mxu0 %v3776_v14  ;;  %v504_v44 = vsel %vm4029_vm2, %v499_v23, %v503_v2  ;;  %v532_v48 = vsel %vm4029_vm2, %v527_v24, %v531_v5  ;;  %v3088_v58 = vcombine.low %v4132_v30, %v4193_v47  ;;  %v3789_v17 = vld [vmem:[%s4707_s1 + $0x2c8] sm:$0xff]   ;;  %v3792_v21 = vld [vmem:[%s4707_s1 + $0x250] sm:$0xff]  }
  0x3e   : > { %3407 = vmatprep.subr.bf16.mxu1 %v3777_v15  ;;  %v540_v49 = vor.u32 %v539_v31, %v536_v27  ;;  %v2917_v53 = vcombine.high %v504_v44, %v532_v48  ;;  %v513_v54 = vrot.slane %v512_v34, 4  ;;  %v2916_v55 = vcombine.low %v504_v44, %v532_v48  ;;  %v3790_v15 = vld [vmem:[%s4707_s1 + $0x208] sm:$0xff]   ;;  %v3793_v24 = vld [vmem:[%s4707_s1 + $0x2d0] sm:$0xff]   ;;  %v3796_v31 = vld [vmem:[%s4707_s1 + $0x258] sm:$0xff]  }
  0x3f   : > { %v3090_v63 = vcombine.low %v4146_v46, %v4205_v59  ;;  %v2955_v6 = vcombine.high %v4015_v42, %v4018_v43  ;;  %v2952_v9 = vcombine.low %v4003_v32, %v4006_v33  ;;  %v2957_v12 = vcombine.high %v4062_v22, %v4065_v25  ;;  %v3787_v32 = vld [vmem:[%s4707_s1 + $0x280] sm:$0xff]   ;;  %v3794_v27 = vld [vmem:[%s4707_s1 + $0x210] sm:$0xff]   ;;  %v3797_v44 = vld [vmem:[%s4707_s1 + $0x2d8] sm:$0xff]  }
  0x40   : > { %3368 = vmatpush3.bf16.msra.mxu0 %v3778_v40  ;;  %v541_v61 = vrot.slane %v540_v49, 4  ;;  %924 = vmatprep.mubr.bf16.mxu0 %v2917_v53  ;;  %v518_v0 = vsel %vm4029_vm2, %v513_v54, %v517_v39  ;;  %v2954_v14 = vcombine.low %v4015_v42, %v4018_v43  ;;  %v2959_v18 = vcombine.high %v4076_v36, %v4079_v37  ;;  %v3791_v42 = vld [vmem:[%s4707_s1 + $0x288] sm:$0xff]   ;;  %v3795_v40 = vld [vmem:[%s4707_s1 + $0x290] sm:$0xff]   ;;  %v3799_v49 = vld [vmem:[%s4707_s1 + $0x298] sm:$0xff]  }
  0x41   : > { %3408 = vmatpush3.bf16.msra.mxu1 %v3779_v52  ;;  %3369 = vmatprep.subr.bf16.mxu0 %v3780_v56  ;;  %v2956_v23 = vcombine.low %v4062_v22, %v4065_v25  ;;  %v2961_v34 = vcombine.high %v4129_v26, %v4132_v30  ;;  %v2958_v39 = vcombine.low %v4076_v36, %v4079_v37  ;;  %v3801_v53 = vld [vmem:[%s4707_s1 + $0x2e0] sm:$0xff]   ;;  %v3823_v33 = vld [vmem:[%s4707_s1 + $0x388] sm:$0xff]   ;;  %v3824_v22 = vld [vmem:[%s4707_s1 + $0x350] sm:$0xff]  }
  0x42   : > { %v546_v2 = vsel %vm4029_vm2, %v541_v61, %v545_v51  ;;  %925 = vmatmul.mubr.bf16.gmra.mrb[12].mxu0 %v2916_v55  ;;  %3409 = vmatprep.subr.bf16.mxu1 %v3781_v62  ;;  %v2963_v48 = vcombine.high %v4143_v45, %v4146_v46  ;;  %v3800_v51 = vld [vmem:[%s4707_s1 + $0x260] sm:$0xff]   ;;  %v2960_v52 = vcombine.low %v4129_v26, %v4132_v30  ;;  %v3804_v55 = vld [vmem:[%s4707_s1 + $0x268] sm:$0xff]   ;;  %v3828_v43 = vld [vmem:[%s4707_s1 + $0x358] sm:$0xff]  }
  0x43   : > { %v2919_v4 = vcombine.high %v518_v0, %v546_v2  ;;  %v2918_v5 = vcombine.low %v518_v0, %v546_v2  ;;  %1302 = vmatprep.mubr.bf16.mxu0 %v2953_v41  ;;  %v3798_v41 = vld [vmem:[%s4707_s1 + $0x218] sm:$0xff]   ;;  %v3802_v54 = vld [vmem:[%s4707_s1 + $0x220] sm:$0xff]   ;;  %v2965_v56 = vcombine.high %v4193_v47, %v4196_v50  ;;  %v2962_v61 = vcombine.low %v4143_v45, %v4146_v46  ;;  %v3806_v0 = vld [vmem:[%s4707_s1 + $0x228] sm:$0xff]  }
  0x44   : > { %3370 = vmatpush3.bf16.msra.mxu0 %v3782_v1  ;;  %v3803_v62 = vld [vmem:[%s4707_s1 + $0x2a0] sm:$0xff]   ;;  %v3805_v1 = vld [vmem:[%s4707_s1 + $0x2e8] sm:$0xff]   ;;  %v2967_v2 = vcombine.high %v4205_v59, %v4208_v60  ;;  %v3089_v36 = vcombine.high %v4132_v30, %v4193_v47  ;;  %v3091_v25 = vcombine.high %v4146_v46, %v4205_v59  ;;  %v3831_v26 = vld [vmem:[%s4707_s1 + $0x398] sm:$0xff]  }
  0x45   : > { %3410 = vmatpush3.bf16.msra.mxu1 %v3783_v3  ;;  %989 = vmatprep.mubr.bf16.mxu1 %v2919_v4  ;;  %v3807_v3 = vld [vmem:[%s4707_s1 + $0x2a8] sm:$0xff]   ;;  %v3808_v4 = vld [vmem:[%s4707_s1 + $0x270] sm:$0xff]   ;;  %v3835_v37 = vld [vmem:[%s4707_s1 + $0x3a0] sm:$0xff]  }
  0x46   : > { %3435 = vmatprep.subr.bf16.mxu0 %v3784_v7  ;;  %990 = vmatmul.mubr.bf16.gmra.mrb[12].mxu1 %v2918_v5  ;;  %v2964_v5 = vcombine.low %v4193_v47, %v4196_v50  ;;  %v3810_v7 = vld [vmem:[%s4707_s1 + $0x230] sm:$0xff]   ;;  %v3838_v45 = vld [vmem:[%s4707_s1 + $0x328] sm:$0xff]   ;;  %v3844_v46 = vld [vmem:[%s4707_s1 + $0x378] sm:$0xff]  }
  0x47   : > { %3475 = vmatprep.subr.bf16.mxu1 %v3785_v8  ;;  %1367 = vmatprep.mubr.bf16.mxu1 %v2955_v6  ;;  %v3809_v6 = vld [vmem:[%s4707_s1 + $0x2f0] sm:$0xff]   ;;  %v3812_v8 = vld [vmem:[%s4707_s1 + $0x278] sm:$0xff]  }
  0x4a   : > { %1303 = vmatmul.mubr.bf16.vlgmr.msra.gmra.mrb[16].mxu0 %v2952_v9  ;;  %v2966_v9 = vcombine.low %v4205_v59, %v4208_v60 }
  0x4b   : > { %3436 = vmatpush3.bf16.msra.mxu0 %v3786_v10  ;;  %1310 = vmatprep.mubr.bf16.mxu0 %v2957_v12  ;;  %v3811_v10 = vld [vmem:[%s4707_s1 + $0x2b0] sm:$0xff]   ;;  %v3814_v12 = vld [vmem:[%s4707_s1 + $0x238] sm:$0xff]  }
  0x4c   : > { %3437 = vmatprep.subr.bf16.mxu0 %v3788_v13  ;;  %v3813_v13 = vld [vmem:[%s4707_s1 + $0x2f8] sm:$0xff]  }
  0x4e   : > { %1368 = vmatmul.mubr.bf16.vlgmr.msra.gmra.mrb[16].mxu1 %v2954_v14  ;;  %v3815_v14 = vld [vmem:[%s4707_s1 + $0x2b8] sm:$0xff]  }
  0x4f   : > { %3476 = vmatpush3.bf16.msra.mxu1 %v3787_v32  ;;  %3438 = vmatpush3.bf16.msra.mxu0 %v3790_v15  ;;  %v3816_v32 = vld [vmem:[%s4707_s1 + $0x340] sm:$0xff]  }
  0x50   : > { %3477 = vmatprep.subr.bf16.mxu1 %v3789_v17  ;;  %1375 = vmatprep.mubr.bf16.mxu1 %v2959_v18  ;;  %v3817_v15 = vld [vmem:[%s4707_s1 + $0x3c0] sm:$0xff]  }
  0x51   : > { %3439 = vmatprep.subr.bf16.mxu0 %v3792_v21  ;;  %v3818_v17 = vld [vmem:[%s4707_s1 + $0x300] sm:$0xff]   ;;  %v3826_v21 = vld [vmem:[%s4707_s1 + $0x310] sm:$0xff]  }
  0x52   : > { %1311 = vmatmul.mubr.bf16.gmra.mrb[20].mxu0 %v2956_v23  ;;  %v3819_v18 = vld [vmem:[%s4707_s1 + $0x380] sm:$0xff]  }
  0x53   : > { %3478 = vmatpush3.bf16.msra.mxu1 %v3791_v42  ;;  %3440 = vmatpush3.bf16.msra.mxu0 %v3794_v27  ;;  %v3822_v42 = vld [vmem:[%s4707_s1 + $0x308] sm:$0xff]   ;;  %v3833_v23 = vld [vmem:[%s4707_s1 + $0x3e0] sm:$0xff]  }
  0x54   : > { %3479 = vmatprep.subr.bf16.mxu1 %v3793_v24  ;;  %3441 = vmatprep.subr.bf16.mxu0 %v3796_v31  ;;  %v3834_v24 = vld [vmem:[%s4707_s1 + $0x320] sm:$0xff]   ;;  %v3836_v27 = vld [vmem:[%s4707_s1 + $0x368] sm:$0xff]  }
  0x55   : > { %1318 = vmatprep.mubr.bf16.mxu0 %v2961_v34  ;;  %v3015_v34 = vld [vmem:[%s3994_s12 + $0x108] sm:$0xff] }
  0x56   : > { %1376 = vmatmul.mubr.bf16.gmra.mrb[20].mxu1 %v2958_v39  ;;  %v3095_v30 = vcombine.high %v4208_v60, %v3015_v34  ;;  %v2138_v59 = vshll.u32 %v3015_v34, 16 }
  0x57   : > { %3480 = vmatpush3.bf16.msra.mxu1 %v3795_v40  ;;  %3442 = vmatpush3.bf16.msra.mxu0 %v3798_v41  ;;  %v3837_v40 = vld [vmem:[%s4707_s1 + $0x3e8] sm:$0xff]   ;;  %v3840_v41 = vld [vmem:[%s4707_s1 + $0x370] sm:$0xff]  }
  0x58   : > { %3481 = vmatprep.subr.bf16.mxu1 %v3797_v44  ;;  %1383 = vmatprep.mubr.bf16.mxu1 %v2963_v48 }
  0x59   : > { %3443 = vmatprep.subr.bf16.mxu0 %v3800_v51 }
  0x5a   : > { %1319 = vmatmul.mubr.bf16.gmra.mrb[24].mxu0 %v2960_v52  ;;  %v3842_v52 = vld [vmem:[%s4707_s1 + $0x330] sm:$0xff]  }
  0x5b   : > { %3482 = vmatpush3.bf16.msra.mxu1 %v3799_v49  ;;  %3444 = vmatpush3.bf16.msra.mxu0 %v3802_v54  ;;  %v3841_v49 = vld [vmem:[%s4707_s1 + $0x3f0] sm:$0xff]   ;;  %v3094_v54 = vcombine.low %v4208_v60, %v3015_v34  ;;  %v3132_v60 = vld [vmem:[%s3994_s12 + $0x40] sm:$0xff] }
  0x5c   : > { %3483 = vmatprep.subr.bf16.mxu1 %v3801_v53  ;;  %3445 = vmatprep.subr.bf16.mxu0 %v3804_v55  ;;  %v2135_v53 = vshrl.u32 %v3015_v34, 16  ;;  %v3845_v55 = vld [vmem:[%s4707_s1 + $0x3f8] sm:$0xff]  }
  0x5d   : > { %1326 = vmatprep.mubr.bf16.mxu0 %v2965_v56 }
  0x5e   : > { %1384 = vmatmul.mubr.bf16.gmra.mrb[24].mxu1 %v2962_v61  ;;  %v4510_v56 = vrot.slane %v2135_v53, 4  ;;  %v3846_v61 = vld [vmem:[%s4707_s1 + $0x338] sm:$0xff]  }
  0x5f   : > { %3484 = vmatpush3.bf16.msra.mxu1 %v3803_v62  ;;  %3446 = vmatpush3.bf16.msra.mxu0 %v3806_v0  ;;  %v3128_v62 = vld [vmem:[%s3994_s12 + $0x20] sm:$0xff]  ;;  %v3130_v0 = vld [vmem:[%s3994_s12 + $0x30] sm:$0x11] }
  0x60   : > { %3485 = vmatprep.subr.bf16.mxu1 %v3805_v1  ;;  %1391 = vmatprep.mubr.bf16.mxu1 %v2967_v2  ;;  %v4519_v2 = vrot.slane %v2138_v59, 5  ;;  %v3139_v59 = vld [vmem:[%s3994_s12 + $0x78] sm:$0x11] }
  0x61   : > { %3447 = vmatprep.subr.bf16.mxu0 %v3808_v4  ;;  %v1925_v4 = vshrl.u32 %v3128_v62, 16 }
  0x62   : > { %1327 = vmatmul.mubr.bf16.gmra.mrb[28].mxu0 %v2964_v5  ;;  %v1928_v5 = vshll.u32 %v3128_v62, 16 }
  0x63   : > { %3486 = vmatpush3.bf16.msra.mxu1 %v3807_v3  ;;  %3448 = vmatpush3.bf16.msra.mxu0 %v3810_v7  ;;  %v3134_v3 = vld [vmem:[%s3994_s12 + $0x50] sm:$0x11]  ;;  %v1953_v7 = vshrl.u32 %v3132_v60, 16 }
  0x64   : > { %3487 = vmatprep.subr.bf16.mxu1 %v3809_v6  ;;  %3449 = vmatprep.subr.bf16.mxu0 %v3812_v8  ;;  %v1934_v6 = vshll.u32 %v3130_v0, 16  ;;  %v1956_v8 = vshll.u32 %v3132_v60, 16 }
  0x65   : > { %1786 = vmatprep.mubr.bf16.mxu0 %v3081_v11  ;;  %v3820_v11 = vld [vmem:[%s4707_s1 + $0x348] sm:$0xff]  }
  0x66   : > { %1392 = vmatmul.mubr.bf16.gmra.mrb[28].mxu1 %v2966_v9  ;;  %v1962_v9 = vshll.u32 %v3134_v3, 16 }
  0x67   : > { %3488 = vmatpush3.bf16.msra.mxu1 %v3811_v10  ;;  %3450 = vmatpush3.bf16.msra.mxu0 %v3814_v12  ;;  %v3129_v10 = vld [vmem:[%s3994_s12 + $0x28] sm:$0xff]  ;;  %v3131_v12 = vld [vmem:[%s3994_s12 + $0x38] sm:$0x11] }
  0x68   : > { %3489 = vmatprep.subr.bf16.mxu1 %v3813_v13  ;;  %1851 = vmatprep.mubr.bf16.mxu1 %v3083_v19  ;;  %v3821_v19 = vld [vmem:[%s4707_s1 + $0x3c8] sm:$0xff]   ;;  %v1927_v13 = vrot.slane %v1925_v4, 4 }
  0x69   : > { %3515 = vmatprep.subr.bf16.mxu0 %v3816_v32  ;;  %v1936_v32 = vrot.slane %v1934_v6, 5  ;;  %v3141_v6 = vld [vmem:[%s3994_s12 + $0x88] sm:$0xff] }
  0x6a   : > { %1787 = vmatmul.mubr.bf16.vlgmr.msra.gmra.mrb[32].mxu0 %v3080_v29  ;;  %v3825_v29 = vld [vmem:[%s4707_s1 + $0x3d0] sm:$0xff]  }
  0x6b   : > { %3490 = vmatpush3.bf16.msra.mxu1 %v3815_v14  ;;  %3516 = vmatpush3.bf16.msra.mxu0 %v3818_v17  ;;  %v1930_v14 = vrot.slane %v1928_v5, 5  ;;  %v3135_v17 = vld [vmem:[%s3994_s12 + $0x58] sm:$0x11] }
  0x6c   : > { %3555 = vmatprep.subr.bf16.mxu1 %v3817_v15  ;;  %3517 = vmatprep.subr.bf16.mxu0 %v3820_v11  ;;  %v3133_v15 = vld [vmem:[%s3994_s12 + $0x48] sm:$0xff]  ;;  %v3847_v11 = vld [vmem:[%s4707_s1 + $0x3b8] sm:$0xff]  }
  0x6d   : > { %1794 = vmatprep.mubr.bf16.mxu0 %v3085_v38  ;;  %v3830_v38 = vld [vmem:[%s4707_s1 + $0x318] sm:$0xff]  }
  0x6e   : > { %1852 = vmatmul.mubr.bf16.vlgmr.msra.gmra.mrb[32].mxu1 %v3082_v16  ;;  %v3827_v16 = vld [vmem:[%s4707_s1 + $0x390] sm:$0xff]  }
  0x6f   : > { %3556 = vmatpush3.bf16.msra.mxu1 %v3819_v18  ;;  %3518 = vmatpush3.bf16.msra.mxu0 %v3822_v42  ;;  %v1955_v18 = vrot.slane %v1953_v7, 4  ;;  %v1958_v42 = vrot.slane %v1956_v8, 5  ;;  %v3143_v7 = vld [vmem:[%s3994_s12 + $0x98] sm:$0x11] }
  0x70   : > { %3557 = vmatprep.subr.bf16.mxu1 %v3821_v19  ;;  %1859 = vmatprep.mubr.bf16.mxu1 %v3087_v20  ;;  %v3829_v20 = vld [vmem:[%s4707_s1 + $0x3d8] sm:$0xff]   ;;  %v1964_v19 = vrot.slane %v1962_v9, 5  ;;  %v2004_v9 = vshll.u32 %v3139_v59, 16  ;;  %v3149_v59 = vld [vmem:[%s3994_s12 + $0xc8] sm:$0xff] }
  0x71   : > { %3519 = vmatprep.subr.bf16.mxu0 %v3824_v22  ;;  %v1931_v22 = vor.u32 %v1930_v14, %v1927_v13 }
  0x72   : > { %1795 = vmatmul.mubr.bf16.gmra.mrb[36].mxu0 %v3084_v28  ;;  %v3832_v28 = vld [vmem:[%s4707_s1 + $0x360] sm:$0xff]  }
  0x73   : > { %3558 = vmatpush3.bf16.msra.mxu1 %v3823_v33  ;;  %3520 = vmatpush3.bf16.msra.mxu0 %v3826_v21  ;;  %v1939_v33 = vshrl.u32 %v3129_v10, 16  ;;  %v1948_v21 = vshll.u32 %v3131_v12, 16 }
  0x74   : > { %3559 = vmatprep.subr.bf16.mxu1 %v3825_v29  ;;  %3521 = vmatprep.subr.bf16.mxu0 %v3828_v43  ;;  %v1942_v29 = vshll.u32 %v3129_v10, 16  ;;  %v1967_v43 = vshrl.u32 %v3133_v15, 16 }
  0x75   : > { %1802 = vmatprep.mubr.bf16.mxu0 %v3089_v36  ;;  %v3136_v36 = vld [vmem:[%s3994_s12 + $0x60] sm:$0xff] }
  0x76   : > { %1860 = vmatmul.mubr.bf16.gmra.mrb[36].mxu1 %v3086_v35  ;;  %v3014_v35 = vld [vmem:[%s3994_s12 + $0x100] sm:$0xff]  ;;  %v1981_v34 = vshrl.u32 %v3136_v36, 16 }
  0x77   : > { %3560 = vmatpush3.bf16.msra.mxu1 %v3827_v16  ;;  %3522 = vmatpush3.bf16.msra.mxu0 %v3830_v38  ;;  %v3093_v31 = vcombine.high %v4196_v50, %v3014_v35  ;;  %v2121_v39 = vshrl.u32 %v3014_v35, 16  ;;  %v2124_v47 = vshll.u32 %v3014_v35, 16  ;;  %v3092_v48 = vcombine.low %v4196_v50, %v3014_v35 }
  0x78   : > { %3561 = vmatprep.subr.bf16.mxu1 %v3829_v20  ;;  %1867 = vmatprep.mubr.bf16.mxu1 %v3091_v25  ;;  %v1959_v16 = vor.u32 %v1958_v42, %v1955_v18  ;;  %v1941_v38 = vrot.slane %v1939_v33, 4  ;;  %v1970_v20 = vshll.u32 %v3133_v15, 16  ;;  %v1976_v25 = vshll.u32 %v3135_v17, 16  ;;  %v3146_v42 = vld [vmem:[%s3994_s12 + $0xb0] sm:$0x11] }
  0x79   : > { %3523 = vmatprep.subr.bf16.mxu0 %v3832_v28  ;;  %v2123_v44 = vrot.slane %v2121_v39, 4  ;;  %v2126_v51 = vrot.slane %v2124_v47, 5  ;;  %v1932_v28 = vrot.slane %v1931_v22, 4  ;;  %v2006_v18 = vrot.slane %v2004_v9, 5 }
  0x7a   : > { %1803 = vmatmul.mubr.bf16.gmra.mrb[40].mxu0 %v3088_v58  ;;  %v3839_v58 = vld [vmem:[%s4707_s1 + $0x3a8] sm:$0xff]   ;;  %v1972_v35 = vrot.slane %v1970_v20, 5  ;;  %v2023_v33 = vshrl.u32 %v3141_v6, 16  ;;  %v2026_v22 = vshll.u32 %v3141_v6, 16 }
  0x7b   : > { %3562 = vmatpush3.bf16.msra.mxu1 %v3831_v26  ;;  %3524 = vmatpush3.bf16.msra.mxu0 %v3834_v24  ;;  %v2127_v50 = vor.u32 %v2126_v51, %v2123_v44  ;;  %v3138_v26 = vld [vmem:[%s3994_s12 + $0x70] sm:$0x11]  ;;  %v1950_v24 = vrot.slane %v1948_v21, 5  ;;  %v1937_v39 = vsel %vm4029_vm2, %v1932_v28, %v1936_v32  ;;  %v3137_v51 = vld [vmem:[%s3994_s12 + $0x68] sm:$0xff]  ;;  %v3144_v32 = vld [vmem:[%s3994_s12 + $0xa0] sm:$0xff]  ;;  %v2046_v28 = vshll.u32 %v3146_v42, 16 }
  0x7c   : > { %3563 = vmatprep.subr.bf16.mxu1 %v3833_v23  ;;  %3525 = vmatprep.subr.bf16.mxu0 %v3836_v27  ;;  %v1944_v23 = vrot.slane %v1942_v29, 5  ;;  %v1969_v27 = vrot.slane %v1967_v43, 4  ;;  %v1990_v47 = vshll.u32 %v3138_v26, 16  ;;  %v3142_v44 = vld [vmem:[%s3994_s12 + $0x90] sm:$0x11]  ;;  %v1995_v3 = vshrl.u32 %v3137_v51, 16 }
  0x7d   : > { %1810 = vmatprep.mubr.bf16.mxu0 %v3093_v31  ;;  %v4517_v1 = vrot.slane %v2127_v50, 4  ;;  %v1978_v31 = vrot.slane %v1976_v25, 5  ;;  %v2018_v60 = vshll.u32 %v3142_v44, 16  ;;  %v1998_v8 = vshll.u32 %v3137_v51, 16  ;;  %v3148_v26 = vld [vmem:[%s3994_s12 + $0xc0] sm:$0xff] }
  0x7e   : > { %1868 = vmatmul.mubr.bf16.gmra.mrb[40].mxu1 %v3090_v63  ;;  %v3843_v63 = vld [vmem:[%s4707_s1 + $0x3b0] sm:$0xff]   ;;  %v1997_v17 = vrot.slane %v1995_v3, 4  ;;  %v2032_v29 = vshll.u32 %v3143_v7, 16  ;;  %v2028_v20 = vrot.slane %v2026_v22, 5  ;;  %v2068_v44 = vshll.u32 %v3148_v26, 16 }
  0x7f   : > { %3564 = vmatpush3.bf16.msra.mxu1 %v3835_v37  ;;  %3526 = vmatpush3.bf16.msra.mxu0 %v3838_v45  ;;  %v3140_v37 = vld [vmem:[%s3994_s12 + $0x80] sm:$0xff]  ;;  %v1960_v45 = vrot.slane %v1959_v16, 4  ;;  %v2020_v14 = vrot.slane %v2018_v60, 5  ;;  %v2040_v16 = vshll.u32 %v3144_v32, 16  ;;  %v3154_v7 = vld [vmem:[%s3994_s12 + $0xf0] sm:$0x11] }
  0x80   : > { %3565 = vmatprep.subr.bf16.mxu1 %v3837_v40  ;;  %1875 = vmatprep.mubr.bf16.mxu1 %v3095_v30  ;;  %v1945_v40 = vor.u32 %v1944_v23, %v1941_v38  ;;  %v1984_v30 = vshll.u32 %v3136_v36, 16  ;;  %v2037_v36 = vshrl.u32 %v3144_v32, 16  ;;  %v2025_v38 = vrot.slane %v2023_v33, 4  ;;  %v3152_v60 = vld [vmem:[%s3994_s12 + $0xe0] sm:$0xff] }
  0x81   : > { %3527 = vmatprep.subr.bf16.mxu0 %v3840_v41  ;;  %v1973_v41 = vor.u32 %v1972_v35, %v1969_v27  ;;  %v2034_v25 = vrot.slane %v2032_v29, 5  ;;  %v3150_v27 = vld [vmem:[%s3994_s12 + $0xd0] sm:$0x11]  ;;  %v3145_v35 = vld [vmem:[%s3994_s12 + $0xa8] sm:$0xff]  ;;  %v2093_v32 = vshrl.u32 %v3152_v60, 16  ;;  %v2102_v33 = vshll.u32 %v3154_v7, 16 }
  0x82   : > { %1811 = vmatmul.mubr.bf16.gmra.mrb[44].mxu0 %v3092_v48  ;;  %v1983_v48 = vrot.slane %v1981_v34, 4  ;;  %v1986_v50 = vrot.slane %v1984_v30, 5  ;;  %v2029_v34 = vor.u32 %v2028_v20, %v2025_v38  ;;  %v3147_v30 = vld [vmem:[%s3994_s12 + $0xb8] sm:$0x11]  ;;  %v2051_v51 = vshrl.u32 %v3145_v35, 16 }
  0x83   : > { %3566 = vmatpush3.bf16.msra.mxu1 %v3839_v58  ;;  %3528 = vmatpush3.bf16.msra.mxu0 %v3842_v52  ;;  %v1965_v58 = vsel %vm4029_vm2, %v1960_v45, %v1964_v19  ;;  %v2042_v45 = vrot.slane %v2040_v16, 5  ;;  %v2095_v29 = vrot.slane %v2093_v32, 4  ;;  %v2645_v7 = vld [vmem:[%s4709_s3 + $0x38] sm:$0xff] }
  0x84   : > { %3567 = vmatprep.subr.bf16.mxu1 %v3841_v49  ;;  %3529 = vmatprep.subr.bf16.mxu0 %v3844_v46  ;;  %v2009_v49 = vshrl.u32 %v3140_v37, 16  ;;  %v3224_v52 = vcombine.low %v1937_v39, %v1965_v58  ;;  %v3225_v53 = vcombine.high %v1937_v39, %v1965_v58  ;;  %v1946_v46 = vrot.slane %v1945_v40, 4 }
  0x85   : > { %v1987_v0 = vor.u32 %v1986_v50, %v1983_v48  ;;  %v2048_v40 = vrot.slane %v2046_v28, 5  ;;  %v2030_v48 = vrot.slane %v2029_v34, 4  ;;  %v2070_v50 = vrot.slane %v2068_v44, 5 }
  0x86   : > { %1876 = vmatmul.mubr.bf16.gmra.mrb[44].mxu1 %v3094_v54  ;;  %v1992_v54 = vrot.slane %v1990_v47, 5  ;;  %2501 = vmatprep.mubr.bf16.mxu0 %v3225_v53  ;;  %v1951_v62 = vsel %vm4029_vm2, %v1946_v46, %v1950_v24 }
  0x87   : > { %3568 = vmatpush3.bf16.msra.mxu1 %v3843_v63  ;;  %3530 = vmatpush3.bf16.msra.mxu0 %v3846_v61  ;;  %v1974_v63 = vrot.slane %v1973_v41, 4  ;;  %v2012_v61 = vshll.u32 %v3140_v37, 16  ;;  %v1988_v13 = vrot.slane %v1987_v0, 4  ;;  %v2039_v37 = vrot.slane %v2037_v36, 4 }
  0x88   : > { %3569 = vmatprep.subr.bf16.mxu1 %v3845_v55  ;;  %v2011_v55 = vrot.slane %v2009_v49, 4  ;;  %v2065_v41 = vshrl.u32 %v3148_v26, 16  ;;  %v2074_v49 = vshll.u32 %v3150_v27, 16  ;;  %v2141_v36 = vor.u32 %v4519_v2, %v4510_v56  ;;  %v3159_v26 = vld [vmem:[%s3994_s12 + $0x118] sm:$0x11] }
  0x89   : > { %v1979_v4 = vsel %vm4029_vm2, %v1974_v63, %v1978_v31  ;;  %v2014_v5 = vrot.slane %v2012_v61, 5  ;;  %v1993_v19 = vsel %vm4029_vm2, %v1988_v13, %v1992_v54  ;;  %v2043_v58 = vor.u32 %v2042_v45, %v2039_v37  ;;  %v3151_v61 = vld [vmem:[%s3994_s12 + $0xd8] sm:$0x11] }
  0x8a   : > { %2502 = vmatmul.mubr.bf16.vlgmr.msra.gmra.mrb[48].mxu0 %v3224_v52  ;;  %v3226_v10 = vcombine.low %v1951_v62, %v1979_v4  ;;  %v3227_v12 = vcombine.high %v1951_v62, %v1979_v4  ;;  %v2054_v52 = vshll.u32 %v3145_v35, 16  ;;  %v2067_v46 = vrot.slane %v2065_v41, 4 }
  0x8b   : > { %3570 = vmatpush3.bf16.msra.mxu1 %v3847_v11  ;;  %v2015_v15 = vor.u32 %v2014_v5, %v2011_v55  ;;  %v2000_v11 = vrot.slane %v1998_v8, 5  ;;  %v2044_v53 = vrot.slane %v2043_v58, 4  ;;  %v2060_v63 = vshll.u32 %v3147_v30, 16 }
  0x8c   : > { %2566 = vmatprep.mubr.bf16.mxu1 %v3227_v12  ;;  %v2035_v54 = vsel %vm4029_vm2, %v2030_v48, %v2034_v25  ;;  %v2076_v55 = vrot.slane %v2074_v49, 5  ;;  %v2053_v62 = vrot.slane %v2051_v51, 4  ;;  %v2056_v0 = vrot.slane %v2054_v52, 5 }
  0x8d   : > { %v2016_v21 = vrot.slane %v2015_v15, 4  ;;  %v2001_v43 = vor.u32 %v2000_v11, %v1997_v17  ;;  %v2049_v5 = vsel %vm4029_vm2, %v2044_v53, %v2048_v40  ;;  %v2071_v6 = vor.u32 %v2070_v50, %v2067_v46  ;;  %v3153_v17 = vld [vmem:[%s3994_s12 + $0xe8] sm:$0xff] }
  0x8e   : > { %2567 = vmatmul.mubr.bf16.vlgmr.msra.gmra.mrb[48].mxu1 %v3226_v10  ;;  %v2057_v8 = vor.u32 %v2056_v0, %v2053_v62  ;;  %v2062_v9 = vrot.slane %v2060_v63, 5  ;;  %v2079_v10 = vshrl.u32 %v3149_v59, 16  ;;  %v2082_v12 = vshll.u32 %v3149_v59, 16  ;;  %v2641_v0 = vld [vmem:[%s4709_s3 + $0x18] sm:$0xff] }
  0x8f   : > { %v2021_v23 = vsel %vm4029_vm2, %v2016_v21, %v2020_v14  ;;  %v2002_v24 = vrot.slane %v2001_v43, 4  ;;  %v2072_v13 = vrot.slane %v2071_v6, 4  ;;  %v2088_v14 = vshll.u32 %v3151_v61, 16  ;;  %v3155_v43 = vld [vmem:[%s3994_s12 + $0xf8] sm:$0x11]  ;;  %v2639_v61 = vld [vmem:[%s4709_s3 + $0x8] sm:$0xff] }
  0x90   : > { %v3229_v31 = vcombine.high %v1993_v19, %v2021_v23  ;;  %v3228_v39 = vcombine.low %v1993_v19, %v2021_v23  ;;  %v2096_v15 = vshll.u32 %v3152_v60, 16  ;;  %v2058_v11 = vrot.slane %v2057_v8, 4  ;;  %v3158_v19 = vld [vmem:[%s3994_s12 + $0x110] sm:$0x11]  ;;  %v2642_v60 = vld [vmem:[%s4709_s3 + $0x20] sm:$0xff] }
  0x91   : > { %v2007_v47 = vsel %vm4029_vm2, %v2002_v24, %v2006_v18  ;;  %v2081_v18 = vrot.slane %v2079_v10, 4  ;;  %v2084_v42 = vrot.slane %v2082_v12, 5  ;;  %v2077_v22 = vsel %vm4029_vm2, %v2072_v13, %v2076_v55  ;;  %v2644_v6 = vld [vmem:[%s4709_s3 + $0x30] sm:$0xff]  ;;  %v2647_v10 = vld [vmem:[%s4709_s3 + $0x48] sm:$0xff] }
  0x92   : > { %2509 = vmatprep.mubr.bf16.mxu0 %v3229_v31  ;;  %v3231_v3 = vcombine.high %v2007_v47, %v2035_v54  ;;  %v3230_v4 = vcombine.low %v2007_v47, %v2035_v54  ;;  %v2098_v21 = vrot.slane %v2096_v15, 5  ;;  %v3233_v16 = vcombine.high %v2049_v5, %v2077_v22 }
  0x93   : > { %2510 = vmatmul.mubr.bf16.gmra.mrb[52].mxu0 %v3228_v39  ;;  %v2085_v38 = vor.u32 %v2084_v42, %v2081_v18  ;;  %v2090_v20 = vrot.slane %v2088_v14, 5  ;;  %v3232_v25 = vcombine.low %v2049_v5, %v2077_v22  ;;  %v2104_v23 = vrot.slane %v2102_v33, 5  ;;  %v2649_v18 = vld [vmem:[%s4709_s3 + $0x58] sm:$0xff] }
  0x94   : > { %2574 = vmatprep.mubr.bf16.mxu1 %v3231_v3  ;;  %v2099_v28 = vor.u32 %v2098_v21, %v2095_v29  ;;  %v2130_v24 = vshll.u32 %v3158_v19, 16  ;;  %v2107_v27 = vshrl.u32 %v3153_v17, 16  ;;  %2517 = vmatprep.mubr.bf16.mxu0 %v3233_v16  ;;  %v2063_v37 = vsel %vm4029_vm2, %v2058_v11, %v2062_v9  ;;  %v2646_v9 = vld [vmem:[%s4709_s3 + $0x40] sm:$0xff]  ;;  %v2648_v11 = vld [vmem:[%s4709_s3 + $0x50] sm:$0xff]  ;;  %v2651_v16 = vld [vmem:[%s4709_s3 + $0x68] sm:$0xff] }
  0x95   : > { %v2086_v45 = vrot.slane %v2085_v38, 4  ;;  %v2110_v35 = vshll.u32 %v3153_v17, 16  ;;  %v2116_v31 = vshll.u32 %v3155_v43, 16  ;;  %v2144_v2 = vshll.u32 %v3159_v26, 16 }
  0x96   : > { %2575 = vmatmul.mubr.bf16.gmra.mrb[52].mxu1 %v3230_v4  ;;  %v2100_v34 = vrot.slane %v2099_v28, 4  ;;  %v2132_v39 = vrot.slane %v2130_v24, 5  ;;  %v2109_v56 = vrot.slane %v2107_v27, 4  ;;  %v2142_v47 = vrot.slane %v2141_v36, 4  ;;  %v2643_v4 = vld [vmem:[%s4709_s3 + $0x28] sm:$0xff]  ;;  %v2650_v36 = vld [vmem:[%s4709_s3 + $0x60] sm:$0xff] }
  0x97   : > { %v2091_v40 = vsel %vm4029_vm2, %v2086_v45, %v2090_v20  ;;  %v2112_v30 = vrot.slane %v2110_v35, 5  ;;  %v2118_v52 = vrot.slane %v2116_v31, 5  ;;  %v2146_v53 = vrot.slane %v2144_v2, 5  ;;  %v2652_v28 = vld [vmem:[%s4709_s3 + $0x70] sm:$0xff] }
  0x98   : > { %v3235_v58 = vcombine.high %v2063_v37, %v2091_v40  ;;  %v3234_v41 = vcombine.low %v2063_v37, %v2091_v40  ;;  %v2105_v44 = vsel %vm4029_vm2, %v2100_v34, %v2104_v23  ;;  %v2133_v48 = vsel %vm4029_vm2, %v4517_v1, %v2132_v39  ;;  %v2638_v1 = vld [vmem:[%s4709_s3] sm:$0xff]  ;;  %v2653_v23 = vld [vmem:[%s4709_s3 + $0x78] sm:$0xff] }
  0x99   : > { %v3237_v49 = vcombine.high %v2105_v44, %v2133_v48  ;;  %v2113_v51 = vor.u32 %v2112_v30, %v2109_v56  ;;  %v3236_v46 = vcombine.low %v2105_v44, %v2133_v48  ;;  %v2147_v59 = vsel %vm4029_vm2, %v2142_v47, %v2146_v53 }
  0x9a   : > { %2582 = vmatprep.mubr.bf16.mxu1 %v3235_v58  ;;  %v3663_v62 = vpack.c.bf16 %v2639_v61, %v2638_v1  ;;  %v3667_v3 = vpack.c.bf16 %v2641_v0, %v2640_v57  ;;  %v3671_v5 = vpack.c.bf16 %v2643_v4, %v2642_v60  ;;  %v3675_v8 = vpack.c.bf16 %v2645_v7, %v2644_v6 }
  0x9b   : > { %2518 = vmatmul.mubr.bf16.gmra.mrb[56].mxu0 %v3232_v25  ;;  %v2114_v50 = vrot.slane %v2113_v51, 4  ;;  %v3679_v12 = vpack.c.bf16 %v2647_v10, %v2646_v9  ;;  %v3683_v33 = vpack.c.bf16 %v2649_v18, %v2648_v11  ;;  %v3687_v25 = vpack.c.bf16 %v2651_v16, %v2650_v36 }
  0x9c   : > { %2525 = vmatprep.mubr.bf16.mxu0 %v3237_v49  ;;  %3664 = vmatprep.subr.bf16.mxu0 %v3663_v62  ;;  %v3691_v24 = vpack.c.bf16 %v2653_v23, %v2652_v28 }
  0x9d   : > { %v2119_v63 = vsel %vm4029_vm2, %v2114_v50, %v2118_v52  ;;  %3695 = vmatprep.subr.bf16.mxu1 %v3663_v62  ;;  %3666 = vmatpush3.bf16.msra.mxu0 %v3663_v62 }
  0x9e   : > { %2583 = vmatmul.mubr.bf16.gmra.mrb[56].mxu1 %v3234_v41  ;;  %v3239_v54 = vcombine.high %v2119_v63, %v2147_v59  ;;  %v3238_v55 = vcombine.low %v2119_v63, %v2147_v59  ;;  %3668 = vmatprep.subr.bf16.mxu0 %v3667_v3 }
  0x9f   : > { %3703 = vmatpush3.bf16.msra.mxu1 %v3663_v62 }
  0xa0   : > { %2590 = vmatprep.mubr.bf16.mxu1 %v3239_v54  ;;  %3696 = vmatprep.subr.bf16.mxu1 %v3667_v3 }
  0xa1   : > { %3670 = vmatpush3.bf16.msra.mxu0 %v3667_v3 }
  0xa2   : > { %3672 = vmatprep.subr.bf16.mxu0 %v3671_v5 }
  0xa3   : > { %2526 = vmatmul.mubr.bf16.gmra.mrb[60].mxu0 %v3236_v46  ;;  %3704 = vmatpush3.bf16.msra.mxu1 %v3667_v3 }
  0xa4   : > { %3697 = vmatprep.subr.bf16.mxu1 %v3671_v5 }
  0xa5   : > { %3674 = vmatpush3.bf16.msra.mxu0 %v3671_v5 }
  0xa6   : > { %2591 = vmatmul.mubr.bf16.gmra.mrb[60].mxu1 %v3238_v55  ;;  %3676 = vmatprep.subr.bf16.mxu0 %v3675_v8 }
  0xa7   : > { %3705 = vmatpush3.bf16.msra.mxu1 %v3671_v5 }
  0xa8   : > { %3698 = vmatprep.subr.bf16.mxu1 %v3675_v8 }
  0xa9   : > { %3678 = vmatpush3.bf16.msra.mxu0 %v3675_v8 }
  0xaa   : > { %3680 = vmatprep.subr.bf16.mxu0 %v3679_v12 }
  0xab   : > { %3706 = vmatpush3.bf16.msra.mxu1 %v3675_v8 }
  0xac   : > { %3699 = vmatprep.subr.bf16.mxu1 %v3679_v12 }
  0xad   : > { %3682 = vmatpush3.bf16.msra.mxu0 %v3679_v12 }
  0xae   : > { %3684 = vmatprep.subr.bf16.mxu0 %v3683_v33 }
  0xaf   : > { %3707 = vmatpush3.bf16.msra.mxu1 %v3679_v12 }
  0xb0   : > { %3700 = vmatprep.subr.bf16.mxu1 %v3683_v33 }
  0xb1   : > { %3686 = vmatpush3.bf16.msra.mxu0 %v3683_v33 }
  0xb2   : > { %3688 = vmatprep.subr.bf16.mxu0 %v3687_v25 }
  0xb3   : > { %3708 = vmatpush3.bf16.msra.mxu1 %v3683_v33 }
  0xb4   : > { %3701 = vmatprep.subr.bf16.mxu1 %v3687_v25 }
  0xb5   : > { %3690 = vmatpush3.bf16.msra.mxu0 %v3687_v25 }
  0xb6   : > { %3692 = vmatprep.subr.bf16.mxu0 %v3691_v24 }
  0xb7   : > { %3709 = vmatpush3.bf16.msra.mxu1 %v3687_v25 }
  0xb8   : > { %3702 = vmatprep.subr.bf16.mxu1 %v3691_v24 }
  0xb9   : > { %3694 = vmatpush3.bf16.msra.mxu0 %v3691_v24 }
  0xbb   : > { %3710 = vmatpush3.bf16.msra.mxu1 %v3691_v24 }
  0xfa   : > { %v3291_v13 = vpop.f32.mrb[0].mxu0 }
  0xfb   : > { %v3292_v14 = vpop.f32.mrb[1].mxu0  ;;  %v3331_v42 = vpop.f32.mrb[0].mxu1 }
  0xfc   : > { %v3293_v32 = vadd.f32 %v3292_v14, %v3291_v13  ;;  %v3294_v15 = vpop.f32.mrb[2].mxu0  ;;  %v3332_v22 = vpop.f32.mrb[1].mxu1 }
  0xfd   : > { %v3295_v17 = vpop.f32.mrb[3].mxu0  ;;  %v3333_v29 = vadd.f32 %v3332_v22, %v3331_v42  ;;  %v3334_v21 = vpop.f32.mrb[2].mxu1 }
  0xfe   : > { %v3296_v19 = vadd.f32 %v3295_v17, %v3294_v15  ;;  %v3335_v43 = vpop.f32.mrb[3].mxu1 }
  0xff   : > { %v4629_v38 = vadd.f32 %v3333_v29, %v3293_v32  ;;  %v3336_v20 = vadd.f32 %v3335_v43, %v3334_v21 }
 0x101   : > { %v4631_v26 = vadd.f32 %v3336_v20, %v3296_v19 }
 0x104   : > { %v3297_v27 = vpop.f32.mrb[4].mxu0 }
 0x105   : > { %v3298_v37 = vpop.f32.mrb[5].mxu0 }
 0x106   : > { %v3299_v45 = vadd.f32 %v3298_v37, %v3297_v27  ;;  %v3300_v35 = vpop.f32.mrb[6].mxu0  ;;  %v3337_v34 = vpop.f32.mrb[4].mxu1 }
 0x107   : > { %v3301_v31 = vpop.f32.mrb[7].mxu0  ;;  %v3338_v56 = vpop.f32.mrb[5].mxu1 }
 0x108   : > { %v3302_v39 = vadd.f32 %v3301_v31, %v3300_v35  ;;  %v3339_v2 = vadd.f32 %v3338_v56, %v3337_v34  ;;  %v3340_v40 = vpop.f32.mrb[6].mxu1 }
 0x109   : > { %v3341_v30 = vpop.f32.mrb[7].mxu1 }
 0x10a   : > { %v976_v47 = vadd.f32 %v3339_v2, %v3299_v45  ;;  %v3342_v58 = vadd.f32 %v3341_v30, %v3340_v40 }
 0x10c   : > { %v979_v41 = vadd.f32 %v3342_v58, %v3302_v39 }
 0x10d   : > { %v3303_v44 = vpop.f32.mrb[8].mxu0 }
 0x10e   : > { %v3304_v48 = vpop.f32.mrb[9].mxu0 }
 0x10f   : > { %v3305_v49 = vadd.f32 %v3304_v48, %v3303_v44  ;;  %v3306_v51 = vpop.f32.mrb[10].mxu0  ;;  %v3343_v53 = vpop.f32.mrb[8].mxu1 }
 0x110   : > { %v3307_v52 = vpop.f32.mrb[11].mxu0  ;;  %v3344_v50 = vpop.f32.mrb[9].mxu1 }
 0x111   : > { %v3308_v46 = vadd.f32 %v3307_v52, %v3306_v51  ;;  %v3345_v59 = vadd.f32 %v3344_v50, %v3343_v53  ;;  %v3346_v63 = vpop.f32.mrb[10].mxu1 }
 0x112   : > { %v3347_v54 = vpop.f32.mrb[11].mxu1 }
 0x113   : > { %v984_v55 = vadd.f32 %v3345_v59, %v3305_v49  ;;  %v3348_v1 = vadd.f32 %v3347_v54, %v3346_v63 }
 0x115   : > { %v987_v61 = vadd.f32 %v3348_v1, %v3308_v46  ;;  %v3309_v62 = vpop.f32.mrb[12].mxu0 }
 0x116   : > { %v3310_v57 = vpop.f32.mrb[13].mxu0 }
 0x117   : > { %v3311_v0 = vadd.f32 %v3310_v57, %v3309_v62  ;;  %v3312_v60 = vpop.f32.mrb[14].mxu0 }
 0x118   : > { %v3313_v3 = vpop.f32.mrb[15].mxu0 }
 0x119   : > { %v3349_v4 = vpop.f32.mrb[12].mxu1  ;;  %v3314_v5 = vadd.f32 %v3313_v3, %v3312_v60 }
 0x11a   : > { %v3350_v6 = vpop.f32.mrb[13].mxu1 }
 0x11b   : > { %v3351_v7 = vadd.f32 %v3350_v6, %v3349_v4  ;;  %v3352_v8 = vpop.f32.mrb[14].mxu1 }
 0x11c   : > { %v3353_v9 = vpop.f32.mrb[15].mxu1 }
 0x11d   : > { %v992_v10 = vadd.f32 %v3351_v7, %v3311_v0  ;;  %v3354_v12 = vadd.f32 %v3353_v9, %v3352_v8  ;;  %v3371_v13 = vpop.f32.mrb[16].mxu0 }
 0x11e   : > { %v3372_v14 = vpop.f32.mrb[17].mxu0 }
 0x11f   : > { %v995_v32 = vadd.f32 %v3354_v12, %v3314_v5  ;;  %v3373_v15 = vadd.f32 %v3372_v14, %v3371_v13  ;;  %v3374_v17 = vpop.f32.mrb[18].mxu0 }
 0x120   : > { %v3375_v11 = vpop.f32.mrb[19].mxu0 }
 0x121   : > { %v3411_v18 = vpop.f32.mrb[16].mxu1  ;;  %v1305_v42 = vadd.f32 %v3373_v15, %v4629_v38  ;;  %v3376_v19 = vadd.f32 %v3375_v11, %v3374_v17 }
 0x122   : > { %v3412_v33 = vpop.f32.mrb[17].mxu1 }
 0x123   : > { %v3413_v22 = vadd.f32 %v3412_v33, %v3411_v18  ;;  %v3414_v29 = vpop.f32.mrb[18].mxu1  ;;  %v1308_v21 = vadd.f32 %v3376_v19, %v4631_v26 }
 0x124   : > { %v3415_v43 = vpop.f32.mrb[19].mxu1 }
 0x125   : > { %v4641_v36 = vadd.f32 %v3413_v22, %v1305_v42  ;;  %v3416_v16 = vadd.f32 %v3415_v43, %v3414_v29  ;;  %v3377_v20 = vpop.f32.mrb[20].mxu0 }
 0x126   : > { %v3378_v25 = vpop.f32.mrb[21].mxu0 }
 0x127   : > { %v4643_v28 = vadd.f32 %v3416_v16, %v1308_v21  ;;  %v3379_v23 = vadd.f32 %v3378_v25, %v3377_v20  ;;  %v3380_v24 = vpop.f32.mrb[22].mxu0 }
 0x128   : > { %v3381_v27 = vpop.f32.mrb[23].mxu0 }
 0x129   : > { %v3417_v37 = vpop.f32.mrb[20].mxu1  ;;  %v1313_v45 = vadd.f32 %v3379_v23, %v976_v47  ;;  %v3382_v38 = vadd.f32 %v3381_v27, %v3380_v24 }
 0x12a   : > { %v3418_v35 = vpop.f32.mrb[21].mxu1 }
 0x12b   : > { %v3419_v31 = vadd.f32 %v3418_v35, %v3417_v37  ;;  %v3420_v34 = vpop.f32.mrb[22].mxu1  ;;  %v1316_v39 = vadd.f32 %v3382_v38, %v979_v41 }
 0x12c   : > { %v3421_v56 = vpop.f32.mrb[23].mxu1 }
 0x12d   : > { %v4645_v26 = vadd.f32 %v3419_v31, %v1313_v45  ;;  %v3422_v2 = vadd.f32 %v3421_v56, %v3420_v34  ;;  %v3383_v40 = vpop.f32.mrb[24].mxu0 }
 0x12e   : > { %v3384_v30 = vpop.f32.mrb[25].mxu0 }
 0x12f   : > { %v4647_v58 = vadd.f32 %v3422_v2, %v1316_v39  ;;  %v3385_v44 = vadd.f32 %v3384_v30, %v3383_v40  ;;  %v3386_v48 = vpop.f32.mrb[26].mxu0 }
 0x130   : > { %v3387_v49 = vpop.f32.mrb[27].mxu0 }
 0x131   : > { %v3423_v51 = vpop.f32.mrb[24].mxu1  ;;  %v1321_v52 = vadd.f32 %v3385_v44, %v984_v55  ;;  %v3388_v53 = vadd.f32 %v3387_v49, %v3386_v48 }
 0x132   : > { %v3424_v47 = vpop.f32.mrb[25].mxu1 }
 0x133   : > { %v3425_v46 = vadd.f32 %v3424_v47, %v3423_v51  ;;  %v3426_v50 = vpop.f32.mrb[26].mxu1  ;;  %v1324_v59 = vadd.f32 %v3388_v53, %v987_v61 }
 0x134   : > { %v3427_v63 = vpop.f32.mrb[27].mxu1 }
 0x135   : > { %v4649_v41 = vadd.f32 %v3425_v46, %v1321_v52  ;;  %v3428_v54 = vadd.f32 %v3427_v63, %v3426_v50  ;;  %v3389_v1 = vpop.f32.mrb[28].mxu0 }
 0x136   : > { %v3390_v62 = vpop.f32.mrb[29].mxu0 }
 0x137   : > { %v4651_v57 = vadd.f32 %v3428_v54, %v1324_v59  ;;  %v3391_v0 = vadd.f32 %v3390_v62, %v3389_v1  ;;  %v3392_v60 = vpop.f32.mrb[30].mxu0 }
 0x138   : > { %v3393_v3 = vpop.f32.mrb[31].mxu0 }
 0x139   : > { %v3429_v4 = vpop.f32.mrb[28].mxu1  ;;  %v1329_v5 = vadd.f32 %v3391_v0, %v992_v10  ;;  %v3394_v6 = vadd.f32 %v3393_v3, %v3392_v60 }
 0x13a   : > { %v3430_v55 = vpop.f32.mrb[29].mxu1 }
 0x13b   : > { %v3431_v7 = vadd.f32 %v3430_v55, %v3429_v4  ;;  %v3432_v8 = vpop.f32.mrb[30].mxu1  ;;  %v1332_v9 = vadd.f32 %v3394_v6, %v995_v32 }
 0x13c   : > { %v3433_v12 = vpop.f32.mrb[31].mxu1 }
 0x13d   : > { %v4653_v61 = vadd.f32 %v3431_v7, %v1329_v5  ;;  %v3434_v13 = vadd.f32 %v3433_v12, %v3432_v8  ;;  %v3451_v14 = vpop.f32.mrb[32].mxu0 }
 0x13e   : > { %v3452_v15 = vpop.f32.mrb[33].mxu0 }
 0x13f   : > { %v1397_v17 = vadd.f32 %v3434_v13, %v1332_v9  ;;  %v3453_v11 = vadd.f32 %v3452_v15, %v3451_v14  ;;  %v3454_v18 = vpop.f32.mrb[34].mxu0 }
 0x140   : > { %v3455_v42 = vpop.f32.mrb[35].mxu0 }
 0x141   : > { %v3491_v19 = vpop.f32.mrb[32].mxu1  ;;  %v3456_v33 = vadd.f32 %v3455_v42, %v3454_v18 }
 0x142   : > { %v3492_v22 = vpop.f32.mrb[33].mxu1 }
 0x143   : > { %v3493_v29 = vadd.f32 %v3492_v22, %v3491_v19  ;;  %v3494_v10 = vpop.f32.mrb[34].mxu1 }
 0x144   : > { %v3495_v21 = vpop.f32.mrb[35].mxu1 }
 0x145   : > { %v1854_v43 = vadd.f32 %v3493_v29, %v3453_v11  ;;  %v3496_v16 = vadd.f32 %v3495_v21, %v3494_v10  ;;  %v3457_v20 = vpop.f32.mrb[36].mxu0 }
 0x146   : > { %v3458_v32 = vpop.f32.mrb[37].mxu0 }
 0x147   : > { %v4656_v25 = vadd.f32 %v1854_v43, %v4641_v36  ;;  %v1857_v23 = vadd.f32 %v3496_v16, %v3456_v33  ;;  %v3459_v24 = vadd.f32 %v3458_v32, %v3457_v20  ;;  %v3460_v27 = vpop.f32.mrb[38].mxu0 }
 0x148   : > { %v3461_v37 = vpop.f32.mrb[39].mxu0 }
 0x149   : > { %v1885_v45 = vadd.f32 %v1857_v23, %v4643_v28  ;;  %v3497_v38 = vpop.f32.mrb[36].mxu1  ;;  %v3462_v35 = vadd.f32 %v3461_v37, %v3460_v27 }
 0x14a   : > { %v3498_v31 = vpop.f32.mrb[37].mxu1 }
 0x14b   : > { %v3499_v34 = vadd.f32 %v3498_v31, %v3497_v38  ;;  %v3500_v39 = vpop.f32.mrb[38].mxu1 }
 0x14c   : > { %v3501_v56 = vpop.f32.mrb[39].mxu1 }
 0x14d   : > { %v1862_v2 = vadd.f32 %v3499_v34, %v3459_v24  ;;  %v3502_v40 = vadd.f32 %v3501_v56, %v3500_v39  ;;  %v3463_v30 = vpop.f32.mrb[40].mxu0 }
 0x14e   : > { %v3464_v44 = vpop.f32.mrb[41].mxu0 }
 0x14f   : > { %v4660_v48 = vadd.f32 %v1862_v2, %v4645_v26  ;;  %v1865_v36 = vadd.f32 %v3502_v40, %v3462_v35  ;;  %v3465_v49 = vadd.f32 %v3464_v44, %v3463_v30  ;;  %v3466_v51 = vpop.f32.mrb[42].mxu0 }
 0x150   : > { %v3467_v52 = vpop.f32.mrb[43].mxu0 }
 0x151   : > { %v4663_v53 = vadd.f32 %v1865_v36, %v4647_v58  ;;  %v3503_v28 = vpop.f32.mrb[40].mxu1  ;;  %v3468_v47 = vadd.f32 %v3467_v52, %v3466_v51 }
 0x152   : > { %v3504_v46 = vpop.f32.mrb[41].mxu1 }
 0x153   : > { %v3505_v50 = vadd.f32 %v3504_v46, %v3503_v28  ;;  %v3506_v59 = vpop.f32.mrb[42].mxu1 }
 0x154   : > { %v3507_v63 = vpop.f32.mrb[43].mxu1 }
 0x155   : > { %v1870_v54 = vadd.f32 %v3505_v50, %v3465_v49  ;;  %v3508_v1 = vadd.f32 %v3507_v63, %v3506_v59  ;;  %v3469_v62 = vpop.f32.mrb[44].mxu0 }
 0x156   : > { %v3470_v0 = vpop.f32.mrb[45].mxu0 }
 0x157   : > { %v4666_v26 = vadd.f32 %v1870_v54, %v4649_v41  ;;  %v1873_v60 = vadd.f32 %v3508_v1, %v3468_v47  ;;  %v3471_v3 = vadd.f32 %v3470_v0, %v3469_v62  ;;  %v3472_v4 = vpop.f32.mrb[46].mxu0 }
 0x158   : > { %v3473_v5 = vpop.f32.mrb[47].mxu0 }
 0x159   : > { %v4669_v58 = vadd.f32 %v1873_v60, %v4651_v57  ;;  %v3509_v6 = vpop.f32.mrb[44].mxu1  ;;  %v3474_v55 = vadd.f32 %v3473_v5, %v3472_v4 }
 0x15a   : > { %v3510_v7 = vpop.f32.mrb[45].mxu1 }
 0x15b   : > { %v3511_v8 = vadd.f32 %v3510_v7, %v3509_v6  ;;  %v3512_v9 = vpop.f32.mrb[46].mxu1 }
 0x15c   : > { %v3513_v12 = vpop.f32.mrb[47].mxu1 }
 0x15d   : > { %v1878_v13 = vadd.f32 %v3511_v8, %v3471_v3  ;;  %v3514_v14 = vadd.f32 %v3513_v12, %v3512_v9  ;;  %v3531_v18 = vpop.f32.mrb[48].mxu0 }
 0x15e   : > { %v3532_v42 = vpop.f32.mrb[49].mxu0 }
 0x15f   : > { %v4672_v15 = vadd.f32 %v1878_v13, %v4653_v61  ;;  %v1881_v41 = vadd.f32 %v3514_v14, %v3474_v55  ;;  %v3533_v19 = vadd.f32 %v3532_v42, %v3531_v18  ;;  %v3534_v33 = vpop.f32.mrb[50].mxu0  ;;  %v4679_v61 = vld [vmem:[%s4708_s2] ss:$0 sm:$0xff] }
 0x160   : > { %v3535_v57 = vpop.f32.mrb[51].mxu0 }
 0x161   : > { %v4674_v11 = vadd.f32 %v1881_v41, %v1397_v17  ;;  %v3571_v22 = vpop.f32.mrb[48].mxu1  ;;  %v3536_v29 = vadd.f32 %v3535_v57, %v3534_v33 }
 0x162   : > { %v3572_v10 = vpop.f32.mrb[49].mxu1 }
 0x163   : > { %v3573_v21 = vadd.f32 %v3572_v10, %v3571_v22  ;;  %v3574_v43 = vpop.f32.mrb[50].mxu1 }
 0x164   : > { %v3575_v16 = vpop.f32.mrb[51].mxu1 }
 0x165   : > { %v2569_v20 = vadd.f32 %v3573_v21, %v3533_v19  ;;  %v3576_v32 = vadd.f32 %v3575_v16, %v3574_v43 }
 0x166   : > { %v3537_v24 = vpop.f32.mrb[52].mxu0 }
 0x167   : > { %v2599_v17 = vadd.f32 %v2569_v20, %v4656_v25  ;;  %v2572_v23 = vadd.f32 %v3576_v32, %v3536_v29  ;;  %v3538_v27 = vpop.f32.mrb[53].mxu0 }
 0x168   : > { %v3539_v38 = vadd.f32 %v3538_v27, %v3537_v24  ;;  %v3540_v35 = vpop.f32.mrb[54].mxu0 }
 0x169   : > { %v2600_v37 = vadd.f32 %v2572_v23, %v1885_v45  ;;  %v2614_v31 = vadd.f32 %v4679_v61, %v2599_v17  ;;  %v3541_v34 = vpop.f32.mrb[55].mxu0  ;;  %v3577_v40 = vpop.f32.mrb[52].mxu1 }
 0x16a   : > { %v3542_v56 = vadd.f32 %v3541_v34, %v3540_v35  ;;  %v3578_v44 = vpop.f32.mrb[53].mxu1 }
 0x16b   : > { %v2615_v39 = vadd.f32 %v4679_v61, %v2600_v37  ;;  %v2622_v2 = vmul.f32 0.2, %v2614_v31  ;;  %v3579_v49 = vadd.f32 %v3578_v44, %v3577_v40  ;;  %v3580_v51 = vpop.f32.mrb[54].mxu1 }
 0x16c   : > { %v3581_v52 = vpop.f32.mrb[55].mxu1 }
 0x16d   : > { %v2623_v30 = vmul.f32 0.2, %v2615_v39  ;;  %v2630_v36 = vmax.f32 %v2614_v31, %v2622_v2  ;;  %v2577_v28 = vadd.f32 %v3579_v49, %v3539_v38  ;;  %v3582_v45 = vadd.f32 %v3581_v52, %v3580_v51 }
 0x16e   : > { %v3543_v47 = vpop.f32.mrb[56].mxu0 }
 0x16f   : > { %v2631_v25 = vmax.f32 %v2615_v39, %v2623_v30  ;;  %3651 = vmatprep.mubr.f32.mxu0 %v2630_v36  ;;  %v2601_v46 = vadd.f32 %v2577_v28, %v4660_v48  ;;  %v2580_v50 = vadd.f32 %v3582_v45, %v3542_v56  ;;  %v3544_v59 = vpop.f32.mrb[57].mxu0 }
 0x170   : > { %v3545_v63 = vadd.f32 %v3544_v59, %v3543_v47  ;;  %v3546_v54 = vpop.f32.mrb[58].mxu0 }
 0x171   : > { %3652 = vmatmul.mubr.f32.vlgmr.msra.gmra.mrb[64].mxu0 %v2631_v25  ;;  %v2602_v1 = vadd.f32 %v2580_v50, %v4663_v53  ;;  %v3547_v62 = vpop.f32.mrb[59].mxu0  ;;  %v2616_v0 = vadd.f32 %v4679_v61, %v2601_v46  ;;  %v3583_v3 = vpop.f32.mrb[56].mxu1 }
 0x172   : > { %v3548_v60 = vadd.f32 %v3547_v62, %v3546_v54  ;;  %v3584_v6 = vpop.f32.mrb[57].mxu1  ;;  %v2775_v62 = vlaneseq }
 0x173   : > { %v2624_v4 = vmul.f32 0.2, %v2616_v0  ;;  %v2617_v5 = vadd.f32 %v4679_v61, %v2602_v1  ;;  %v3585_v55 = vadd.f32 %v3584_v6, %v3583_v3  ;;  %v3586_v7 = vpop.f32.mrb[58].mxu1 }
 0x174   : > { %v3587_v48 = vpop.f32.mrb[59].mxu1  ;;  %v2776_v3 = vshrl.u32 %v2775_v62, 7 }
 0x175   : > { %v2632_v8 = vmax.f32 %v2616_v0, %v2624_v4  ;;  %v2625_v9 = vmul.f32 0.2, %v2617_v5  ;;  %v2585_v13 = vadd.f32 %v3585_v55, %v3545_v63  ;;  %v3588_v14 = vadd.f32 %v3587_v48, %v3586_v7 }
 0x176   : > { %v3549_v12 = vpop.f32.mrb[60].mxu0  ;;  %v2777_v55 = vsub.s32 0, %v2776_v3 }
 0x177   : > { %3654 = vmatprep.mubr.f32.mxu0 %v2632_v8  ;;  %v2633_v41 = vmax.f32 %v2617_v5, %v2625_v9  ;;  %v3550_v53 = vpop.f32.mrb[61].mxu0  ;;  %v2603_v19 = vadd.f32 %v2585_v13, %v4666_v26  ;;  %v2588_v33 = vadd.f32 %v3588_v14, %v3548_v60  ;;  %v2773_v5 = vld [vmem:[%s4710_s4] sm:$0x1] }
 0x178   : > { %v3551_v18 = vadd.f32 %v3550_v53, %v3549_v12  ;;  %v3552_v42 = vpop.f32.mrb[62].mxu0 }
 0x179   : > { %3655 = vmatmul.mubr.f32.gmra.mrb[66].mxu0 %v2633_v41  ;;  %v3553_v57 = vpop.f32.mrb[63].mxu0  ;;  %v2604_v29 = vadd.f32 %v2588_v33, %v4669_v58  ;;  %v3589_v10 = vpop.f32.mrb[60].mxu1  ;;  %v2618_v21 = vadd.f32 %v4679_v61, %v2603_v19 }
 0x17a   : > { %v3554_v22 = vadd.f32 %v3553_v57, %v3552_v42  ;;  %v3590_v43 = vpop.f32.mrb[61].mxu1 }
 0x17b   : > { %v2619_v16 = vadd.f32 %v4679_v61, %v2604_v29  ;;  %v3591_v20 = vadd.f32 %v3590_v43, %v3589_v10  ;;  %v3592_v32 = vpop.f32.mrb[62].mxu1  ;;  %v2626_v17 = vmul.f32 0.2, %v2618_v21 }
 0x17c   : > { %v3593_v23 = vpop.f32.mrb[63].mxu1 }
 0x17d   : > { %v2627_v24 = vmul.f32 0.2, %v2619_v16  ;;  %v2593_v27 = vadd.f32 %v3591_v20, %v3551_v18  ;;  %v3594_v37 = vadd.f32 %v3593_v23, %v3592_v32  ;;  %v2634_v26 = vmax.f32 %v2618_v21, %v2626_v17 }
 0x17f   : > { %v2635_v38 = vmax.f32 %v2619_v16, %v2627_v24  ;;  %v2605_v35 = vadd.f32 %v2593_v27, %v4672_v15  ;;  %v2596_v31 = vadd.f32 %v3594_v37, %v3554_v22  ;;  %3657 = vmatprep.mubr.f32.mxu1 %v2634_v26 }
 0x181   : > { %v2606_v58 = vadd.f32 %v2596_v31, %v4674_v11  ;;  %3658 = vmatmul.mubr.f32.vlgmr.msra.gmra.mrb[64].mxu1 %v2635_v38  ;;  %v2620_v34 = vadd.f32 %v4679_v61, %v2605_v35 }
 0x183   : > { %v2628_v39 = vmul.f32 0.2, %v2620_v34  ;;  %v2621_v56 = vadd.f32 %v4679_v61, %v2606_v58 }
 0x185   : > { %v2636_v2 = vmax.f32 %v2620_v34, %v2628_v39  ;;  %v2629_v40 = vmul.f32 0.2, %v2621_v56 }
 0x187   : > { %3660 = vmatprep.mubr.f32.mxu1 %v2636_v2  ;;  %v2637_v30 = vmax.f32 %v2621_v56, %v2629_v40 }
 0x189   : > { %3661 = vmatmul.mubr.f32.gmra.mrb[66].mxu1 %v2637_v30 }
 0x244   : > { %v3653_v44 = vpop.f32.mrb[64].mxu0 }
 0x245   : > { %v2720_v36 = vpop.f32.mrb[65].mxu0 }
 0x246   : > { %v2759_v49 = vadd.f32 %v3653_v44, %v2720_v36 }
 0x24c   : > { %v3656_v51 = vpop.f32.mrb[66].mxu0 }
 0x24d   : > { %v2730_v15 = vpop.f32.mrb[67].mxu0 }
 0x24e   : > { %v2760_v25 = vadd.f32 %v2759_v49, %v2730_v15 }
 0x250   : > { %v2761_v52 = vadd.f32 %v3656_v51, %v2760_v25 }
 0x254   : > { %v3659_v28 = vpop.f32.mrb[64].mxu1 }
 0x255   : > { %v2740_v11 = vpop.f32.mrb[65].mxu1 }
 0x256   : > { %v2762_v45 = vadd.f32 %v2761_v52, %v2740_v11 }
 0x258   : > { %v2763_v47 = vadd.f32 %v3659_v28, %v2762_v45 }
 0x25c   : > { %v3662_v46 = vpop.f32.mrb[66].mxu1 }
 0x25d   : > { %v2750_v50 = vpop.f32.mrb[67].mxu1 }
 0x25e   : > { %v2764_v61 = vadd.f32 %v2763_v47, %v2750_v50 }
 0x260   : > { %v2765_v59 = vadd.f32 %v3662_v46, %v2764_v61 }
 0x262   : > { %v2766_v63 = vrot.slane %v2765_v59, 4 }
 0x264   : > { %v2767_v54 = vadd.f32 %v2766_v63, %v2765_v59 }
 0x266   : > { %v2768_v1 = vrot.slane %v2767_v54, 2 }
 0x268   : > { %v2769_v0 = vadd.f32 %v2768_v1, %v2767_v54 }
 0x26a   : > { %v2770_v60 = vrot.slane %v2769_v0, 1 }
 0x26c   : > { %v2771_v4 = vadd.f32 %v2770_v60, %v2769_v0 }
 0x26e   : > { %v2772_v6 = vmul.f32 0.015625, %v2771_v4 }
 0x270   : > { %v2774_v7 = vadd.f32 %v2773_v5, %v2772_v6 }
 0x272   : > { %v2778_v8 = vrot.slane %v2774_v7, %v2777_v55 }
 0x274   : > { %2779 = vst [vmem:[%s222_s28] sm:$0xff] %v2778_v8 }
 0x275 PF: > { %s15_s18 = sadd.s32 1, %s3854_s18  }
 0x276   : > { %p12_p4 = scmp.ge.s32.totalorder %s15_s18, 4  }
 0x278   :  { %14 = sbr.rel (!%p12_p4) target bundleno = 1 (0x1), region = 74 }

</bundles_post_ra>
